<compile_context>
chip_gen: v7x
topology: tpu7x:2x2x1
jax: 0.10.0
libtpu: 0.0.40
codegen_flags: <defaults>
</compile_context>

<pallas_src>
import math
import functools

import jax
import jax.numpy as jnp
from jax import lax
from jax.experimental import pallas as pl
from jax.experimental.pallas import tpu as pltpu


# ------------------------------ Pallas kernel ------------------------------
def _deform_attn_kernel(lidar_ref, img_ref, mask_ref,
                        wq_ref, wkv_ref, wo_ref, b_ref,
                        o_ref, s_scr, v_scr, *, num_heads):
    K, C, bn = img_ref.shape
    E = wq_ref.shape[0]
    H = num_heads
    D = E // H
    f32 = jnp.float32

    b = b_ref[...]                         # (E, 4) f32 : columns [bq, bk, bv, bo]
    bq = b[:, 0:1]
    bk = b[:, 1:2]
    bv = b[:, 2:3]
    bo = b[:, 3:4]

    # fused + pre-scaled (query_proj ∘ MHA q-in-proj), tokens on lanes: (E, bn) f32
    q_t = jnp.dot(wq_ref[...], lidar_ref[...], preferred_element_type=f32) + bq

    wkv = wkv_ref[...]                     # (2E, C) bf16, stacked [wk; wv]

    # ---- pass 1: one 2E-row MXU matmul per sampled feature; scores + running max; stash values ----
    def pass1(j, m):
        feat = img_ref[j]                                              # (C, bn) bf16
        kv = jnp.dot(wkv, feat, preferred_element_type=f32)            # (2E, bn) f32
        k_t = kv[:E] + bk
        v_scr[j] = kv[E:] + bv                                         # VMEM stash for pass 2
        # per-head score = XLU sublane reduction over each head's D features (no seg-matrix matmul)
        s_j = jnp.sum((q_t * k_t).reshape(H, D, bn), axis=1)
        s_j = s_j + mask_ref[pl.ds(j, 1), :]                           # additive key-padding mask
        s_scr[j] = s_j
        return jnp.maximum(m, s_j)

    m = lax.fori_loop(0, K, pass1, jnp.full((H, bn), -jnp.inf, f32), unroll=True)

    # ---- pass 2: stable softmax weights (EUP exp) + pure-VPU weighted sum of stashed values ----
    def pass2(j, carry):
        denom, acc = carry
        p = jnp.exp(s_scr[j] - m)                                      # (H, bn)
        p_full = jnp.broadcast_to(p[:, None, :], (H, D, bn)).reshape(E, bn)   # head -> lane rows
        return denom + p, acc + p_full * v_scr[j]

    denom, acc = lax.fori_loop(
        0, K, pass2,
        (jnp.zeros((H, bn), f32), jnp.zeros((E, bn), f32)),
        unroll=True)

    inv = pl.reciprocal(denom, approx=True)                            # (H, bn), EUP
    inv_full = jnp.broadcast_to(inv[:, None, :], (H, D, bn)).reshape(E, bn)
    ctx = (acc * inv_full).astype(jnp.bfloat16)                        # (E, bn)

    # fused (MHA out_proj ∘ output_proj)
    out_t = jnp.dot(wo_ref[...], ctx, preferred_element_type=f32) + bo
    o_ref[...] = out_t.astype(o_ref.dtype)


# ------------------------------ wrapper ------------------------------
def _default_block_cols(n):
    """Generation-aware lane-tile width: 512 on single-TC chips (v5e/v6e); keep >=4 grid steps on
    v7x so the 'parallel' token axis gives both TensorCores pipelined work."""
    kind = ""
    try:
        kind = jax.devices()[0].device_kind.lower()
    except Exception:
        pass
    if "v7" in kind:
        return min(512, max(128, (n // 4 // 128) * 128))
    return 512


def deformable_attention(params, sampled_img_features, lidar_features, masks=None,
                         *, num_heads, upcast=True, block_cols=None):
    """Forward pass of the torch DeformableAttention module.

    sampled_img_features: (N, K, C); lidar_features: (N, C); masks: optional bool (N, K), True=ignore.
    returns: (N, out_channels) float32
    """
    N, K, C = sampled_img_features.shape
    E = params['q_w'].shape[0]
    scale = 1.0 / math.sqrt(E // num_heads)
    f32, bf16 = jnp.float32, jnp.bfloat16
    hp = lax.Precision.HIGHEST

    if upcast:
        lidar_features = lidar_features.astype(f32)
        sampled_img_features = sampled_img_features.astype(f32)

    # Fold (x @ A^T + a) @ B^T + b == x @ (B A)^T + (B a + b): exact affine composition of each
    # per-stream Linear with the MHA in-projection, and of MHA out_proj with output_proj.
    wq_m, wk_m, wv_m = jnp.split(params['mha_in_w'], 3, axis=0)
    bq_m, bk_m, bv_m = jnp.split(params['mha_in_b'], 3)
    mm = functools.partial(jnp.matmul, precision=hp)
    wq_t = mm(wq_m, params['q_w']) * scale                       # softmax scale folded into q
    bq_t = (mm(wq_m, params['q_b']) + bq_m) * scale
    wk_t = mm(wk_m, params['k_w'])
    bk_t = mm(wk_m, params['k_b']) + bk_m
    wv_t = mm(wv_m, params['v_w'])
    bv_t = mm(wv_m, params['v_b']) + bv_m
    wkv_t = jnp.concatenate([wk_t, wv_t], axis=0)                # (2E, C): one 2E-row MXU pass
    wo_t = mm(params['out_w'], params['mha_out_w'])              # (E, E)
    bo_t = mm(params['out_w'], params['mha_out_b']) + params['out_b']
    biases = jnp.stack([bq_t, bk_t, bv_t, bo_t], axis=1).astype(f32)   # (E, 4)

    # bf16 for every MXU operand / dominant HBM stream (cast BEFORE the relayout transposes).
    wq_t, wkv_t, wo_t = wq_t.astype(bf16), wkv_t.astype(bf16), wo_t.astype(bf16)
    lidar_t = lidar_features.astype(bf16).T                              # (C, N)
    img_t = jnp.transpose(sampled_img_features.astype(bf16), (1, 2, 0))  # (K, C, N)
    if masks is None:
        mask_t = jnp.zeros((K, N), f32)
    else:
        mask_t = jnp.where(masks, -1e30, 0.0).astype(f32).T              # (K, N) additive

    # cdiv-safe lane tiling: bn is a multiple of 128, token axis padded up to a bn multiple.
    bn = block_cols if block_cols is not None else _default_block_cols(N)
    bn = min(bn, N)
    if N > 128:
        bn = max(128, (bn // 128) * 128)
    n_pad = int(pl.cdiv(N, bn)) * bn
    if n_pad != N:
        pad = n_pad - N
        lidar_t = jnp.pad(lidar_t, ((0, 0), (0, pad)))
        img_t = jnp.pad(img_t, ((0, 0), (0, 0), (0, pad)))
        mask_t = jnp.pad(mask_t, ((0, 0), (0, pad)))
    grid = (n_pad // bn,)

    kernel = functools.partial(_deform_attn_kernel, num_heads=num_heads)
    out_t = pl.pallas_call(
        kernel,
        out_shape=jax.ShapeDtypeStruct((E, n_pad), f32),
        grid=grid,
        in_specs=[
            pl.BlockSpec((C, bn), lambda i: (0, i)),            # lidar queries (tokens on lanes)
            pl.BlockSpec((K, C, bn), lambda i: (0, 0, i)),      # sampled image features
            pl.BlockSpec((K, bn), lambda i: (0, i)),            # additive key-padding mask
            pl.BlockSpec((E, C), lambda i: (0, 0)),             # fused q weight (scale folded in)
            pl.BlockSpec((2 * E, C), lambda i: (0, 0)),         # stacked fused k/v weight
            pl.BlockSpec((E, E), lambda i: (0, 0)),             # fused output weight
            pl.BlockSpec((E, 4), lambda i: (0, 0)),             # stacked biases [bq bk bv bo]
        ],
        out_specs=pl.BlockSpec((E, bn), lambda i: (0, i)),
        scratch_shapes=[
            pltpu.VMEM((K, num_heads, bn), f32),                # per-sample head scores
            pltpu.VMEM((K, E, bn), f32),                        # stashed value projections
        ],
        compiler_params=pltpu.CompilerParams(dimension_semantics=("parallel",)),
    )(lidar_t, img_t, mask_t, wq_t, wkv_t, wo_t, biases)
    return out_t[:, :N].T                                       # (N, E) float32


# ------------------------------ pure-JAX reference (torch semantics) ------------------------------
def deformable_attention_reference(params, sampled_img_features, lidar_features, masks, num_heads):
    N, K, C = sampled_img_features.shape
    E = params['q_w'].shape[0]
    D = E // num_heads
    hp = lax.Precision.HIGHEST
    img = sampled_img_features.astype(jnp.float32)
    lidar = lidar_features.astype(jnp.float32)
    mm = functools.partial(jnp.matmul, precision=hp)
    q = mm(lidar, params['q_w'].T) + params['q_b']
    k = mm(img, params['k_w'].T) + params['k_b']
    v = mm(img, params['v_w'].T) + params['v_b']
    wq_m, wk_m, wv_m = jnp.split(params['mha_in_w'], 3, axis=0)
    bq_m, bk_m, bv_m = jnp.split(params['mha_in_b'], 3)
    q2 = mm(q, wq_m.T) + bq_m
    k2 = mm(k, wk_m.T) + bk_m
    v2 = mm(v, wv_m.T) + bv_m
    qh = q2.reshape(N, num_heads, D)
    kh = k2.reshape(N, K, num_heads, D)
    vh = v2.reshape(N, K, num_heads, D)
    s = jnp.einsum('nhd,nkhd->nhk', qh, kh, precision=hp) / math.sqrt(D)
    if masks is not None:
        s = s + jnp.where(masks, -jnp.inf, 0.0)[:, None, :]
    p = jax.nn.softmax(s, axis=-1)
    ctx = jnp.einsum('nhk,nkhd->nhd', p, vh, precision=hp).reshape(N, E)
    out = mm(ctx, params['mha_out_w'].T) + params['mha_out_b']
    out = mm(out, params['out_w'].T) + params['out_b']
    return out


# ------------------------------ deterministic parameter init ------------------------------
def init_params(key, in_channels, out_channels):
    C, E = in_channels, out_channels
    ks = jax.random.split(key, 10)

    def xavier(k, shape):
        fan_out, fan_in = shape            # torch Linear weight layout: (out, in)
        bound = math.sqrt(6.0 / (fan_in + fan_out))
        return jax.random.uniform(k, shape, jnp.float32, -bound, bound)

    def linear_bias(k, fan_in, n):
        bound = 1.0 / math.sqrt(fan_in)
        return jax.random.uniform(k, (n,), jnp.float32, -bound, bound)

    return dict(
        q_w=xavier(ks[0], (E, C)), q_b=linear_bias(ks[1], C, E),
        k_w=xavier(ks[2], (E, C)), k_b=linear_bias(ks[3], C, E),
        v_w=xavier(ks[4], (E, C)), v_b=linear_bias(ks[5], C, E),
        mha_in_w=xavier(ks[6], (3 * E, E)),            # torch MHA: xavier_uniform_, zero biases
        mha_in_b=jnp.zeros((3 * E,), jnp.float32),
        mha_out_w=xavier(ks[7], (E, E)),
        mha_out_b=jnp.zeros((E,), jnp.float32),
        out_w=xavier(ks[8], (E, E)), out_b=linear_bias(ks[9], E, E),
    )


# ------------------------------ main ------------------------------
if __name__ == "__main__":
    key = jax.random.PRNGKey(0)
    kp, ki, kl, km = jax.random.split(key, 4)

    # small, lane/MXU-aligned shapes: N lidar/BEV queries, K sampled image features each
    N, K, C, E, H = 512, 8, 128, 128, 8
    params = init_params(kp, C, E)
    sampled_img_features = jax.random.normal(ki, (N, K, C), jnp.float32)
    lidar_features = jax.random.normal(kl, (N, C), jnp.float32)

    # --- test 1: no mask, multi-step token grid ---
    fwd = jax.jit(functools.partial(deformable_attention, num_heads=H, block_cols=256))
    out = fwd(params, sampled_img_features, lidar_features)
    jax.block_until_ready(out)
    ref = deformable_attention_reference(params, sampled_img_features, lidar_features, None, H)
    err = float(jnp.max(jnp.abs(out - ref)))
    tol = 5e-2 * (1.0 + float(jnp.max(jnp.abs(ref))))          # bf16-MXU-operand tolerance
    if not (err <= tol):
        raise AssertionError(f"Pallas kernel mismatch (no mask): {err:.4f} > tol {tol:.4f}")

    # --- test 2: key-padding mask + token count not a multiple of 128 (cdiv/pad path) ---
    N2 = 200
    img2 = jax.random.normal(ki, (N2, K, C), jnp.float32)
    lidar2 = jax.random.normal(kl, (N2, C), jnp.float32)
    masks2 = jax.random.bernoulli(km, 0.3, (N2, K))
    masks2 = masks2.at[:, 0].set(False)    # avoid the fully-masked degenerate row (torch -> NaN)
    fwd2 = jax.jit(functools.partial(deformable_attention, num_heads=H))
    out2 = fwd2(params, img2, lidar2, masks2)
    jax.block_until_ready(out2)
    ref2 = deformable_attention_reference(params, img2, lidar2, masks2, H)
    err2 = float(jnp.max(jnp.abs(out2 - ref2)))
    tol2 = 5e-2 * (1.0 + float(jnp.max(jnp.abs(ref2))))
    if not (err2 <= tol2):
        raise AssertionError(f"Pallas kernel mismatch (masked/padded): {err2:.4f} > tol {tol2:.4f}")

    print("KERNEL_OK")
</pallas_src>

<mosaic_0001>
module attributes {stable_mosaic.version = 11 : i64} {
  func.func @_deform_attn_kernel(%arg0: i32, %arg1: memref<128x256xbf16, #tpu.memory_space<vmem>>, %arg2: memref<8x128x256xbf16, #tpu.memory_space<vmem>>, %arg3: memref<8x256xf32, #tpu.memory_space<vmem>>, %arg4: memref<128x128xbf16, #tpu.memory_space<vmem>>, %arg5: memref<256x128xbf16, #tpu.memory_space<vmem>>, %arg6: memref<128x128xbf16, #tpu.memory_space<vmem>>, %arg7: memref<128x4xf32, #tpu.memory_space<vmem>>, %arg8: memref<128x256xf32, #tpu.memory_space<vmem>>, %arg9: memref<8x8x256xf32, #tpu.memory_space<vmem>>, %arg10: memref<8x128x256xf32, #tpu.memory_space<vmem>>) attributes {dimension_semantics = [#tpu.dimension_semantics<parallel>], iteration_bounds = array<i64: 2>, scalar_prefetch = 0 : i64, scratch_operands = 2 : i64, tpu.core_type = #tpu.core_type<tc>, window_params = [{transform_indices = @transform_0, window_bounds = array<i64: 128, 256>}, {transform_indices = @transform_1, window_bounds = array<i64: 8, 128, 256>}, {transform_indices = @transform_2, window_bounds = array<i64: 8, 256>}, {pipeline_mode = #tpu.pipeline_mode<synchronous>, transform_indices = @transform_3, window_bounds = array<i64: 128, 128>}, {pipeline_mode = #tpu.pipeline_mode<synchronous>, transform_indices = @transform_4, window_bounds = array<i64: 256, 128>}, {pipeline_mode = #tpu.pipeline_mode<synchronous>, transform_indices = @transform_5, window_bounds = array<i64: 128, 128>}, {pipeline_mode = #tpu.pipeline_mode<synchronous>, transform_indices = @transform_6, window_bounds = array<i64: 128, 4>}, {transform_indices = @transform_7, window_bounds = array<i64: 128, 256>}]} {
    %c0 = arith.constant 0 : index
    %c0_0 = arith.constant 0 : index
    %0 = vector.load %arg7[%c0, %c0_0] : memref<128x4xf32, #tpu.memory_space<vmem>>, vector<128x4xf32>
    %1 = vector.extract_strided_slice %0 {offsets = [0, 0], sizes = [128, 1], strides = [1, 1]} : vector<128x4xf32> to vector<128x1xf32>
    %2 = vector.extract_strided_slice %0 {offsets = [0, 1], sizes = [128, 1], strides = [1, 1]} : vector<128x4xf32> to vector<128x1xf32>
    %3 = vector.extract_strided_slice %0 {offsets = [0, 2], sizes = [128, 1], strides = [1, 1]} : vector<128x4xf32> to vector<128x1xf32>
    %4 = vector.extract_strided_slice %0 {offsets = [0, 3], sizes = [128, 1], strides = [1, 1]} : vector<128x4xf32> to vector<128x1xf32>
    %c0_1 = arith.constant 0 : index
    %c0_2 = arith.constant 0 : index
    %5 = vector.load %arg4[%c0_1, %c0_2] : memref<128x128xbf16, #tpu.memory_space<vmem>>, vector<128x128xbf16>
    %c0_3 = arith.constant 0 : index
    %c0_4 = arith.constant 0 : index
    %6 = vector.load %arg1[%c0_3, %c0_4] : memref<128x256xbf16, #tpu.memory_space<vmem>>, vector<128x256xbf16>
    %cst = arith.constant dense<0.000000e+00> : vector<128x256xf32>
    %7 = tpu.matmul %5, %6, %cst {dimension_numbers = #tpu.dot_dimension_numbers<[1], [0], [0], [1], [0, 0, 1, 1], [], []>} : vector<128x128xbf16>, vector<128x256xbf16>, vector<128x256xf32> -> vector<128x256xf32>
    %8 = vector.broadcast %1 : vector<128x1xf32> to vector<128x256xf32>
    %9 = arith.addf %7, %8 : vector<128x256xf32>
    %c0_5 = arith.constant 0 : index
    %c0_6 = arith.constant 0 : index
    %10 = vector.load %arg5[%c0_5, %c0_6] : memref<256x128xbf16, #tpu.memory_space<vmem>>, vector<256x128xbf16>
    %cst_7 = arith.constant 0xFF800000 : f32
    %11 = vector.broadcast %cst_7 : f32 to vector<8x256xf32>
    %c0_i32 = arith.constant 0 : i32
    %12 = arith.index_cast %c0_i32 : i32 to index
    %c0_8 = arith.constant 0 : index
    %c0_9 = arith.constant 0 : index
    %13 = vector.load %arg2[%12, %c0_8, %c0_9] : memref<8x128x256xbf16, #tpu.memory_space<vmem>>, vector<1x128x256xbf16>
    %14 = vector.shape_cast %13 : vector<1x128x256xbf16> to vector<128x256xbf16>
    %cst_10 = arith.constant dense<0.000000e+00> : vector<256x256xf32>
    %15 = tpu.matmul %10, %14, %cst_10 {dimension_numbers = #tpu.dot_dimension_numbers<[1], [0], [0], [1], [0, 0, 1, 1], [], []>} : vector<256x128xbf16>, vector<128x256xbf16>, vector<256x256xf32> -> vector<256x256xf32>
    %16 = vector.extract_strided_slice %15 {offsets = [0, 0], sizes = [128, 256], strides = [1, 1]} : vector<256x256xf32> to vector<128x256xf32>
    %17 = vector.broadcast %2 : vector<128x1xf32> to vector<128x256xf32>
    %18 = arith.addf %16, %17 : vector<128x256xf32>
    %19 = vector.extract_strided_slice %15 {offsets = [128, 0], sizes = [128, 256], strides = [1, 1]} : vector<256x256xf32> to vector<128x256xf32>
    %20 = vector.broadcast %3 : vector<128x1xf32> to vector<128x256xf32>
    %21 = arith.addf %19, %20 : vector<128x256xf32>
    %22 = arith.index_cast %c0_i32 : i32 to index
    %c0_11 = arith.constant 0 : index
    %c0_12 = arith.constant 0 : index
    %23 = vector.load %arg10[%22, %c0_11, %c0_12] : memref<8x128x256xf32, #tpu.memory_space<vmem>>, vector<1x128x256xf32>
    %24 = vector.shape_cast %23 : vector<1x128x256xf32> to vector<128x256xf32>
    %25 = vector.shape_cast %21 : vector<128x256xf32> to vector<1x128x256xf32>
    tpu.vector_store %arg10[%22, %c0_11, %c0_12], %25 {strides = array<i32>} : memref<8x128x256xf32, #tpu.memory_space<vmem>>, vector<1x128x256xf32>,
    %26 = arith.mulf %9, %18 : vector<128x256xf32>
    %27 = vector.shape_cast %26 : vector<128x256xf32> to vector<8x16x256xf32>
    %cst_13 = arith.constant dense<0.000000e+00> : vector<8x256xf32>
    %28 = vector.multi_reduction <add>, %27, %cst_13 [1] : vector<8x16x256xf32> to vector<8x256xf32>
    %29 = arith.index_cast %c0_i32 : i32 to index
    %c0_14 = arith.constant 0 : index
    %30 = vector.load %arg3[%29, %c0_14] : memref<8x256xf32, #tpu.memory_space<vmem>>, vector<1x256xf32>
    %31 = vector.broadcast %30 : vector<1x256xf32> to vector<8x256xf32>
    %32 = arith.addf %28, %31 : vector<8x256xf32>
    %33 = arith.index_cast %c0_i32 : i32 to index
    %c0_15 = arith.constant 0 : index
    %c0_16 = arith.constant 0 : index
    %34 = vector.load %arg9[%33, %c0_15, %c0_16] : memref<8x8x256xf32, #tpu.memory_space<vmem>>, vector<1x8x256xf32>
    %35 = vector.shape_cast %34 : vector<1x8x256xf32> to vector<8x256xf32>
    %36 = vector.shape_cast %32 : vector<8x256xf32> to vector<1x8x256xf32>
    tpu.vector_store %arg9[%33, %c0_15, %c0_16], %36 {strides = array<i32>} : memref<8x8x256xf32, #tpu.memory_space<vmem>>, vector<1x8x256xf32>,
    %37 = arith.maximumf %11, %32 : vector<8x256xf32>
    %c1_i32 = arith.constant 1 : i32
    %38 = arith.index_cast %c1_i32 : i32 to index
    %c0_17 = arith.constant 0 : index
    %c0_18 = arith.constant 0 : index
    %39 = vector.load %arg2[%38, %c0_17, %c0_18] : memref<8x128x256xbf16, #tpu.memory_space<vmem>>, vector<1x128x256xbf16>
    %40 = vector.shape_cast %39 : vector<1x128x256xbf16> to vector<128x256xbf16>
    %cst_19 = arith.constant dense<0.000000e+00> : vector<256x256xf32>
    %41 = tpu.matmul %10, %40, %cst_19 {dimension_numbers = #tpu.dot_dimension_numbers<[1], [0], [0], [1], [0, 0, 1, 1], [], []>} : vector<256x128xbf16>, vector<128x256xbf16>, vector<256x256xf32> -> vector<256x256xf32>
    %42 = vector.extract_strided_slice %41 {offsets = [0, 0], sizes = [128, 256], strides = [1, 1]} : vector<256x256xf32> to vector<128x256xf32>
    %43 = vector.broadcast %2 : vector<128x1xf32> to vector<128x256xf32>
    %44 = arith.addf %42, %43 : vector<128x256xf32>
    %45 = vector.extract_strided_slice %41 {offsets = [128, 0], sizes = [128, 256], strides = [1, 1]} : vector<256x256xf32> to vector<128x256xf32>
    %46 = vector.broadcast %3 : vector<128x1xf32> to vector<128x256xf32>
    %47 = arith.addf %45, %46 : vector<128x256xf32>
    %48 = arith.index_cast %c1_i32 : i32 to index
    %c0_20 = arith.constant 0 : index
    %c0_21 = arith.constant 0 : index
    %49 = vector.load %arg10[%48, %c0_20, %c0_21] : memref<8x128x256xf32, #tpu.memory_space<vmem>>, vector<1x128x256xf32>
    %50 = vector.shape_cast %49 : vector<1x128x256xf32> to vector<128x256xf32>
    %51 = vector.shape_cast %47 : vector<128x256xf32> to vector<1x128x256xf32>
    tpu.vector_store %arg10[%48, %c0_20, %c0_21], %51 {strides = array<i32>} : memref<8x128x256xf32, #tpu.memory_space<vmem>>, vector<1x128x256xf32>,
    %52 = arith.mulf %9, %44 : vector<128x256xf32>
    %53 = vector.shape_cast %52 : vector<128x256xf32> to vector<8x16x256xf32>
    %cst_22 = arith.constant dense<0.000000e+00> : vector<8x256xf32>
    %54 = vector.multi_reduction <add>, %53, %cst_22 [1] : vector<8x16x256xf32> to vector<8x256xf32>
    %55 = arith.index_cast %c1_i32 : i32 to index
    %c0_23 = arith.constant 0 : index
    %56 = vector.load %arg3[%55, %c0_23] : memref<8x256xf32, #tpu.memory_space<vmem>>, vector<1x256xf32>
    %57 = vector.broadcast %56 : vector<1x256xf32> to vector<8x256xf32>
    %58 = arith.addf %54, %57 : vector<8x256xf32>
    %59 = arith.index_cast %c1_i32 : i32 to index
    %c0_24 = arith.constant 0 : index
    %c0_25 = arith.constant 0 : index
    %60 = vector.load %arg9[%59, %c0_24, %c0_25] : memref<8x8x256xf32, #tpu.memory_space<vmem>>, vector<1x8x256xf32>
    %61 = vector.shape_cast %60 : vector<1x8x256xf32> to vector<8x256xf32>
    %62 = vector.shape_cast %58 : vector<8x256xf32> to vector<1x8x256xf32>
    tpu.vector_store %arg9[%59, %c0_24, %c0_25], %62 {strides = array<i32>} : memref<8x8x256xf32, #tpu.memory_space<vmem>>, vector<1x8x256xf32>,
    %63 = arith.maximumf %37, %58 : vector<8x256xf32>
    %c2_i32 = arith.constant 2 : i32
    %64 = arith.index_cast %c2_i32 : i32 to index
    %c0_26 = arith.constant 0 : index
    %c0_27 = arith.constant 0 : index
    %65 = vector.load %arg2[%64, %c0_26, %c0_27] : memref<8x128x256xbf16, #tpu.memory_space<vmem>>, vector<1x128x256xbf16>
    %66 = vector.shape_cast %65 : vector<1x128x256xbf16> to vector<128x256xbf16>
    %cst_28 = arith.constant dense<0.000000e+00> : vector<256x256xf32>
    %67 = tpu.matmul %10, %66, %cst_28 {dimension_numbers = #tpu.dot_dimension_numbers<[1], [0], [0], [1], [0, 0, 1, 1], [], []>} : vector<256x128xbf16>, vector<128x256xbf16>, vector<256x256xf32> -> vector<256x256xf32>
    %68 = vector.extract_strided_slice %67 {offsets = [0, 0], sizes = [128, 256], strides = [1, 1]} : vector<256x256xf32> to vector<128x256xf32>
    %69 = vector.broadcast %2 : vector<128x1xf32> to vector<128x256xf32>
    %70 = arith.addf %68, %69 : vector<128x256xf32>
    %71 = vector.extract_strided_slice %67 {offsets = [128, 0], sizes = [128, 256], strides = [1, 1]} : vector<256x256xf32> to vector<128x256xf32>
    %72 = vector.broadcast %3 : vector<128x1xf32> to vector<128x256xf32>
    %73 = arith.addf %71, %72 : vector<128x256xf32>
    %74 = arith.index_cast %c2_i32 : i32 to index
    %c0_29 = arith.constant 0 : index
    %c0_30 = arith.constant 0 : index
    %75 = vector.load %arg10[%74, %c0_29, %c0_30] : memref<8x128x256xf32, #tpu.memory_space<vmem>>, vector<1x128x256xf32>
    %76 = vector.shape_cast %75 : vector<1x128x256xf32> to vector<128x256xf32>
    %77 = vector.shape_cast %73 : vector<128x256xf32> to vector<1x128x256xf32>
    tpu.vector_store %arg10[%74, %c0_29, %c0_30], %77 {strides = array<i32>} : memref<8x128x256xf32, #tpu.memory_space<vmem>>, vector<1x128x256xf32>,
    %78 = arith.mulf %9, %70 : vector<128x256xf32>
    %79 = vector.shape_cast %78 : vector<128x256xf32> to vector<8x16x256xf32>
    %cst_31 = arith.constant dense<0.000000e+00> : vector<8x256xf32>
    %80 = vector.multi_reduction <add>, %79, %cst_31 [1] : vector<8x16x256xf32> to vector<8x256xf32>
    %81 = arith.index_cast %c2_i32 : i32 to index
    %c0_32 = arith.constant 0 : index
    %82 = vector.load %arg3[%81, %c0_32] : memref<8x256xf32, #tpu.memory_space<vmem>>, vector<1x256xf32>
    %83 = vector.broadcast %82 : vector<1x256xf32> to vector<8x256xf32>
    %84 = arith.addf %80, %83 : vector<8x256xf32>
    %85 = arith.index_cast %c2_i32 : i32 to index
    %c0_33 = arith.constant 0 : index
    %c0_34 = arith.constant 0 : index
    %86 = vector.load %arg9[%85, %c0_33, %c0_34] : memref<8x8x256xf32, #tpu.memory_space<vmem>>, vector<1x8x256xf32>
    %87 = vector.shape_cast %86 : vector<1x8x256xf32> to vector<8x256xf32>
    %88 = vector.shape_cast %84 : vector<8x256xf32> to vector<1x8x256xf32>
    tpu.vector_store %arg9[%85, %c0_33, %c0_34], %88 {strides = array<i32>} : memref<8x8x256xf32, #tpu.memory_space<vmem>>, vector<1x8x256xf32>,
    %89 = arith.maximumf %63, %84 : vector<8x256xf32>
    %c3_i32 = arith.constant 3 : i32
    %90 = arith.index_cast %c3_i32 : i32 to index
    %c0_35 = arith.constant 0 : index
    %c0_36 = arith.constant 0 : index
    %91 = vector.load %arg2[%90, %c0_35, %c0_36] : memref<8x128x256xbf16, #tpu.memory_space<vmem>>, vector<1x128x256xbf16>
    %92 = vector.shape_cast %91 : vector<1x128x256xbf16> to vector<128x256xbf16>
    %cst_37 = arith.constant dense<0.000000e+00> : vector<256x256xf32>
    %93 = tpu.matmul %10, %92, %cst_37 {dimension_numbers = #tpu.dot_dimension_numbers<[1], [0], [0], [1], [0, 0, 1, 1], [], []>} : vector<256x128xbf16>, vector<128x256xbf16>, vector<256x256xf32> -> vector<256x256xf32>
    %94 = vector.extract_strided_slice %93 {offsets = [0, 0], sizes = [128, 256], strides = [1, 1]} : vector<256x256xf32> to vector<128x256xf32>
    %95 = vector.broadcast %2 : vector<128x1xf32> to vector<128x256xf32>
    %96 = arith.addf %94, %95 : vector<128x256xf32>
    %97 = vector.extract_strided_slice %93 {offsets = [128, 0], sizes = [128, 256], strides = [1, 1]} : vector<256x256xf32> to vector<128x256xf32>
    %98 = vector.broadcast %3 : vector<128x1xf32> to vector<128x256xf32>
    %99 = arith.addf %97, %98 : vector<128x256xf32>
    %100 = arith.index_cast %c3_i32 : i32 to index
    %c0_38 = arith.constant 0 : index
    %c0_39 = arith.constant 0 : index
    %101 = vector.load %arg10[%100, %c0_38, %c0_39] : memref<8x128x256xf32, #tpu.memory_space<vmem>>, vector<1x128x256xf32>
    %102 = vector.shape_cast %101 : vector<1x128x256xf32> to vector<128x256xf32>
    %103 = vector.shape_cast %99 : vector<128x256xf32> to vector<1x128x256xf32>
    tpu.vector_store %arg10[%100, %c0_38, %c0_39], %103 {strides = array<i32>} : memref<8x128x256xf32, #tpu.memory_space<vmem>>, vector<1x128x256xf32>,
    %104 = arith.mulf %9, %96 : vector<128x256xf32>
    %105 = vector.shape_cast %104 : vector<128x256xf32> to vector<8x16x256xf32>
    %cst_40 = arith.constant dense<0.000000e+00> : vector<8x256xf32>
    %106 = vector.multi_reduction <add>, %105, %cst_40 [1] : vector<8x16x256xf32> to vector<8x256xf32>
    %107 = arith.index_cast %c3_i32 : i32 to index
    %c0_41 = arith.constant 0 : index
    %108 = vector.load %arg3[%107, %c0_41] : memref<8x256xf32, #tpu.memory_space<vmem>>, vector<1x256xf32>
    %109 = vector.broadcast %108 : vector<1x256xf32> to vector<8x256xf32>
    %110 = arith.addf %106, %109 : vector<8x256xf32>
    %111 = arith.index_cast %c3_i32 : i32 to index
    %c0_42 = arith.constant 0 : index
    %c0_43 = arith.constant 0 : index
    %112 = vector.load %arg9[%111, %c0_42, %c0_43] : memref<8x8x256xf32, #tpu.memory_space<vmem>>, vector<1x8x256xf32>
    %113 = vector.shape_cast %112 : vector<1x8x256xf32> to vector<8x256xf32>
    %114 = vector.shape_cast %110 : vector<8x256xf32> to vector<1x8x256xf32>
    tpu.vector_store %arg9[%111, %c0_42, %c0_43], %114 {strides = array<i32>} : memref<8x8x256xf32, #tpu.memory_space<vmem>>, vector<1x8x256xf32>,
    %115 = arith.maximumf %89, %110 : vector<8x256xf32>
    %c4_i32 = arith.constant 4 : i32
    %116 = arith.index_cast %c4_i32 : i32 to index
    %c0_44 = arith.constant 0 : index
    %c0_45 = arith.constant 0 : index
    %117 = vector.load %arg2[%116, %c0_44, %c0_45] : memref<8x128x256xbf16, #tpu.memory_space<vmem>>, vector<1x128x256xbf16>
    %118 = vector.shape_cast %117 : vector<1x128x256xbf16> to vector<128x256xbf16>
    %cst_46 = arith.constant dense<0.000000e+00> : vector<256x256xf32>
    %119 = tpu.matmul %10, %118, %cst_46 {dimension_numbers = #tpu.dot_dimension_numbers<[1], [0], [0], [1], [0, 0, 1, 1], [], []>} : vector<256x128xbf16>, vector<128x256xbf16>, vector<256x256xf32> -> vector<256x256xf32>
    %120 = vector.extract_strided_slice %119 {offsets = [0, 0], sizes = [128, 256], strides = [1, 1]} : vector<256x256xf32> to vector<128x256xf32>
    %121 = vector.broadcast %2 : vector<128x1xf32> to vector<128x256xf32>
    %122 = arith.addf %120, %121 : vector<128x256xf32>
    %123 = vector.extract_strided_slice %119 {offsets = [128, 0], sizes = [128, 256], strides = [1, 1]} : vector<256x256xf32> to vector<128x256xf32>
    %124 = vector.broadcast %3 : vector<128x1xf32> to vector<128x256xf32>
    %125 = arith.addf %123, %124 : vector<128x256xf32>
    %126 = arith.index_cast %c4_i32 : i32 to index
    %c0_47 = arith.constant 0 : index
    %c0_48 = arith.constant 0 : index
    %127 = vector.load %arg10[%126, %c0_47, %c0_48] : memref<8x128x256xf32, #tpu.memory_space<vmem>>, vector<1x128x256xf32>
    %128 = vector.shape_cast %127 : vector<1x128x256xf32> to vector<128x256xf32>
    %129 = vector.shape_cast %125 : vector<128x256xf32> to vector<1x128x256xf32>
    tpu.vector_store %arg10[%126, %c0_47, %c0_48], %129 {strides = array<i32>} : memref<8x128x256xf32, #tpu.memory_space<vmem>>, vector<1x128x256xf32>,
    %130 = arith.mulf %9, %122 : vector<128x256xf32>
    %131 = vector.shape_cast %130 : vector<128x256xf32> to vector<8x16x256xf32>
    %cst_49 = arith.constant dense<0.000000e+00> : vector<8x256xf32>
    %132 = vector.multi_reduction <add>, %131, %cst_49 [1] : vector<8x16x256xf32> to vector<8x256xf32>
    %133 = arith.index_cast %c4_i32 : i32 to index
    %c0_50 = arith.constant 0 : index
    %134 = vector.load %arg3[%133, %c0_50] : memref<8x256xf32, #tpu.memory_space<vmem>>, vector<1x256xf32>
    %135 = vector.broadcast %134 : vector<1x256xf32> to vector<8x256xf32>
    %136 = arith.addf %132, %135 : vector<8x256xf32>
    %137 = arith.index_cast %c4_i32 : i32 to index
    %c0_51 = arith.constant 0 : index
    %c0_52 = arith.constant 0 : index
    %138 = vector.load %arg9[%137, %c0_51, %c0_52] : memref<8x8x256xf32, #tpu.memory_space<vmem>>, vector<1x8x256xf32>
    %139 = vector.shape_cast %138 : vector<1x8x256xf32> to vector<8x256xf32>
    %140 = vector.shape_cast %136 : vector<8x256xf32> to vector<1x8x256xf32>
    tpu.vector_store %arg9[%137, %c0_51, %c0_52], %140 {strides = array<i32>} : memref<8x8x256xf32, #tpu.memory_space<vmem>>, vector<1x8x256xf32>,
    %141 = arith.maximumf %115, %136 : vector<8x256xf32>
    %c5_i32 = arith.constant 5 : i32
    %142 = arith.index_cast %c5_i32 : i32 to index
    %c0_53 = arith.constant 0 : index
    %c0_54 = arith.constant 0 : index
    %143 = vector.load %arg2[%142, %c0_53, %c0_54] : memref<8x128x256xbf16, #tpu.memory_space<vmem>>, vector<1x128x256xbf16>
    %144 = vector.shape_cast %143 : vector<1x128x256xbf16> to vector<128x256xbf16>
    %cst_55 = arith.constant dense<0.000000e+00> : vector<256x256xf32>
    %145 = tpu.matmul %10, %144, %cst_55 {dimension_numbers = #tpu.dot_dimension_numbers<[1], [0], [0], [1], [0, 0, 1, 1], [], []>} : vector<256x128xbf16>, vector<128x256xbf16>, vector<256x256xf32> -> vector<256x256xf32>
    %146 = vector.extract_strided_slice %145 {offsets = [0, 0], sizes = [128, 256], strides = [1, 1]} : vector<256x256xf32> to vector<128x256xf32>
    %147 = vector.broadcast %2 : vector<128x1xf32> to vector<128x256xf32>
    %148 = arith.addf %146, %147 : vector<128x256xf32>
    %149 = vector.extract_strided_slice %145 {offsets = [128, 0], sizes = [128, 256], strides = [1, 1]} : vector<256x256xf32> to vector<128x256xf32>
    %150 = vector.broadcast %3 : vector<128x1xf32> to vector<128x256xf32>
    %151 = arith.addf %149, %150 : vector<128x256xf32>
    %152 = arith.index_cast %c5_i32 : i32 to index
    %c0_56 = arith.constant 0 : index
    %c0_57 = arith.constant 0 : index
    %153 = vector.load %arg10[%152, %c0_56, %c0_57] : memref<8x128x256xf32, #tpu.memory_space<vmem>>, vector<1x128x256xf32>
    %154 = vector.shape_cast %153 : vector<1x128x256xf32> to vector<128x256xf32>
    %155 = vector.shape_cast %151 : vector<128x256xf32> to vector<1x128x256xf32>
    tpu.vector_store %arg10[%152, %c0_56, %c0_57], %155 {strides = array<i32>} : memref<8x128x256xf32, #tpu.memory_space<vmem>>, vector<1x128x256xf32>,
    %156 = arith.mulf %9, %148 : vector<128x256xf32>
    %157 = vector.shape_cast %156 : vector<128x256xf32> to vector<8x16x256xf32>
    %cst_58 = arith.constant dense<0.000000e+00> : vector<8x256xf32>
    %158 = vector.multi_reduction <add>, %157, %cst_58 [1] : vector<8x16x256xf32> to vector<8x256xf32>
    %159 = arith.index_cast %c5_i32 : i32 to index
    %c0_59 = arith.constant 0 : index
    %160 = vector.load %arg3[%159, %c0_59] : memref<8x256xf32, #tpu.memory_space<vmem>>, vector<1x256xf32>
    %161 = vector.broadcast %160 : vector<1x256xf32> to vector<8x256xf32>
    %162 = arith.addf %158, %161 : vector<8x256xf32>
    %163 = arith.index_cast %c5_i32 : i32 to index
    %c0_60 = arith.constant 0 : index
    %c0_61 = arith.constant 0 : index
    %164 = vector.load %arg9[%163, %c0_60, %c0_61] : memref<8x8x256xf32, #tpu.memory_space<vmem>>, vector<1x8x256xf32>
    %165 = vector.shape_cast %164 : vector<1x8x256xf32> to vector<8x256xf32>
    %166 = vector.shape_cast %162 : vector<8x256xf32> to vector<1x8x256xf32>
    tpu.vector_store %arg9[%163, %c0_60, %c0_61], %166 {strides = array<i32>} : memref<8x8x256xf32, #tpu.memory_space<vmem>>, vector<1x8x256xf32>,
    %167 = arith.maximumf %141, %162 : vector<8x256xf32>
    %c6_i32 = arith.constant 6 : i32
    %168 = arith.index_cast %c6_i32 : i32 to index
    %c0_62 = arith.constant 0 : index
    %c0_63 = arith.constant 0 : index
    %169 = vector.load %arg2[%168, %c0_62, %c0_63] : memref<8x128x256xbf16, #tpu.memory_space<vmem>>, vector<1x128x256xbf16>
    %170 = vector.shape_cast %169 : vector<1x128x256xbf16> to vector<128x256xbf16>
    %cst_64 = arith.constant dense<0.000000e+00> : vector<256x256xf32>
    %171 = tpu.matmul %10, %170, %cst_64 {dimension_numbers = #tpu.dot_dimension_numbers<[1], [0], [0], [1], [0, 0, 1, 1], [], []>} : vector<256x128xbf16>, vector<128x256xbf16>, vector<256x256xf32> -> vector<256x256xf32>
    %172 = vector.extract_strided_slice %171 {offsets = [0, 0], sizes = [128, 256], strides = [1, 1]} : vector<256x256xf32> to vector<128x256xf32>
    %173 = vector.broadcast %2 : vector<128x1xf32> to vector<128x256xf32>
    %174 = arith.addf %172, %173 : vector<128x256xf32>
    %175 = vector.extract_strided_slice %171 {offsets = [128, 0], sizes = [128, 256], strides = [1, 1]} : vector<256x256xf32> to vector<128x256xf32>
    %176 = vector.broadcast %3 : vector<128x1xf32> to vector<128x256xf32>
    %177 = arith.addf %175, %176 : vector<128x256xf32>
    %178 = arith.index_cast %c6_i32 : i32 to index
    %c0_65 = arith.constant 0 : index
    %c0_66 = arith.constant 0 : index
    %179 = vector.load %arg10[%178, %c0_65, %c0_66] : memref<8x128x256xf32, #tpu.memory_space<vmem>>, vector<1x128x256xf32>
    %180 = vector.shape_cast %179 : vector<1x128x256xf32> to vector<128x256xf32>
    %181 = vector.shape_cast %177 : vector<128x256xf32> to vector<1x128x256xf32>
    tpu.vector_store %arg10[%178, %c0_65, %c0_66], %181 {strides = array<i32>} : memref<8x128x256xf32, #tpu.memory_space<vmem>>, vector<1x128x256xf32>,
    %182 = arith.mulf %9, %174 : vector<128x256xf32>
    %183 = vector.shape_cast %182 : vector<128x256xf32> to vector<8x16x256xf32>
    %cst_67 = arith.constant dense<0.000000e+00> : vector<8x256xf32>
    %184 = vector.multi_reduction <add>, %183, %cst_67 [1] : vector<8x16x256xf32> to vector<8x256xf32>
    %185 = arith.index_cast %c6_i32 : i32 to index
    %c0_68 = arith.constant 0 : index
    %186 = vector.load %arg3[%185, %c0_68] : memref<8x256xf32, #tpu.memory_space<vmem>>, vector<1x256xf32>
    %187 = vector.broadcast %186 : vector<1x256xf32> to vector<8x256xf32>
    %188 = arith.addf %184, %187 : vector<8x256xf32>
    %189 = arith.index_cast %c6_i32 : i32 to index
    %c0_69 = arith.constant 0 : index
    %c0_70 = arith.constant 0 : index
    %190 = vector.load %arg9[%189, %c0_69, %c0_70] : memref<8x8x256xf32, #tpu.memory_space<vmem>>, vector<1x8x256xf32>
    %191 = vector.shape_cast %190 : vector<1x8x256xf32> to vector<8x256xf32>
    %192 = vector.shape_cast %188 : vector<8x256xf32> to vector<1x8x256xf32>
    tpu.vector_store %arg9[%189, %c0_69, %c0_70], %192 {strides = array<i32>} : memref<8x8x256xf32, #tpu.memory_space<vmem>>, vector<1x8x256xf32>,
    %193 = arith.maximumf %167, %188 : vector<8x256xf32>
    %c7_i32 = arith.constant 7 : i32
    %194 = arith.index_cast %c7_i32 : i32 to index
    %c0_71 = arith.constant 0 : index
    %c0_72 = arith.constant 0 : index
    %195 = vector.load %arg2[%194, %c0_71, %c0_72] : memref<8x128x256xbf16, #tpu.memory_space<vmem>>, vector<1x128x256xbf16>
    %196 = vector.shape_cast %195 : vector<1x128x256xbf16> to vector<128x256xbf16>
    %cst_73 = arith.constant dense<0.000000e+00> : vector<256x256xf32>
    %197 = tpu.matmul %10, %196, %cst_73 {dimension_numbers = #tpu.dot_dimension_numbers<[1], [0], [0], [1], [0, 0, 1, 1], [], []>} : vector<256x128xbf16>, vector<128x256xbf16>, vector<256x256xf32> -> vector<256x256xf32>
    %198 = vector.extract_strided_slice %197 {offsets = [0, 0], sizes = [128, 256], strides = [1, 1]} : vector<256x256xf32> to vector<128x256xf32>
    %199 = vector.broadcast %2 : vector<128x1xf32> to vector<128x256xf32>
    %200 = arith.addf %198, %199 : vector<128x256xf32>
    %201 = vector.extract_strided_slice %197 {offsets = [128, 0], sizes = [128, 256], strides = [1, 1]} : vector<256x256xf32> to vector<128x256xf32>
    %202 = vector.broadcast %3 : vector<128x1xf32> to vector<128x256xf32>
    %203 = arith.addf %201, %202 : vector<128x256xf32>
    %204 = arith.index_cast %c7_i32 : i32 to index
    %c0_74 = arith.constant 0 : index
    %c0_75 = arith.constant 0 : index
    %205 = vector.load %arg10[%204, %c0_74, %c0_75] : memref<8x128x256xf32, #tpu.memory_space<vmem>>, vector<1x128x256xf32>
    %206 = vector.shape_cast %205 : vector<1x128x256xf32> to vector<128x256xf32>
    %207 = vector.shape_cast %203 : vector<128x256xf32> to vector<1x128x256xf32>
    tpu.vector_store %arg10[%204, %c0_74, %c0_75], %207 {strides = array<i32>} : memref<8x128x256xf32, #tpu.memory_space<vmem>>, vector<1x128x256xf32>,
    %208 = arith.mulf %9, %200 : vector<128x256xf32>
    %209 = vector.shape_cast %208 : vector<128x256xf32> to vector<8x16x256xf32>
    %cst_76 = arith.constant dense<0.000000e+00> : vector<8x256xf32>
    %210 = vector.multi_reduction <add>, %209, %cst_76 [1] : vector<8x16x256xf32> to vector<8x256xf32>
    %211 = arith.index_cast %c7_i32 : i32 to index
    %c0_77 = arith.constant 0 : index
    %212 = vector.load %arg3[%211, %c0_77] : memref<8x256xf32, #tpu.memory_space<vmem>>, vector<1x256xf32>
    %213 = vector.broadcast %212 : vector<1x256xf32> to vector<8x256xf32>
    %214 = arith.addf %210, %213 : vector<8x256xf32>
    %215 = arith.index_cast %c7_i32 : i32 to index
    %c0_78 = arith.constant 0 : index
    %c0_79 = arith.constant 0 : index
    %216 = vector.load %arg9[%215, %c0_78, %c0_79] : memref<8x8x256xf32, #tpu.memory_space<vmem>>, vector<1x8x256xf32>
    %217 = vector.shape_cast %216 : vector<1x8x256xf32> to vector<8x256xf32>
    %218 = vector.shape_cast %214 : vector<8x256xf32> to vector<1x8x256xf32>
    tpu.vector_store %arg9[%215, %c0_78, %c0_79], %218 {strides = array<i32>} : memref<8x8x256xf32, #tpu.memory_space<vmem>>, vector<1x8x256xf32>,
    %219 = arith.maximumf %193, %214 : vector<8x256xf32>
    %c8_i32 = arith.constant 8 : i32
    %cst_80 = arith.constant 0.000000e+00 : f32
    %220 = vector.broadcast %cst_80 : f32 to vector<8x256xf32>
    %cst_81 = arith.constant 0.000000e+00 : f32
    %221 = vector.broadcast %cst_81 : f32 to vector<128x256xf32>
    %c0_i32_82 = arith.constant 0 : i32
    %222 = arith.index_cast %c0_i32_82 : i32 to index
    %c0_83 = arith.constant 0 : index
    %c0_84 = arith.constant 0 : index
    %223 = vector.load %arg9[%222, %c0_83, %c0_84] : memref<8x8x256xf32, #tpu.memory_space<vmem>>, vector<1x8x256xf32>
    %224 = vector.shape_cast %223 : vector<1x8x256xf32> to vector<8x256xf32>
    %225 = arith.subf %224, %219 : vector<8x256xf32>
    %226 = math.exp %225 : vector<8x256xf32>
    %227 = vector.shape_cast %226 : vector<8x256xf32> to vector<8x1x256xf32>
    %228 = vector.shape_cast %227 : vector<8x1x256xf32> to vector<8x1x256xf32>
    %229 = vector.broadcast %228 : vector<8x1x256xf32> to vector<8x16x256xf32>
    %230 = vector.shape_cast %229 : vector<8x16x256xf32> to vector<128x256xf32>
    %231 = arith.addf %220, %226 : vector<8x256xf32>
    %232 = arith.index_cast %c0_i32_82 : i32 to index
    %c0_85 = arith.constant 0 : index
    %c0_86 = arith.constant 0 : index
    %233 = vector.load %arg10[%232, %c0_85, %c0_86] : memref<8x128x256xf32, #tpu.memory_space<vmem>>, vector<1x128x256xf32>
    %234 = vector.shape_cast %233 : vector<1x128x256xf32> to vector<128x256xf32>
    %235 = arith.mulf %230, %234 : vector<128x256xf32>
    %236 = arith.addf %221, %235 : vector<128x256xf32>
    %c1_i32_87 = arith.constant 1 : i32
    %237 = arith.index_cast %c1_i32_87 : i32 to index
    %c0_88 = arith.constant 0 : index
    %c0_89 = arith.constant 0 : index
    %238 = vector.load %arg9[%237, %c0_88, %c0_89] : memref<8x8x256xf32, #tpu.memory_space<vmem>>, vector<1x8x256xf32>
    %239 = vector.shape_cast %238 : vector<1x8x256xf32> to vector<8x256xf32>
    %240 = arith.subf %239, %219 : vector<8x256xf32>
    %241 = math.exp %240 : vector<8x256xf32>
    %242 = vector.shape_cast %241 : vector<8x256xf32> to vector<8x1x256xf32>
    %243 = vector.shape_cast %242 : vector<8x1x256xf32> to vector<8x1x256xf32>
    %244 = vector.broadcast %243 : vector<8x1x256xf32> to vector<8x16x256xf32>
    %245 = vector.shape_cast %244 : vector<8x16x256xf32> to vector<128x256xf32>
    %246 = arith.addf %231, %241 : vector<8x256xf32>
    %247 = arith.index_cast %c1_i32_87 : i32 to index
    %c0_90 = arith.constant 0 : index
    %c0_91 = arith.constant 0 : index
    %248 = vector.load %arg10[%247, %c0_90, %c0_91] : memref<8x128x256xf32, #tpu.memory_space<vmem>>, vector<1x128x256xf32>
    %249 = vector.shape_cast %248 : vector<1x128x256xf32> to vector<128x256xf32>
    %250 = arith.mulf %245, %249 : vector<128x256xf32>
    %251 = arith.addf %236, %250 : vector<128x256xf32>
    %c2_i32_92 = arith.constant 2 : i32
    %252 = arith.index_cast %c2_i32_92 : i32 to index
    %c0_93 = arith.constant 0 : index
    %c0_94 = arith.constant 0 : index
    %253 = vector.load %arg9[%252, %c0_93, %c0_94] : memref<8x8x256xf32, #tpu.memory_space<vmem>>, vector<1x8x256xf32>
    %254 = vector.shape_cast %253 : vector<1x8x256xf32> to vector<8x256xf32>
    %255 = arith.subf %254, %219 : vector<8x256xf32>
    %256 = math.exp %255 : vector<8x256xf32>
    %257 = vector.shape_cast %256 : vector<8x256xf32> to vector<8x1x256xf32>
    %258 = vector.shape_cast %257 : vector<8x1x256xf32> to vector<8x1x256xf32>
    %259 = vector.broadcast %258 : vector<8x1x256xf32> to vector<8x16x256xf32>
    %260 = vector.shape_cast %259 : vector<8x16x256xf32> to vector<128x256xf32>
    %261 = arith.addf %246, %256 : vector<8x256xf32>
    %262 = arith.index_cast %c2_i32_92 : i32 to index
    %c0_95 = arith.constant 0 : index
    %c0_96 = arith.constant 0 : index
    %263 = vector.load %arg10[%262, %c0_95, %c0_96] : memref<8x128x256xf32, #tpu.memory_space<vmem>>, vector<1x128x256xf32>
    %264 = vector.shape_cast %263 : vector<1x128x256xf32> to vector<128x256xf32>
    %265 = arith.mulf %260, %264 : vector<128x256xf32>
    %266 = arith.addf %251, %265 : vector<128x256xf32>
    %c3_i32_97 = arith.constant 3 : i32
    %267 = arith.index_cast %c3_i32_97 : i32 to index
    %c0_98 = arith.constant 0 : index
    %c0_99 = arith.constant 0 : index
    %268 = vector.load %arg9[%267, %c0_98, %c0_99] : memref<8x8x256xf32, #tpu.memory_space<vmem>>, vector<1x8x256xf32>
    %269 = vector.shape_cast %268 : vector<1x8x256xf32> to vector<8x256xf32>
    %270 = arith.subf %269, %219 : vector<8x256xf32>
    %271 = math.exp %270 : vector<8x256xf32>
    %272 = vector.shape_cast %271 : vector<8x256xf32> to vector<8x1x256xf32>
    %273 = vector.shape_cast %272 : vector<8x1x256xf32> to vector<8x1x256xf32>
    %274 = vector.broadcast %273 : vector<8x1x256xf32> to vector<8x16x256xf32>
    %275 = vector.shape_cast %274 : vector<8x16x256xf32> to vector<128x256xf32>
    %276 = arith.addf %261, %271 : vector<8x256xf32>
    %277 = arith.index_cast %c3_i32_97 : i32 to index
    %c0_100 = arith.constant 0 : index
    %c0_101 = arith.constant 0 : index
    %278 = vector.load %arg10[%277, %c0_100, %c0_101] : memref<8x128x256xf32, #tpu.memory_space<vmem>>, vector<1x128x256xf32>
    %279 = vector.shape_cast %278 : vector<1x128x256xf32> to vector<128x256xf32>
    %280 = arith.mulf %275, %279 : vector<128x256xf32>
    %281 = arith.addf %266, %280 : vector<128x256xf32>
    %c4_i32_102 = arith.constant 4 : i32
    %282 = arith.index_cast %c4_i32_102 : i32 to index
    %c0_103 = arith.constant 0 : index
    %c0_104 = arith.constant 0 : index
    %283 = vector.load %arg9[%282, %c0_103, %c0_104] : memref<8x8x256xf32, #tpu.memory_space<vmem>>, vector<1x8x256xf32>
    %284 = vector.shape_cast %283 : vector<1x8x256xf32> to vector<8x256xf32>
    %285 = arith.subf %284, %219 : vector<8x256xf32>
    %286 = math.exp %285 : vector<8x256xf32>
    %287 = vector.shape_cast %286 : vector<8x256xf32> to vector<8x1x256xf32>
    %288 = vector.shape_cast %287 : vector<8x1x256xf32> to vector<8x1x256xf32>
    %289 = vector.broadcast %288 : vector<8x1x256xf32> to vector<8x16x256xf32>
    %290 = vector.shape_cast %289 : vector<8x16x256xf32> to vector<128x256xf32>
    %291 = arith.addf %276, %286 : vector<8x256xf32>
    %292 = arith.index_cast %c4_i32_102 : i32 to index
    %c0_105 = arith.constant 0 : index
    %c0_106 = arith.constant 0 : index
    %293 = vector.load %arg10[%292, %c0_105, %c0_106] : memref<8x128x256xf32, #tpu.memory_space<vmem>>, vector<1x128x256xf32>
    %294 = vector.shape_cast %293 : vector<1x128x256xf32> to vector<128x256xf32>
    %295 = arith.mulf %290, %294 : vector<128x256xf32>
    %296 = arith.addf %281, %295 : vector<128x256xf32>
    %c5_i32_107 = arith.constant 5 : i32
    %297 = arith.index_cast %c5_i32_107 : i32 to index
    %c0_108 = arith.constant 0 : index
    %c0_109 = arith.constant 0 : index
    %298 = vector.load %arg9[%297, %c0_108, %c0_109] : memref<8x8x256xf32, #tpu.memory_space<vmem>>, vector<1x8x256xf32>
    %299 = vector.shape_cast %298 : vector<1x8x256xf32> to vector<8x256xf32>
    %300 = arith.subf %299, %219 : vector<8x256xf32>
    %301 = math.exp %300 : vector<8x256xf32>
    %302 = vector.shape_cast %301 : vector<8x256xf32> to vector<8x1x256xf32>
    %303 = vector.shape_cast %302 : vector<8x1x256xf32> to vector<8x1x256xf32>
    %304 = vector.broadcast %303 : vector<8x1x256xf32> to vector<8x16x256xf32>
    %305 = vector.shape_cast %304 : vector<8x16x256xf32> to vector<128x256xf32>
    %306 = arith.addf %291, %301 : vector<8x256xf32>
    %307 = arith.index_cast %c5_i32_107 : i32 to index
    %c0_110 = arith.constant 0 : index
    %c0_111 = arith.constant 0 : index
    %308 = vector.load %arg10[%307, %c0_110, %c0_111] : memref<8x128x256xf32, #tpu.memory_space<vmem>>, vector<1x128x256xf32>
    %309 = vector.shape_cast %308 : vector<1x128x256xf32> to vector<128x256xf32>
    %310 = arith.mulf %305, %309 : vector<128x256xf32>
    %311 = arith.addf %296, %310 : vector<128x256xf32>
    %c6_i32_112 = arith.constant 6 : i32
    %312 = arith.index_cast %c6_i32_112 : i32 to index
    %c0_113 = arith.constant 0 : index
    %c0_114 = arith.constant 0 : index
    %313 = vector.load %arg9[%312, %c0_113, %c0_114] : memref<8x8x256xf32, #tpu.memory_space<vmem>>, vector<1x8x256xf32>
    %314 = vector.shape_cast %313 : vector<1x8x256xf32> to vector<8x256xf32>
    %315 = arith.subf %314, %219 : vector<8x256xf32>
    %316 = math.exp %315 : vector<8x256xf32>
    %317 = vector.shape_cast %316 : vector<8x256xf32> to vector<8x1x256xf32>
    %318 = vector.shape_cast %317 : vector<8x1x256xf32> to vector<8x1x256xf32>
    %319 = vector.broadcast %318 : vector<8x1x256xf32> to vector<8x16x256xf32>
    %320 = vector.shape_cast %319 : vector<8x16x256xf32> to vector<128x256xf32>
    %321 = arith.addf %306, %316 : vector<8x256xf32>
    %322 = arith.index_cast %c6_i32_112 : i32 to index
    %c0_115 = arith.constant 0 : index
    %c0_116 = arith.constant 0 : index
    %323 = vector.load %arg10[%322, %c0_115, %c0_116] : memref<8x128x256xf32, #tpu.memory_space<vmem>>, vector<1x128x256xf32>
    %324 = vector.shape_cast %323 : vector<1x128x256xf32> to vector<128x256xf32>
    %325 = arith.mulf %320, %324 : vector<128x256xf32>
    %326 = arith.addf %311, %325 : vector<128x256xf32>
    %c7_i32_117 = arith.constant 7 : i32
    %327 = arith.index_cast %c7_i32_117 : i32 to index
    %c0_118 = arith.constant 0 : index
    %c0_119 = arith.constant 0 : index
    %328 = vector.load %arg9[%327, %c0_118, %c0_119] : memref<8x8x256xf32, #tpu.memory_space<vmem>>, vector<1x8x256xf32>
    %329 = vector.shape_cast %328 : vector<1x8x256xf32> to vector<8x256xf32>
    %330 = arith.subf %329, %219 : vector<8x256xf32>
    %331 = math.exp %330 : vector<8x256xf32>
    %332 = vector.shape_cast %331 : vector<8x256xf32> to vector<8x1x256xf32>
    %333 = vector.shape_cast %332 : vector<8x1x256xf32> to vector<8x1x256xf32>
    %334 = vector.broadcast %333 : vector<8x1x256xf32> to vector<8x16x256xf32>
    %335 = vector.shape_cast %334 : vector<8x16x256xf32> to vector<128x256xf32>
    %336 = arith.addf %321, %331 : vector<8x256xf32>
    %337 = arith.index_cast %c7_i32_117 : i32 to index
    %c0_120 = arith.constant 0 : index
    %c0_121 = arith.constant 0 : index
    %338 = vector.load %arg10[%337, %c0_120, %c0_121] : memref<8x128x256xf32, #tpu.memory_space<vmem>>, vector<1x128x256xf32>
    %339 = vector.shape_cast %338 : vector<1x128x256xf32> to vector<128x256xf32>
    %340 = arith.mulf %335, %339 : vector<128x256xf32>
    %341 = arith.addf %326, %340 : vector<128x256xf32>
    %c8_i32_122 = arith.constant 8 : i32
    %342 = tpu.reciprocal %336 {approx = true} : vector<8x256xf32> -> vector<8x256xf32>
    %343 = vector.shape_cast %342 : vector<8x256xf32> to vector<8x1x256xf32>
    %344 = vector.shape_cast %343 : vector<8x1x256xf32> to vector<8x1x256xf32>
    %345 = vector.broadcast %344 : vector<8x1x256xf32> to vector<8x16x256xf32>
    %346 = vector.shape_cast %345 : vector<8x16x256xf32> to vector<128x256xf32>
    %347 = arith.mulf %341, %346 : vector<128x256xf32>
    %348 = arith.truncf %347 : vector<128x256xf32> to vector<128x256xbf16>
    %c0_123 = arith.constant 0 : index
    %c0_124 = arith.constant 0 : index
    %349 = vector.load %arg6[%c0_123, %c0_124] : memref<128x128xbf16, #tpu.memory_space<vmem>>, vector<128x128xbf16>
    %cst_125 = arith.constant dense<0.000000e+00> : vector<128x256xf32>
    %350 = tpu.matmul %349, %348, %cst_125 {dimension_numbers = #tpu.dot_dimension_numbers<[1], [0], [0], [1], [0, 0, 1, 1], [], []>} : vector<128x128xbf16>, vector<128x256xbf16>, vector<128x256xf32> -> vector<128x256xf32>
    %351 = vector.broadcast %4 : vector<128x1xf32> to vector<128x256xf32>
    %352 = arith.addf %350, %351 : vector<128x256xf32>
    %c0_126 = arith.constant 0 : index
    %c0_127 = arith.constant 0 : index
    %353 = vector.load %arg8[%c0_126, %c0_127] : memref<128x256xf32, #tpu.memory_space<vmem>>, vector<128x256xf32>
    tpu.vector_store %arg8[%c0_126, %c0_127], %352 {strides = array<i32>} : memref<128x256xf32, #tpu.memory_space<vmem>>, vector<128x256xf32>,
    return
  }
  func.func @transform_0(%arg0: i32) -> (i32, i32) {
    %c0_i32 = arith.constant 0 : i32
    %c0_i32_0 = arith.constant 0 : i32
    return %c0_i32, %arg0 : i32, i32
  }
  func.func @transform_1(%arg0: i32) -> (i32, i32, i32) {
    %c0_i32 = arith.constant 0 : i32
    %c0_i32_0 = arith.constant 0 : i32
    %c0_i32_1 = arith.constant 0 : i32
    return %c0_i32, %c0_i32_0, %arg0 : i32, i32, i32
  }
  func.func @transform_2(%arg0: i32) -> (i32, i32) {
    %c0_i32 = arith.constant 0 : i32
    %c0_i32_0 = arith.constant 0 : i32
    return %c0_i32, %arg0 : i32, i32
  }
  func.func @transform_3(%arg0: i32) -> (i32, i32) {
    %c0_i32 = arith.constant 0 : i32
    %c0_i32_0 = arith.constant 0 : i32
    %c0_i32_1 = arith.constant 0 : i32
    return %c0_i32, %c0_i32_0 : i32, i32
  }
  func.func @transform_4(%arg0: i32) -> (i32, i32) {
    %c0_i32 = arith.constant 0 : i32
    %c0_i32_0 = arith.constant 0 : i32
    %c0_i32_1 = arith.constant 0 : i32
    return %c0_i32, %c0_i32_0 : i32, i32
  }
  func.func @transform_5(%arg0: i32) -> (i32, i32) {
    %c0_i32 = arith.constant 0 : i32
    %c0_i32_0 = arith.constant 0 : i32
    %c0_i32_1 = arith.constant 0 : i32
    return %c0_i32, %c0_i32_0 : i32, i32
  }
  func.func @transform_6(%arg0: i32) -> (i32, i32) {
    %c0_i32 = arith.constant 0 : i32
    %c0_i32_0 = arith.constant 0 : i32
    %c0_i32_1 = arith.constant 0 : i32
    return %c0_i32, %c0_i32_0 : i32, i32
  }
  func.func @transform_7(%arg0: i32) -> (i32, i32) {
    %c0_i32 = arith.constant 0 : i32
    %c0_i32_0 = arith.constant 0 : i32
    return %c0_i32, %arg0 : i32, i32
  }
}

</mosaic_0001>

<bundles_post_ra>
// kernel: deformable_attention.1
= control target key start
LH: loop header
LB: loop body
LE: loop exit
PB: predicated region body
PF: predicated region fallthrough
CT: control target
= control target key end

     0   :  { %s9925_s24 = smov 0   ;;  %s9927_s25 = smov 0   ;;  %s15653_s0 = inlined_call_operand.vmem [shape: bf16[128,512], index: 0, kind: input, shape index: {}]   ;;  %s15654_s1 = inlined_call_operand.vmem [shape: bf16[8,128,512], index: 1, kind: input, shape index: {}]   ;;  %s15655_s2 = inlined_call_operand.vmem [shape: f32[8,512], index: 2, kind: input, shape index: {}]   ;;  %s15656_s3 = inlined_call_operand.vmem [shape: bf16[128,128], index: 3, kind: input, shape index: {}]   ;;  %s15657_s4 = inlined_call_operand.vmem [shape: bf16[256,128], index: 4, kind: input, shape index: {}]   ;;  %s15658_s5 = inlined_call_operand.vmem [shape: bf16[128,128], index: 5, kind: input, shape index: {}]   ;;  %s15659_s6 = inlined_call_operand.vmem [shape: f32[128,4], index: 6, kind: input, shape index: {}]   ;;  %s15660_s7 = inlined_call_operand.vmem [shape: f32[128,512], index: 7, kind: output, shape index: {}]  }
   0x1   :  { %s9929_s26 = smov 0  }
   0x2 LB: > { %s9941_s27 = sadd.s32 4294967295, %s9878_s26   ;;  %s9944_s28 = sadd.s32 1, %s9878_s26   ;;  %s9878_s26 = sphi %s9929_s26, %s17666_s26   ;;  %s9874_s25 = sphi %s9927_s25, %s17665_s25   ;;  %s9870_s24 = sphi %s9925_s24, %s17664_s24  }
   0x3   : > { %s21_s29 = ssub.s32 %s9878_s26, %s9944_s28  ;;  %s24_s30 = sadd.s32 1, %s9874_s25 }
   0x4   : > { %p22_p0 = scmp.eq.s32.totalorder %s21_s29, 0  ;;  %p31_p1 = scmp.ne.s32.totalorder %s9874_s25, %s9870_s24 }
   0x5   : > { %p32_p2 = scmp.eq.s32.totalorder %s9878_s26, 0  ;;  %p197_p3 = scmp.eq.s32.totalorder %s9941_s27, 1 }
   0x6   : > { %s9954_s8 = scalar_select %p22_p0, %s9874_s25, %s24_s30  }
   0x7   : > { %p9956_p4 = por %p32_p2, %p31_p1  ;;  %p9960_p5 = por %p197_p3, %p31_p1 }
   0x8   : > { %p9152_p6 = scmp.ge.s32.totalorder %s9878_s26, 2 }
   0xa   : > { %231 = sbr.rel (%p9152_p6) target bundleno = 97 (0x61), region = 32 }
  0x11   : > { %234 = sbr.rel (!%p9956_p4) target bundleno = 29 (0x1d), region = 36  ;;  %s236_s11 = sand.u32 (%p9956_p4), 1, %s9874_s25  }
  0x12   : > { %s9465_s12 = sshll.u32 (%p9956_p4), %s9878_s26, 3  ;;  %s9153_s13 = sshll.u32 (%p9956_p4), %s236_s11, 7 }
  0x13   : > { %s9972_s16 = scalar_lea.vmem (%p9956_p4), %s15653_s0, %s9465_s12  ;;  %s238_s17 = scalar_lea.vmem (%p9956_p4), [#allocation4], %s9153_s13 }
  0x14   : > { %v299_v0 = vld [vmem:[%s9972_s16] sm:$0xff] (%p9956_p4)  ;;  %v301_v1 = vld [vmem:[%s9972_s16 + $0x10] sm:$0xff] (%p9956_p4) }
  0x15   : > { %v303_v2 = vld [vmem:[%s9972_s16 + $0x20] sm:$0xff] (%p9956_p4)  ;;  %300 = vst [vmem:[%s238_s17] sm:$0xff] (%p9956_p4), %v299_v0  ;;  %302 = vst [vmem:[%s238_s17 + $0x8] sm:$0xff] (%p9956_p4), %v301_v1  ;;  %v305_v3 = vld [vmem:[%s9972_s16 + $0x30] sm:$0xff] (%p9956_p4) }
  0x16   : > { %304 = vst [vmem:[%s238_s17 + $0x10] sm:$0xff] (%p9956_p4), %v303_v2  ;;  %v307_v4 = vld [vmem:[%s9972_s16 + $0x40] sm:$0xff] (%p9956_p4)  ;;  %v309_v5 = vld [vmem:[%s9972_s16 + $0x50] sm:$0xff] (%p9956_p4)  ;;  %306 = vst [vmem:[%s238_s17 + $0x18] sm:$0xff] (%p9956_p4), %v305_v3 }
  0x17   : > { %308 = vst [vmem:[%s238_s17 + $0x20] sm:$0xff] (%p9956_p4), %v307_v4  ;;  %310 = vst [vmem:[%s238_s17 + $0x28] sm:$0xff] (%p9956_p4), %v309_v5  ;;  %v311_v6 = vld [vmem:[%s9972_s16 + $0x60] sm:$0xff] (%p9956_p4)  ;;  %v313_v7 = vld [vmem:[%s9972_s16 + $0x70] sm:$0xff] (%p9956_p4) }
  0x18   : > { %v315_v8 = vld [vmem:[%s9972_s16 + $0x80] sm:$0xff]  ;;  %312 = vst [vmem:[%s238_s17 + $0x30] sm:$0xff] %v311_v6  ;;  %314 = vst [vmem:[%s238_s17 + $0x38] sm:$0xff] %v313_v7  ;;  %v317_v9 = vld [vmem:[%s9972_s16 + $0x90] sm:$0xff] }
  0x19   : > { %316 = vst [vmem:[%s238_s17 + $0x40] sm:$0xff] %v315_v8  ;;  %v319_v10 = vld [vmem:[%s9972_s16 + $0xa0] sm:$0xff]  ;;  %v321_v11 = vld [vmem:[%s9972_s16 + $0xb0] sm:$0xff]  ;;  %318 = vst [vmem:[%s238_s17 + $0x48] sm:$0xff] %v317_v9 }
  0x1a   : > { %320 = vst [vmem:[%s238_s17 + $0x50] sm:$0xff] %v319_v10  ;;  %322 = vst [vmem:[%s238_s17 + $0x58] sm:$0xff] %v321_v11  ;;  %v323_v12 = vld [vmem:[%s9972_s16 + $0xc0] sm:$0xff]  ;;  %v325_v13 = vld [vmem:[%s9972_s16 + $0xd0] sm:$0xff] }
  0x1b   : > { %v327_v14 = vld [vmem:[%s9972_s16 + $0xe0] sm:$0xff]  ;;  %324 = vst [vmem:[%s238_s17 + $0x60] sm:$0xff] %v323_v12  ;;  %326 = vst [vmem:[%s238_s17 + $0x68] sm:$0xff] %v325_v13  ;;  %v329_v15 = vld [vmem:[%s9972_s16 + $0xf0] sm:$0xff] }
  0x1c   : > { %328 = vst [vmem:[%s238_s17 + $0x70] sm:$0xff] %v327_v14  ;;  %330 = vst [vmem:[%s238_s17 + $0x78] sm:$0xff] %v329_v15 }
  0x1d PF: > { %336 = sbr.rel (!%p9956_p4) target bundleno = 97 (0x61), region = 74  ;;  %s338_s18 = sand.u32 (%p9956_p4), 1, %s9874_s25  }
  0x1e   : > { %s9466_s19 = sshll.u32 (%p9956_p4), %s9878_s26, 3  ;;  %s9156_s20 = sshll.u32 (%p9956_p4), %s338_s18, 10 }
  0x1f   : > { %s9997_s23 = scalar_lea.vmem (%p9956_p4), %s15654_s1, %s9466_s19  ;;  %s10002_s29 = scalar_lea.vmem (%p9956_p4), [#allocation5], %s9156_s20 }
  0x20   : > { %v625_v16 = vld [vmem:[%s9997_s23] sm:$0xff] (%p9956_p4)  ;;  %v627_v17 = vld [vmem:[%s9997_s23 + $0x10] sm:$0xff] (%p9956_p4) }
  0x21   : > { %v629_v18 = vld [vmem:[%s9997_s23 + $0x20] sm:$0xff] (%p9956_p4)  ;;  %626 = vst [vmem:[%s10002_s29] sm:$0xff] (%p9956_p4), %v625_v16  ;;  %628 = vst [vmem:[%s10002_s29 + $0x8] sm:$0xff] (%p9956_p4), %v627_v17  ;;  %v631_v19 = vld [vmem:[%s9997_s23 + $0x30] sm:$0xff] (%p9956_p4) }
  0x22   : > { %630 = vst [vmem:[%s10002_s29 + $0x10] sm:$0xff] (%p9956_p4), %v629_v18  ;;  %v633_v20 = vld [vmem:[%s9997_s23 + $0x40] sm:$0xff] (%p9956_p4)  ;;  %v635_v21 = vld [vmem:[%s9997_s23 + $0x50] sm:$0xff] (%p9956_p4)  ;;  %632 = vst [vmem:[%s10002_s29 + $0x18] sm:$0xff] (%p9956_p4), %v631_v19 }
  0x23   : > { %634 = vst [vmem:[%s10002_s29 + $0x20] sm:$0xff] (%p9956_p4), %v633_v20  ;;  %636 = vst [vmem:[%s10002_s29 + $0x28] sm:$0xff] (%p9956_p4), %v635_v21  ;;  %v637_v22 = vld [vmem:[%s9997_s23 + $0x60] sm:$0xff] (%p9956_p4)  ;;  %v639_v23 = vld [vmem:[%s9997_s23 + $0x70] sm:$0xff] (%p9956_p4) }
  0x24   : > { %v641_v24 = vld [vmem:[%s9997_s23 + $0x80] sm:$0xff]  ;;  %638 = vst [vmem:[%s10002_s29 + $0x30] sm:$0xff] %v637_v22  ;;  %640 = vst [vmem:[%s10002_s29 + $0x38] sm:$0xff] %v639_v23  ;;  %v643_v25 = vld [vmem:[%s9997_s23 + $0x90] sm:$0xff] }
  0x25   : > { %642 = vst [vmem:[%s10002_s29 + $0x40] sm:$0xff] %v641_v24  ;;  %v645_v26 = vld [vmem:[%s9997_s23 + $0xa0] sm:$0xff]  ;;  %v647_v27 = vld [vmem:[%s9997_s23 + $0xb0] sm:$0xff]  ;;  %644 = vst [vmem:[%s10002_s29 + $0x48] sm:$0xff] %v643_v25 }
  0x26   : > { %646 = vst [vmem:[%s10002_s29 + $0x50] sm:$0xff] %v645_v26  ;;  %648 = vst [vmem:[%s10002_s29 + $0x58] sm:$0xff] %v647_v27  ;;  %v649_v28 = vld [vmem:[%s9997_s23 + $0xc0] sm:$0xff]  ;;  %v651_v29 = vld [vmem:[%s9997_s23 + $0xd0] sm:$0xff] }
  0x27   : > { %v653_v30 = vld [vmem:[%s9997_s23 + $0xe0] sm:$0xff]  ;;  %650 = vst [vmem:[%s10002_s29 + $0x60] sm:$0xff] %v649_v28  ;;  %652 = vst [vmem:[%s10002_s29 + $0x68] sm:$0xff] %v651_v29  ;;  %v655_v31 = vld [vmem:[%s9997_s23 + $0xf0] sm:$0xff] }
  0x28   : > { %654 = vst [vmem:[%s10002_s29 + $0x70] sm:$0xff] %v653_v30  ;;  %v657_v32 = vld [vmem:[%s9997_s23 + $0x100] sm:$0xff]  ;;  %v659_v33 = vld [vmem:[%s9997_s23 + $0x110] sm:$0xff]  ;;  %656 = vst [vmem:[%s10002_s29 + $0x78] sm:$0xff] %v655_v31 }
  0x29   : > { %658 = vst [vmem:[%s10002_s29 + $0x80] sm:$0xff] %v657_v32  ;;  %660 = vst [vmem:[%s10002_s29 + $0x88] sm:$0xff] %v659_v33  ;;  %v661_v34 = vld [vmem:[%s9997_s23 + $0x120] sm:$0xff]  ;;  %v663_v35 = vld [vmem:[%s9997_s23 + $0x130] sm:$0xff] }
  0x2a   : > { %v665_v36 = vld [vmem:[%s9997_s23 + $0x140] sm:$0xff]  ;;  %662 = vst [vmem:[%s10002_s29 + $0x90] sm:$0xff] %v661_v34  ;;  %664 = vst [vmem:[%s10002_s29 + $0x98] sm:$0xff] %v663_v35  ;;  %v667_v37 = vld [vmem:[%s9997_s23 + $0x150] sm:$0xff] }
  0x2b   : > { %666 = vst [vmem:[%s10002_s29 + $0xa0] sm:$0xff] %v665_v36  ;;  %v669_v38 = vld [vmem:[%s9997_s23 + $0x160] sm:$0xff]  ;;  %v671_v39 = vld [vmem:[%s9997_s23 + $0x170] sm:$0xff]  ;;  %668 = vst [vmem:[%s10002_s29 + $0xa8] sm:$0xff] %v667_v37 }
  0x2c   : > { %670 = vst [vmem:[%s10002_s29 + $0xb0] sm:$0xff] %v669_v38  ;;  %672 = vst [vmem:[%s10002_s29 + $0xb8] sm:$0xff] %v671_v39  ;;  %v673_v40 = vld [vmem:[%s9997_s23 + $0x180] sm:$0xff]  ;;  %v675_v41 = vld [vmem:[%s9997_s23 + $0x190] sm:$0xff] }
  0x2d   : > { %v677_v42 = vld [vmem:[%s9997_s23 + $0x1a0] sm:$0xff]  ;;  %674 = vst [vmem:[%s10002_s29 + $0xc0] sm:$0xff] %v673_v40  ;;  %676 = vst [vmem:[%s10002_s29 + $0xc8] sm:$0xff] %v675_v41  ;;  %v679_v43 = vld [vmem:[%s9997_s23 + $0x1b0] sm:$0xff] }
  0x2e   : > { %678 = vst [vmem:[%s10002_s29 + $0xd0] sm:$0xff] %v677_v42  ;;  %v681_v44 = vld [vmem:[%s9997_s23 + $0x1c0] sm:$0xff]  ;;  %v683_v45 = vld [vmem:[%s9997_s23 + $0x1d0] sm:$0xff]  ;;  %680 = vst [vmem:[%s10002_s29 + $0xd8] sm:$0xff] %v679_v43 }
  0x2f   : > { %682 = vst [vmem:[%s10002_s29 + $0xe0] sm:$0xff] %v681_v44  ;;  %684 = vst [vmem:[%s10002_s29 + $0xe8] sm:$0xff] %v683_v45  ;;  %v685_v46 = vld [vmem:[%s9997_s23 + $0x1e0] sm:$0xff]  ;;  %v687_v47 = vld [vmem:[%s9997_s23 + $0x1f0] sm:$0xff] }
  0x30   : > { %v689_v48 = vld [vmem:[%s9997_s23 + $0x200] sm:$0xff]  ;;  %686 = vst [vmem:[%s10002_s29 + $0xf0] sm:$0xff] %v685_v46  ;;  %688 = vst [vmem:[%s10002_s29 + $0xf8] sm:$0xff] %v687_v47  ;;  %v691_v49 = vld [vmem:[%s9997_s23 + $0x210] sm:$0xff] }
  0x31   : > { %690 = vst [vmem:[%s10002_s29 + $0x100] sm:$0xff] %v689_v48  ;;  %v693_v50 = vld [vmem:[%s9997_s23 + $0x220] sm:$0xff]  ;;  %v695_v51 = vld [vmem:[%s9997_s23 + $0x230] sm:$0xff]  ;;  %692 = vst [vmem:[%s10002_s29 + $0x108] sm:$0xff] %v691_v49 }
  0x32   : > { %694 = vst [vmem:[%s10002_s29 + $0x110] sm:$0xff] %v693_v50  ;;  %696 = vst [vmem:[%s10002_s29 + $0x118] sm:$0xff] %v695_v51  ;;  %v697_v52 = vld [vmem:[%s9997_s23 + $0x240] sm:$0xff]  ;;  %v699_v53 = vld [vmem:[%s9997_s23 + $0x250] sm:$0xff] }
  0x33   : > { %v701_v54 = vld [vmem:[%s9997_s23 + $0x260] sm:$0xff]  ;;  %698 = vst [vmem:[%s10002_s29 + $0x120] sm:$0xff] %v697_v52  ;;  %700 = vst [vmem:[%s10002_s29 + $0x128] sm:$0xff] %v699_v53  ;;  %v703_v55 = vld [vmem:[%s9997_s23 + $0x270] sm:$0xff] }
  0x34   : > { %702 = vst [vmem:[%s10002_s29 + $0x130] sm:$0xff] %v701_v54  ;;  %v705_v56 = vld [vmem:[%s9997_s23 + $0x280] sm:$0xff]  ;;  %v707_v57 = vld [vmem:[%s9997_s23 + $0x290] sm:$0xff]  ;;  %704 = vst [vmem:[%s10002_s29 + $0x138] sm:$0xff] %v703_v55 }
  0x35   : > { %706 = vst [vmem:[%s10002_s29 + $0x140] sm:$0xff] %v705_v56  ;;  %708 = vst [vmem:[%s10002_s29 + $0x148] sm:$0xff] %v707_v57  ;;  %v709_v58 = vld [vmem:[%s9997_s23 + $0x2a0] sm:$0xff]  ;;  %v711_v59 = vld [vmem:[%s9997_s23 + $0x2b0] sm:$0xff] }
  0x36   : > { %v713_v60 = vld [vmem:[%s9997_s23 + $0x2c0] sm:$0xff]  ;;  %710 = vst [vmem:[%s10002_s29 + $0x150] sm:$0xff] %v709_v58  ;;  %712 = vst [vmem:[%s10002_s29 + $0x158] sm:$0xff] %v711_v59  ;;  %v715_v61 = vld [vmem:[%s9997_s23 + $0x2d0] sm:$0xff] }
  0x37   : > { %714 = vst [vmem:[%s10002_s29 + $0x160] sm:$0xff] %v713_v60  ;;  %v717_v62 = vld [vmem:[%s9997_s23 + $0x2e0] sm:$0xff]  ;;  %v719_v63 = vld [vmem:[%s9997_s23 + $0x2f0] sm:$0xff]  ;;  %716 = vst [vmem:[%s10002_s29 + $0x168] sm:$0xff] %v715_v61 }
  0x38   : > { %718 = vst [vmem:[%s10002_s29 + $0x170] sm:$0xff] %v717_v62  ;;  %720 = vst [vmem:[%s10002_s29 + $0x178] sm:$0xff] %v719_v63  ;;  %v721_v0 = vld [vmem:[%s9997_s23 + $0x300] sm:$0xff]  ;;  %v723_v1 = vld [vmem:[%s9997_s23 + $0x310] sm:$0xff] }
  0x39   : > { %v725_v2 = vld [vmem:[%s9997_s23 + $0x320] sm:$0xff]  ;;  %722 = vst [vmem:[%s10002_s29 + $0x180] sm:$0xff] %v721_v0  ;;  %724 = vst [vmem:[%s10002_s29 + $0x188] sm:$0xff] %v723_v1  ;;  %v727_v3 = vld [vmem:[%s9997_s23 + $0x330] sm:$0xff] }
  0x3a   : > { %726 = vst [vmem:[%s10002_s29 + $0x190] sm:$0xff] %v725_v2  ;;  %v729_v4 = vld [vmem:[%s9997_s23 + $0x340] sm:$0xff]  ;;  %v731_v5 = vld [vmem:[%s9997_s23 + $0x350] sm:$0xff]  ;;  %728 = vst [vmem:[%s10002_s29 + $0x198] sm:$0xff] %v727_v3 }
  0x3b   : > { %730 = vst [vmem:[%s10002_s29 + $0x1a0] sm:$0xff] %v729_v4  ;;  %732 = vst [vmem:[%s10002_s29 + $0x1a8] sm:$0xff] %v731_v5  ;;  %v733_v6 = vld [vmem:[%s9997_s23 + $0x360] sm:$0xff]  ;;  %v735_v7 = vld [vmem:[%s9997_s23 + $0x370] sm:$0xff] }
  0x3c   : > { %v737_v8 = vld [vmem:[%s9997_s23 + $0x380] sm:$0xff]  ;;  %734 = vst [vmem:[%s10002_s29 + $0x1b0] sm:$0xff] %v733_v6  ;;  %736 = vst [vmem:[%s10002_s29 + $0x1b8] sm:$0xff] %v735_v7  ;;  %v739_v9 = vld [vmem:[%s9997_s23 + $0x390] sm:$0xff] }
  0x3d   : > { %738 = vst [vmem:[%s10002_s29 + $0x1c0] sm:$0xff] %v737_v8  ;;  %v741_v10 = vld [vmem:[%s9997_s23 + $0x3a0] sm:$0xff]  ;;  %v743_v11 = vld [vmem:[%s9997_s23 + $0x3b0] sm:$0xff]  ;;  %740 = vst [vmem:[%s10002_s29 + $0x1c8] sm:$0xff] %v739_v9 }
  0x3e   : > { %742 = vst [vmem:[%s10002_s29 + $0x1d0] sm:$0xff] %v741_v10  ;;  %744 = vst [vmem:[%s10002_s29 + $0x1d8] sm:$0xff] %v743_v11  ;;  %v745_v12 = vld [vmem:[%s9997_s23 + $0x3c0] sm:$0xff]  ;;  %v747_v13 = vld [vmem:[%s9997_s23 + $0x3d0] sm:$0xff] }
  0x3f   : > { %v749_v14 = vld [vmem:[%s9997_s23 + $0x3e0] sm:$0xff]  ;;  %746 = vst [vmem:[%s10002_s29 + $0x1e0] sm:$0xff] %v745_v12  ;;  %748 = vst [vmem:[%s10002_s29 + $0x1e8] sm:$0xff] %v747_v13  ;;  %v751_v15 = vld [vmem:[%s9997_s23 + $0x3f0] sm:$0xff] }
  0x40   : > { %750 = vst [vmem:[%s10002_s29 + $0x1f0] sm:$0xff] %v749_v14  ;;  %v753_v16 = vld [vmem:[%s9997_s23 + $0x400] sm:$0xff]  ;;  %v755_v17 = vld [vmem:[%s9997_s23 + $0x410] sm:$0xff]  ;;  %752 = vst [vmem:[%s10002_s29 + $0x1f8] sm:$0xff] %v751_v15 }
  0x41   : > { %754 = vst [vmem:[%s10002_s29 + $0x200] sm:$0xff] %v753_v16  ;;  %756 = vst [vmem:[%s10002_s29 + $0x208] sm:$0xff] %v755_v17  ;;  %v757_v18 = vld [vmem:[%s9997_s23 + $0x420] sm:$0xff]  ;;  %v759_v19 = vld [vmem:[%s9997_s23 + $0x430] sm:$0xff] }
  0x42   : > { %v761_v20 = vld [vmem:[%s9997_s23 + $0x440] sm:$0xff]  ;;  %758 = vst [vmem:[%s10002_s29 + $0x210] sm:$0xff] %v757_v18  ;;  %760 = vst [vmem:[%s10002_s29 + $0x218] sm:$0xff] %v759_v19  ;;  %v763_v21 = vld [vmem:[%s9997_s23 + $0x450] sm:$0xff] }
  0x43   : > { %762 = vst [vmem:[%s10002_s29 + $0x220] sm:$0xff] %v761_v20  ;;  %v765_v22 = vld [vmem:[%s9997_s23 + $0x460] sm:$0xff]  ;;  %v767_v23 = vld [vmem:[%s9997_s23 + $0x470] sm:$0xff]  ;;  %764 = vst [vmem:[%s10002_s29 + $0x228] sm:$0xff] %v763_v21 }
  0x44   : > { %766 = vst [vmem:[%s10002_s29 + $0x230] sm:$0xff] %v765_v22  ;;  %768 = vst [vmem:[%s10002_s29 + $0x238] sm:$0xff] %v767_v23  ;;  %v769_v24 = vld [vmem:[%s9997_s23 + $0x480] sm:$0xff]  ;;  %v771_v25 = vld [vmem:[%s9997_s23 + $0x490] sm:$0xff] }
  0x45   : > { %v773_v26 = vld [vmem:[%s9997_s23 + $0x4a0] sm:$0xff]  ;;  %770 = vst [vmem:[%s10002_s29 + $0x240] sm:$0xff] %v769_v24  ;;  %772 = vst [vmem:[%s10002_s29 + $0x248] sm:$0xff] %v771_v25  ;;  %v775_v27 = vld [vmem:[%s9997_s23 + $0x4b0] sm:$0xff] }
  0x46   : > { %774 = vst [vmem:[%s10002_s29 + $0x250] sm:$0xff] %v773_v26  ;;  %v777_v28 = vld [vmem:[%s9997_s23 + $0x4c0] sm:$0xff]  ;;  %v779_v29 = vld [vmem:[%s9997_s23 + $0x4d0] sm:$0xff]  ;;  %776 = vst [vmem:[%s10002_s29 + $0x258] sm:$0xff] %v775_v27 }
  0x47   : > { %778 = vst [vmem:[%s10002_s29 + $0x260] sm:$0xff] %v777_v28  ;;  %780 = vst [vmem:[%s10002_s29 + $0x268] sm:$0xff] %v779_v29  ;;  %v781_v30 = vld [vmem:[%s9997_s23 + $0x4e0] sm:$0xff]  ;;  %v783_v31 = vld [vmem:[%s9997_s23 + $0x4f0] sm:$0xff] }
  0x48   : > { %v785_v32 = vld [vmem:[%s9997_s23 + $0x500] sm:$0xff]  ;;  %782 = vst [vmem:[%s10002_s29 + $0x270] sm:$0xff] %v781_v30  ;;  %784 = vst [vmem:[%s10002_s29 + $0x278] sm:$0xff] %v783_v31  ;;  %v787_v33 = vld [vmem:[%s9997_s23 + $0x510] sm:$0xff] }
  0x49   : > { %786 = vst [vmem:[%s10002_s29 + $0x280] sm:$0xff] %v785_v32  ;;  %v789_v34 = vld [vmem:[%s9997_s23 + $0x520] sm:$0xff]  ;;  %v791_v35 = vld [vmem:[%s9997_s23 + $0x530] sm:$0xff]  ;;  %788 = vst [vmem:[%s10002_s29 + $0x288] sm:$0xff] %v787_v33 }
  0x4a   : > { %790 = vst [vmem:[%s10002_s29 + $0x290] sm:$0xff] %v789_v34  ;;  %792 = vst [vmem:[%s10002_s29 + $0x298] sm:$0xff] %v791_v35  ;;  %v793_v36 = vld [vmem:[%s9997_s23 + $0x540] sm:$0xff]  ;;  %v795_v37 = vld [vmem:[%s9997_s23 + $0x550] sm:$0xff] }
  0x4b   : > { %v797_v38 = vld [vmem:[%s9997_s23 + $0x560] sm:$0xff]  ;;  %794 = vst [vmem:[%s10002_s29 + $0x2a0] sm:$0xff] %v793_v36  ;;  %796 = vst [vmem:[%s10002_s29 + $0x2a8] sm:$0xff] %v795_v37  ;;  %v799_v39 = vld [vmem:[%s9997_s23 + $0x570] sm:$0xff] }
  0x4c   : > { %798 = vst [vmem:[%s10002_s29 + $0x2b0] sm:$0xff] %v797_v38  ;;  %v801_v40 = vld [vmem:[%s9997_s23 + $0x580] sm:$0xff]  ;;  %v803_v41 = vld [vmem:[%s9997_s23 + $0x590] sm:$0xff]  ;;  %800 = vst [vmem:[%s10002_s29 + $0x2b8] sm:$0xff] %v799_v39 }
  0x4d   : > { %802 = vst [vmem:[%s10002_s29 + $0x2c0] sm:$0xff] %v801_v40  ;;  %804 = vst [vmem:[%s10002_s29 + $0x2c8] sm:$0xff] %v803_v41  ;;  %v805_v42 = vld [vmem:[%s9997_s23 + $0x5a0] sm:$0xff]  ;;  %v807_v43 = vld [vmem:[%s9997_s23 + $0x5b0] sm:$0xff] }
  0x4e   : > { %v809_v44 = vld [vmem:[%s9997_s23 + $0x5c0] sm:$0xff]  ;;  %806 = vst [vmem:[%s10002_s29 + $0x2d0] sm:$0xff] %v805_v42  ;;  %808 = vst [vmem:[%s10002_s29 + $0x2d8] sm:$0xff] %v807_v43  ;;  %v811_v45 = vld [vmem:[%s9997_s23 + $0x5d0] sm:$0xff] }
  0x4f   : > { %810 = vst [vmem:[%s10002_s29 + $0x2e0] sm:$0xff] %v809_v44  ;;  %v813_v46 = vld [vmem:[%s9997_s23 + $0x5e0] sm:$0xff]  ;;  %v815_v47 = vld [vmem:[%s9997_s23 + $0x5f0] sm:$0xff]  ;;  %812 = vst [vmem:[%s10002_s29 + $0x2e8] sm:$0xff] %v811_v45 }
  0x50   : > { %814 = vst [vmem:[%s10002_s29 + $0x2f0] sm:$0xff] %v813_v46  ;;  %816 = vst [vmem:[%s10002_s29 + $0x2f8] sm:$0xff] %v815_v47  ;;  %v817_v48 = vld [vmem:[%s9997_s23 + $0x600] sm:$0xff]  ;;  %v819_v49 = vld [vmem:[%s9997_s23 + $0x610] sm:$0xff] }
  0x51   : > { %v821_v50 = vld [vmem:[%s9997_s23 + $0x620] sm:$0xff]  ;;  %818 = vst [vmem:[%s10002_s29 + $0x300] sm:$0xff] %v817_v48  ;;  %820 = vst [vmem:[%s10002_s29 + $0x308] sm:$0xff] %v819_v49  ;;  %v823_v51 = vld [vmem:[%s9997_s23 + $0x630] sm:$0xff] }
  0x52   : > { %822 = vst [vmem:[%s10002_s29 + $0x310] sm:$0xff] %v821_v50  ;;  %v825_v52 = vld [vmem:[%s9997_s23 + $0x640] sm:$0xff]  ;;  %v827_v53 = vld [vmem:[%s9997_s23 + $0x650] sm:$0xff]  ;;  %824 = vst [vmem:[%s10002_s29 + $0x318] sm:$0xff] %v823_v51 }
  0x53   : > { %826 = vst [vmem:[%s10002_s29 + $0x320] sm:$0xff] %v825_v52  ;;  %828 = vst [vmem:[%s10002_s29 + $0x328] sm:$0xff] %v827_v53  ;;  %v829_v54 = vld [vmem:[%s9997_s23 + $0x660] sm:$0xff]  ;;  %v831_v55 = vld [vmem:[%s9997_s23 + $0x670] sm:$0xff] }
  0x54   : > { %v833_v56 = vld [vmem:[%s9997_s23 + $0x680] sm:$0xff]  ;;  %830 = vst [vmem:[%s10002_s29 + $0x330] sm:$0xff] %v829_v54  ;;  %832 = vst [vmem:[%s10002_s29 + $0x338] sm:$0xff] %v831_v55  ;;  %v835_v57 = vld [vmem:[%s9997_s23 + $0x690] sm:$0xff] }
  0x55   : > { %834 = vst [vmem:[%s10002_s29 + $0x340] sm:$0xff] %v833_v56  ;;  %v837_v58 = vld [vmem:[%s9997_s23 + $0x6a0] sm:$0xff]  ;;  %v839_v59 = vld [vmem:[%s9997_s23 + $0x6b0] sm:$0xff]  ;;  %836 = vst [vmem:[%s10002_s29 + $0x348] sm:$0xff] %v835_v57 }
  0x56   : > { %838 = vst [vmem:[%s10002_s29 + $0x350] sm:$0xff] %v837_v58  ;;  %840 = vst [vmem:[%s10002_s29 + $0x358] sm:$0xff] %v839_v59  ;;  %v841_v60 = vld [vmem:[%s9997_s23 + $0x6c0] sm:$0xff]  ;;  %v843_v61 = vld [vmem:[%s9997_s23 + $0x6d0] sm:$0xff] }
  0x57   : > { %v845_v62 = vld [vmem:[%s9997_s23 + $0x6e0] sm:$0xff]  ;;  %842 = vst [vmem:[%s10002_s29 + $0x360] sm:$0xff] %v841_v60  ;;  %844 = vst [vmem:[%s10002_s29 + $0x368] sm:$0xff] %v843_v61  ;;  %v847_v63 = vld [vmem:[%s9997_s23 + $0x6f0] sm:$0xff] }
  0x58   : > { %846 = vst [vmem:[%s10002_s29 + $0x370] sm:$0xff] %v845_v62  ;;  %v849_v0 = vld [vmem:[%s9997_s23 + $0x700] sm:$0xff]  ;;  %v851_v1 = vld [vmem:[%s9997_s23 + $0x710] sm:$0xff]  ;;  %848 = vst [vmem:[%s10002_s29 + $0x378] sm:$0xff] %v847_v63 }
  0x59   : > { %850 = vst [vmem:[%s10002_s29 + $0x380] sm:$0xff] %v849_v0  ;;  %852 = vst [vmem:[%s10002_s29 + $0x388] sm:$0xff] %v851_v1  ;;  %v853_v2 = vld [vmem:[%s9997_s23 + $0x720] sm:$0xff]  ;;  %v855_v3 = vld [vmem:[%s9997_s23 + $0x730] sm:$0xff] }
  0x5a   : > { %v857_v4 = vld [vmem:[%s9997_s23 + $0x740] sm:$0xff]  ;;  %854 = vst [vmem:[%s10002_s29 + $0x390] sm:$0xff] %v853_v2  ;;  %856 = vst [vmem:[%s10002_s29 + $0x398] sm:$0xff] %v855_v3  ;;  %v859_v5 = vld [vmem:[%s9997_s23 + $0x750] sm:$0xff] }
  0x5b   : > { %858 = vst [vmem:[%s10002_s29 + $0x3a0] sm:$0xff] %v857_v4  ;;  %v861_v6 = vld [vmem:[%s9997_s23 + $0x760] sm:$0xff]  ;;  %v863_v7 = vld [vmem:[%s9997_s23 + $0x770] sm:$0xff]  ;;  %860 = vst [vmem:[%s10002_s29 + $0x3a8] sm:$0xff] %v859_v5 }
  0x5c   : > { %862 = vst [vmem:[%s10002_s29 + $0x3b0] sm:$0xff] %v861_v6  ;;  %864 = vst [vmem:[%s10002_s29 + $0x3b8] sm:$0xff] %v863_v7  ;;  %v865_v8 = vld [vmem:[%s9997_s23 + $0x780] sm:$0xff]  ;;  %v867_v9 = vld [vmem:[%s9997_s23 + $0x790] sm:$0xff] }
  0x5d   : > { %v869_v10 = vld [vmem:[%s9997_s23 + $0x7a0] sm:$0xff]  ;;  %866 = vst [vmem:[%s10002_s29 + $0x3c0] sm:$0xff] %v865_v8  ;;  %868 = vst [vmem:[%s10002_s29 + $0x3c8] sm:$0xff] %v867_v9  ;;  %v871_v11 = vld [vmem:[%s9997_s23 + $0x7b0] sm:$0xff] }
  0x5e   : > { %870 = vst [vmem:[%s10002_s29 + $0x3d0] sm:$0xff] %v869_v10  ;;  %v873_v12 = vld [vmem:[%s9997_s23 + $0x7c0] sm:$0xff]  ;;  %v875_v13 = vld [vmem:[%s9997_s23 + $0x7d0] sm:$0xff]  ;;  %872 = vst [vmem:[%s10002_s29 + $0x3d8] sm:$0xff] %v871_v11 }
  0x5f   : > { %874 = vst [vmem:[%s10002_s29 + $0x3e0] sm:$0xff] %v873_v12  ;;  %876 = vst [vmem:[%s10002_s29 + $0x3e8] sm:$0xff] %v875_v13  ;;  %v877_v14 = vld [vmem:[%s9997_s23 + $0x7e0] sm:$0xff]  ;;  %v879_v15 = vld [vmem:[%s9997_s23 + $0x7f0] sm:$0xff] }
  0x60   : > { %878 = vst [vmem:[%s10002_s29 + $0x3f0] sm:$0xff] %v877_v14  ;;  %880 = vst [vmem:[%s10002_s29 + $0x3f8] sm:$0xff] %v879_v15 }
  0x61 PF: > { %p9159_p7 = scmp.ge.s32.totalorder %s9878_s26, 1  ;;  %p894_p8 = scmp.lt.s32.totalorder %s9878_s26, 3 }
  0x63   : > { %p895_p9 = pnand %p9159_p7, %p894_p8 }
  0x65   : > { %898 = sbr.rel (%p895_p9) target bundleno = 1477 (0x5c5), region = 116 }
  0x6c   : > { %s10260_s30 = sand.u32 1, %s9870_s24   ;;  %v15661_v16 = vmov 0   ;;  %v9881_v19 = vmov 1   ;;  %v9564_v51 = vld [vmem:[%s15656_s3] sm:$0xff]   ;;  %v10321_v55 = vld [vmem:[%s15659_s6 + $0x10] sm:$0xff]  ;;  %v9566_v58 = vld [vmem:[%s15656_s3 + $0x8] sm:$0xff]  }
  0x6d   : > { %s9160_s9 = sshll.u32 %s10260_s30, 7  ;;  %s9161_s11 = sshll.u32 %s10260_s30, 10  ;;  %1245 = vmatprep.mubr.bf16.mxu0 %v15661_v16  ;;  %1582 = vmatprep.mubr.bf16.mxu1 %v15661_v16  ;;  %v10311_v52 = vld [vmem:[%s15657_s4] sm:$0xff]   ;;  %v10333_v59 = vld [vmem:[%s15657_s4 + $0x8] sm:$0xff]   ;;  %v10338_v60 = vld [vmem:[%s15659_s6 + $0x18] sm:$0xff]  ;;  %vm2156_vm0 = vcmask 1041409  }
  0x6e   : > { %9497 = vset.pattern.permute.xlu0 %v15661_v16  ;;  %s10267_s12 = scalar_lea.vmem [#allocation4], %s9160_s9  ;;  %s10270_s24 = scalar_lea.vmem [#allocation5], %s9161_s11  ;;  %9498 = vset.pattern.permute.xlu1 %v9881_v19  ;;  %v10346_v63 = vld [vmem:[%s15659_s6 + $0x20] sm:$0xff]  ;;  %v9568_v0 = vld [vmem:[%s15656_s3 + $0x10] sm:$0xff]   ;;  %v10361_v3 = vld [vmem:[%s15659_s6 + $0x8] sm:$0xff]  ;;  %vm2159_vm1 = vcmask 1042434  }
  0x6f   : > { %v9516_v17 = vld [vmem:[%s10267_s12 + $0x4] ss:$8 sps:$4 sm:$0xff]   ;;  %v9520_v20 = vld [vmem:[%s10267_s12] ss:$8 sps:$4 sm:$0xff]   ;;  %v9522_v22 = vld [vmem:[%s10267_s12 + $0x14] ss:$8 sps:$4 sm:$0xff]   ;;  %1017 = vperm.xlu0 %9497, %v10321_v55   ;;  %1752 = vperm.xlu1 %9498, %v10321_v55  }
  0x70   : > { %v9518_v18 = vld [vmem:[%s10270_s24 + $0x4] ss:$8 sps:$4 sm:$0xff]   ;;  %1213 = vmatprep.subr.bf16.mxu0 %v9516_v17  ;;  %v9521_v21 = vld [vmem:[%s10270_s24] ss:$8 sps:$4 sm:$0xff]   ;;  %v9524_v23 = vld [vmem:[%s10270_s24 + $0x14] ss:$8 sps:$4 sm:$0xff]  }
  0x71   : > { %1550 = vmatprep.subr.bf16.mxu1 %v9518_v18  ;;  %1214 = vmatpush1.bf16.msra.mxu0 %v9520_v20  ;;  %v9526_v24 = vld [vmem:[%s10267_s12 + $0x10] ss:$8 sps:$4 sm:$0xff]   ;;  %v9528_v26 = vld [vmem:[%s10267_s12 + $0x24] ss:$8 sps:$4 sm:$0xff]   ;;  %v9532_v28 = vld [vmem:[%s10267_s12 + $0x20] ss:$8 sps:$4 sm:$0xff]  }
  0x72   : > { %1551 = vmatpush1.bf16.msra.mxu1 %v9521_v21  ;;  %1215 = vmatprep.subr.bf16.mxu0 %v9522_v22  ;;  %v9527_v25 = vld [vmem:[%s10270_s24 + $0x10] ss:$8 sps:$4 sm:$0xff]   ;;  %v9530_v27 = vld [vmem:[%s10270_s24 + $0x24] ss:$8 sps:$4 sm:$0xff]   ;;  %v9533_v29 = vld [vmem:[%s10270_s24 + $0x20] ss:$8 sps:$4 sm:$0xff]  }
  0x73   : > { %1552 = vmatprep.subr.bf16.mxu1 %v9524_v23  ;;  %v9534_v30 = vld [vmem:[%s10267_s12 + $0x34] ss:$8 sps:$4 sm:$0xff]   ;;  %v9538_v32 = vld [vmem:[%s10267_s12 + $0x30] ss:$8 sps:$4 sm:$0xff]   ;;  %v9540_v34 = vld [vmem:[%s10267_s12 + $0x44] ss:$8 sps:$4 sm:$0xff]   ;;  %1022 = vperm.xlu0 %9497, %v10338_v60  }
  0x74   : > { %v9536_v31 = vld [vmem:[%s10270_s24 + $0x34] ss:$8 sps:$4 sm:$0xff]   ;;  %v9539_v33 = vld [vmem:[%s10270_s24 + $0x30] ss:$8 sps:$4 sm:$0xff]   ;;  %v9542_v35 = vld [vmem:[%s10270_s24 + $0x44] ss:$8 sps:$4 sm:$0xff]   ;;  %1756 = vperm.xlu1 %9498, %v10338_v60  }
  0x75   : > { %1216 = vmatpush1.bf16.msra.mxu0 %v9526_v24  ;;  %v9544_v36 = vld [vmem:[%s10267_s12 + $0x40] ss:$8 sps:$4 sm:$0xff]   ;;  %v9546_v38 = vld [vmem:[%s10267_s12 + $0x54] ss:$8 sps:$4 sm:$0xff]   ;;  %v9550_v40 = vld [vmem:[%s10267_s12 + $0x50] ss:$8 sps:$4 sm:$0xff]  }
  0x76   : > { %1553 = vmatpush1.bf16.msra.mxu1 %v9527_v25  ;;  %1217 = vmatprep.subr.bf16.mxu0 %v9528_v26  ;;  %v9545_v37 = vld [vmem:[%s10270_s24 + $0x40] ss:$8 sps:$4 sm:$0xff]   ;;  %v9548_v39 = vld [vmem:[%s10270_s24 + $0x54] ss:$8 sps:$4 sm:$0xff]   ;;  %v9551_v41 = vld [vmem:[%s10270_s24 + $0x50] ss:$8 sps:$4 sm:$0xff]  }
  0x77   : > { %1554 = vmatprep.subr.bf16.mxu1 %v9530_v27  ;;  %v9552_v42 = vld [vmem:[%s10267_s12 + $0x64] ss:$8 sps:$4 sm:$0xff]   ;;  %v9556_v44 = vld [vmem:[%s10267_s12 + $0x60] ss:$8 sps:$4 sm:$0xff]   ;;  %v9558_v46 = vld [vmem:[%s10267_s12 + $0x74] ss:$8 sps:$4 sm:$0xff]   ;;  %1027 = vperm.xlu0 %9497, %v10346_v63  }
  0x78   : > { %v9554_v43 = vld [vmem:[%s10270_s24 + $0x64] ss:$8 sps:$4 sm:$0xff]   ;;  %v9557_v45 = vld [vmem:[%s10270_s24 + $0x60] ss:$8 sps:$4 sm:$0xff]   ;;  %v9560_v47 = vld [vmem:[%s10270_s24 + $0x74] ss:$8 sps:$4 sm:$0xff]   ;;  %9499 = vset.pattern.permute.xlu1 %v15661_v16 }
  0x79   : > { %1218 = vmatpush1.bf16.msra.mxu0 %v9532_v28  ;;  %v9562_v48 = vld [vmem:[%s10267_s12 + $0x70] ss:$8 sps:$4 sm:$0xff]   ;;  %v9576_v50 = vld [vmem:[%s10270_s24 + $0x84] ss:$8 sps:$4 sm:$0xff]   ;;  %v9574_v53 = vld [vmem:[%s10270_s24 + $0x80] ss:$8 sps:$4 sm:$0xff]  }
  0x7a   : > { %1555 = vmatpush1.bf16.msra.mxu1 %v9533_v29  ;;  %1219 = vmatprep.subr.bf16.mxu0 %v9534_v30  ;;  %v9563_v49 = vld [vmem:[%s10270_s24 + $0x70] ss:$8 sps:$4 sm:$0xff]   ;;  %v9579_v54 = vld [vmem:[%s10270_s24 + $0x94] ss:$8 sps:$4 sm:$0xff]   ;;  %v9584_v57 = vld [vmem:[%s10270_s24 + $0xa4] ss:$8 sps:$4 sm:$0xff]  }
  0x7b   : > { %1556 = vmatprep.subr.bf16.mxu1 %v9536_v31  ;;  %v9577_v56 = vld [vmem:[%s10270_s24 + $0x90] ss:$8 sps:$4 sm:$0xff]   ;;  %v9582_v61 = vld [vmem:[%s10270_s24 + $0xa0] ss:$8 sps:$4 sm:$0xff]   ;;  %v9587_v62 = vld [vmem:[%s10270_s24 + $0xb4] ss:$8 sps:$4 sm:$0xff]   ;;  %1012 = vperm.xlu0 %9497, %v10361_v3  }
  0x7c   : > { %v9585_v1 = vld [vmem:[%s10270_s24 + $0xb0] ss:$8 sps:$4 sm:$0xff]   ;;  %v9592_v2 = vld [vmem:[%s10270_s24 + $0xc4] ss:$8 sps:$4 sm:$0xff]   ;;  %v9590_v6 = vld [vmem:[%s10270_s24 + $0xc0] ss:$8 sps:$4 sm:$0xff]  }
  0x7d   : > { %1220 = vmatpush1.bf16.msra.mxu0 %v9538_v32  ;;  %v10367_v4 = vld [vmem:[%s15657_s4 + $0x10] sm:$0xff]   ;;  %v10372_v5 = vld [vmem:[%s15659_s6 + $0x28] sm:$0xff]  ;;  %v9570_v10 = vld [vmem:[%s15656_s3 + $0x18] sm:$0xff]   ;;  %s9163_s26 = sshll.u32 %s9941_s27, 1  ;;  %vm2162_vm2 = vcmask 1043459   ;;  %vm2165_vm3 = vcmask 1044484  }
  0x7e   : > { %1557 = vmatpush1.bf16.msra.mxu1 %v9539_v33  ;;  %1221 = vmatprep.subr.bf16.mxu0 %v9540_v34  ;;  %v9595_v7 = vld [vmem:[%s10270_s24 + $0xd4] ss:$8 sps:$4 sm:$0xff]   ;;  %v10381_v8 = vld [vmem:[%s15659_s6 + $0x48] sm:$0xff]  ;;  %v9593_v9 = vld [vmem:[%s10270_s24 + $0xd0] ss:$8 sps:$4 sm:$0xff]   ;;  %p10786_p10 = scmp.lt.s32.totalorder %s9163_s26, 3 }
  0x7f   : > { %1558 = vmatprep.subr.bf16.mxu1 %v9542_v35  ;;  %1032 = vperm.xlu1 %9499, %v10372_v5   ;;  %v9600_v11 = vld [vmem:[%s10270_s24 + $0xe4] ss:$8 sps:$4 sm:$0xff]   ;;  %v10396_v12 = vld [vmem:[%s15659_s6 + $0x50] sm:$0xff]  ;;  %v10401_v13 = vld [vmem:[%s15657_s4 + $0x18] sm:$0xff]   ;;  %vm2168_vm4 = vcmask 1045509   ;;  %vm2171_vm5 = vcmask 1046534  }
  0x80   : > { %1052 = vperm.xlu0 %9497, %v10381_v8   ;;  %v9611_v14 = vld [vmem:[%s10270_s24 + $0x104] ss:$8 sps:$4 sm:$0xff]   ;;  %v9598_v15 = vld [vmem:[%s10270_s24 + $0xe0] ss:$8 sps:$4 sm:$0xff]   ;;  %v9603_v17 = vld [vmem:[%s10270_s24 + $0xf4] ss:$8 sps:$4 sm:$0xff]  }
  0x81   : > { %1222 = vmatpush1.bf16.msra.mxu0 %v9544_v36  ;;  %v10411_v18 = vld [vmem:[%s15659_s6 + $0x68] sm:$0xff]  ;;  %v10417_v20 = vld [vmem:[%s15659_s6] sm:$0xff]  ;;  %v9614_v22 = vld [vmem:[%s10270_s24 + $0x114] ss:$8 sps:$4 sm:$0xff]   ;;  %s17668_s26 = smov (!%p10786_p10, %s9163_s26), 3  ;;  %vm2174_vm6 = vcmask 1047559  }
  0x82   : > { %1559 = vmatpush1.bf16.msra.mxu1 %v9545_v37  ;;  %1223 = vmatprep.subr.bf16.mxu0 %v9546_v38  ;;  %v9609_v21 = vld [vmem:[%s10270_s24 + $0x100] ss:$8 sps:$4 sm:$0xff]   ;;  %v9601_v23 = vld [vmem:[%s10270_s24 + $0xf0] ss:$8 sps:$4 sm:$0xff]   ;;  %v9618_v29 = vld [vmem:[%s10270_s24 + $0x124] ss:$8 sps:$4 sm:$0xff]  }
  0x83   : > { %1560 = vmatprep.subr.bf16.mxu1 %v9548_v39  ;;  %9500 = vset.pattern.permute.xlu1 %v9881_v19  ;;  %v10429_v24 = vld [vmem:[%s15659_s6 + $0x70] sm:$0xff]  ;;  %v9572_v25 = vld [vmem:[%s15656_s3 + $0x20] sm:$0xff]   ;;  %v9580_v30 = vld [vmem:[%s15656_s3 + $0x28] sm:$0xff]   ;;  %s9164_s14 = sshll.u32 %s17668_s26, 3  ;;  %s9162_s16 = sshll.u32 %s10260_s30, 8 }
  0x84   : > { %1764 = vperm.xlu1 %9500, %v10372_v5   ;;  %1057 = vperm.xlu0 %9497, %v10396_v12   ;;  %v10437_v26 = vld [vmem:[%s15657_s4 + $0x20] sm:$0xff]   ;;  %v10444_v27 = vld [vmem:[%s15659_s6 + $0x30] sm:$0xff]  ;;  %v10459_v31 = vld [vmem:[%s15659_s6 + $0x38] sm:$0xff]  ;;  %s10834_s17 = scalar_lea.vmem %s15655_s2, %s9164_s14  ;;  %s15537_s18 = scalar_lea.vmem [#allocation6], %s9162_s16 }
  0x85   : > { %1224 = vmatpush1.bf16.msra.mxu0 %v9550_v40  ;;  %v9612_v28 = vld [vmem:[%s10270_s24 + $0x110] ss:$8 sps:$4 sm:$0xff]   ;;  %v9616_v32 = vld [vmem:[%s10270_s24 + $0x120] ss:$8 sps:$4 sm:$0xff]   ;;  %v9638_v33 = vld [vmem:[%s10270_s24 + $0x184] ss:$8 sps:$4 sm:$0xff]  }
  0x86   : > { %1561 = vmatpush1.bf16.msra.mxu1 %v9551_v41  ;;  %1225 = vmatprep.subr.bf16.mxu0 %v9552_v42  ;;  %v10467_v34 = vld [vmem:[%s15657_s4 + $0x28] sm:$0xff]   ;;  %v9621_v35 = vld [vmem:[%s10270_s24 + $0x134] ss:$8 sps:$4 sm:$0xff]   ;;  %v9619_v36 = vld [vmem:[%s10270_s24 + $0x130] ss:$8 sps:$4 sm:$0xff]   ;;  %s9467_s30 = sshll.u32 (%p9960_p5), %s9941_s27, 4 }
  0x87   : > { %1562 = vmatprep.subr.bf16.mxu1 %v9554_v43  ;;  %v9625_v37 = vld [vmem:[%s10270_s24 + $0x144] ss:$8 sps:$4 sm:$0xff]   ;;  %v9623_v38 = vld [vmem:[%s10270_s24 + $0x140] ss:$8 sps:$4 sm:$0xff]   ;;  %v9588_v39 = vld [vmem:[%s15656_s3 + $0x30] sm:$0xff]  }
  0x88   : > { %1072 = vperm.xlu0 %9497, %v10411_v18   ;;  %9501 = vset.pattern.permute.xlu1 %v15661_v16  ;;  %v10484_v40 = vld [vmem:[%s15657_s4 + $0x30] sm:$0xff]   ;;  %v10496_v43 = vld [vmem:[%s15659_s6 + $0x40] sm:$0xff] }
  0x89   : > { %1226 = vmatpush1.bf16.msra.mxu0 %v9556_v44  ;;  %1007 = vperm.xlu1 %9501, %v10417_v20   ;;  %v9628_v41 = vld [vmem:[%s10270_s24 + $0x154] ss:$8 sps:$4 sm:$0xff]   ;;  %v9626_v42 = vld [vmem:[%s10270_s24 + $0x150] ss:$8 sps:$4 sm:$0xff]   ;;  %v9632_v44 = vld [vmem:[%s10270_s24 + $0x164] ss:$8 sps:$4 sm:$0xff]  }
  0x8a   : > { %1563 = vmatpush1.bf16.msra.mxu1 %v9557_v45  ;;  %1227 = vmatprep.subr.bf16.mxu0 %v9558_v46  ;;  %v9630_v45 = vld [vmem:[%s10270_s24 + $0x160] ss:$8 sps:$4 sm:$0xff]   ;;  %v9596_v46 = vld [vmem:[%s15656_s3 + $0x38] sm:$0xff]  }
  0x8b   : > { %1564 = vmatprep.subr.bf16.mxu1 %v9560_v47  ;;  %v10508_v47 = vld [vmem:[%s15657_s4 + $0x38] sm:$0xff]  }
  0x8c   : > { %1077 = vperm.xlu0 %9497, %v10429_v24  }
  0x8d   : > { %1228 = vmatpush1.bf16.msra.mxu0 %v9562_v48  ;;  %1037 = vperm.xlu1 %9501, %v10444_v27   ;;  %v9635_v48 = vld [vmem:[%s10270_s24 + $0x174] ss:$8 sps:$4 sm:$0xff]  }
  0x8e   : > { %1565 = vmatpush1.bf16.msra.mxu1 %v9563_v49  ;;  %2291 = vmatprep.subr.bf16.mxu0 %v9576_v50  ;;  %v9633_v49 = vld [vmem:[%s10270_s24 + $0x170] ss:$8 sps:$4 sm:$0xff]   ;;  %v10522_v50 = vld [vmem:[%s15657_s4 + $0x40] sm:$0xff]  }
  0x8f   : > { %2916 = vmatprep.subr.bf16.mxu1 %v9611_v14  ;;  %v9882_v14 = vmov 2  }
  0x90   : > { %1246 = vmatmul.mubr.bf16.vlgmr.msra.gmra.mrb[0].mxu0 %v9564_v51  ;;  %9509 = vset.pattern.permute.xlu0 %v9881_v19  ;;  %v9636_v51 = vld [vmem:[%s10270_s24 + $0x180] ss:$8 sps:$4 sm:$0xff]  }
  0x91   : > { %1583 = vmatmul.mubr.bf16.vlgmr.msra.gmra.mrb[0].mxu1 %v10311_v52  ;;  %1255 = vmatprep.mubr.bf16.mxu0 %v15661_v16 }
  0x92   : > { %1592 = vmatprep.mubr.bf16.mxu1 %v15661_v16  ;;  %2292 = vmatpush1.bf16.msra.mxu0 %v9574_v53  ;;  %v9641_v53 = vld [vmem:[%s10270_s24 + $0x194] ss:$8 sps:$4 sm:$0xff]  }
  0x93   : > { %2293 = vmatprep.subr.bf16.mxu0 %v9579_v54  ;;  %2917 = vmatpush1.bf16.msra.mxu1 %v9609_v21  ;;  %v10532_v54 = vld [vmem:[%s15659_s6 + $0x58] sm:$0xff] }
  0x94   : > { %2918 = vmatprep.subr.bf16.mxu1 %v9614_v22  ;;  %1760 = vperm.xlu0 %9509, %v10346_v63   ;;  %v9659_v21 = vld [vmem:[%s10270_s24 + $0x1f4] ss:$8 sps:$4 sm:$0xff]   ;;  %v9657_v22 = vld [vmem:[%s10270_s24 + $0x1f0] ss:$8 sps:$4 sm:$0xff]  }
  0x95   : > { %1042 = vperm.xlu1 %9501, %v10459_v31  }
  0x96   : > { %2294 = vmatpush1.bf16.msra.mxu0 %v9577_v56  ;;  %v9639_v56 = vld [vmem:[%s10270_s24 + $0x190] ss:$8 sps:$4 sm:$0xff]  }
  0x97   : > { %2295 = vmatprep.subr.bf16.mxu0 %v9584_v57  ;;  %2919 = vmatpush1.bf16.msra.mxu1 %v9612_v28  ;;  %v9644_v57 = vld [vmem:[%s10270_s24 + $0x1a4] ss:$8 sps:$4 sm:$0xff]  }
  0x98   : > { %1256 = vmatmul.mubr.bf16.gmra.mrb[4].mxu0 %v9566_v58  ;;  %2920 = vmatprep.subr.bf16.mxu1 %v9618_v29  ;;  %v10543_v58 = vld [vmem:[%s15657_s4 + $0x48] sm:$0xff]  }
  0x99   : > { %1593 = vmatmul.mubr.bf16.gmra.mrb[4].mxu1 %v10333_v59  ;;  %1265 = vmatprep.mubr.bf16.mxu0 %v15661_v16  ;;  %v9674_v28 = vld [vmem:[%s10270_s24 + $0x244] ss:$8 sps:$4 sm:$0xff]   ;;  %v9672_v29 = vld [vmem:[%s10270_s24 + $0x240] ss:$8 sps:$4 sm:$0xff]  }
  0x9a   : > { %1602 = vmatprep.mubr.bf16.mxu1 %v15661_v16  ;;  %2296 = vmatpush1.bf16.msra.mxu0 %v9582_v61  ;;  %v9642_v61 = vld [vmem:[%s10270_s24 + $0x1a0] ss:$8 sps:$4 sm:$0xff]  }
  0x9b   : > { %2297 = vmatprep.subr.bf16.mxu0 %v9587_v62  ;;  %1744 = vperm.xlu0 %9509, %v10417_v20   ;;  %v9647_v62 = vld [vmem:[%s10270_s24 + $0x1b4] ss:$8 sps:$4 sm:$0xff]  }
  0x9c   : > { %2921 = vmatpush1.bf16.msra.mxu1 %v9616_v32  ;;  %9502 = vset.pattern.permute.xlu1 %v9881_v19  ;;  %v9680_v32 = vld [vmem:[%s10270_s24 + $0x264] ss:$8 sps:$4 sm:$0xff]  }
  0x9d   : > { %2922 = vmatprep.subr.bf16.mxu1 %v9621_v35  ;;  %1748 = vperm.xlu1 %9502, %v10361_v3   ;;  %v9683_v35 = vld [vmem:[%s10270_s24 + $0x274] ss:$8 sps:$4 sm:$0xff]  }
  0x9e   : > { %2298 = vmatpush1.bf16.msra.mxu0 %v9585_v1  ;;  %v9650_v1 = vld [vmem:[%s10270_s24 + $0x1c4] ss:$8 sps:$4 sm:$0xff]  }
  0x9f   : > { %2299 = vmatprep.subr.bf16.mxu0 %v9592_v2  ;;  %1772 = vperm.xlu0 %9509, %v10459_v31   ;;  %v10560_v2 = vld [vmem:[%s15657_s4 + $0x50] sm:$0xff]  }
  0xa0   : > { %1266 = vmatmul.mubr.bf16.gmra.mrb[8].mxu0 %v9568_v0  ;;  %2923 = vmatpush1.bf16.msra.mxu1 %v9619_v36  ;;  %v9645_v0 = vld [vmem:[%s10270_s24 + $0x1b0] ss:$8 sps:$4 sm:$0xff]  }
  0xa1   : > { %1603 = vmatmul.mubr.bf16.gmra.mrb[8].mxu1 %v10367_v4  ;;  %1275 = vmatprep.mubr.bf16.mxu0 %v15661_v16 }
  0xa2   : > { %1612 = vmatprep.mubr.bf16.mxu1 %v15661_v16  ;;  %2300 = vmatpush1.bf16.msra.mxu0 %v9590_v6  ;;  %v9648_v6 = vld [vmem:[%s10270_s24 + $0x1c0] ss:$8 sps:$4 sm:$0xff]  }
  0xa3   : > { %2301 = vmatprep.subr.bf16.mxu0 %v9595_v7  ;;  %2924 = vmatprep.subr.bf16.mxu1 %v9625_v37  ;;  %v969_v7 = vld [vmem:[%s15659_s6 + $0x60] sm:$0xff]  ;;  %v9681_v37 = vld [vmem:[%s10270_s24 + $0x270] ss:$8 sps:$4 sm:$0xff]  }
  0xa4   : > { %1768 = vperm.xlu1 %9502, %v10444_v27   ;;  %2925 = vmatpush1.bf16.msra.mxu1 %v9623_v38 }
  0xa5   : > { %2926 = vmatprep.subr.bf16.mxu1 %v9628_v41  ;;  %1784 = vperm.xlu0 %9509, %v10396_v12  }
  0xa6   : > { %2302 = vmatpush1.bf16.msra.mxu0 %v9593_v9  ;;  %v9653_v9 = vld [vmem:[%s10270_s24 + $0x1d4] ss:$8 sps:$4 sm:$0xff]  }
  0xa7   : > { %2303 = vmatprep.subr.bf16.mxu0 %v9600_v11  ;;  %v9656_v11 = vld [vmem:[%s10270_s24 + $0x1e4] ss:$8 sps:$4 sm:$0xff]  }
  0xa8   : > { %1276 = vmatmul.mubr.bf16.gmra.mrb[12].mxu0 %v9570_v10  ;;  %9503 = vset.pattern.permute.xlu1 %v15661_v16  ;;  %v9651_v10 = vld [vmem:[%s10270_s24 + $0x1d0] ss:$8 sps:$4 sm:$0xff]  }
  0xa9   : > { %1613 = vmatmul.mubr.bf16.gmra.mrb[12].mxu1 %v10401_v13  ;;  %1285 = vmatprep.mubr.bf16.mxu0 %v15661_v16 }
  0xaa   : > { %1622 = vmatprep.mubr.bf16.mxu1 %v15661_v16  ;;  %2304 = vmatpush1.bf16.msra.mxu0 %v9598_v15  ;;  %v10577_v15 = vld [vmem:[%s15657_s4 + $0x58] sm:$0xff]  }
  0xab   : > { %2305 = vmatprep.subr.bf16.mxu0 %v9603_v17  ;;  %2927 = vmatpush1.bf16.msra.mxu1 %v9626_v42  ;;  %v9654_v17 = vld [vmem:[%s10270_s24 + $0x1e0] ss:$8 sps:$4 sm:$0xff]   ;;  %v9686_v42 = vld [vmem:[%s10270_s24 + $0x284] ss:$8 sps:$4 sm:$0xff]  }
  0xac   : > { %1047 = vperm.xlu1 %9503, %v10496_v43   ;;  %2928 = vmatprep.subr.bf16.mxu1 %v9632_v44 }
  0xad   : > { %1800 = vperm.xlu0 %9509, %v10429_v24  }
  0xae   : > { %2306 = vmatpush1.bf16.msra.mxu0 %v9601_v23  ;;  %v9662_v23 = vld [vmem:[%s10270_s24 + $0x204] ss:$8 sps:$4 sm:$0xff]  }
  0xaf   : > { %3541 = vmatprep.subr.bf16.mxu0 %v9638_v33  ;;  %2929 = vmatpush1.bf16.msra.mxu1 %v9630_v45  ;;  %v9678_v33 = vld [vmem:[%s10270_s24 + $0x260] ss:$8 sps:$4 sm:$0xff]  }
  0xb0   : > { %1286 = vmatmul.mubr.bf16.gmra.mrb[16].mxu0 %v9572_v25  ;;  %9504 = vset.pattern.permute.xlu1 %v9881_v19  ;;  %v972_v25 = vld [vmem:[%s15659_s6 + $0x78] sm:$0xff] }
  0xb1   : > { %1623 = vmatmul.mubr.bf16.gmra.mrb[16].mxu1 %v10437_v26  ;;  %1295 = vmatprep.mubr.bf16.mxu0 %v15661_v16 }
  0xb2   : > { %1632 = vmatprep.mubr.bf16.mxu1 %v15661_v16  ;;  %2930 = vmatprep.subr.bf16.mxu1 %v9635_v48 }
  0xb3   : > { %1776 = vperm.xlu1 %9504, %v10496_v43   ;;  %2931 = vmatpush1.bf16.msra.mxu1 %v9633_v49 }
  0xb4   : > { %9513 = vset.pattern.permute.xlu0 %v9882_v14  ;;  %4166 = vmatprep.subr.bf16.mxu1 %v9662_v23 }
  0xb5   : > { %1844 = vperm.xlu0 %9513, %v10361_v3   ;;  %v10593_v3 = vld [vmem:[%s15657_s4 + $0x60] sm:$0xff]  }
  0xb7   : > { %1780 = vperm.xlu1 %9504, %v10381_v8  }
  0xb8   : > { %1296 = vmatmul.mubr.bf16.gmra.mrb[20].mxu0 %v9580_v30  ;;  %v9677_v30 = vld [vmem:[%s10270_s24 + $0x254] ss:$8 sps:$4 sm:$0xff]  }
  0xb9   : > { %1633 = vmatmul.mubr.bf16.gmra.mrb[20].mxu1 %v10467_v34  ;;  %1305 = vmatprep.mubr.bf16.mxu0 %v15661_v16 }
  0xba   : > { %1642 = vmatprep.mubr.bf16.mxu1 %v15661_v16  ;;  %1856 = vperm.xlu0 %9513, %v10346_v63   ;;  %v10609_v63 = vld [vmem:[%s15657_s4 + $0x68] sm:$0xff]  }
  0xbb   : > { %9505 = vset.pattern.permute.xlu1 %v15661_v16 }
  0xbc   : > { %1062 = vperm.xlu1 %9505, %v10532_v54  }
  0xbe   : > { %1864 = vperm.xlu0 %9513, %v10444_v27   ;;  %v10620_v27 = vld [vmem:[%s15657_s4 + $0x70] sm:$0xff]  }
  0xc0   : > { %1306 = vmatmul.mubr.bf16.gmra.mrb[24].mxu0 %v9588_v39  ;;  %9506 = vset.pattern.permute.xlu1 %v9881_v19 }
  0xc1   : > { %1643 = vmatmul.mubr.bf16.gmra.mrb[24].mxu1 %v10484_v40  ;;  %1315 = vmatprep.mubr.bf16.mxu0 %v15661_v16 }
  0xc2   : > { %1652 = vmatprep.mubr.bf16.mxu1 %v15661_v16  ;;  %1788 = vperm.xlu1 %9506, %v10532_v54  }
  0xc3   : > { %1872 = vperm.xlu0 %9513, %v10496_v43  }
  0xc6   : > { %9507 = vset.pattern.permute.xlu1 %v15661_v16 }
  0xc7   : > { %1067 = vperm.xlu1 %9507, %v969_v7   ;;  %1880 = vperm.xlu0 %9513, %v10396_v12   ;;  %v9665_v12 = vld [vmem:[%s10270_s24 + $0x214] ss:$8 sps:$4 sm:$0xff]  }
  0xc8   : > { %1316 = vmatmul.mubr.bf16.gmra.mrb[28].mxu0 %v9596_v46 }
  0xc9   : > { %1653 = vmatmul.mubr.bf16.gmra.mrb[28].mxu1 %v10508_v47  ;;  %2323 = vmatprep.mubr.bf16.mxu0 %v15661_v16 }
  0xca   : > { %1662 = vmatprep.mubr.bf16.mxu1 %v15661_v16 }
  0xcb   : > { %9508 = vset.pattern.permute.xlu1 %v9881_v19  ;;  %1888 = vperm.xlu0 %9513, %v969_v7  }
  0xcc   : > { %1792 = vperm.xlu1 %9508, %v969_v7  }
  0xcf   : > { %1896 = vperm.xlu0 %9513, %v10429_v24   ;;  %v9671_v24 = vld [vmem:[%s10270_s24 + $0x234] ss:$8 sps:$4 sm:$0xff]  }
  0xd0   : > { %2324 = vmatmul.mubr.bf16.vlgmr.msra.gmra.mrb[32].mxu0 %v10311_v52  ;;  %1796 = vperm.xlu1 %9508, %v10411_v18  }
  0xd1   : > { %1663 = vmatmul.mubr.bf16.gmra.mrb[32].mxu1 %v10522_v50  ;;  %2333 = vmatprep.mubr.bf16.mxu0 %v15661_v16 }
  0xd2   : > { %1672 = vmatprep.mubr.bf16.mxu1 %v15661_v16  ;;  %3542 = vmatpush1.bf16.msra.mxu0 %v9636_v51 }
  0xd3   : > { %3543 = vmatprep.subr.bf16.mxu0 %v9641_v53 }
  0xd4   : > { %9510 = vset.pattern.permute.xlu1 %v15661_v16 }
  0xd5   : > { %1082 = vperm.xlu1 %9510, %v972_v25  }
  0xd6   : > { %3544 = vmatpush1.bf16.msra.mxu0 %v9639_v56  ;;  %v9684_v56 = vld [vmem:[%s10270_s24 + $0x280] ss:$8 sps:$4 sm:$0xff]  }
  0xd7   : > { %3545 = vmatprep.subr.bf16.mxu0 %v9644_v57 }
  0xd8   : > { %2334 = vmatmul.mubr.bf16.gmra.mrb[36].mxu0 %v10333_v59 }
  0xd9   : > { %1673 = vmatmul.mubr.bf16.gmra.mrb[36].mxu1 %v10543_v58  ;;  %2343 = vmatprep.mubr.bf16.mxu0 %v15661_v16 }
  0xda   : > { %1682 = vmatprep.mubr.bf16.mxu1 %v15661_v16  ;;  %3546 = vmatpush1.bf16.msra.mxu0 %v9642_v61  ;;  %v9689_v61 = vld [vmem:[%s10270_s24 + $0x294] ss:$8 sps:$4 sm:$0xff]  }
  0xdb   : > { %3547 = vmatprep.subr.bf16.mxu0 %v9647_v62  ;;  %9511 = vset.pattern.permute.xlu1 %v9881_v19  ;;  %v10632_v19 = vld [vmem:[%s15657_s4 + $0x78] sm:$0xff]  }
  0xdc   : > { %1804 = vperm.xlu1 %9511, %v972_v25  }
  0xde   : > { %3548 = vmatpush1.bf16.msra.mxu0 %v9645_v0  ;;  %v9687_v0 = vld [vmem:[%s10270_s24 + $0x290] ss:$8 sps:$4 sm:$0xff]  }
  0xdf   : > { %3549 = vmatprep.subr.bf16.mxu0 %v9650_v1  ;;  %v9692_v1 = vld [vmem:[%s10270_s24 + $0x2a4] ss:$8 sps:$4 sm:$0xff]  }
  0xe0   : > { %2344 = vmatmul.mubr.bf16.gmra.mrb[40].mxu0 %v10367_v4  ;;  %9512 = vset.pattern.permute.xlu1 %v9882_v14 }
  0xe1   : > { %1683 = vmatmul.mubr.bf16.gmra.mrb[40].mxu1 %v10560_v2  ;;  %2353 = vmatprep.mubr.bf16.mxu0 %v15661_v16 }
  0xe2   : > { %1692 = vmatprep.mubr.bf16.mxu1 %v15661_v16  ;;  %3550 = vmatpush1.bf16.msra.mxu0 %v9648_v6 }
  0xe3   : > { %3551 = vmatprep.subr.bf16.mxu0 %v9653_v9  ;;  %1840 = vperm.xlu1 %9512, %v10417_v20   ;;  %v9666_v20 = vld [vmem:[%s10270_s24 + $0x220] ss:$8 sps:$4 sm:$0xff]   ;;  %v9693_v9 = vld [vmem:[%s10270_s24 + $0x2b0] ss:$8 sps:$4 sm:$0xff]  }
  0xe6   : > { %3552 = vmatpush1.bf16.msra.mxu0 %v9651_v10 }
  0xe7   : > { %3553 = vmatprep.subr.bf16.mxu0 %v9656_v11  ;;  %1848 = vperm.xlu1 %9512, %v10321_v55   ;;  %v9660_v55 = vld [vmem:[%s10270_s24 + $0x200] ss:$8 sps:$4 sm:$0xff]   ;;  %v9698_v11 = vld [vmem:[%s10270_s24 + $0x2c4] ss:$8 sps:$4 sm:$0xff]  }
  0xe8   : > { %2354 = vmatmul.mubr.bf16.gmra.mrb[44].mxu0 %v10401_v13 }
  0xe9   : > { %1693 = vmatmul.mubr.bf16.gmra.mrb[44].mxu1 %v10577_v15  ;;  %2363 = vmatprep.mubr.bf16.mxu0 %v15661_v16 }
  0xea   : > { %1702 = vmatprep.mubr.bf16.mxu1 %v15661_v16  ;;  %3554 = vmatpush1.bf16.msra.mxu0 %v9654_v17  ;;  %v9696_v17 = vld [vmem:[%s10270_s24 + $0x2c0] ss:$8 sps:$4 sm:$0xff]  }
  0xeb   : > { %3555 = vmatprep.subr.bf16.mxu0 %v9659_v21  ;;  %1852 = vperm.xlu1 %9512, %v10338_v60   ;;  %v9663_v60 = vld [vmem:[%s10270_s24 + $0x210] ss:$8 sps:$4 sm:$0xff]  }
  0xee   : > { %3556 = vmatpush1.bf16.msra.mxu0 %v9657_v22  ;;  %v10679_v38 = vpop.permute.xlu0 %1017  ;;  %v9699_v22 = vld [vmem:[%s10270_s24 + $0x2d0] ss:$8 sps:$4 sm:$0xff]  }
  0xef   : > { %1860 = vperm.xlu1 %9512, %v10372_v5   ;;  %v9668_v5 = vld [vmem:[%s10270_s24 + $0x224] ss:$8 sps:$4 sm:$0xff]   ;;  %4791 = vmatprep.subr.bf16.mxu0 %v9686_v42 }
  0xf0   : > { %2364 = vmatmul.mubr.bf16.gmra.mrb[48].mxu0 %v10437_v26 }
  0xf1   : > { %1703 = vmatmul.mubr.bf16.gmra.mrb[48].mxu1 %v10593_v3  ;;  %2373 = vmatprep.mubr.bf16.mxu0 %v15661_v16 }
  0xf2   : > { %1712 = vmatprep.mubr.bf16.mxu1 %v15661_v16  ;;  %v10687_v41 = vpop.permute.xlu0 %1022 }
  0xf3   : > { %1868 = vperm.xlu1 %9512, %v10459_v31   ;;  %v9675_v31 = vld [vmem:[%s10270_s24 + $0x250] ss:$8 sps:$4 sm:$0xff]  }
  0xf6   : > { %v10692_v44 = vpop.permute.xlu0 %1027 }
  0xf7   : > { %1876 = vperm.xlu1 %9512, %v10381_v8   ;;  %v9669_v8 = vld [vmem:[%s10270_s24 + $0x230] ss:$8 sps:$4 sm:$0xff]  }
  0xf8   : > { %2374 = vmatmul.mubr.bf16.gmra.mrb[52].mxu0 %v10467_v34 }
  0xf9   : > { %1713 = vmatmul.mubr.bf16.gmra.mrb[52].mxu1 %v10609_v63  ;;  %2383 = vmatprep.mubr.bf16.mxu0 %v15661_v16 }
  0xfa   : > { %1722 = vmatprep.mubr.bf16.mxu1 %v15661_v16  ;;  %v10700_v46 = vpop.permute.xlu0 %1012 }
  0xfb   : > { %1884 = vperm.xlu1 %9512, %v10532_v54  }
  0xff   : > { %1892 = vperm.xlu1 %9512, %v10411_v18   ;;  %v10666_v18 = vpop.permute.xlu1 %1752  ;;  %v10708_v49 = vpop.permute.xlu0 %1052 }
 0x100   : > { %2384 = vmatmul.mubr.bf16.gmra.mrb[56].mxu0 %v10484_v40  ;;  %16063 = vst [vmem:[#allocation7_spill] sm:$0xff] %v10666_v18 }
 0x101   : > { %1723 = vmatmul.mubr.bf16.gmra.mrb[56].mxu1 %v10620_v27  ;;  %2393 = vmatprep.mubr.bf16.mxu0 %v15661_v16 }
 0x102   : > { %1732 = vmatprep.mubr.bf16.mxu1 %v15661_v16 }
 0x103   : > { %1900 = vperm.xlu1 %9512, %v972_v25   ;;  %v10674_v36 = vpop.permute.xlu1 %1756  ;;  %v10716_v53 = vpop.permute.xlu0 %1057 }
 0x104   : > { %16064 = vst [vmem:[#allocation8_spill] sm:$0xff] %v10674_v36 }
 0x107   : > { %v10681_v39 = vpop.permute.xlu1 %1032  ;;  %v10721_v57 = vpop.permute.xlu0 %1072 }
 0x108   : > { %2394 = vmatmul.mubr.bf16.gmra.mrb[60].mxu0 %v10508_v47 }
 0x109   : > { %1733 = vmatmul.mubr.bf16.gmra.mrb[60].mxu1 %v10632_v19  ;;  %2403 = vmatprep.mubr.bf16.mxu0 %v15661_v16 }
 0x10a   : > { %2948 = vmatprep.mubr.bf16.mxu1 %v15661_v16 }
 0x10b   : > { %v10690_v43 = vpop.permute.xlu1 %1764  ;;  %v10732_v6 = vpop.permute.xlu0 %1077 }
 0x10c   : > { %16065 = vst [vmem:[#allocation9_spill] sm:$0xff] %v10690_v43 }
 0x10f   : > { %v10698_v45 = vpop.permute.xlu1 %1007 }
 0x110   : > { %2404 = vmatmul.mubr.bf16.gmra.mrb[64].mxu0 %v10522_v50 }
 0x111   : > { %2949 = vmatmul.mubr.bf16.vlgmr.msra.gmra.mrb[64].mxu1 %v10311_v52  ;;  %2413 = vmatprep.mubr.bf16.mxu0 %v15661_v16 }
 0x112   : > { %2958 = vmatprep.mubr.bf16.mxu1 %v15661_v16  ;;  %4167 = vmatpush1.bf16.msra.mxu1 %v9660_v55  ;;  %v9704_v55 = vld [vmem:[%s10270_s24 + $0x2e4] ss:$8 sps:$4 sm:$0xff]  }
 0x113   : > { %4168 = vmatprep.subr.bf16.mxu1 %v9665_v12  ;;  %v10704_v48 = vpop.permute.xlu1 %1037  ;;  %v10743_v10 = vpop.permute.xlu0 %1760 }
 0x114   : > { %16068 = vst [vmem:[#allocation12_spill] sm:$0xff] %v10743_v10 }
 0x116   : > { %4169 = vmatpush1.bf16.msra.mxu1 %v9663_v60 }
 0x117   : > { %4170 = vmatprep.subr.bf16.mxu1 %v9668_v5  ;;  %v10710_v51 = vpop.permute.xlu1 %1042 }
 0x118   : > { %2414 = vmatmul.mubr.bf16.gmra.mrb[68].mxu0 %v10543_v58 }
 0x119   : > { %2959 = vmatmul.mubr.bf16.gmra.mrb[68].mxu1 %v10333_v59  ;;  %2423 = vmatprep.mubr.bf16.mxu0 %v15661_v16 }
 0x11a   : > { %2968 = vmatprep.mubr.bf16.mxu1 %v15661_v16  ;;  %4171 = vmatpush1.bf16.msra.mxu1 %v9666_v20 }
 0x11b   : > { %4172 = vmatprep.subr.bf16.mxu1 %v9671_v24 }
 0x11c   : > { %v10718_v54 = vpop.permute.xlu1 %1748 }
 0x11d   : > { %16066 = vst [vmem:[#allocation10_spill] sm:$0xff] %v10718_v54 }
 0x11e   : > { %4173 = vmatpush1.bf16.msra.mxu1 %v9669_v8 }
 0x11f   : > { %4174 = vmatprep.subr.bf16.mxu1 %v9674_v28 }
 0x120   : > { %2424 = vmatmul.mubr.bf16.gmra.mrb[72].mxu0 %v10560_v2 }
 0x121   : > { %2969 = vmatmul.mubr.bf16.gmra.mrb[72].mxu1 %v10367_v4  ;;  %2433 = vmatprep.mubr.bf16.mxu0 %v15661_v16 }
 0x122   : > { %2978 = vmatprep.mubr.bf16.mxu1 %v15661_v16  ;;  %4175 = vmatpush1.bf16.msra.mxu1 %v9672_v29 }
 0x123   : > { %4176 = vmatprep.subr.bf16.mxu1 %v9677_v30  ;;  %v10726_v62 = vpop.permute.xlu1 %1768 }
 0x124   : > { %16067 = vst [vmem:[#allocation11_spill] sm:$0xff] %v10726_v62 }
 0x126   : > { %4177 = vmatpush1.bf16.msra.mxu1 %v9675_v31 }
 0x127   : > { %4178 = vmatprep.subr.bf16.mxu1 %v9680_v32 }
 0x128   : > { %2434 = vmatmul.mubr.bf16.gmra.mrb[76].mxu0 %v10577_v15 }
 0x129   : > { %2979 = vmatmul.mubr.bf16.gmra.mrb[76].mxu1 %v10401_v13  ;;  %2443 = vmatprep.mubr.bf16.mxu0 %v15661_v16 }
 0x12a   : > { %2988 = vmatprep.mubr.bf16.mxu1 %v15661_v16  ;;  %4179 = vmatpush1.bf16.msra.mxu1 %v9678_v33  ;;  %v9702_v33 = vld [vmem:[%s10270_s24 + $0x2e0] ss:$8 sps:$4 sm:$0xff]  }
 0x12b   : > { %4180 = vmatprep.subr.bf16.mxu1 %v9683_v35  ;;  %v10734_v7 = vpop.permute.xlu1 %1047 }
 0x12e   : > { %4181 = vmatpush1.bf16.msra.mxu1 %v9681_v37 }
 0x130   : > { %2444 = vmatmul.mubr.bf16.gmra.mrb[80].mxu0 %v10593_v3 }
 0x131   : > { %2989 = vmatmul.mubr.bf16.gmra.mrb[80].mxu1 %v10437_v26  ;;  %2453 = vmatprep.mubr.bf16.mxu0 %v15661_v16 }
 0x132   : > { %2998 = vmatprep.mubr.bf16.mxu1 %v15661_v16  ;;  %v10746_v14 = vpop.permute.xlu1 %1776 }
 0x133   : > { %16069 = vst [vmem:[#allocation13_spill] sm:$0xff] %v10746_v14 }
 0x136   : > { %v10756_v21 = vpop.permute.xlu1 %1780 }
 0x137   : > { %16071 = vst [vmem:[#allocation15_spill] sm:$0xff] %v10756_v21 }
 0x138   : > { %2454 = vmatmul.mubr.bf16.gmra.mrb[84].mxu0 %v10609_v63 }
 0x139   : > { %2999 = vmatmul.mubr.bf16.gmra.mrb[84].mxu1 %v10467_v34  ;;  %2463 = vmatprep.mubr.bf16.mxu0 %v15661_v16 }
 0x13a   : > { %3008 = vmatprep.mubr.bf16.mxu1 %v15661_v16 }
 0x140   : > { %2464 = vmatmul.mubr.bf16.gmra.mrb[88].mxu0 %v10620_v27 }
 0x141   : > { %3009 = vmatmul.mubr.bf16.gmra.mrb[88].mxu1 %v10484_v40  ;;  %2473 = vmatprep.mubr.bf16.mxu0 %v15661_v16 }
 0x142   : > { %3018 = vmatprep.mubr.bf16.mxu1 %v15661_v16 }
 0x148   : > { %2474 = vmatmul.mubr.bf16.gmra.mrb[92].mxu0 %v10632_v19 }
 0x149   : > { %3019 = vmatmul.mubr.bf16.gmra.mrb[92].mxu1 %v10508_v47  ;;  %3573 = vmatprep.mubr.bf16.mxu0 %v15661_v16 }
 0x14a   : > { %3028 = vmatprep.mubr.bf16.mxu1 %v15661_v16 }
 0x150   : > { %3574 = vmatmul.mubr.bf16.vlgmr.msra.gmra.mrb[96].mxu0 %v10311_v52  ;;  %v9695_v52 = vld [vmem:[%s10270_s24 + $0x2b4] ss:$8 sps:$4 sm:$0xff]  }
 0x151   : > { %3029 = vmatmul.mubr.bf16.gmra.mrb[96].mxu1 %v10522_v50  ;;  %3583 = vmatprep.mubr.bf16.mxu0 %v15661_v16  ;;  %v9690_v50 = vld [vmem:[%s10270_s24 + $0x2a0] ss:$8 sps:$4 sm:$0xff]  }
 0x152   : > { %3038 = vmatprep.mubr.bf16.mxu1 %v15661_v16  ;;  %4792 = vmatpush1.bf16.msra.mxu0 %v9684_v56 }
 0x153   : > { %4793 = vmatprep.subr.bf16.mxu0 %v9689_v61 }
 0x156   : > { %4794 = vmatpush1.bf16.msra.mxu0 %v9687_v0  ;;  %v10793_v0 = vpop.permute.xlu1 %1062 }
 0x157   : > { %4795 = vmatprep.subr.bf16.mxu0 %v9692_v1 }
 0x158   : > { %3584 = vmatmul.mubr.bf16.gmra.mrb[100].mxu0 %v10333_v59  ;;  %v10752_v59 = vpop.permute.xlu0 %1744 }
 0x159   : > { %3039 = vmatmul.mubr.bf16.gmra.mrb[100].mxu1 %v10543_v58  ;;  %3593 = vmatprep.mubr.bf16.mxu0 %v15661_v16  ;;  %v9701_v58 = vld [vmem:[%s10270_s24 + $0x2d4] ss:$8 sps:$4 sm:$0xff]   ;;  %16070 = vst [vmem:[#allocation14_spill] sm:$0xff] %v10752_v59 }
 0x15a   : > { %3048 = vmatprep.mubr.bf16.mxu1 %v15661_v16  ;;  %4796 = vmatpush1.bf16.msra.mxu0 %v9690_v50 }
 0x15b   : > { %4797 = vmatprep.subr.bf16.mxu0 %v9695_v52 }
 0x15e   : > { %4798 = vmatpush1.bf16.msra.mxu0 %v9693_v9  ;;  %v2113_v9 = vlaneseq }
 0x15f   : > { %4799 = vmatprep.subr.bf16.mxu0 %v9698_v11 }
 0x160   : > { %3594 = vmatmul.mubr.bf16.gmra.mrb[104].mxu0 %v10367_v4 }
 0x161   : > { %3049 = vmatmul.mubr.bf16.gmra.mrb[104].mxu1 %v10560_v2  ;;  %3603 = vmatprep.mubr.bf16.mxu0 %v15661_v16 }
 0x162   : > { %3058 = vmatprep.mubr.bf16.mxu1 %v15661_v16  ;;  %4800 = vmatpush1.bf16.msra.mxu0 %v9696_v17 }
 0x163   : > { %v1247_v23 = vpop.f32.mrb[0].mxu0  ;;  %4801 = vmatprep.subr.bf16.mxu0 %v9701_v58 }
 0x164   : > { %v1584_v25 = vpop.f32.mrb[0].mxu1  ;;  %v10761_v2 = vadd.f32 %v1247_v23, %v10698_v45  ;;  %v1249_v12 = vpop.f32.mrb[1].mxu0 }
 0x165   : > { %v1807_v4 = vadd.f32 %v10752_v59, %v1584_v25  ;;  %v1586_v60 = vpop.f32.mrb[1].mxu1  ;;  %v10765_v5 = vadd.f32 %v1249_v12, %v10698_v45  ;;  %v1251_v24 = vpop.f32.mrb[2].mxu0  ;;  %v9707_v45 = vld [vmem:[%s10270_s24 + $0x2f4] ss:$8 sps:$4 sm:$0xff]  }
 0x166   : > { %16072 = vst [vmem:[#allocation16_spill] sm:$0xff] %v10761_v2  ;;  %v1808_v20 = vadd.f32 %v10752_v59, %v1586_v60  ;;  %v1588_v8 = vpop.f32.mrb[2].mxu1  ;;  %v10770_v29 = vadd.f32 %v1251_v24, %v10700_v46  ;;  %v1253_v31 = vpop.f32.mrb[3].mxu0  ;;  %4802 = vmatpush1.bf16.msra.mxu0 %v9699_v22 }
 0x167   : > { %16073 = vst [vmem:[#allocation17_spill] sm:$0xff] %v10765_v5  ;;  %v1967_v28 = vmul.f32 %v1807_v4, %v10761_v2  ;;  %v1809_v30 = vadd.f32 %v10718_v54, %v1588_v8  ;;  %v1590_v32 = vpop.f32.mrb[3].mxu1  ;;  %v10777_v37 = vadd.f32 %v1253_v31, %v10700_v46  ;;  %4803 = vmatprep.subr.bf16.mxu0 %v9704_v55 }
 0x168   : > { %16074 = vst [vmem:[#allocation18_spill] sm:$0xff] %v10770_v29  ;;  %v1968_v35 = vmul.f32 %v1808_v20, %v10765_v5  ;;  %v1810_v42 = vadd.f32 %v10718_v54, %v1590_v32  ;;  %3604 = vmatmul.mubr.bf16.gmra.mrb[108].mxu0 %v10401_v13 }
 0x169   : > { %16075 = vst [vmem:[#allocation19_spill] sm:$0xff] %v10777_v37  ;;  %v1969_v56 = vmul.f32 %v1809_v30, %v10770_v29  ;;  %3059 = vmatmul.mubr.bf16.gmra.mrb[108].mxu1 %v10577_v15  ;;  %3613 = vmatprep.mubr.bf16.mxu0 %v15661_v16  ;;  %v9705_v15 = vld [vmem:[%s10270_s24 + $0x2f0] ss:$8 sps:$4 sm:$0xff]  }
 0x16a   : > { %v1970_v61 = vmul.f32 %v1810_v42, %v10777_v37  ;;  %3068 = vmatprep.mubr.bf16.mxu1 %v15661_v16  ;;  %4804 = vmatpush1.bf16.msra.mxu0 %v9702_v33  ;;  %v10820_v42 = vshrl.u32 %v2113_v9, 7 }
 0x16b   : > { %v1999_v46 = vadd.f32 %v1969_v56, %v1967_v28  ;;  %v1257_v13 = vpop.f32.mrb[4].mxu0  ;;  %4805 = vmatprep.subr.bf16.mxu0 %v9707_v45 }
 0x16c   : > { %v2006_v1 = vadd.f32 %v1970_v61, %v1968_v35  ;;  %v1594_v50 = vpop.f32.mrb[4].mxu1  ;;  %v10797_v11 = vadd.f32 %v1257_v13, %v10679_v38  ;;  %v1259_v58 = vpop.f32.mrb[5].mxu0  ;;  %16081 = vst [vmem:[#allocation24_spill] sm:$0xff] %v10820_v42 }
 0x16d   : > { %v2000_v52 = vrot.slane %v1999_v46, 4  ;;  %v1811_v17 = vadd.f32 %v10666_v18, %v1594_v50  ;;  %v1596_v22 = vpop.f32.mrb[5].mxu1  ;;  %v10807_v25 = vadd.f32 %v1259_v58, %v10679_v38  ;;  %v1261_v4 = vpop.f32.mrb[6].mxu0 }
 0x16e   : > { %16077 = vst [vmem:[#allocation20_spill] sm:$0xff] %v10797_v11  ;;  %v2007_v23 = vrot.slane %v2006_v1, 4  ;;  %v1812_v55 = vadd.f32 %v10666_v18, %v1596_v22  ;;  %v1598_v12 = vpop.f32.mrb[6].mxu1  ;;  %v10812_v24 = vadd.f32 %v1261_v4, %v10687_v41  ;;  %v1263_v28 = vpop.f32.mrb[7].mxu0  ;;  %4806 = vmatpush1.bf16.msra.mxu0 %v9705_v15 }
 0x16f   : > { %16078 = vst [vmem:[#allocation21_spill] sm:$0xff] %v10807_v25  ;;  %v2001_v60 = vadd.f32 %v2000_v52, %v1999_v46  ;;  %v1971_v20 = vmul.f32 %v1811_v17, %v10797_v11  ;;  %v1813_v8 = vadd.f32 %v10674_v36, %v1598_v12  ;;  %v1600_v30 = vpop.f32.mrb[7].mxu1  ;;  %v10817_v32 = vadd.f32 %v1263_v28, %v10687_v41  ;;  %v10829_v15 = vpop.permute.xlu1 %1788 }
 0x170   : > { %16079 = vst [vmem:[#allocation22_spill] sm:$0xff] %v10812_v24  ;;  %v2008_v31 = vadd.f32 %v2007_v23, %v2006_v1  ;;  %v1972_v38 = vmul.f32 %v1812_v55, %v10807_v25  ;;  %v1814_v33 = vadd.f32 %v10674_v36, %v1600_v30  ;;  %3614 = vmatmul.mubr.bf16.gmra.mrb[112].mxu0 %v10437_v26  ;;  %16082 = vst [vmem:[#allocation25_spill] sm:$0xff] %v10829_v15  ;;  %v9710_v23 = vld [vmem:[%s10270_s24 + $0x304] ss:$8 sps:$4 sm:$0xff]  }
 0x171   : > { %16080 = vst [vmem:[#allocation23_spill] sm:$0xff] %v10817_v32  ;;  %v2002_v35 = vrot.slane %v2001_v60, 2  ;;  %v1973_v45 = vmul.f32 %v1813_v8, %v10812_v24  ;;  %3069 = vmatmul.mubr.bf16.gmra.mrb[112].mxu1 %v10593_v3  ;;  %3623 = vmatprep.mubr.bf16.mxu0 %v15661_v16  ;;  %v10837_v26 = vsub.s32 0, %v10820_v42  ;;  %v10845_v55 = vsub.s32 1, %v10820_v42 }
 0x172   : > { %v2009_v56 = vrot.slane %v2008_v31, 2  ;;  %v1974_v61 = vmul.f32 %v1814_v33, %v10817_v32  ;;  %3078 = vmatprep.mubr.bf16.mxu1 %v15661_v16  ;;  %5416 = vmatprep.subr.bf16.mxu1 %v9710_v23 }
 0x173   : > { %v2003_v41 = vadd.f32 %v2002_v35, %v2001_v60  ;;  %v2013_v46 = vadd.f32 %v1973_v45, %v1971_v20  ;;  %v1267_v50 = vpop.f32.mrb[8].mxu0  ;;  %16083 = vst [vmem:[#allocation26_spill] sm:$0xff] %v10837_v26  ;;  %16085 = vst [vmem:[#allocation28_spill] sm:$0xff] %v10845_v55  ;;  %v2111_v45 = vld [vmem:[%s10834_s17] ss:$8 sm:$0x3] }
 0x174   : > { %v2010_v1 = vadd.f32 %v2009_v56, %v2008_v31  ;;  %v2020_v13 = vadd.f32 %v1974_v61, %v1972_v38  ;;  %v1604_v52 = vpop.f32.mrb[8].mxu1  ;;  %v10840_v9 = vadd.f32 %v1267_v50, %v10692_v44  ;;  %v1269_v58 = vpop.f32.mrb[9].mxu0 }
 0x175   : > { %v2014_v3 = vrot.slane %v2013_v46, 4  ;;  %v1815_v17 = vadd.f32 %v10743_v10, %v1604_v52  ;;  %v1606_v22 = vpop.f32.mrb[9].mxu1  ;;  %v10848_v12 = vadd.f32 %v1269_v58, %v10692_v44  ;;  %v1271_v20 = vpop.f32.mrb[10].mxu0  ;;  %v2004_v28 = vrot.slane %v2003_v41, 1 }
 0x176   : > { %16084 = vst [vmem:[#allocation27_spill] sm:$0xff] %v10840_v9  ;;  %v2021_v4 = vrot.slane %v2020_v13, 4  ;;  %v1816_v60 = vadd.f32 %v10743_v10, %v1606_v22  ;;  %v1608_v8 = vpop.f32.mrb[10].mxu1  ;;  %v10853_v38 = vadd.f32 %v1271_v20, %v10681_v39  ;;  %v1273_v33 = vpop.f32.mrb[11].mxu0  ;;  %v2011_v56 = vrot.slane %v2010_v1, 1 }
 0x177   : > { %16086 = vst [vmem:[#allocation29_spill] sm:$0xff] %v10848_v12  ;;  %v2015_v30 = vadd.f32 %v2014_v3, %v2013_v46  ;;  %v1975_v31 = vmul.f32 %v1815_v17, %v10840_v9  ;;  %v1610_v35 = vpop.f32.mrb[11].mxu1  ;;  %v1817_v50 = vadd.f32 %v10690_v43, %v1608_v8  ;;  %v10859_v58 = vadd.f32 %v1273_v33, %v10681_v39 }
 0x178   : > { %16087 = vst [vmem:[#allocation30_spill] sm:$0xff] %v10853_v38  ;;  %v2022_v61 = vadd.f32 %v2021_v4, %v2020_v13  ;;  %v1976_v44 = vmul.f32 %v1816_v60, %v10848_v12  ;;  %v1818_v46 = vadd.f32 %v10690_v43, %v1610_v35  ;;  %3624 = vmatmul.mubr.bf16.gmra.mrb[116].mxu0 %v10467_v34  ;;  %v10874_v4 = vpop.permute.xlu0 %1772 }
 0x179   : > { %v2016_v52 = vrot.slane %v2015_v30, 2  ;;  %16088 = vst [vmem:[#allocation31_spill] sm:$0xff] %v10859_v58  ;;  %3079 = vmatmul.mubr.bf16.gmra.mrb[116].mxu1 %v10609_v63  ;;  %v1977_v17 = vmul.f32 %v1817_v50, %v10853_v38  ;;  %3633 = vmatprep.mubr.bf16.mxu0 %v15661_v16  ;;  %v10868_v13 = vrot.slane %v2111_v45, %v10837_v26  ;;  %16089 = vst [vmem:[#allocation32_spill] sm:$0xff] %v10874_v4  ;;  %v10876_v63 = vpop.permute.xlu1 %1067 }
 0x17a   : > { %v2023_v3 = vrot.slane %v2022_v61, 2  ;;  %3088 = vmatprep.mubr.bf16.mxu1 %v15661_v16  ;;  %v10871_v22 = vrot.slane %v2111_v45, %v10845_v55  ;;  %v1978_v23 = vmul.f32 %v1818_v46, %v10859_v58  ;;  %v2005_v34 = vadd.f32 %v2004_v28, %v2003_v41 }
 0x17b   : > { %v2017_v39 = vadd.f32 %v2016_v52, %v2015_v30  ;;  %v2012_v60 = vadd.f32 %v2011_v56, %v2010_v1  ;;  %v2027_v8 = vadd.f32 %v1977_v17, %v1975_v31  ;;  %v1277_v33 = vpop.f32.mrb[12].mxu0 }
 0x17c   : > { %v2024_v20 = vadd.f32 %v2023_v3, %v2022_v61  ;;  %v1614_v35 = vpop.f32.mrb[12].mxu1  ;;  %v2034_v16 = vadd.f32 %v1978_v23, %v1976_v44  ;;  %v10879_v42 = vadd.f32 %v1277_v33, %v10704_v48  ;;  %v1279_v30 = vpop.f32.mrb[13].mxu0 }
 0x17d   : > { %v2018_v50 = vrot.slane %v2017_v39, 1  ;;  %v1819_v45 = vadd.f32 %v10726_v62, %v1614_v35  ;;  %v1616_v52 = vpop.f32.mrb[13].mxu1  ;;  %v2028_v58 = vrot.slane %v2027_v8, 4  ;;  %v10883_v38 = vadd.f32 %v1279_v30, %v10704_v48  ;;  %v1281_v1 = vpop.f32.mrb[14].mxu0 }
 0x17e   : > { %16090 = vst [vmem:[#allocation33_spill] sm:$0xff] %v10879_v42  ;;  %v2025_v46 = vrot.slane %v2024_v20, 1  ;;  %v1820_v41 = vadd.f32 %v10726_v62, %v1616_v52  ;;  %v1618_v28 = vpop.f32.mrb[14].mxu1  ;;  %v2035_v56 = vrot.slane %v2034_v16, 4  ;;  %v10888_v44 = vadd.f32 %v1281_v1, %v10710_v51  ;;  %v1283_v3 = vpop.f32.mrb[15].mxu0 }
 0x17f   : > { %16091 = vst [vmem:[#allocation34_spill] sm:$0xff] %v10883_v38  ;;  %v2019_v31 = vadd.f32 %v2018_v50, %v2017_v39  ;;  %v1979_v61 = vmul.f32 %v1819_v45, %v10879_v42  ;;  %v1620_v17 = vpop.f32.mrb[15].mxu1  ;;  %v2029_v33 = vadd.f32 %v2028_v58, %v2027_v8  ;;  %v1821_v48 = vadd.f32 %v10874_v4, %v1618_v28 }
 0x180   : > { %16092 = vst [vmem:[#allocation35_spill] sm:$0xff] %v10888_v44  ;;  %v2026_v23 = vadd.f32 %v2025_v46, %v2024_v20  ;;  %v1980_v35 = vmul.f32 %v1820_v41, %v10883_v38  ;;  %v2036_v52 = vadd.f32 %v2035_v56, %v2034_v16  ;;  %v10896_v39 = vadd.f32 %v1283_v3, %v10710_v51 }
 0x181   : > { %v10893_v30 = vadd.f32 %v10868_v13, %v2019_v31  ;;  %v1822_v50 = vadd.f32 %v10874_v4, %v1620_v17  ;;  %3089 = vmatmul.mubr.bf16.gmra.mrb[120].mxu1 %v10620_v27  ;;  %v2030_v58 = vrot.slane %v2029_v33, 2  ;;  %v1981_v20 = vmul.f32 %v1821_v48, %v10888_v44  ;;  %3634 = vmatmul.mubr.bf16.gmra.mrb[120].mxu0 %v10484_v40  ;;  %v10912_v27 = vpop.permute.xlu1 %1792 }
 0x182   : > { %16094 = vst [vmem:[#allocation37_spill] sm:$0xff] %v10896_v39  ;;  %v10901_v45 = vadd.f32 %v10871_v22, %v2026_v23  ;;  %v16096_v8 = vmov 0   ;;  %v10907_v16 = vadd.f32 %v10868_v13, %v2005_v34  ;;  %v2037_v46 = vrot.slane %v2036_v52, 2  ;;  %16098 = vst [vmem:[#allocation40_spill] sm:$0xff] %v10912_v27 }
 0x183   : > { %16093 = vst [vmem:[#allocation36_spill] sm:$0xff] %v10893_v30  ;;  %3098 = vmatprep.mubr.bf16.mxu1 %v16096_v8  ;;  %v2155_v51 = vrot.slane %v10893_v30, 7  ;;  %v1982_v41 = vmul.f32 %v1822_v50, %v10896_v39  ;;  %3643 = vmatprep.mubr.bf16.mxu0 %v16096_v8  ;;  %v10915_v1 = vadd.f32 %v10871_v22, %v2012_v60  ;;  %v1287_v56 = vpop.f32.mrb[16].mxu0 }
 0x184   : > { %16095 = vst [vmem:[#allocation38_spill] sm:$0xff] %v10901_v45  ;;  %16097 = vst [vmem:[#allocation39_spill] sm:$0xff] %v10907_v16  ;;  %v2176_v28 = vrot.slane %v10901_v45, 7  ;;  %v2031_v40 = vadd.f32 %v2030_v58, %v2029_v33  ;;  %v2041_v31 = vadd.f32 %v1981_v20, %v1979_v61  ;;  %v1624_v3 = vpop.f32.mrb[16].mxu1  ;;  %v2038_v17 = vadd.f32 %v2037_v46, %v2036_v52  ;;  %v1289_v50 = vpop.f32.mrb[17].mxu0 }
 0x185   : > { %16099 = vst [vmem:[#allocation41_spill] sm:$0xff] %v10915_v1  ;;  %v2157_v34 = vsel %vm2156_vm0, %v2155_v51, %v10907_v16  ;;  %v2048_v23 = vadd.f32 %v1982_v41, %v1980_v35  ;;  %v10921_v48 = vadd.f32 %v1287_v56, %v10734_v7  ;;  %v1626_v30 = vpop.f32.mrb[17].mxu1  ;;  %v1823_v33 = vadd.f32 %v10746_v14, %v1624_v3  ;;  %v1291_v61 = vpop.f32.mrb[18].mxu0 }
 0x186   : > { %v2177_v60 = vsel %vm2156_vm0, %v2176_v28, %v10915_v1  ;;  %v2032_v39 = vrot.slane %v2031_v40, 1  ;;  %v2042_v44 = vrot.slane %v2041_v31, 4  ;;  %v1628_v58 = vpop.f32.mrb[18].mxu1  ;;  %v2039_v20 = vrot.slane %v2038_v17, 1  ;;  %v1293_v52 = vpop.f32.mrb[19].mxu0 }
 0x187   : > { %16100 = vst [vmem:[#allocation42_spill] sm:$0xff] %v10921_v48  ;;  %v2049_v45 = vrot.slane %v2048_v23, 4  ;;  %v10927_v51 = vadd.f32 %v1289_v50, %v10734_v7  ;;  %v1824_v35 = vadd.f32 %v10746_v14, %v1626_v30  ;;  %v1630_v46 = vpop.f32.mrb[19].mxu1  ;;  %v1983_v38 = vmul.f32 %v1823_v33, %v10921_v48 }
 0x188   : > { %v2033_v41 = vadd.f32 %v2032_v39, %v2031_v40  ;;  %v2043_v56 = vadd.f32 %v2042_v44, %v2041_v31  ;;  %v10932_v28 = vadd.f32 %v1291_v61, %v10708_v49  ;;  %v2040_v42 = vadd.f32 %v2039_v20, %v2038_v17  ;;  %v10950_v31 = vpop.permute.xlu0 %1784  ;;  %v10953_v17 = vpop.permute.xlu1 %1796 }
 0x189   : > { %16101 = vst [vmem:[#allocation43_spill] sm:$0xff] %v10927_v51  ;;  %v2050_v3 = vadd.f32 %v2049_v45, %v2048_v23  ;;  %v1984_v4 = vmul.f32 %v1824_v35, %v10927_v51  ;;  %v1825_v62 = vadd.f32 %v10756_v21, %v1628_v58  ;;  %3099 = vmatmul.mubr.bf16.gmra.mrb[124].mxu1 %v10632_v19  ;;  %16106 = vst [vmem:[#allocation48_spill] sm:$0xff] %v10950_v31 }
 0x18a   : > { %16102 = vst [vmem:[#allocation44_spill] sm:$0xff] %v10932_v28  ;;  %v10938_v7 = vadd.f32 %v10868_v13, %v2033_v41  ;;  %v2044_v30 = vrot.slane %v2043_v56, 2  ;;  %v10941_v39 = vadd.f32 %v1293_v52, %v10708_v49  ;;  %v1826_v44 = vadd.f32 %v10756_v21, %v1630_v46  ;;  %3644 = vmatmul.mubr.bf16.gmra.mrb[124].mxu0 %v10508_v47 }
 0x18b   : > { %4198 = vmatprep.mubr.bf16.mxu1 %v16096_v8  ;;  %v10947_v45 = vadd.f32 %v10871_v22, %v2040_v42  ;;  %v2051_v40 = vrot.slane %v2050_v3, 2  ;;  %v1985_v19 = vmul.f32 %v1825_v62, %v10932_v28  ;;  %3653 = vmatprep.mubr.bf16.mxu0 %v16096_v8  ;;  %16107 = vst [vmem:[#allocation49_spill] sm:$0xff] %v10953_v17  ;;  %v1297_v50 = vpop.f32.mrb[20].mxu0 }
 0x18c   : > { %16103 = vst [vmem:[#allocation45_spill] sm:$0xff] %v10938_v7  ;;  %16104 = vst [vmem:[#allocation46_spill] sm:$0xff] %v10941_v39  ;;  %v2158_v49 = vrot.slane %v10938_v7, 6  ;;  %v2045_v23 = vadd.f32 %v2044_v30, %v2043_v56  ;;  %v1986_v47 = vmul.f32 %v1826_v44, %v10941_v39  ;;  %v1634_v33 = vpop.f32.mrb[20].mxu1  ;;  %v10959_v62 = vadd.f32 %v1297_v50, %v10716_v53  ;;  %v1299_v20 = vpop.f32.mrb[21].mxu0 }
 0x18d   : > { %16105 = vst [vmem:[#allocation47_spill] sm:$0xff] %v10947_v45  ;;  %v2178_v42 = vrot.slane %v10947_v45, 6  ;;  %v2052_v61 = vadd.f32 %v2051_v40, %v2050_v3  ;;  %v2055_v58 = vadd.f32 %v1985_v19, %v1983_v38  ;;  %v1636_v35 = vpop.f32.mrb[21].mxu1  ;;  %v1827_v56 = vadd.f32 %v10950_v31, %v1634_v33  ;;  %v1301_v30 = vpop.f32.mrb[22].mxu0 }
 0x18e   : > { %16108 = vst [vmem:[#allocation50_spill] sm:$0xff] %v10959_v62  ;;  %v2160_v52 = vsel %vm2159_vm1, %v2158_v49, %v2157_v34  ;;  %v2046_v46 = vrot.slane %v2045_v23, 1  ;;  %v2062_v41 = vadd.f32 %v1986_v47, %v1984_v4  ;;  %v1638_v44 = vpop.f32.mrb[22].mxu1  ;;  %v10965_v38 = vadd.f32 %v1299_v20, %v10716_v53  ;;  %v1303_v40 = vpop.f32.mrb[23].mxu0  ;;  %v9708_v49 = vld [vmem:[%s10270_s24 + $0x300] ss:$8 sps:$4 sm:$0xff]  }
 0x18f   : > { %v2179_v7 = vsel %vm2159_vm1, %v2178_v42, %v2177_v60  ;;  %v2053_v39 = vrot.slane %v2052_v61, 1  ;;  %v2056_v3 = vrot.slane %v2055_v58, 4  ;;  %v1640_v19 = vpop.f32.mrb[23].mxu1  ;;  %v1987_v34 = vmul.f32 %v1827_v56, %v10959_v62  ;;  %v10977_v53 = vld [vmem:[%s15657_s4] sm:$0xff]  }
 0x190   : > { %16109 = vst [vmem:[#allocation51_spill] sm:$0xff] %v10965_v38  ;;  %v2047_v50 = vadd.f32 %v2046_v46, %v2045_v23  ;;  %v2063_v45 = vrot.slane %v2062_v41, 4  ;;  %v1828_v4 = vadd.f32 %v10950_v31, %v1636_v35  ;;  %v10971_v28 = vadd.f32 %v1301_v30, %v10793_v0  ;;  %16111 = vst [vmem:[#allocation53_spill] sm:$0xff] %v10977_v53  ;;  %v9713_v23 = vld [vmem:[%s10270_s24 + $0x314] ss:$8 sps:$4 sm:$0xff]  }
 0x191   : > { %v2054_v47 = vadd.f32 %v2053_v39, %v2052_v61  ;;  %v2057_v33 = vadd.f32 %v2056_v3, %v2055_v58  ;;  %v1829_v60 = vadd.f32 %v10829_v15, %v1638_v44  ;;  %4199 = vmatmul.mubr.bf16.vlgmr.msra.gmra.mrb[128].mxu1 %v10977_v53  ;;  %v10986_v61 = vadd.f32 %v1303_v40, %v10793_v0  ;;  %v10991_v58 = vld [vmem:[%s15657_s4 + $0x40] sm:$0xff]   ;;  %v11001_v0 = vpop.permute.xlu1 %1082  ;;  %v9711_v40 = vld [vmem:[%s10270_s24 + $0x310] ss:$8 sps:$4 sm:$0xff]  }
 0x192   : > { %16110 = vst [vmem:[#allocation52_spill] sm:$0xff] %v10971_v28  ;;  %v10982_v42 = vadd.f32 %v10868_v13, %v2047_v50  ;;  %v2064_v20 = vadd.f32 %v2063_v45, %v2062_v41  ;;  %v1988_v39 = vmul.f32 %v1828_v4, %v10965_v38  ;;  %16114 = vst [vmem:[#allocation56_spill] sm:$0xff] %v10991_v58  ;;  %3654 = vmatmul.mubr.bf16.gmra.mrb[128].mxu0 %v10991_v58  ;;  %v9716_v53 = vld [vmem:[%s10270_s24 + $0x324] ss:$8 sps:$4 sm:$0xff]  }
 0x193   : > { %16113 = vst [vmem:[#allocation55_spill] sm:$0xff] %v10986_v61  ;;  %v10995_v35 = vadd.f32 %v10871_v22, %v2054_v47  ;;  %v2058_v46 = vrot.slane %v2057_v33, 2  ;;  %v1989_v56 = vmul.f32 %v1829_v60, %v10971_v28  ;;  %v1830_v45 = vadd.f32 %v10829_v15, %v1640_v19  ;;  %3663 = vmatprep.mubr.bf16.mxu0 %v16096_v8  ;;  %v1307_v44 = vpop.f32.mrb[24].mxu0 }
 0x194   : > { %16112 = vst [vmem:[#allocation54_spill] sm:$0xff] %v10982_v42  ;;  %4208 = vmatprep.mubr.bf16.mxu1 %v16096_v8  ;;  %v2161_v41 = vrot.slane %v10982_v42, 5  ;;  %v2065_v30 = vrot.slane %v2064_v20, 2  ;;  %v1644_v3 = vpop.f32.mrb[24].mxu1  ;;  %5417 = vmatpush1.bf16.msra.mxu1 %v9708_v49  ;;  %v1309_v60 = vpop.f32.mrb[25].mxu0  ;;  %v11010_v42 = vadd.f32 %v1307_v44, %v10876_v63 }
 0x195   : > { %16115 = vst [vmem:[#allocation57_spill] sm:$0xff] %v10995_v35  ;;  %v2180_v50 = vrot.slane %v10995_v35, 5  ;;  %v2059_v4 = vadd.f32 %v2058_v46, %v2057_v33  ;;  %v2069_v47 = vadd.f32 %v1989_v56, %v1987_v34  ;;  %v1990_v19 = vmul.f32 %v1830_v45, %v10986_v61  ;;  %v1646_v28 = vpop.f32.mrb[25].mxu1  ;;  %5418 = vmatprep.subr.bf16.mxu1 %v9713_v23  ;;  %v1311_v15 = vpop.f32.mrb[26].mxu0 }
 0x196   : > { %v2163_v38 = vsel %vm2162_vm2, %v2161_v41, %v2160_v52  ;;  %v2066_v58 = vadd.f32 %v2065_v30, %v2064_v20  ;;  %16116 = vst [vmem:[#allocation58_spill] sm:$0xff] %v11010_v42  ;;  %v1831_v49 = vadd.f32 %v10912_v27, %v1644_v3  ;;  %v1648_v62 = vpop.f32.mrb[26].mxu1  ;;  %v1313_v45 = vpop.f32.mrb[27].mxu0  ;;  %v11016_v20 = vadd.f32 %v1309_v60, %v10876_v63  ;;  %v9714_v30 = vld [vmem:[%s10270_s24 + $0x320] ss:$8 sps:$4 sm:$0xff]  }
 0x197   : > { %v2181_v33 = vsel %vm2162_vm2, %v2180_v50, %v2179_v7  ;;  %v2060_v34 = vrot.slane %v2059_v4, 1  ;;  %v2070_v46 = vrot.slane %v2069_v47, 4  ;;  %v2076_v56 = vadd.f32 %v1990_v19, %v1988_v39  ;;  %v1650_v23 = vpop.f32.mrb[27].mxu1  ;;  %v11026_v39 = vld [vmem:[%s15657_s4 + $0x8] sm:$0xff]   ;;  %v9719_v63 = vld [vmem:[%s10270_s24 + $0x334] ss:$8 sps:$4 sm:$0xff]   ;;  %v11045_v19 = vpop.permute.xlu0 %1800 }
 0x198   : > { %v2067_v35 = vrot.slane %v2066_v58, 1  ;;  %v1991_v52 = vmul.f32 %v1831_v49, %v11010_v42  ;;  %16117 = vst [vmem:[#allocation59_spill] sm:$0xff] %v11016_v20  ;;  %v1832_v41 = vadd.f32 %v10912_v27, %v1646_v28  ;;  %5419 = vmatpush1.bf16.msra.mxu1 %v9711_v40  ;;  %v11021_v7 = vadd.f32 %v1311_v15, %v10721_v57  ;;  %v11038_v15 = vld [vmem:[%s15657_s4 + $0x48] sm:$0xff]  }
 0x199   : > { %v2061_v44 = vadd.f32 %v2060_v34, %v2059_v4  ;;  %v2071_v3 = vadd.f32 %v2070_v46, %v2069_v47  ;;  %v2077_v61 = vrot.slane %v2076_v56, 4  ;;  %16119 = vst [vmem:[#allocation61_spill] sm:$0xff] %v11026_v39  ;;  %4209 = vmatmul.mubr.bf16.gmra.mrb[132].mxu1 %v11026_v39  ;;  %5420 = vmatprep.subr.bf16.mxu1 %v9716_v53  ;;  %16121 = vst [vmem:[#allocation63_spill] sm:$0xff] %v11038_v15  ;;  %v9722_v39 = vld [vmem:[%s10270_s24 + $0x344] ss:$8 sps:$4 sm:$0xff]  }
 0x19a   : > { %16118 = vst [vmem:[#allocation60_spill] sm:$0xff] %v11021_v7  ;;  %v2068_v50 = vadd.f32 %v2067_v35, %v2066_v58  ;;  %v1992_v28 = vmul.f32 %v1832_v41, %v11016_v20  ;;  %v1833_v40 = vadd.f32 %v10953_v17, %v1648_v62  ;;  %v11033_v4 = vadd.f32 %v1313_v45, %v10721_v57  ;;  %v11047_v62 = vpop.permute.xlu1 %1804 }
 0x19b   : > { %3664 = vmatmul.mubr.bf16.gmra.mrb[132].mxu0 %v11038_v15  ;;  %v11042_v47 = vadd.f32 %v10868_v13, %v2061_v44  ;;  %v2072_v53 = vrot.slane %v2071_v3, 2  ;;  %v2078_v58 = vadd.f32 %v2077_v61, %v2076_v56  ;;  %v1834_v35 = vadd.f32 %v10953_v17, %v1650_v23  ;;  %16123 = vst [vmem:[#allocation65_spill] sm:$0xff] %v11045_v19  ;;  %v1317_v49 = vpop.f32.mrb[28].mxu0  ;;  %v9717_v61 = vld [vmem:[%s10270_s24 + $0x330] ss:$8 sps:$4 sm:$0xff]  }
 0x19c   : > { %16120 = vst [vmem:[#allocation62_spill] sm:$0xff] %v11033_v4  ;;  %16124 = vst [vmem:[#allocation66_spill] sm:$0xff] %v11047_v62  ;;  %3673 = vmatprep.mubr.bf16.mxu0 %v16096_v8  ;;  %4218 = vmatprep.mubr.bf16.mxu1 %v16096_v8  ;;  %v11052_v57 = vadd.f32 %v10871_v22, %v2068_v50  ;;  %v1993_v60 = vmul.f32 %v1833_v40, %v11021_v7  ;;  %v1654_v34 = vpop.f32.mrb[28].mxu1  ;;  %v1319_v41 = vpop.f32.mrb[29].mxu0 }
 0x19d   : > { %16122 = vst [vmem:[#allocation64_spill] sm:$0xff] %v11042_v47  ;;  %5421 = vmatpush1.bf16.msra.mxu1 %v9714_v30  ;;  %v2164_v46 = vrot.slane %v11042_v47, 4  ;;  %v2073_v56 = vadd.f32 %v2072_v53, %v2071_v3  ;;  %v2079_v45 = vrot.slane %v2078_v58, 2  ;;  %v1994_v23 = vmul.f32 %v1834_v35, %v11033_v4  ;;  %v1656_v44 = vpop.f32.mrb[29].mxu1  ;;  %v1321_v7 = vpop.f32.mrb[30].mxu0 }
 0x19e   : > { %16125 = vst [vmem:[#allocation67_spill] sm:$0xff] %v11052_v57  ;;  %5422 = vmatprep.subr.bf16.mxu1 %v9719_v63  ;;  %v2182_v15 = vrot.slane %v11052_v57, 4  ;;  %v2083_v50 = vadd.f32 %v1993_v60, %v1991_v52  ;;  %v11061_v40 = vadd.f32 %v1317_v49, %v10732_v6  ;;  %v1835_v30 = vadd.f32 %v11045_v19, %v1654_v34  ;;  %v1658_v20 = vpop.f32.mrb[30].mxu1  ;;  %v1323_v4 = vpop.f32.mrb[31].mxu0  ;;  %v9720_v49 = vld [vmem:[%s10270_s24 + $0x340] ss:$8 sps:$4 sm:$0xff]  }
 0x19f   : > { %v2166_v3 = vsel %vm2165_vm3, %v2164_v46, %v2163_v38  ;;  %v2074_v53 = vrot.slane %v2073_v56, 1  ;;  %v2080_v47 = vadd.f32 %v2079_v45, %v2078_v58  ;;  %v2090_v35 = vadd.f32 %v1994_v23, %v1992_v28  ;;  %v1660_v63 = vpop.f32.mrb[31].mxu1  ;;  %v11075_v28 = vld [vmem:[%s15657_s4 + $0x10] sm:$0xff]  }
 0x1a0   : > { %16126 = vst [vmem:[#allocation68_spill] sm:$0xff] %v11061_v40  ;;  %v2183_v17 = vsel %vm2165_vm3, %v2182_v15, %v2181_v33  ;;  %v2084_v57 = vrot.slane %v2083_v50, 4  ;;  %v1995_v52 = vmul.f32 %v1835_v30, %v11061_v40  ;;  %v11068_v60 = vadd.f32 %v1319_v41, %v10732_v6  ;;  %v9725_v33 = vld [vmem:[%s10270_s24 + $0x354] ss:$8 sps:$4 sm:$0xff]   ;;  %v9723_v41 = vld [vmem:[%s10270_s24 + $0x350] ss:$8 sps:$4 sm:$0xff]  }
 0x1a1   : > { %5423 = vmatpush1.bf16.msra.mxu1 %v9717_v61  ;;  %v2075_v34 = vadd.f32 %v2074_v53, %v2073_v56  ;;  %v2081_v42 = vrot.slane %v2080_v47, 1  ;;  %v2091_v27 = vrot.slane %v2090_v35, 4  ;;  %v1836_v38 = vadd.f32 %v11045_v19, %v1656_v44  ;;  %v11089_v46 = vld [vmem:[%s15657_s4 + $0x50] sm:$0xff]   ;;  %v9728_v53 = vld [vmem:[%s10270_s24 + $0x364] ss:$8 sps:$4 sm:$0xff]  }
 0x1a2   : > { %16127 = vst [vmem:[#allocation69_spill] sm:$0xff] %v11068_v60  ;;  %4219 = vmatmul.mubr.bf16.gmra.mrb[136].mxu1 %v11075_v28  ;;  %5424 = vmatprep.subr.bf16.mxu1 %v9722_v39  ;;  %v2085_v15 = vadd.f32 %v2084_v57, %v2083_v50  ;;  %v11080_v6 = vadd.f32 %v1321_v7, %v11001_v0 }
 0x1a3   : > { %v1837_v58 = vadd.f32 %v11047_v62, %v1658_v20  ;;  %v11084_v61 = vadd.f32 %v1323_v4, %v11001_v0  ;;  %3674 = vmatmul.mubr.bf16.gmra.mrb[136].mxu0 %v11089_v46  ;;  %v11093_v39 = vadd.f32 %v10868_v13, %v2075_v34  ;;  %v2082_v57 = vadd.f32 %v2081_v42, %v2080_v47  ;;  %v2325_v45 = vpop.f32.mrb[32].mxu0 }
 0x1a4   : > { %16128 = vst [vmem:[#allocation70_spill] sm:$0xff] %v11080_v6  ;;  %v2092_v56 = vadd.f32 %v2091_v27, %v2090_v35  ;;  %v1996_v7 = vmul.f32 %v1836_v38, %v11068_v60  ;;  %3683 = vmatprep.mubr.bf16.mxu0 %v16096_v8  ;;  %v2086_v0 = vrot.slane %v2085_v15, 2  ;;  %v1838_v4 = vadd.f32 %v11047_v62, %v1660_v63  ;;  %v11100_v23 = vpop.f32.mrb[32].mxu1  ;;  %v2327_v50 = vpop.f32.mrb[33].mxu0 }
 0x1a5   : > { %16129 = vst [vmem:[#allocation71_spill] sm:$0xff] %v11084_v61  ;;  %16130 = vst [vmem:[#allocation72_spill] sm:$0xff] %v11093_v39  ;;  %v1997_v20 = vmul.f32 %v1837_v58, %v11080_v6  ;;  %4228 = vmatprep.mubr.bf16.mxu1 %v16096_v8  ;;  %5425 = vmatpush1.bf16.msra.mxu1 %v9720_v49  ;;  %v2167_v27 = vrot.slane %v11093_v39, 3  ;;  %v11105_v42 = vadd.f32 %v10871_v22, %v2082_v57  ;;  %v11108_v30 = vpop.f32.mrb[33].mxu1  ;;  %v2329_v38 = vpop.f32.mrb[34].mxu0 }
 0x1a6   : > { %16131 = vst [vmem:[#allocation73_spill] sm:$0xff] %v11100_v23  ;;  %v2093_v47 = vrot.slane %v2092_v56, 2  ;;  %v2484_v44 = vadd.f32 %v2325_v45, %v10752_v59  ;;  %16133 = vst [vmem:[#allocation75_spill] sm:$0xff] %v11108_v30  ;;  %5426 = vmatprep.subr.bf16.mxu1 %v9725_v33  ;;  %v2087_v35 = vadd.f32 %v2086_v0, %v2085_v15  ;;  %v11113_v58 = vpop.f32.mrb[34].mxu1  ;;  %v2331_v33 = vpop.f32.mrb[35].mxu0 }
 0x1a7   : > { %16132 = vst [vmem:[#allocation74_spill] sm:$0xff] %v11105_v42  ;;  %v2097_v63 = vadd.f32 %v1997_v20, %v1995_v52  ;;  %v1998_v34 = vmul.f32 %v1838_v4, %v11084_v61  ;;  %v2485_v49 = vadd.f32 %v2327_v50, %v10752_v59  ;;  %16134 = vst [vmem:[#allocation76_spill] sm:$0xff] %v11113_v58  ;;  %v2184_v23 = vrot.slane %v11105_v42, 3  ;;  %v11118_v30 = vpop.f32.mrb[35].mxu1  ;;  %v9726_v4 = vld [vmem:[%s10270_s24 + $0x360] ss:$8 sps:$4 sm:$0xff]  }
 0x1a8   : > { %v2169_v57 = vsel %vm2168_vm4, %v2167_v27, %v2166_v3  ;;  %v2094_v45 = vadd.f32 %v2093_v47, %v2092_v56  ;;  %v2581_v39 = vmul.f32 %v2484_v44, %v10761_v2  ;;  %16135 = vst [vmem:[#allocation77_spill] sm:$0xff] %v11118_v30  ;;  %v2088_v52 = vrot.slane %v2087_v35, 1  ;;  %v11128_v27 = vld [vmem:[%s15657_s4 + $0x18] sm:$0xff]  }
 0x1a9   : > { %v2098_v15 = vrot.slane %v2097_v63, 4  ;;  %v2104_v0 = vadd.f32 %v1998_v34, %v1996_v7  ;;  %v2582_v20 = vmul.f32 %v2485_v49, %v10765_v5  ;;  %5427 = vmatpush1.bf16.msra.mxu1 %v9723_v41  ;;  %v2185_v50 = vsel %vm2168_vm4, %v2184_v23, %v2183_v17  ;;  %v9731_v7 = vld [vmem:[%s10270_s24 + $0x374] ss:$8 sps:$4 sm:$0xff]  }
 0x1aa   : > { %v2095_v58 = vrot.slane %v2094_v45, 1  ;;  %v2486_v3 = vadd.f32 %v2329_v38, %v10718_v54  ;;  %v2487_v56 = vadd.f32 %v2331_v33, %v10718_v54  ;;  %4229 = vmatmul.mubr.bf16.gmra.mrb[140].mxu1 %v11128_v27  ;;  %5428 = vmatprep.subr.bf16.mxu1 %v9728_v53  ;;  %v2089_v47 = vadd.f32 %v2088_v52, %v2087_v35  ;;  %v11135_v17 = vld [vmem:[%s15657_s4 + $0x58] sm:$0xff]  }
 0x1ab   : > { %v2099_v44 = vadd.f32 %v2098_v15, %v2097_v63  ;;  %v2105_v41 = vrot.slane %v2104_v0, 4  ;;  %3684 = vmatmul.mubr.bf16.gmra.mrb[140].mxu0 %v11135_v17  ;;  %4238 = vmatprep.mubr.bf16.mxu1 %v16096_v8  ;;  %v2335_v38 = vpop.f32.mrb[36].mxu0  ;;  %v9729_v52 = vld [vmem:[%s10270_s24 + $0x370] ss:$8 sps:$4 sm:$0xff]  }
 0x1ac   : > { %v2096_v23 = vadd.f32 %v2095_v58, %v2094_v45  ;;  %v2583_v34 = vmul.f32 %v2486_v3, %v10770_v29  ;;  %v2584_v49 = vmul.f32 %v2487_v56, %v10777_v37  ;;  %3693 = vmatprep.mubr.bf16.mxu0 %v16096_v8  ;;  %v11143_v53 = vadd.f32 %v10868_v13, %v2089_v47  ;;  %v11145_v33 = vpop.f32.mrb[36].mxu1  ;;  %v2337_v56 = vpop.f32.mrb[37].mxu0 }
 0x1ad   : > { %v2100_v35 = vrot.slane %v2099_v44, 2  ;;  %v2106_v63 = vadd.f32 %v2105_v41, %v2104_v0  ;;  %16137 = vst [vmem:[#allocation79_spill] sm:$0xff] %v11145_v33  ;;  %5429 = vmatpush1.bf16.msra.mxu1 %v9726_v4  ;;  %v2488_v3 = vadd.f32 %v2335_v38, %v10666_v18  ;;  %v11152_v30 = vpop.f32.mrb[37].mxu1  ;;  %v2489_v33 = vadd.f32 %v2337_v56, %v10666_v18  ;;  %v2339_v4 = vpop.f32.mrb[38].mxu0 }
 0x1ae   : > { %16136 = vst [vmem:[#allocation78_spill] sm:$0xff] %v11143_v53  ;;  %v11149_v15 = vadd.f32 %v10871_v22, %v2096_v23  ;;  %v2613_v58 = vadd.f32 %v2583_v34, %v2581_v39  ;;  %v2620_v45 = vadd.f32 %v2584_v49, %v2582_v20  ;;  %16139 = vst [vmem:[#allocation81_spill] sm:$0xff] %v11152_v30  ;;  %5430 = vmatprep.subr.bf16.mxu1 %v9731_v7  ;;  %v11156_v37 = vpop.f32.mrb[38].mxu1  ;;  %v2341_v49 = vpop.f32.mrb[39].mxu0 }
 0x1af   : > { %v2170_v47 = vrot.slane %v11143_v53, 2  ;;  %v2101_v0 = vadd.f32 %v2100_v35, %v2099_v44  ;;  %v2107_v41 = vrot.slane %v2106_v63, 2  ;;  %16140 = vst [vmem:[#allocation82_spill] sm:$0xff] %v11156_v37  ;;  %v2585_v34 = vmul.f32 %v2488_v3, %v10797_v11  ;;  %v11160_v38 = vpop.f32.mrb[39].mxu1  ;;  %v11170_v3 = vld [vmem:[%s15657_s4 + $0x20] sm:$0xff]  }
 0x1b0   : > { %16138 = vst [vmem:[#allocation80_spill] sm:$0xff] %v11149_v15  ;;  %v2186_v23 = vrot.slane %v11149_v15, 2  ;;  %v2614_v39 = vrot.slane %v2613_v58, 4  ;;  %v2621_v20 = vrot.slane %v2620_v45, 4  ;;  %16141 = vst [vmem:[#allocation83_spill] sm:$0xff] %v11160_v38  ;;  %v2586_v35 = vmul.f32 %v2489_v33, %v10807_v25 }
 0x1b1   : > { %v2172_v7 = vsel %vm2171_vm5, %v2170_v47, %v2169_v57  ;;  %v2102_v30 = vrot.slane %v2101_v0, 1  ;;  %v2108_v29 = vadd.f32 %v2107_v41, %v2106_v63  ;;  %v9253_v44 = vld [vmem:[%s10834_s17 + $0x1] ss:$8 sm:$0x3]  ;;  %5431 = vmatpush1.bf16.msra.mxu1 %v9729_v52  ;;  %v2490_v15 = vadd.f32 %v2339_v4, %v10674_v36  ;;  %16142 = vst [vmem:[#allocation84_spill] sm:$0xff] %v11170_v3 }
 0x1b2   : > { %v2187_v56 = vsel %vm2171_vm5, %v2186_v23, %v2185_v50  ;;  %v2615_v37 = vadd.f32 %v2614_v39, %v2613_v58  ;;  %v2622_v18 = vadd.f32 %v2621_v20, %v2620_v45  ;;  %4239 = vmatmul.mubr.bf16.gmra.mrb[144].mxu1 %v11170_v3  ;;  %v2491_v47 = vadd.f32 %v2341_v49, %v10674_v36  ;;  %v11177_v50 = vld [vmem:[%s15657_s4 + $0x60] sm:$0xff]  }
 0x1b3   : > { %v2103_v57 = vadd.f32 %v2102_v30, %v2101_v0  ;;  %v2109_v63 = vrot.slane %v2108_v29, 1  ;;  %3694 = vmatmul.mubr.bf16.gmra.mrb[144].mxu0 %v11177_v50  ;;  %4248 = vmatprep.mubr.bf16.mxu1 %v16096_v8  ;;  %v11182_v52 = vrot.slane %v9253_v44, %v10837_v26  ;;  %v2587_v30 = vmul.f32 %v2490_v15, %v10812_v24  ;;  %v2345_v23 = vpop.f32.mrb[40].mxu0 }
 0x1b4   : > { %v2616_v33 = vrot.slane %v2615_v37, 2  ;;  %v2623_v58 = vrot.slane %v2622_v18, 2  ;;  %3703 = vmatprep.mubr.bf16.mxu0 %v16096_v8  ;;  %v11190_v41 = vrot.slane %v9253_v44, %v10845_v55  ;;  %v2588_v4 = vmul.f32 %v2491_v47, %v10817_v32  ;;  %v11193_v39 = vpop.f32.mrb[40].mxu1  ;;  %v2347_v24 = vpop.f32.mrb[41].mxu0 }
 0x1b5   : > { %v11187_v45 = vadd.f32 %v10868_v13, %v2103_v57  ;;  %v2110_v0 = vadd.f32 %v2109_v63, %v2108_v29  ;;  %16144 = vst [vmem:[#allocation86_spill] sm:$0xff] %v11193_v39  ;;  %v2627_v38 = vadd.f32 %v2587_v30, %v2585_v34  ;;  %v2492_v15 = vadd.f32 %v2345_v23, %v10743_v10  ;;  %v11196_v3 = vpop.f32.mrb[41].mxu1  ;;  %v2349_v63 = vpop.f32.mrb[42].mxu0  ;;  %v9734_v39 = vld [vmem:[%s10270_s24 + $0x384] ss:$8 sps:$4 sm:$0xff]  }
 0x1b6   : > { %v2617_v20 = vadd.f32 %v2616_v33, %v2615_v37  ;;  %v2624_v49 = vadd.f32 %v2623_v58, %v2622_v18  ;;  %16145 = vst [vmem:[#allocation87_spill] sm:$0xff] %v11196_v3  ;;  %v2634_v44 = vadd.f32 %v2588_v4, %v2586_v35  ;;  %v2493_v57 = vadd.f32 %v2347_v24, %v10743_v10  ;;  %v11203_v47 = vpop.f32.mrb[42].mxu1  ;;  %v2351_v58 = vpop.f32.mrb[43].mxu0 }
 0x1b7   : > { %16143 = vst [vmem:[#allocation85_spill] sm:$0xff] %v11187_v45  ;;  %v2173_v13 = vrot.slane %v11187_v45, 1  ;;  %v11200_v29 = vadd.f32 %v10871_v22, %v2110_v0  ;;  %16147 = vst [vmem:[#allocation89_spill] sm:$0xff] %v11203_v47  ;;  %v2628_v34 = vrot.slane %v2627_v38, 4  ;;  %v2589_v33 = vmul.f32 %v2492_v15, %v10840_v9  ;;  %v11207_v30 = vpop.f32.mrb[43].mxu1  ;;  %6041 = vmatprep.subr.bf16.mxu0 %v9734_v39  ;;  %v11218_v15 = vld [vmem:[%s15657_s4 + $0x28] sm:$0xff]  }
 0x1b8   : > { %v2618_v37 = vrot.slane %v2617_v20, 1  ;;  %v2625_v18 = vrot.slane %v2624_v49, 1  ;;  %16148 = vst [vmem:[#allocation90_spill] sm:$0xff] %v11207_v30  ;;  %v2635_v35 = vrot.slane %v2634_v44, 4  ;;  %v2590_v24 = vmul.f32 %v2493_v57, %v10848_v12  ;;  %16150 = vst [vmem:[#allocation92_spill] sm:$0xff] %v11218_v15  ;;  %v11228_v39 = vld [vmem:[%s15657_s4 + $0x68] sm:$0xff]  }
 0x1b9   : > { %16146 = vst [vmem:[#allocation88_spill] sm:$0xff] %v11200_v29  ;;  %v11210_v23 = vsel %vm2174_vm6, %v2173_v13, %v2172_v7  ;;  %v2188_v22 = vrot.slane %v11200_v29, 1  ;;  %v2629_v47 = vadd.f32 %v2628_v34, %v2627_v38  ;;  %v2494_v3 = vadd.f32 %v2349_v63, %v10690_v43  ;;  %v16153_v63 = vld [vmem:[#allocation31_spill] sm:$0xff]  ;;  %v16245_v45 = vld [vmem:[#allocation81_spill] sm:$0xff] }
 0x1ba   : > { %16149 = vst [vmem:[#allocation91_spill] sm:$0xff] %v11210_v23  ;;  %v2619_v0 = vadd.f32 %v2618_v37, %v2617_v20  ;;  %v2626_v4 = vadd.f32 %v2625_v18, %v2624_v49  ;;  %4249 = vmatmul.mubr.bf16.gmra.mrb[148].mxu1 %v11218_v15  ;;  %v2636_v13 = vadd.f32 %v2635_v35, %v2634_v44  ;;  %v16152_v49 = vld [vmem:[#allocation30_spill] sm:$0xff] }
 0x1bb   : > { %v11222_v7 = vsel %vm2174_vm6, %v2188_v22, %v2187_v56  ;;  %v2495_v23 = vadd.f32 %v2351_v58, %v10690_v43  ;;  %3704 = vmatmul.mubr.bf16.gmra.mrb[148].mxu0 %v11228_v39  ;;  %4258 = vmatprep.mubr.bf16.mxu1 %v16096_v8  ;;  %v2630_v56 = vrot.slane %v2629_v47, 2  ;;  %v2591_v44 = vmul.f32 %v2494_v3, %v16152_v49  ;;  %v2355_v18 = vpop.f32.mrb[44].mxu0  ;;  %v16156_v49 = vld [vmem:[#allocation11_spill] sm:$0xff]  ;;  %v16158_v58 = vld [vmem:[#allocation32_spill] sm:$0xff] }
 0x1bc   : > { %16151 = vst [vmem:[#allocation93_spill] sm:$0xff] %v11222_v7  ;;  %v11233_v38 = vadd.f32 %v11182_v52, %v2619_v0  ;;  %v11236_v20 = vadd.f32 %v11190_v41, %v2626_v4  ;;  %3713 = vmatprep.mubr.bf16.mxu0 %v16096_v8  ;;  %v2637_v57 = vrot.slane %v2636_v13, 2  ;;  %v11241_v34 = vpop.f32.mrb[44].mxu1  ;;  %v2357_v4 = vpop.f32.mrb[45].mxu0  ;;  %v2496_v43 = vadd.f32 %v2355_v18, %v16156_v49  ;;  %v16162_v18 = vld [vmem:[#allocation35_spill] sm:$0xff] }
 0x1bd   : > { %v2592_v37 = vmul.f32 %v2495_v23, %v16153_v63  ;;  %16154 = vst [vmem:[#allocation94_spill] sm:$0xff] %v11241_v34  ;;  %v2631_v35 = vadd.f32 %v2630_v56, %v2629_v47  ;;  %v2641_v0 = vadd.f32 %v2591_v44, %v2589_v33  ;;  %v11247_v7 = vpop.f32.mrb[45].mxu1  ;;  %v2497_v23 = vadd.f32 %v2357_v4, %v16156_v49  ;;  %v2359_v63 = vpop.f32.mrb[46].mxu0  ;;  %v16160_v56 = vld [vmem:[#allocation33_spill] sm:$0xff] }
 0x1be   : > { %16155 = vst [vmem:[#allocation95_spill] sm:$0xff] %v11247_v7  ;;  %v2638_v3 = vadd.f32 %v2637_v57, %v2636_v13  ;;  %v11251_v12 = vpop.f32.mrb[46].mxu1  ;;  %v2498_v16 = vadd.f32 %v2359_v63, %v16158_v58  ;;  %v2361_v9 = vpop.f32.mrb[47].mxu0  ;;  %v2593_v44 = vmul.f32 %v2496_v43, %v16160_v56  ;;  %v16161_v13 = vld [vmem:[#allocation34_spill] sm:$0xff]  ;;  %v11269_v43 = vld [vmem:[%s15657_s4 + $0x70] sm:$0xff]  }
 0x1bf   : > { %v2648_v30 = vadd.f32 %v2592_v37, %v2590_v24  ;;  %16157 = vst [vmem:[#allocation96_spill] sm:$0xff] %v11251_v12  ;;  %v2632_v34 = vrot.slane %v2631_v35, 1  ;;  %v2642_v15 = vrot.slane %v2641_v0, 4  ;;  %v11254_v22 = vpop.f32.mrb[47].mxu1  ;;  %v2594_v24 = vmul.f32 %v2497_v23, %v16161_v13  ;;  %v11263_v12 = vld [vmem:[%s15657_s4 + $0x30] sm:$0xff]   ;;  %16164 = vst [vmem:[#allocation99_spill] sm:$0xff] %v11269_v43 }
 0x1c0   : > { %16159 = vst [vmem:[#allocation97_spill] sm:$0xff] %v11254_v22  ;;  %v2639_v47 = vrot.slane %v2638_v3, 1  ;;  %v2595_v4 = vmul.f32 %v2498_v16, %v16162_v18  ;;  %v2499_v7 = vadd.f32 %v2361_v9, %v16158_v58  ;;  %16163 = vst [vmem:[#allocation98_spill] sm:$0xff] %v11263_v12 }
 0x1c1   : > { %v2649_v33 = vrot.slane %v2648_v30, 4  ;;  %v2633_v57 = vadd.f32 %v2632_v34, %v2631_v35  ;;  %v2643_v37 = vadd.f32 %v2642_v15, %v2641_v0  ;;  %v16166_v34 = vld [vmem:[#allocation37_spill] sm:$0xff] }
 0x1c2   : > { %4259 = vmatmul.mubr.bf16.gmra.mrb[152].mxu1 %v11263_v12  ;;  %v2640_v63 = vadd.f32 %v2639_v47, %v2638_v3  ;;  %v2655_v15 = vadd.f32 %v2595_v4, %v2593_v44  ;;  %v2596_v35 = vmul.f32 %v2499_v7, %v16166_v34 }
 0x1c3   : > { %v2650_v22 = vadd.f32 %v2649_v33, %v2648_v30  ;;  %3714 = vmatmul.mubr.bf16.gmra.mrb[152].mxu0 %v11269_v43  ;;  %4268 = vmatprep.mubr.bf16.mxu1 %v16096_v8  ;;  %v11274_v9 = vadd.f32 %v11182_v52, %v2633_v57  ;;  %v2644_v16 = vrot.slane %v2643_v37, 2  ;;  %v2365_v3 = vpop.f32.mrb[48].mxu0 }
 0x1c4   : > { %3723 = vmatprep.mubr.bf16.mxu0 %v16096_v8  ;;  %v11279_v30 = vadd.f32 %v11190_v41, %v2640_v63  ;;  %v11281_v23 = vpop.f32.mrb[48].mxu1  ;;  %v2656_v13 = vrot.slane %v2655_v15, 4  ;;  %v2367_v12 = vpop.f32.mrb[49].mxu0  ;;  %v2662_v58 = vadd.f32 %v2596_v35, %v2594_v24 }
 0x1c5   : > { %16165 = vst [vmem:[#allocation100_spill] sm:$0xff] %v11274_v9  ;;  %v2651_v0 = vrot.slane %v2650_v22, 2  ;;  %16168 = vst [vmem:[#allocation102_spill] sm:$0xff] %v11281_v23  ;;  %v2770_v47 = vrot.slane %v11274_v9, 7  ;;  %v2645_v57 = vadd.f32 %v2644_v16, %v2643_v37  ;;  %v11286_v44 = vpop.f32.mrb[49].mxu1  ;;  %v2369_v1 = vpop.f32.mrb[50].mxu0  ;;  %v2500_v37 = vadd.f32 %v2365_v3, %v10746_v14 }
 0x1c6   : > { %16167 = vst [vmem:[#allocation101_spill] sm:$0xff] %v11279_v30  ;;  %16170 = vst [vmem:[#allocation103_spill] sm:$0xff] %v11286_v44  ;;  %v2784_v7 = vrot.slane %v11279_v30, 7  ;;  %v11291_v43 = vpop.f32.mrb[50].mxu1  ;;  %v2657_v18 = vadd.f32 %v2656_v13, %v2655_v15  ;;  %v2371_v16 = vpop.f32.mrb[51].mxu0  ;;  %v2663_v63 = vrot.slane %v2662_v58, 4 }
 0x1c7   : > { %v2652_v34 = vadd.f32 %v2651_v0, %v2650_v22  ;;  %16172 = vst [vmem:[#allocation104_spill] sm:$0xff] %v11291_v43  ;;  %v2771_v23 = vsel %vm2156_vm0, %v2770_v47, %v11233_v38  ;;  %v2646_v56 = vrot.slane %v2645_v57, 1  ;;  %v11296_v9 = vpop.f32.mrb[51].mxu1  ;;  %v2501_v22 = vadd.f32 %v2367_v12, %v10746_v14  ;;  %v11306_v13 = vld [vmem:[%s15657_s4 + $0x38] sm:$0xff]   ;;  %v16206_v14 = vld [vmem:[#allocation60_spill] sm:$0xff] }
 0x1c8   : > { %16173 = vst [vmem:[#allocation105_spill] sm:$0xff] %v11296_v9  ;;  %v2785_v44 = vsel %vm2156_vm0, %v2784_v7, %v11236_v20  ;;  %v2658_v35 = vrot.slane %v2657_v18, 2  ;;  %v2597_v0 = vmul.f32 %v2500_v37, %v10921_v48  ;;  %v2502_v47 = vadd.f32 %v2369_v1, %v10756_v21  ;;  %16174 = vst [vmem:[#allocation106_spill] sm:$0xff] %v11306_v13  ;;  %v11314_v12 = vld [vmem:[%s15657_s4 + $0x78] sm:$0xff]  }
 0x1c9   : > { %v2653_v33 = vrot.slane %v2652_v34, 1  ;;  %v2647_v24 = vadd.f32 %v2646_v56, %v2645_v57  ;;  %v2664_v3 = vadd.f32 %v2663_v63, %v2662_v58  ;;  %v2598_v7 = vmul.f32 %v2501_v22, %v10927_v51  ;;  %16175 = vst [vmem:[#allocation107_spill] sm:$0xff] %v11314_v12  ;;  %v16177_v57 = vld [vmem:[#allocation44_spill] sm:$0xff] }
 0x1ca   : > { %4269 = vmatmul.mubr.bf16.gmra.mrb[156].mxu1 %v11306_v13  ;;  %v2503_v9 = vadd.f32 %v2371_v16, %v10756_v21  ;;  %v2659_v56 = vadd.f32 %v2658_v35, %v2657_v18  ;;  %v2599_v37 = vmul.f32 %v2502_v47, %v16177_v57  ;;  %v16189_v13 = vld [vmem:[#allocation56_spill] sm:$0xff] }
 0x1cb   : > { %v2654_v15 = vadd.f32 %v2653_v33, %v2652_v34  ;;  %3724 = vmatmul.mubr.bf16.gmra.mrb[156].mxu0 %v11314_v12  ;;  %v11318_v1 = vadd.f32 %v11182_v52, %v2647_v24  ;;  %4278 = vmatprep.mubr.bf16.mxu1 %v16096_v8  ;;  %v2665_v34 = vrot.slane %v2664_v3, 2  ;;  %v16179_v33 = vld [vmem:[#allocation46_spill] sm:$0xff]  ;;  %v2375_v16 = vpop.f32.mrb[52].mxu0 }
 0x1cc   : > { %4823 = vmatprep.mubr.bf16.mxu0 %v16096_v8  ;;  %v2600_v63 = vmul.f32 %v2503_v9, %v16179_v33  ;;  %v11327_v22 = vpop.f32.mrb[52].mxu1  ;;  %v2660_v35 = vrot.slane %v2659_v56, 1  ;;  %v2669_v47 = vadd.f32 %v2599_v37, %v2597_v0  ;;  %v2377_v57 = vpop.f32.mrb[53].mxu0  ;;  %v2504_v0 = vadd.f32 %v2375_v16, %v10950_v31  ;;  %v9737_v16 = vld [vmem:[%s10270_s24 + $0x394] ss:$8 sps:$4 sm:$0xff]  }
 0x1cd   : > { %16176 = vst [vmem:[#allocation108_spill] sm:$0xff] %v11318_v1  ;;  %v11324_v58 = vadd.f32 %v11190_v41, %v2654_v15  ;;  %16180 = vst [vmem:[#allocation110_spill] sm:$0xff] %v11327_v22  ;;  %v2772_v43 = vrot.slane %v11318_v1, 6  ;;  %v11332_v51 = vpop.f32.mrb[53].mxu1  ;;  %v2666_v9 = vadd.f32 %v2665_v34, %v2664_v3  ;;  %v2379_v12 = vpop.f32.mrb[54].mxu0  ;;  %v2505_v3 = vadd.f32 %v2377_v57, %v10950_v31  ;;  %v16191_v57 = vld [vmem:[#allocation53_spill] sm:$0xff] }
 0x1ce   : > { %16182 = vst [vmem:[#allocation111_spill] sm:$0xff] %v11332_v51  ;;  %v2676_v33 = vadd.f32 %v2600_v63, %v2598_v7  ;;  %v11337_v22 = vpop.f32.mrb[54].mxu1  ;;  %v2661_v18 = vadd.f32 %v2660_v35, %v2659_v56  ;;  %v2670_v1 = vrot.slane %v2669_v47, 4  ;;  %v2381_v37 = vpop.f32.mrb[55].mxu0  ;;  %v9732_v7 = vld [vmem:[%s10270_s24 + $0x380] ss:$8 sps:$4 sm:$0xff]  }
 0x1cf   : > { %16178 = vst [vmem:[#allocation109_spill] sm:$0xff] %v11324_v58  ;;  %v2786_v21 = vrot.slane %v11324_v58, 6  ;;  %16184 = vst [vmem:[#allocation112_spill] sm:$0xff] %v11337_v22  ;;  %v2773_v48 = vsel %vm2159_vm1, %v2772_v43, %v2771_v23  ;;  %v11341_v51 = vpop.f32.mrb[55].mxu1  ;;  %v2667_v30 = vrot.slane %v2666_v9, 1  ;;  %v16187_v43 = vld [vmem:[#allocation50_spill] sm:$0xff] }
 0x1d0   : > { %16185 = vst [vmem:[#allocation113_spill] sm:$0xff] %v11341_v51  ;;  %v2677_v4 = vrot.slane %v2676_v33, 4  ;;  %v11347_v34 = vadd.f32 %v11182_v52, %v2661_v18  ;;  %v2671_v63 = vadd.f32 %v2670_v1, %v2669_v47  ;;  %v2601_v23 = vmul.f32 %v2504_v0, %v16187_v43  ;;  %v16188_v56 = vld [vmem:[#allocation25_spill] sm:$0xff]  ;;  %v16190_v58 = vld [vmem:[#allocation51_spill] sm:$0xff]  ;;  %v16193_v43 = vld [vmem:[#allocation52_spill] sm:$0xff] }
 0x1d1   : > { %v2787_v24 = vsel %vm2159_vm1, %v2786_v21, %v2785_v44  ;;  %v2506_v35 = vadd.f32 %v2379_v12, %v16188_v56  ;;  %v2668_v22 = vadd.f32 %v2667_v30, %v2666_v9  ;;  %v2602_v21 = vmul.f32 %v2505_v3, %v16190_v58  ;;  %v9735_v3 = vld [vmem:[%s10270_s24 + $0x390] ss:$8 sps:$4 sm:$0xff]  }
 0x1d2   : > { %16186 = vst [vmem:[#allocation114_spill] sm:$0xff] %v11347_v34  ;;  %4279 = vmatmul.mubr.bf16.gmra.mrb[160].mxu1 %v16189_v13  ;;  %v2678_v51 = vadd.f32 %v2677_v4, %v2676_v33  ;;  %v2507_v44 = vadd.f32 %v2381_v37, %v16188_v56  ;;  %v2774_v18 = vrot.slane %v11347_v34, 5  ;;  %v2672_v0 = vrot.slane %v2671_v63, 2  ;;  %v16195_v13 = vld [vmem:[#allocation55_spill] sm:$0xff] }
 0x1d3   : > { %4824 = vmatmul.mubr.bf16.vlgmr.msra.gmra.mrb[160].mxu0 %v16191_v57  ;;  %v2603_v12 = vmul.f32 %v2506_v35, %v16193_v43  ;;  %4288 = vmatprep.mubr.bf16.mxu1 %v16096_v8  ;;  %v11363_v30 = vadd.f32 %v11190_v41, %v2668_v22  ;;  %v2385_v9 = vpop.f32.mrb[56].mxu0  ;;  %v16197_v43 = vld [vmem:[#allocation40_spill] sm:$0xff] }
 0x1d4   : > { %4833 = vmatprep.mubr.bf16.mxu0 %v16096_v8  ;;  %v2679_v4 = vrot.slane %v2678_v51, 2  ;;  %v2604_v33 = vmul.f32 %v2507_v44, %v16195_v13  ;;  %v11366_v37 = vpop.f32.mrb[56].mxu1  ;;  %6042 = vmatpush1.bf16.msra.mxu0 %v9732_v7  ;;  %v11370_v57 = vsel %vm2162_vm2, %v2774_v18, %v2773_v48  ;;  %v2673_v47 = vadd.f32 %v2672_v0, %v2671_v63  ;;  %v2387_v1 = vpop.f32.mrb[57].mxu0  ;;  %v16201_v18 = vld [vmem:[#allocation58_spill] sm:$0xff]  ;;  %v16204_v44 = vld [vmem:[#allocation59_spill] sm:$0xff] }
 0x1d5   : > { %16194 = vst [vmem:[#allocation56_spill] sm:$0xff] %v11363_v30  ;;  %16196 = vst [vmem:[#allocation53_spill] sm:$0xff] %v11366_v37  ;;  %v2683_v35 = vadd.f32 %v2603_v12, %v2601_v23  ;;  %v2508_v34 = vadd.f32 %v2385_v9, %v16197_v43  ;;  %v11373_v58 = vpop.f32.mrb[57].mxu1  ;;  %6043 = vmatprep.subr.bf16.mxu0 %v9737_v16  ;;  %v2788_v22 = vrot.slane %v11363_v30, 5  ;;  %v2389_v56 = vpop.f32.mrb[58].mxu0 }
 0x1d6   : > { %16198 = vst [vmem:[#allocation115_spill] sm:$0xff] %v11373_v58  ;;  %v2680_v37 = vadd.f32 %v2679_v4, %v2678_v51  ;;  %v2690_v7 = vadd.f32 %v2604_v33, %v2602_v21  ;;  %v11378_v48 = vpop.f32.mrb[58].mxu1  ;;  %v2674_v63 = vrot.slane %v2673_v47, 1  ;;  %v2509_v12 = vadd.f32 %v2387_v1, %v16197_v43  ;;  %v2391_v9 = vpop.f32.mrb[59].mxu0  ;;  %v9740_v58 = vld [vmem:[%s10270_s24 + $0x3a4] ss:$8 sps:$4 sm:$0xff]  }
 0x1d7   : > { %16200 = vst [vmem:[#allocation116_spill] sm:$0xff] %v11378_v48  ;;  %v2684_v23 = vrot.slane %v2683_v35, 4  ;;  %v2605_v0 = vmul.f32 %v2508_v34, %v16201_v18  ;;  %v11382_v16 = vpop.f32.mrb[59].mxu1  ;;  %v2789_v15 = vsel %vm2162_vm2, %v2788_v22, %v2787_v24  ;;  %v16203_v4 = vld [vmem:[#allocation49_spill] sm:$0xff]  ;;  %v9738_v33 = vld [vmem:[%s10270_s24 + $0x3a0] ss:$8 sps:$4 sm:$0xff]  }
 0x1d8   : > { %16202 = vst [vmem:[#allocation117_spill] sm:$0xff] %v11382_v16  ;;  %v2681_v13 = vrot.slane %v2680_v37, 1  ;;  %v2691_v51 = vrot.slane %v2690_v7, 4  ;;  %v2510_v21 = vadd.f32 %v2389_v56, %v16203_v4  ;;  %6044 = vmatpush1.bf16.msra.mxu0 %v9735_v3  ;;  %v2675_v48 = vadd.f32 %v2674_v63, %v2673_v47  ;;  %v16205_v18 = vld [vmem:[#allocation63_spill] sm:$0xff]  ;;  %v9743_v1 = vld [vmem:[%s10270_s24 + $0x3b4] ss:$8 sps:$4 sm:$0xff]  }
 0x1d9   : > { %v2685_v30 = vadd.f32 %v2684_v23, %v2683_v35  ;;  %v2606_v31 = vmul.f32 %v2509_v12, %v16204_v44  ;;  %v2511_v34 = vadd.f32 %v2391_v9, %v16203_v4  ;;  %v16207_v22 = vld [vmem:[#allocation61_spill] sm:$0xff]  ;;  %v16209_v3 = vld [vmem:[#allocation62_spill] sm:$0xff]  ;;  %6045 = vmatprep.subr.bf16.mxu0 %v9740_v58 }
 0x1da   : > { %4289 = vmatmul.mubr.bf16.gmra.mrb[164].mxu1 %v16205_v18  ;;  %v2682_v43 = vadd.f32 %v2681_v13, %v2680_v37  ;;  %v2692_v16 = vadd.f32 %v2691_v51, %v2690_v7  ;;  %v2607_v24 = vmul.f32 %v2510_v21, %v16206_v14  ;;  %v11396_v56 = vadd.f32 %v11182_v52, %v2675_v48  ;;  %v9741_v18 = vld [vmem:[%s10270_s24 + $0x3b0] ss:$8 sps:$4 sm:$0xff]  }
 0x1db   : > { %4834 = vmatmul.mubr.bf16.gmra.mrb[164].mxu0 %v16207_v22  ;;  %4298 = vmatprep.mubr.bf16.mxu1 %v16096_v8  ;;  %v2686_v47 = vrot.slane %v2685_v30, 2  ;;  %v2608_v35 = vmul.f32 %v2511_v34, %v16209_v3  ;;  %v2395_v7 = vpop.f32.mrb[60].mxu0 }
 0x1dc   : > { %16208 = vst [vmem:[#allocation63_spill] sm:$0xff] %v11396_v56  ;;  %4843 = vmatprep.mubr.bf16.mxu0 %v16096_v8  ;;  %v11401_v63 = vadd.f32 %v11190_v41, %v2682_v43  ;;  %v2693_v13 = vrot.slane %v2692_v16, 2  ;;  %v2697_v37 = vadd.f32 %v2607_v24, %v2605_v0  ;;  %v11403_v23 = vpop.f32.mrb[60].mxu1  ;;  %6046 = vmatpush1.bf16.msra.mxu0 %v9738_v33  ;;  %v2776_v12 = vrot.slane %v11396_v56, 4  ;;  %v2397_v34 = vpop.f32.mrb[61].mxu0 }
 0x1dd   : > { %16211 = vst [vmem:[#allocation118_spill] sm:$0xff] %v11403_v23  ;;  %v2687_v51 = vadd.f32 %v2686_v47, %v2685_v30  ;;  %v2704_v21 = vadd.f32 %v2608_v35, %v2606_v31  ;;  %v11409_v58 = vpop.f32.mrb[61].mxu1  ;;  %6047 = vmatprep.subr.bf16.mxu0 %v9743_v1  ;;  %v2399_v23 = vpop.f32.mrb[62].mxu0  ;;  %v2512_v35 = vadd.f32 %v2395_v7, %v11045_v19  ;;  %v9749_v7 = vld [vmem:[%s10270_s24 + $0x3d4] ss:$8 sps:$4 sm:$0xff]  }
 0x1de   : > { %16210 = vst [vmem:[#allocation61_spill] sm:$0xff] %v11401_v63  ;;  %16213 = vst [vmem:[#allocation119_spill] sm:$0xff] %v11409_v58  ;;  %v2790_v43 = vrot.slane %v11401_v63, 4  ;;  %v2694_v22 = vadd.f32 %v2693_v13, %v2692_v16  ;;  %v2698_v33 = vrot.slane %v2697_v37, 4  ;;  %v11414_v3 = vpop.f32.mrb[62].mxu1  ;;  %v2777_v30 = vsel %vm2165_vm3, %v2776_v12, %v11370_v57  ;;  %v2401_v1 = vpop.f32.mrb[63].mxu0 }
 0x1df   : > { %16215 = vst [vmem:[#allocation120_spill] sm:$0xff] %v11414_v3  ;;  %v2688_v31 = vrot.slane %v2687_v51, 1  ;;  %v2705_v47 = vrot.slane %v2704_v21, 4  ;;  %v11419_v9 = vpop.f32.mrb[63].mxu1  ;;  %v9746_v58 = vld [vmem:[%s10270_s24 + $0x3c4] ss:$8 sps:$4 sm:$0xff]   ;;  %v2513_v63 = vadd.f32 %v2397_v34, %v11045_v19  ;;  %v2609_v57 = vmul.f32 %v2512_v35, %v11061_v40 }
 0x1e0   : > { %16216 = vst [vmem:[#allocation121_spill] sm:$0xff] %v11419_v9  ;;  %v2791_v24 = vsel %vm2165_vm3, %v2790_v43, %v2789_v15  ;;  %v2695_v16 = vrot.slane %v2694_v22, 1  ;;  %v2699_v13 = vadd.f32 %v2698_v33, %v2697_v37  ;;  %6048 = vmatpush1.bf16.msra.mxu0 %v9741_v18  ;;  %v9744_v3 = vld [vmem:[%s10270_s24 + $0x3c0] ss:$8 sps:$4 sm:$0xff]   ;;  %v2514_v12 = vadd.f32 %v2399_v23, %v11047_v62  ;;  %v9747_v43 = vld [vmem:[%s10270_s24 + $0x3d0] ss:$8 sps:$4 sm:$0xff]  }
 0x1e1   : > { %v2689_v0 = vadd.f32 %v2688_v31, %v2687_v51  ;;  %v2706_v56 = vadd.f32 %v2705_v47, %v2704_v21  ;;  %v2610_v14 = vmul.f32 %v2513_v63, %v11068_v60  ;;  %v2515_v15 = vadd.f32 %v2401_v1, %v11047_v62  ;;  %v11437_v51 = vpop.permute.xlu1 %1840  ;;  %6049 = vmatprep.subr.bf16.mxu0 %v9746_v58 }
 0x1e2   : > { %4299 = vmatmul.mubr.bf16.gmra.mrb[168].mxu1 %v11089_v46  ;;  %v2696_v48 = vadd.f32 %v2695_v16, %v2694_v22  ;;  %v2700_v9 = vrot.slane %v2699_v13, 2  ;;  %v2611_v23 = vmul.f32 %v2514_v12, %v11080_v6  ;;  %16218 = vst [vmem:[#allocation123_spill] sm:$0xff] %v11437_v51  ;;  %v16227_v6 = vld [vmem:[#allocation73_spill] sm:$0xff] }
 0x1e3   : > { %4844 = vmatmul.mubr.bf16.gmra.mrb[168].mxu0 %v11075_v28  ;;  %4308 = vmatprep.mubr.bf16.mxu1 %v16096_v8  ;;  %v11434_v37 = vadd.f32 %v11182_v52, %v2689_v0  ;;  %v2707_v18 = vrot.slane %v2706_v56, 2  ;;  %v2612_v28 = vmul.f32 %v2515_v15, %v11084_v61  ;;  %v11444_v21 = vpop.f32.mrb[64].mxu0 }
 0x1e4   : > { %4853 = vmatprep.mubr.bf16.mxu0 %v16096_v8  ;;  %v11441_v46 = vadd.f32 %v11190_v41, %v2696_v48  ;;  %v2701_v63 = vadd.f32 %v2700_v9, %v2699_v13  ;;  %v2950_v34 = vpop.f32.mrb[64].mxu1  ;;  %6050 = vmatpush1.bf16.msra.mxu0 %v9744_v3  ;;  %v2711_v47 = vadd.f32 %v2611_v23, %v2609_v57  ;;  %v11450_v35 = vpop.f32.mrb[65].mxu0  ;;  %v9286_v48 = vld [vmem:[%s10834_s17 + $0x2] ss:$8 sm:$0x3] }
 0x1e5   : > { %16217 = vst [vmem:[#allocation122_spill] sm:$0xff] %v11434_v37  ;;  %v2778_v0 = vrot.slane %v11434_v37, 3  ;;  %v2708_v31 = vadd.f32 %v2707_v18, %v2706_v56  ;;  %v2952_v58 = vpop.f32.mrb[65].mxu1  ;;  %6051 = vmatprep.subr.bf16.mxu0 %v9749_v7  ;;  %v2718_v16 = vadd.f32 %v2612_v28, %v2610_v14  ;;  %v11456_v13 = vpop.f32.mrb[66].mxu0  ;;  %v3109_v1 = vadd.f32 %v2950_v34, %v10752_v59  ;;  %v9752_v14 = vld [vmem:[%s10270_s24 + $0x3e4] ss:$8 sps:$4 sm:$0xff]  }
 0x1e6   : > { %16219 = vst [vmem:[#allocation124_spill] sm:$0xff] %v11441_v46  ;;  %v2792_v9 = vrot.slane %v11441_v46, 3  ;;  %v2702_v3 = vrot.slane %v2701_v63, 1  ;;  %v2954_v12 = vpop.f32.mrb[66].mxu1  ;;  %v2712_v15 = vrot.slane %v2711_v47, 4  ;;  %v11459_v18 = vpop.f32.mrb[67].mxu0  ;;  %v3110_v42 = vadd.f32 %v2952_v58, %v10752_v59 }
 0x1e7   : > { %v2779_v56 = vsel %vm2168_vm4, %v2778_v0, %v2777_v30  ;;  %v2709_v57 = vrot.slane %v2708_v31, 1  ;;  %v2956_v23 = vpop.f32.mrb[67].mxu1  ;;  %v2719_v61 = vrot.slane %v2718_v16, 4  ;;  %v9750_v30 = vld [vmem:[%s10270_s24 + $0x3e0] ss:$8 sps:$4 sm:$0xff]   ;;  %v11482_v58 = vpop.permute.xlu1 %1848 }
 0x1e8   : > { %v2793_v7 = vsel %vm2168_vm4, %v2792_v9, %v2791_v24  ;;  %v2703_v33 = vadd.f32 %v2702_v3, %v2701_v63  ;;  %6052 = vmatpush1.bf16.msra.mxu0 %v9747_v43  ;;  %v2713_v46 = vadd.f32 %v2712_v15, %v2711_v47  ;;  %v3206_v24 = vmul.f32 %v3109_v1, %v10761_v2  ;;  %v9755_v34 = vld [vmem:[%s10270_s24 + $0x3f4] ss:$8 sps:$4 sm:$0xff]   ;;  %v11479_v47 = vpop.permute.xlu0 %1844 }
 0x1e9   : > { %v2710_v28 = vadd.f32 %v2709_v57, %v2708_v31  ;;  %v2720_v37 = vadd.f32 %v2719_v61, %v2718_v16  ;;  %v11472_v63 = vrot.slane %v9286_v48, %v10837_v26  ;;  %16223 = vst [vmem:[#allocation127_spill] sm:$0xff] %v11479_v47  ;;  %16224 = vst [vmem:[#allocation128_spill] sm:$0xff] %v11482_v58  ;;  %6053 = vmatprep.subr.bf16.mxu0 %v9752_v14 }
 0x1ea   : > { %4309 = vmatmul.mubr.bf16.gmra.mrb[172].mxu1 %v11135_v17  ;;  %v11468_v0 = vadd.f32 %v11182_v52, %v2703_v33  ;;  %v2714_v31 = vrot.slane %v2713_v46, 2  ;;  %v3207_v17 = vmul.f32 %v3110_v42, %v10765_v5  ;;  %v3111_v61 = vadd.f32 %v2954_v12, %v10718_v54  ;;  %v9753_v33 = vld [vmem:[%s10270_s24 + $0x3f0] ss:$8 sps:$4 sm:$0xff]   ;;  %s15580_s24 = scalar_lea.vmem (%p9960_p5), %s15660_s7, %s9467_s30 }
 0x1eb   : > { %4854 = vmatmul.mubr.bf16.gmra.mrb[172].mxu0 %v11128_v27  ;;  %v11477_v43 = vadd.f32 %v11190_v41, %v2710_v28  ;;  %4318 = vmatprep.mubr.bf16.mxu1 %v16096_v8  ;;  %v2721_v9 = vrot.slane %v2720_v37, 2  ;;  %v11491_v1 = vrot.slane %v9286_v48, %v10845_v55  ;;  %v11493_v3 = vpop.f32.mrb[68].mxu0  ;;  %v16226_v28 = vld [vmem:[#allocation18_spill] sm:$0xff]  ;;  %v3112_v53 = vadd.f32 %v2956_v23, %v10718_v54 }
 0x1ec   : > { %16221 = vst [vmem:[#allocation125_spill] sm:$0xff] %v11468_v0  ;;  %4863 = vmatprep.mubr.bf16.mxu0 %v16096_v8  ;;  %v2780_v27 = vrot.slane %v11468_v0, 2  ;;  %v2960_v42 = vpop.f32.mrb[68].mxu1  ;;  %v2715_v15 = vadd.f32 %v2714_v31, %v2713_v46  ;;  %v3208_v5 = vmul.f32 %v3111_v61, %v16226_v28  ;;  %v11499_v2 = vpop.f32.mrb[69].mxu0  ;;  %6054 = vmatpush1.bf16.msra.mxu0 %v9750_v30  ;;  %v16231_v28 = vld [vmem:[#allocation75_spill] sm:$0xff] }
 0x1ed   : > { %16222 = vst [vmem:[#allocation126_spill] sm:$0xff] %v11477_v43  ;;  %v2794_v16 = vrot.slane %v11477_v43, 2  ;;  %v2962_v22 = vpop.f32.mrb[69].mxu1  ;;  %v2722_v0 = vadd.f32 %v2721_v9, %v2720_v37  ;;  %v11504_v59 = vpop.f32.mrb[70].mxu0  ;;  %6055 = vmatprep.subr.bf16.mxu0 %v9755_v34  ;;  %v11508_v57 = vadd.f32 %v11437_v51, %v16227_v6  ;;  %v16229_v43 = vld [vmem:[#allocation7_spill] sm:$0xff]  ;;  %v11518_v34 = vadd.f32 %v11437_v51, %v16231_v28 }
 0x1ee   : > { %v2781_v48 = vsel %vm2171_vm5, %v2780_v27, %v2779_v56  ;;  %v2964_v14 = vpop.f32.mrb[70].mxu1  ;;  %v2716_v31 = vrot.slane %v2715_v15, 1  ;;  %v3238_v61 = vadd.f32 %v3208_v5, %v3206_v24  ;;  %v3113_v30 = vadd.f32 %v2960_v42, %v16229_v43  ;;  %v11512_v12 = vpop.f32.mrb[71].mxu0  ;;  %v16230_v27 = vld [vmem:[#allocation19_spill] sm:$0xff]  ;;  %v16233_v5 = vld [vmem:[#allocation76_spill] sm:$0xff] }
 0x1ef   : > { %16228 = vst [vmem:[#allocation73_spill] sm:$0xff] %v11508_v57  ;;  %v2795_v46 = vsel %vm2171_vm5, %v2794_v16, %v2793_v7  ;;  %v2966_v56 = vpop.f32.mrb[71].mxu1  ;;  %v2723_v37 = vrot.slane %v2722_v0, 1  ;;  %v3209_v23 = vmul.f32 %v3112_v53, %v16230_v27  ;;  %v3114_v9 = vadd.f32 %v2962_v22, %v16229_v43  ;;  %16232 = vst [vmem:[#allocation75_spill] sm:$0xff] %v11518_v34  ;;  %v16235_v27 = vld [vmem:[#allocation84_spill] sm:$0xff] }
 0x1f0   : > { %v2717_v6 = vadd.f32 %v2716_v31, %v2715_v15  ;;  %v3239_v57 = vrot.slane %v3238_v61, 4  ;;  %v3210_v7 = vmul.f32 %v3113_v30, %v10797_v11  ;;  %6056 = vmatpush1.bf16.msra.mxu0 %v9753_v33  ;;  %v11524_v24 = vadd.f32 %v11479_v47, %v16233_v5  ;;  %v11532_v31 = vpop.permute.xlu1 %1852  ;;  %v16238_v33 = vld [vmem:[#allocation77_spill] sm:$0xff]  ;;  %v16241_v30 = vld [vmem:[#allocation22_spill] sm:$0xff] }
 0x1f1   : > { %v2724_v42 = vadd.f32 %v2723_v37, %v2722_v0  ;;  %v3245_v16 = vadd.f32 %v3209_v23, %v3207_v17  ;;  %v3211_v53 = vmul.f32 %v3114_v9, %v10807_v25  ;;  %v3115_v22 = vadd.f32 %v2964_v14, %v10674_v36  ;;  %16237 = vst [vmem:[#allocation129_spill] sm:$0xff] %v11532_v31 }
 0x1f2   : > { %4319 = vmatmul.mubr.bf16.gmra.mrb[176].mxu1 %v11177_v50  ;;  %16234 = vst [vmem:[#allocation76_spill] sm:$0xff] %v11524_v24  ;;  %v11530_v15 = vadd.f32 %v11182_v52, %v2717_v6  ;;  %v3240_v28 = vadd.f32 %v3239_v57, %v3238_v61  ;;  %v3116_v50 = vadd.f32 %v2966_v56, %v10674_v36  ;;  %v16242_v57 = vld [vmem:[#allocation79_spill] sm:$0xff] }
 0x1f3   : > { %4864 = vmatmul.mubr.bf16.gmra.mrb[176].mxu0 %v16235_v27  ;;  %4328 = vmatprep.mubr.bf16.mxu1 %v16096_v8  ;;  %v11538_v0 = vadd.f32 %v11479_v47, %v16238_v33  ;;  %v11541_v17 = vadd.f32 %v11190_v41, %v2724_v42  ;;  %v3246_v14 = vrot.slane %v3245_v16, 4  ;;  %v3212_v37 = vmul.f32 %v3115_v22, %v16241_v30  ;;  %v11544_v27 = vpop.f32.mrb[72].mxu0 }
 0x1f4   : > { %16236 = vst [vmem:[#allocation84_spill] sm:$0xff] %v11530_v15  ;;  %v2970_v52 = vpop.f32.mrb[72].mxu1  ;;  %4873 = vmatprep.mubr.bf16.mxu0 %v16096_v8  ;;  %v11549_v61 = vadd.f32 %v11482_v58, %v16242_v57  ;;  %v2782_v56 = vrot.slane %v11530_v15, 1  ;;  %v3241_v9 = vrot.slane %v3240_v28, 2  ;;  %v3213_v41 = vmul.f32 %v3116_v50, %v10817_v32  ;;  %v11555_v6 = vpop.f32.mrb[73].mxu0 }
 0x1f5   : > { %16239 = vst [vmem:[#allocation77_spill] sm:$0xff] %v11538_v0  ;;  %16240 = vst [vmem:[#allocation130_spill] sm:$0xff] %v11541_v17  ;;  %v2972_v5 = vpop.f32.mrb[73].mxu1  ;;  %v2796_v42 = vrot.slane %v11541_v17, 1  ;;  %v3247_v33 = vadd.f32 %v3246_v14, %v3245_v16  ;;  %v3252_v0 = vadd.f32 %v3212_v37, %v3210_v7  ;;  %v11560_v57 = vpop.f32.mrb[74].mxu0  ;;  %v11569_v32 = vadd.f32 %v11482_v58, %v16245_v45 }
 0x1f6   : > { %16243 = vst [vmem:[#allocation79_spill] sm:$0xff] %v11549_v61  ;;  %v2974_v61 = vpop.f32.mrb[74].mxu1  ;;  %v11563_v24 = vsel %vm2174_vm6, %v2782_v56, %v2781_v48  ;;  %v3242_v23 = vadd.f32 %v3241_v9, %v3240_v28  ;;  %v3259_v34 = vadd.f32 %v3213_v41, %v3211_v53  ;;  %v11565_v50 = vpop.f32.mrb[75].mxu0  ;;  %v3117_v14 = vadd.f32 %v2970_v52, %v10743_v10  ;;  %v9319_v53 = vld [vmem:[%s10834_s17 + $0x3] ss:$8 sm:$0x3] }
 0x1f7   : > { %16244 = vst [vmem:[#allocation131_spill] sm:$0xff] %v11563_v24  ;;  %v2976_v15 = vpop.f32.mrb[75].mxu1  ;;  %16246 = vst [vmem:[#allocation81_spill] sm:$0xff] %v11569_v32  ;;  %v11572_v22 = vsel %vm2174_vm6, %v2796_v42, %v2795_v46  ;;  %v3248_v7 = vrot.slane %v3247_v33, 2  ;;  %v3253_v16 = vrot.slane %v3252_v0, 4  ;;  %v3118_v48 = vadd.f32 %v2972_v5, %v10743_v10  ;;  %v16248_v28 = vld [vmem:[#allocation82_spill] sm:$0xff]  ;;  %v11588_v5 = vpop.permute.xlu0 %1856 }
 0x1f8   : > { %16247 = vst [vmem:[#allocation132_spill] sm:$0xff] %v11572_v22  ;;  %v3243_v37 = vrot.slane %v3242_v23, 1  ;;  %v3260_v17 = vrot.slane %v3259_v34, 4  ;;  %v11580_v56 = vadd.f32 %v11532_v31, %v16248_v28  ;;  %v16250_v41 = vld [vmem:[#allocation27_spill] sm:$0xff]  ;;  %v16251_v42 = vld [vmem:[#allocation92_spill] sm:$0xff]  ;;  %v16256_v10 = vld [vmem:[#allocation9_spill] sm:$0xff]  ;;  %v11607_v28 = vrot.slane %v9319_v53, %v10845_v55 }
 0x1f9   : > { %v3249_v45 = vadd.f32 %v3248_v7, %v3247_v33  ;;  %v3254_v9 = vadd.f32 %v3253_v16, %v3252_v0  ;;  %v3214_v46 = vmul.f32 %v3117_v14, %v16250_v41  ;;  %v16252_v32 = vld [vmem:[#allocation83_spill] sm:$0xff]  ;;  %v3119_v30 = vadd.f32 %v2974_v61, %v16256_v10  ;;  %v16271_v55 = vld [vmem:[#allocation33_spill] sm:$0xff] }
 0x1fa   : > { %4329 = vmatmul.mubr.bf16.gmra.mrb[180].mxu1 %v11228_v39  ;;  %16249 = vst [vmem:[#allocation82_spill] sm:$0xff] %v11580_v56  ;;  %v11586_v52 = vadd.f32 %v11532_v31, %v16252_v32  ;;  %v3244_v22 = vadd.f32 %v3243_v37, %v3242_v23  ;;  %v3261_v24 = vadd.f32 %v3260_v17, %v3259_v34  ;;  %16254 = vst [vmem:[#allocation83_spill] sm:$0xff] %v11588_v5  ;;  %v16255_v39 = vld [vmem:[#allocation29_spill] sm:$0xff]  ;;  %v16259_v23 = vld [vmem:[#allocation30_spill] sm:$0xff] }
 0x1fb   : > { %4874 = vmatmul.mubr.bf16.gmra.mrb[180].mxu0 %v16251_v42  ;;  %v3215_v29 = vmul.f32 %v3118_v48, %v16255_v39  ;;  %4338 = vmatprep.mubr.bf16.mxu1 %v16096_v8  ;;  %v3250_v33 = vrot.slane %v3249_v45, 1  ;;  %v3255_v0 = vrot.slane %v3254_v9, 2  ;;  %v3120_v7 = vadd.f32 %v2976_v15, %v16256_v10  ;;  %v11594_v16 = vpop.f32.mrb[76].mxu0  ;;  %16261 = vst [vmem:[#allocation136_spill] sm:$0xff] %v11607_v28 }
 0x1fc   : > { %16253 = vst [vmem:[#allocation92_spill] sm:$0xff] %v11586_v52  ;;  %16257 = vst [vmem:[#allocation133_spill] sm:$0xff] %v11594_v16  ;;  %v2980_v14 = vpop.f32.mrb[76].mxu1  ;;  %4883 = vmatprep.mubr.bf16.mxu0 %v16096_v8  ;;  %v11598_v32 = vrot.slane %v9319_v53, %v10837_v26  ;;  %v11601_v34 = vadd.f32 %v11472_v63, %v3244_v22  ;;  %v3262_v17 = vrot.slane %v3261_v24, 2  ;;  %v11604_v37 = vpop.f32.mrb[77].mxu0  ;;  %v16262_v52 = vld [vmem:[#allocation31_spill] sm:$0xff] }
 0x1fd   : > { %v3216_v61 = vmul.f32 %v3119_v30, %v16259_v23  ;;  %16260 = vst [vmem:[#allocation135_spill] sm:$0xff] %v11604_v37  ;;  %v2982_v48 = vpop.f32.mrb[77].mxu1  ;;  %v3251_v15 = vadd.f32 %v3250_v33, %v3249_v45  ;;  %v3256_v42 = vadd.f32 %v3255_v0, %v3254_v9  ;;  %v3217_v56 = vmul.f32 %v3120_v7, %v16262_v52  ;;  %v11611_v26 = vpop.f32.mrb[78].mxu0  ;;  %v16264_v22 = vld [vmem:[#allocation39_spill] sm:$0xff]  ;;  %v16268_v45 = vld [vmem:[#allocation86_spill] sm:$0xff]  ;;  %v16296_v52 = vld [vmem:[#allocation101_spill] sm:$0xff] }
 0x1fe   : > { %16258 = vst [vmem:[#allocation134_spill] sm:$0xff] %v11598_v32  ;;  %v3121_v16 = vadd.f32 %v2980_v14, %v16156_v49  ;;  %16263 = vst [vmem:[#allocation137_spill] sm:$0xff] %v11611_v26  ;;  %v2984_v32 = vpop.f32.mrb[78].mxu1  ;;  %v16265_v10 = vmax.f32 %v16264_v22, %v11233_v38  ;;  %v3263_v37 = vadd.f32 %v3262_v17, %v3261_v24  ;;  %v11619_v39 = vpop.f32.mrb[79].mxu0  ;;  %v16273_v17 = vld [vmem:[#allocation87_spill] sm:$0xff]  ;;  %v16275_v22 = vld [vmem:[#allocation41_spill] sm:$0xff] }
 0x1ff   : > { %v3266_v23 = vadd.f32 %v3216_v61, %v3214_v46  ;;  %16267 = vst [vmem:[#allocation138_spill] sm:$0xff] %v11619_v39  ;;  %v2986_v53 = vpop.f32.mrb[79].mxu1  ;;  %v11623_v9 = vadd.f32 %v11588_v5, %v16268_v45  ;;  %v3364_v33 = vadd.f32 %v11491_v1, %v3251_v15  ;;  %v3257_v0 = vrot.slane %v3256_v42, 1  ;;  %v11626_v7 = vpop.permute.xlu1 %1860  ;;  %v16272_v46 = vld [vmem:[#allocation99_spill] sm:$0xff] }
 0x200   : > { %v11617_v30 = vmax.f32 %v16265_v10, %v11601_v34  ;;  %16270 = vst [vmem:[#allocation139_spill] sm:$0xff] %v11626_v7  ;;  %v3273_v14 = vadd.f32 %v3217_v56, %v3215_v29  ;;  %v3218_v26 = vmul.f32 %v3121_v16, %v16271_v55  ;;  %v3264_v38 = vrot.slane %v3263_v37, 1  ;;  %v16278_v29 = vld [vmem:[#allocation32_spill] sm:$0xff]  ;;  %v16279_v16 = vld [vmem:[#allocation98_spill] sm:$0xff] }
 0x201   : > { %16269 = vst [vmem:[#allocation86_spill] sm:$0xff] %v11623_v9  ;;  %v3267_v10 = vrot.slane %v3266_v23, 4  ;;  %v3122_v24 = vadd.f32 %v2982_v48, %v16156_v49  ;;  %v11633_v61 = vadd.f32 %v11588_v5, %v16273_v17  ;;  %v16276_v45 = vmax.f32 %v16275_v22, %v11236_v20  ;;  %v16281_v55 = vld [vmem:[#allocation34_spill] sm:$0xff] }
 0x202   : > { %16266 = vst [vmem:[#allocation39_spill] sm:$0xff] %v11617_v30  ;;  %4339 = vmatmul.mubr.bf16.gmra.mrb[184].mxu1 %v16272_v46  ;;  %v3258_v9 = vadd.f32 %v3257_v0, %v3256_v42  ;;  %v3274_v39 = vrot.slane %v3273_v14, 4  ;;  %v3123_v56 = vadd.f32 %v2984_v32, %v16278_v29  ;;  %v3265_v48 = vadd.f32 %v3264_v38, %v3263_v37  ;;  %v11643_v46 = vpop.permute.xlu0 %1864  ;;  %v16284_v32 = vld [vmem:[#allocation35_spill] sm:$0xff] }
 0x203   : > { %16274 = vst [vmem:[#allocation99_spill] sm:$0xff] %v11633_v61  ;;  %v11638_v15 = vmax.f32 %v16276_v45, %v3364_v33  ;;  %4884 = vmatmul.mubr.bf16.gmra.mrb[184].mxu0 %v16279_v16  ;;  %4348 = vmatprep.mubr.bf16.mxu1 %v16096_v8  ;;  %v3268_v30 = vadd.f32 %v3267_v10, %v3266_v23  ;;  %16280 = vst [vmem:[#allocation41_spill] sm:$0xff] %v11643_v46  ;;  %v16282_v61 = vld [vmem:[#allocation89_spill] sm:$0xff]  ;;  %v11654_v16 = vpop.f32.mrb[80].mxu0 }
 0x204   : > { %v3219_v17 = vmul.f32 %v3122_v24, %v16281_v55  ;;  %4893 = vmatprep.mubr.bf16.mxu0 %v16096_v8  ;;  %v11649_v20 = vadd.f32 %v11626_v7, %v16282_v61  ;;  %v3365_v42 = vadd.f32 %v11472_v63, %v3258_v9  ;;  %v3275_v0 = vadd.f32 %v3274_v39, %v3273_v14  ;;  %v2990_v23 = vpop.f32.mrb[80].mxu1  ;;  %v16286_v10 = vld [vmem:[#allocation13_spill] sm:$0xff]  ;;  %v11658_v55 = vpop.f32.mrb[81].mxu0  ;;  %v16288_v61 = vld [vmem:[#allocation90_spill] sm:$0xff]  ;;  %v16290_v9 = vld [vmem:[#allocation36_spill] sm:$0xff] }
 0x205   : > { %16277 = vst [vmem:[#allocation87_spill] sm:$0xff] %v11638_v15  ;;  %v3220_v22 = vmul.f32 %v3123_v56, %v16284_v32  ;;  %v3124_v45 = vadd.f32 %v2986_v53, %v16278_v29  ;;  %16285 = vst [vmem:[#allocation89_spill] sm:$0xff] %v11654_v16  ;;  %v3366_v37 = vadd.f32 %v11491_v1, %v3265_v48  ;;  %v3269_v38 = vrot.slane %v3268_v30, 2  ;;  %v2992_v15 = vpop.f32.mrb[81].mxu1  ;;  %v16291_v14 = vld [vmem:[#allocation100_spill] sm:$0xff]  ;;  %v11669_v29 = vpop.f32.mrb[82].mxu0 }
 0x206   : > { %16283 = vst [vmem:[#allocation98_spill] sm:$0xff] %v11649_v20  ;;  %v3125_v24 = vadd.f32 %v2990_v23, %v16286_v10  ;;  %16287 = vst [vmem:[#allocation140_spill] sm:$0xff] %v11658_v55  ;;  %v11662_v20 = vadd.f32 %v11626_v7, %v16288_v61  ;;  %v3395_v39 = vrot.slane %v3365_v42, 7  ;;  %v16292_v56 = vmax.f32 %v16290_v9, %v16291_v14  ;;  %v2994_v48 = vpop.f32.mrb[82].mxu1  ;;  %v16295_v23 = vld [vmem:[#allocation38_spill] sm:$0xff]  ;;  %v16299_v61 = vld [vmem:[#allocation37_spill] sm:$0xff] }
 0x207   : > { %v3276_v16 = vrot.slane %v3275_v0, 2  ;;  %v3280_v32 = vadd.f32 %v3220_v22, %v3218_v26  ;;  %16294 = vst [vmem:[#allocation100_spill] sm:$0xff] %v11669_v29  ;;  %v3409_v28 = vrot.slane %v3366_v37, 7  ;;  %v16297_v55 = vmax.f32 %v16295_v23, %v16296_v52  ;;  %v11677_v36 = vpop.f32.mrb[83].mxu0  ;;  %v2996_v25 = vpop.f32.mrb[83].mxu1  ;;  %v16302_v14 = vld [vmem:[#allocation42_spill] sm:$0xff] }
 0x208   : > { %16289 = vst [vmem:[#allocation90_spill] sm:$0xff] %v11662_v20  ;;  %v11667_v53 = vmax.f32 %v16292_v56, %v3365_v42  ;;  %v3270_v41 = vadd.f32 %v3269_v38, %v3268_v30  ;;  %v3221_v20 = vmul.f32 %v3124_v45, %v16299_v61  ;;  %16300 = vst [vmem:[#allocation101_spill] sm:$0xff] %v11677_v36  ;;  %v11681_v26 = vpop.permute.xlu1 %1868  ;;  %v16304_v30 = vld [vmem:[#allocation94_spill] sm:$0xff] }
 0x209   : > { %v11674_v49 = vmax.f32 %v16297_v55, %v3366_v37  ;;  %v3396_v42 = vsel %vm2156_vm0, %v3395_v39, %v11601_v34  ;;  %v3277_v9 = vadd.f32 %v3276_v16, %v3275_v0  ;;  %16301 = vst [vmem:[#allocation141_spill] sm:$0xff] %v11681_v26  ;;  %v3281_v22 = vrot.slane %v3280_v32, 4  ;;  %v16303_v37 = vld [vmem:[#allocation107_spill] sm:$0xff]  ;;  %v16306_v0 = vld [vmem:[#allocation106_spill] sm:$0xff]  ;;  %v16310_v39 = vld [vmem:[#allocation96_spill] sm:$0xff] }
 0x20a   : > { %16293 = vst [vmem:[#allocation36_spill] sm:$0xff] %v11667_v53  ;;  %v3222_v56 = vmul.f32 %v3125_v24, %v16302_v14  ;;  %v3410_v29 = vsel %vm2156_vm0, %v3409_v28, %v3364_v33  ;;  %v3271_v52 = vrot.slane %v3270_v41, 1  ;;  %v3287_v55 = vadd.f32 %v3221_v20, %v3219_v17  ;;  %4349 = vmatmul.mubr.bf16.gmra.mrb[188].mxu1 %v16303_v37  ;;  %v16307_v16 = vld [vmem:[#allocation95_spill] sm:$0xff]  ;;  %v16321_v14 = vld [vmem:[#allocation108_spill] sm:$0xff] }
 0x20b   : > { %16298 = vst [vmem:[#allocation38_spill] sm:$0xff] %v11674_v49  ;;  %v11688_v45 = vadd.f32 %v11643_v46, %v16304_v30  ;;  %v3278_v38 = vrot.slane %v3277_v9, 1  ;;  %v3282_v23 = vadd.f32 %v3281_v22, %v3280_v32  ;;  %v3126_v34 = vadd.f32 %v2992_v15, %v16286_v10  ;;  %4894 = vmatmul.mubr.bf16.gmra.mrb[188].mxu0 %v16306_v0  ;;  %v16309_v17 = vld [vmem:[#allocation15_spill] sm:$0xff] }
 0x20c   : > { %5448 = vmatprep.mubr.bf16.mxu1 %v16096_v8  ;;  %v11695_v24 = vadd.f32 %v11643_v46, %v16307_v16  ;;  %v3272_v28 = vadd.f32 %v3271_v52, %v3270_v41  ;;  %v3288_v33 = vrot.slane %v3287_v55, 4  ;;  %v3127_v20 = vadd.f32 %v2994_v48, %v16309_v17  ;;  %4903 = vmatprep.mubr.bf16.mxu0 %v16096_v8  ;;  %v16312_v22 = vld [vmem:[#allocation43_spill] sm:$0xff]  ;;  %v3000_v16 = vpop.f32.mrb[84].mxu1 }
 0x20d   : > { %16305 = vst [vmem:[#allocation107_spill] sm:$0xff] %v11688_v45  ;;  %v11701_v37 = vadd.f32 %v11681_v26, %v16310_v39  ;;  %v3279_v32 = vadd.f32 %v3278_v38, %v3277_v9  ;;  %v3283_v15 = vrot.slane %v3282_v23, 2  ;;  %v3223_v30 = vmul.f32 %v3126_v34, %v16312_v22  ;;  %v11705_v45 = vpop.f32.mrb[84].mxu0  ;;  %v3002_v9 = vpop.f32.mrb[85].mxu1 }
 0x20e   : > { %16308 = vst [vmem:[#allocation94_spill] sm:$0xff] %v11695_v24  ;;  %v3128_v0 = vadd.f32 %v2996_v25, %v16309_v17  ;;  %16313 = vst [vmem:[#allocation95_spill] sm:$0xff] %v11705_v45  ;;  %v11709_v41 = vadd.f32 %v11444_v21, %v11437_v51  ;;  %v3367_v48 = vadd.f32 %v11472_v63, %v3272_v28  ;;  %v16315_v24 = vld [vmem:[#allocation44_spill] sm:$0xff]  ;;  %v11713_v39 = vpop.f32.mrb[85].mxu0  ;;  %v3004_v49 = vpop.f32.mrb[86].mxu1 }
 0x20f   : > { %16311 = vst [vmem:[#allocation106_spill] sm:$0xff] %v11701_v37  ;;  %v3289_v52 = vadd.f32 %v3288_v33, %v3287_v55  ;;  %v3224_v36 = vmul.f32 %v3127_v20, %v16315_v24  ;;  %16316 = vst [vmem:[#allocation142_spill] sm:$0xff] %v11713_v39  ;;  %v3368_v38 = vadd.f32 %v11491_v1, %v3279_v32  ;;  %v16317_v37 = vld [vmem:[#allocation46_spill] sm:$0xff]  ;;  %v16318_v17 = vld [vmem:[#allocation48_spill] sm:$0xff]  ;;  %v11718_v22 = vpop.f32.mrb[86].mxu0  ;;  %v3006_v24 = vpop.f32.mrb[87].mxu1 }
 0x210   : > { %16314 = vst [vmem:[#allocation96_spill] sm:$0xff] %v11709_v41  ;;  %v3284_v34 = vadd.f32 %v3283_v15, %v3282_v23  ;;  %v3225_v25 = vmul.f32 %v3128_v0, %v16317_v37  ;;  %v3129_v45 = vadd.f32 %v3000_v16, %v16318_v17  ;;  %16319 = vst [vmem:[#allocation143_spill] sm:$0xff] %v11718_v22  ;;  %v3397_v21 = vrot.slane %v3367_v48, 6  ;;  %v16320_v41 = vld [vmem:[#allocation45_spill] sm:$0xff]  ;;  %v11725_v39 = vpop.f32.mrb[87].mxu0  ;;  %v16325_v23 = vld [vmem:[#allocation47_spill] sm:$0xff] }
 0x211   : > { %v16322_v28 = vmax.f32 %v16320_v41, %v16321_v14  ;;  %v3290_v33 = vrot.slane %v3289_v52, 2  ;;  %v3294_v20 = vadd.f32 %v3224_v36, %v3222_v56  ;;  %16324 = vst [vmem:[#allocation108_spill] sm:$0xff] %v11725_v39  ;;  %v3411_v32 = vrot.slane %v3368_v38, 6  ;;  %v16326_v15 = vld [vmem:[#allocation109_spill] sm:$0xff]  ;;  %v16329_v14 = vld [vmem:[#allocation50_spill] sm:$0xff]  ;;  %v11737_v36 = vld [vmem:[%s15657_s4] sm:$0xff]  }
 0x212   : > { %v16327_v0 = vmax.f32 %v16325_v23, %v16326_v15  ;;  %v3285_v16 = vrot.slane %v3284_v34, 1  ;;  %v3301_v22 = vadd.f32 %v3225_v25, %v3223_v30  ;;  %v3398_v53 = vsel %vm2159_vm1, %v3397_v21, %v3396_v42  ;;  %5449 = vmatmul.mubr.bf16.vlgmr.msra.gmra.mrb[192].mxu1 %v11737_v36  ;;  %v11748_v42 = vld [vmem:[%s15657_s4 + $0x40] sm:$0xff]   ;;  %v16346_v39 = vld [vmem:[#allocation57_spill] sm:$0xff] }
 0x213   : > { %v11723_v55 = vmax.f32 %v16322_v28, %v3367_v48  ;;  %v3291_v10 = vadd.f32 %v3290_v33, %v3289_v52  ;;  %v3295_v61 = vrot.slane %v3294_v20, 4  ;;  %v3226_v41 = vmul.f32 %v3129_v45, %v16329_v14  ;;  %4904 = vmatmul.mubr.bf16.gmra.mrb[192].mxu0 %v11748_v42  ;;  %5458 = vmatprep.mubr.bf16.mxu1 %v16096_v8  ;;  %v16333_v28 = vld [vmem:[#allocation25_spill] sm:$0xff] }
 0x214   : > { %v11730_v37 = vmax.f32 %v16327_v0, %v3368_v38  ;;  %v11742_v56 = vadd.f32 %v11450_v35, %v11437_v51  ;;  %v3412_v48 = vsel %vm2159_vm1, %v3411_v32, %v3410_v29  ;;  %v3286_v30 = vadd.f32 %v3285_v16, %v3284_v34  ;;  %4913 = vmatprep.mubr.bf16.mxu0 %v16096_v8  ;;  %v11764_v32 = vpop.f32.mrb[88].mxu0  ;;  %v3010_v23 = vpop.f32.mrb[88].mxu1  ;;  %v16335_v0 = vld [vmem:[#allocation51_spill] sm:$0xff] }
 0x215   : > { %16323 = vst [vmem:[#allocation45_spill] sm:$0xff] %v11723_v55  ;;  %v3302_v38 = vrot.slane %v3301_v22, 4  ;;  %v11754_v45 = vadd.f32 %v11456_v13, %v11479_v47  ;;  %v3292_v52 = vrot.slane %v3291_v10, 1  ;;  %v3296_v35 = vadd.f32 %v3295_v61, %v3294_v20  ;;  %16334 = vst [vmem:[#allocation146_spill] sm:$0xff] %v11764_v32  ;;  %v11768_v20 = vpop.f32.mrb[89].mxu0  ;;  %v3012_v16 = vpop.f32.mrb[89].mxu1 }
 0x216   : > { %16328 = vst [vmem:[#allocation47_spill] sm:$0xff] %v11730_v37  ;;  %16330 = vst [vmem:[#allocation109_spill] sm:$0xff] %v11742_v56  ;;  %v3130_v25 = vadd.f32 %v3002_v9, %v16318_v17  ;;  %v11760_v29 = vadd.f32 %v11459_v18, %v11479_v47  ;;  %v3369_v34 = vadd.f32 %v11472_v63, %v3286_v30  ;;  %v16337_v18 = vld [vmem:[#allocation54_spill] sm:$0xff]  ;;  %v11776_v47 = vpop.f32.mrb[90].mxu0  ;;  %v16344_v51 = vld [vmem:[#allocation55_spill] sm:$0xff] }
 0x217   : > { %16331 = vst [vmem:[#allocation144_spill] sm:$0xff] %v11754_v45  ;;  %v3303_v21 = vadd.f32 %v3302_v38, %v3301_v22  ;;  %v3131_v33 = vadd.f32 %v3004_v49, %v16333_v28  ;;  %v3293_v13 = vadd.f32 %v3292_v52, %v3291_v10  ;;  %v3297_v15 = vrot.slane %v3296_v35, 2  ;;  %16336 = vst [vmem:[#allocation147_spill] sm:$0xff] %v11768_v20  ;;  %v16341_v49 = vld [vmem:[#allocation52_spill] sm:$0xff]  ;;  %v3014_v10 = vpop.f32.mrb[90].mxu1  ;;  %v11784_v32 = vpop.f32.mrb[91].mxu0 }
 0x218   : > { %16332 = vst [vmem:[#allocation145_spill] sm:$0xff] %v11760_v29  ;;  %v3227_v61 = vmul.f32 %v3130_v25, %v16335_v0  ;;  %v3132_v9 = vadd.f32 %v3006_v24, %v16333_v28  ;;  %v3399_v45 = vrot.slane %v3369_v34, 5  ;;  %v16338_v29 = vld [vmem:[#allocation114_spill] sm:$0xff]  ;;  %v11780_v52 = vadd.f32 %v11493_v3, %v11482_v58  ;;  %v16347_v28 = vld [vmem:[#allocation56_spill] sm:$0xff] }
 0x219   : > { %v16339_v56 = vmax.f32 %v16337_v18, %v16338_v29  ;;  %v3304_v22 = vrot.slane %v3303_v21, 2  ;;  %v3228_v38 = vmul.f32 %v3131_v33, %v16341_v49  ;;  %16342 = vst [vmem:[#allocation114_spill] sm:$0xff] %v11776_v47  ;;  %v3370_v24 = vadd.f32 %v11491_v1, %v3293_v13  ;;  %v3016_v29 = vpop.f32.mrb[91].mxu1  ;;  %v16345_v33 = vld [vmem:[#allocation40_spill] sm:$0xff] }
 0x21a   : > { %16343 = vst [vmem:[#allocation148_spill] sm:$0xff] %v11780_v52  ;;  %v3298_v25 = vadd.f32 %v3297_v15, %v3296_v35  ;;  %v3229_v20 = vmul.f32 %v3132_v9, %v16344_v51  ;;  %v3133_v49 = vadd.f32 %v3010_v23, %v16345_v33  ;;  %v16348_v0 = vmax.f32 %v16346_v39, %v16347_v28  ;;  %v11796_v35 = vld [vmem:[%s15657_s4 + $0x8] sm:$0xff]  }
 0x21b   : > { %v11773_v30 = vmax.f32 %v16339_v56, %v3369_v34  ;;  %v3400_v56 = vsel %vm2162_vm2, %v3399_v45, %v3398_v53  ;;  %v3305_v34 = vadd.f32 %v3304_v22, %v3303_v21  ;;  %v3308_v18 = vadd.f32 %v3228_v38, %v3226_v41  ;;  %5459 = vmatmul.mubr.bf16.gmra.mrb[196].mxu1 %v11796_v35  ;;  %v16351_v21 = vld [vmem:[#allocation58_spill] sm:$0xff]  ;;  %v11807_v39 = vld [vmem:[%s15657_s4 + $0x48] sm:$0xff]  }
 0x21c   : > { %v3413_v47 = vrot.slane %v3370_v24, 5  ;;  %v11791_v3 = vmax.f32 %v16348_v0, %v3370_v24  ;;  %v3299_v52 = vrot.slane %v3298_v25, 1  ;;  %v3315_v13 = vadd.f32 %v3229_v20, %v3227_v61  ;;  %4914 = vmatmul.mubr.bf16.gmra.mrb[196].mxu0 %v11807_v39  ;;  %5468 = vmatprep.mubr.bf16.mxu1 %v16096_v8  ;;  %v3020_v38 = vpop.f32.mrb[92].mxu1 }
 0x21d   : > { %16340 = vst [vmem:[#allocation54_spill] sm:$0xff] %v11773_v30  ;;  %v11801_v53 = vadd.f32 %v11499_v2, %v11482_v58  ;;  %v3306_v41 = vrot.slane %v3305_v34, 1  ;;  %v3309_v45 = vrot.slane %v3308_v18, 4  ;;  %v3230_v23 = vmul.f32 %v3133_v49, %v16351_v21  ;;  %4923 = vmatprep.mubr.bf16.mxu0 %v16096_v8  ;;  %v11819_v49 = vpop.f32.mrb[92].mxu0  ;;  %v16361_v58 = vld [vmem:[#allocation97_spill] sm:$0xff] }
 0x21e   : > { %16349 = vst [vmem:[#allocation57_spill] sm:$0xff] %v11791_v3  ;;  %v3414_v28 = vsel %vm2162_vm2, %v3413_v47, %v3412_v48  ;;  %v3300_v15 = vadd.f32 %v3299_v52, %v3298_v25  ;;  %v3316_v0 = vrot.slane %v3315_v13, 4  ;;  %v3134_v2 = vadd.f32 %v3012_v16, %v16345_v33  ;;  %v11827_v24 = vpop.f32.mrb[93].mxu0 }
 0x21f   : > { %16350 = vst [vmem:[#allocation56_spill] sm:$0xff] %v11801_v53  ;;  %v11816_v61 = vadd.f32 %v11504_v59, %v11532_v31  ;;  %v3307_v9 = vadd.f32 %v3306_v41, %v3305_v34  ;;  %v3310_v20 = vadd.f32 %v3309_v45, %v3308_v18  ;;  %v3135_v22 = vadd.f32 %v3014_v10, %v16203_v4  ;;  %v3022_v59 = vpop.f32.mrb[93].mxu1  ;;  %v16354_v18 = vld [vmem:[#allocation60_spill] sm:$0xff]  ;;  %v11832_v45 = vpop.f32.mrb[94].mxu0  ;;  %v16357_v53 = vld [vmem:[#allocation63_spill] sm:$0xff] }
 0x220   : > { %v11823_v47 = vadd.f32 %v11512_v12, %v11532_v31  ;;  %v3371_v48 = vadd.f32 %v11472_v63, %v3300_v15  ;;  %v3317_v16 = vadd.f32 %v3316_v0, %v3315_v13  ;;  %v3231_v52 = vmul.f32 %v3134_v2, %v16204_v44  ;;  %16355 = vst [vmem:[#allocation151_spill] sm:$0xff] %v11832_v45  ;;  %v11839_v2 = vpop.f32.mrb[95].mxu0 }
 0x221   : > { %16352 = vst [vmem:[#allocation149_spill] sm:$0xff] %v11816_v61  ;;  %v3372_v25 = vadd.f32 %v11491_v1, %v3307_v9  ;;  %v3311_v34 = vrot.slane %v3310_v20, 2  ;;  %v3232_v10 = vmul.f32 %v3135_v22, %v16354_v18  ;;  %v3136_v41 = vadd.f32 %v3016_v29, %v16203_v4  ;;  %v3024_v61 = vpop.f32.mrb[94].mxu1  ;;  %16360 = vst [vmem:[#allocation63_spill] sm:$0xff] %v11839_v2  ;;  %v16363_v18 = vld [vmem:[#allocation67_spill] sm:$0xff]  ;;  %v16364_v29 = vld [vmem:[#allocation61_spill] sm:$0xff] }
 0x222   : > { %16353 = vst [vmem:[#allocation150_spill] sm:$0xff] %v11823_v47  ;;  %v3401_v12 = vrot.slane %v3371_v48, 4  ;;  %v16356_v47 = vld [vmem:[#allocation64_spill] sm:$0xff]  ;;  %v3318_v0 = vrot.slane %v3317_v16, 2  ;;  %v3026_v31 = vpop.f32.mrb[95].mxu1  ;;  %v11843_v9 = vadd.f32 %v11681_v26, %v16361_v58  ;;  %v16365_v44 = vmax.f32 %v16363_v18, %v16364_v29  ;;  %v11856_v58 = vld [vmem:[%s15657_s4 + $0x10] sm:$0xff]  }
 0x223   : > { %v16358_v15 = vmax.f32 %v16356_v47, %v16357_v53  ;;  %v3415_v22 = vrot.slane %v3372_v25, 4  ;;  %v3312_v4 = vadd.f32 %v3311_v34, %v3310_v20  ;;  %v3322_v21 = vadd.f32 %v3232_v10, %v3230_v23  ;;  %5469 = vmatmul.mubr.bf16.gmra.mrb[200].mxu1 %v11856_v58 }
 0x224   : > { %16362 = vst [vmem:[#allocation97_spill] sm:$0xff] %v11843_v9  ;;  %v11848_v45 = vmax.f32 %v16365_v44, %v3372_v25  ;;  %v3402_v53 = vsel %vm2165_vm3, %v3401_v12, %v3400_v56  ;;  %v3319_v47 = vadd.f32 %v3318_v0, %v3317_v16  ;;  %v3137_v2 = vadd.f32 %v3020_v38, %v11045_v19  ;;  %v11867_v16 = vld [vmem:[%s15657_s4 + $0x50] sm:$0xff]   ;;  %v3575_v12 = vpop.f32.mrb[96].mxu0  ;;  %v11879_v0 = vpop.f32.mrb[96].mxu1 }
 0x225   : > { %v11837_v13 = vmax.f32 %v16358_v15, %v3371_v48  ;;  %v16367_v48 = vld [vmem:[#allocation62_spill] sm:$0xff]  ;;  %v11861_v44 = vadd.f32 %v11544_v27, %v11588_v5  ;;  %v3416_v23 = vsel %vm2165_vm3, %v3415_v22, %v3414_v28  ;;  %v3313_v20 = vrot.slane %v3312_v4, 1  ;;  %4924 = vmatmul.mubr.bf16.gmra.mrb[200].mxu0 %v11867_v16  ;;  %5478 = vmatprep.mubr.bf16.mxu1 %v16096_v8  ;;  %v3577_v29 = vpop.f32.mrb[97].mxu0 }
 0x226   : > { %16366 = vst [vmem:[#allocation67_spill] sm:$0xff] %v11848_v45  ;;  %v3233_v15 = vmul.f32 %v3136_v41, %v16367_v48  ;;  %v3323_v56 = vrot.slane %v3322_v21, 4  ;;  %v3320_v38 = vrot.slane %v3319_v47, 1  ;;  %v3234_v34 = vmul.f32 %v3137_v2, %v11061_v40  ;;  %4933 = vmatprep.mubr.bf16.mxu0 %v16096_v8  ;;  %v16378_v48 = vld [vmem:[#allocation124_spill] sm:$0xff]  ;;  %v16530_v45 = vld [vmem:[#allocation66_spill] sm:$0xff] }
 0x227   : > { %16359 = vst [vmem:[#allocation64_spill] sm:$0xff] %v11837_v13  ;;  %16368 = vst [vmem:[#allocation61_spill] sm:$0xff] %v11861_v44  ;;  %v3138_v27 = vadd.f32 %v3022_v59, %v11045_v19  ;;  %v11876_v28 = vadd.f32 %v11555_v6, %v11588_v5  ;;  %v3314_v18 = vadd.f32 %v3313_v20, %v3312_v4  ;;  %v16377_v19 = vld [vmem:[#allocation74_spill] sm:$0xff] }
 0x228   : > { %v3329_v25 = vadd.f32 %v3233_v15, %v3231_v52  ;;  %v3324_v10 = vadd.f32 %v3323_v56, %v3322_v21  ;;  %v3139_v41 = vadd.f32 %v3024_v61, %v11047_v62  ;;  %v11883_v52 = vadd.f32 %v11560_v57, %v11626_v7  ;;  %v11886_v15 = vpop.f32.mrb[97].mxu1  ;;  %v16371_v21 = vld [vmem:[#allocation70_spill] sm:$0xff]  ;;  %v3579_v56 = vpop.f32.mrb[98].mxu0 }
 0x229   : > { %16369 = vst [vmem:[#allocation152_spill] sm:$0xff] %v11876_v28  ;;  %v3321_v2 = vadd.f32 %v3320_v38, %v3319_v47  ;;  %v3235_v59 = vmul.f32 %v3138_v27, %v11068_v60  ;;  %v3373_v6 = vadd.f32 %v11472_v63, %v3314_v18  ;;  %v3140_v61 = vadd.f32 %v3026_v31, %v11047_v62  ;;  %v11891_v9 = vpop.f32.mrb[98].mxu1  ;;  %v16372_v47 = vld [vmem:[#allocation14_spill] sm:$0xff]  ;;  %v3581_v28 = vpop.f32.mrb[99].mxu0  ;;  %v16373_v18 = vld [vmem:[#allocation72_spill] sm:$0xff] }
 0x22a   : > { %16370 = vst [vmem:[#allocation153_spill] sm:$0xff] %v11883_v52  ;;  %v3330_v22 = vrot.slane %v3329_v25, 4  ;;  %v3325_v4 = vrot.slane %v3324_v10, 2  ;;  %v3236_v20 = vmul.f32 %v3139_v41, %v16371_v21  ;;  %v3734_v38 = vadd.f32 %v3575_v12, %v16372_v47  ;;  %v11896_v44 = vpop.f32.mrb[99].mxu1  ;;  %v16374_v60 = vld [vmem:[#allocation122_spill] sm:$0xff] }
 0x22b   : > { %v3374_v57 = vadd.f32 %v11491_v1, %v3321_v2  ;;  %v3735_v27 = vadd.f32 %v3577_v29, %v16372_v47  ;;  %v3403_v5 = vrot.slane %v3373_v6, 3  ;;  %v16375_v40 = vmax.f32 %v16373_v18, %v16374_v60  ;;  %v11912_v47 = vld [vmem:[%s15657_s4 + $0x18] sm:$0xff]  }
 0x22c   : > { %v3331_v52 = vadd.f32 %v3330_v22, %v3329_v25  ;;  %v3326_v31 = vadd.f32 %v3325_v4, %v3324_v10  ;;  %v3336_v21 = vadd.f32 %v3236_v20, %v3234_v34  ;;  %v16379_v2 = vmax.f32 %v16377_v19, %v16378_v48  ;;  %v16381_v22 = vld [vmem:[#allocation71_spill] sm:$0xff]  ;;  %16382 = vst [vmem:[#allocation74_spill] sm:$0xff] %v11912_v47  ;;  %v16383_v10 = vld [vmem:[#allocation16_spill] sm:$0xff]  ;;  %v11920_v19 = vld [vmem:[%s15657_s4 + $0x58] sm:$0xff]  }
 0x22d   : > { %v11901_v41 = vmax.f32 %v16375_v40, %v3373_v6  ;;  %v3417_v62 = vrot.slane %v3374_v57, 3  ;;  %v3237_v29 = vmul.f32 %v3140_v61, %v16381_v22  ;;  %5479 = vmatmul.mubr.bf16.gmra.mrb[204].mxu1 %v11912_v47  ;;  %v3404_v40 = vsel %vm2168_vm4, %v3403_v5, %v3402_v53  ;;  %16384 = vst [vmem:[#allocation124_spill] sm:$0xff] %v11920_v19  ;;  %v16385_v61 = vld [vmem:[#allocation17_spill] sm:$0xff]  ;;  %v16389_v47 = vld [vmem:[#allocation78_spill] sm:$0xff] }
 0x22e   : > { %v11906_v25 = vmax.f32 %v16379_v2, %v3374_v57  ;;  %v3332_v12 = vrot.slane %v3331_v52, 2  ;;  %v3327_v60 = vrot.slane %v3326_v31, 1  ;;  %v3337_v34 = vrot.slane %v3336_v21, 4  ;;  %4934 = vmatmul.mubr.bf16.gmra.mrb[204].mxu0 %v11920_v19  ;;  %5488 = vmatprep.mubr.bf16.mxu1 %v16096_v8  ;;  %v3585_v2 = vpop.f32.mrb[100].mxu0 }
 0x22f   : > { %16376 = vst [vmem:[#allocation72_spill] sm:$0xff] %v11901_v41  ;;  %v3831_v6 = vmul.f32 %v3734_v38, %v16383_v10  ;;  %v3418_v48 = vsel %vm2168_vm4, %v3417_v62, %v3416_v23  ;;  %v3343_v20 = vadd.f32 %v3237_v29, %v3235_v59  ;;  %v3832_v57 = vmul.f32 %v3735_v27, %v16385_v61  ;;  %v11929_v10 = vpop.f32.mrb[100].mxu1  ;;  %v3587_v59 = vpop.f32.mrb[101].mxu0 }
 0x230   : > { %16380 = vst [vmem:[#allocation122_spill] sm:$0xff] %v11906_v25  ;;  %v3333_v4 = vadd.f32 %v3332_v12, %v3331_v52  ;;  %4943 = vmatprep.mubr.bf16.mxu0 %v16096_v8  ;;  %v3328_v5 = vadd.f32 %v3327_v60, %v3326_v31  ;;  %v3338_v53 = vadd.f32 %v3337_v34, %v3336_v21  ;;  %v11936_v27 = vpop.f32.mrb[101].mxu1  ;;  %v3589_v60 = vpop.f32.mrb[102].mxu0 }
 0x231   : > { %v3736_v38 = vadd.f32 %v3579_v56, %v10718_v54  ;;  %v3737_v18 = vadd.f32 %v3581_v28, %v10718_v54  ;;  %v11933_v25 = vadd.f32 %v11565_v50, %v11626_v7  ;;  %v3344_v23 = vrot.slane %v3343_v20, 4  ;;  %v16387_v56 = vld [vmem:[#allocation18_spill] sm:$0xff]  ;;  %v16388_v28 = vld [vmem:[#allocation19_spill] sm:$0xff]  ;;  %v11941_v34 = vpop.f32.mrb[102].mxu1 }
 0x232   : > { %v3334_v62 = vrot.slane %v3333_v4, 1  ;;  %v3738_v52 = vadd.f32 %v3585_v2, %v16229_v43  ;;  %v3375_v21 = vadd.f32 %v11472_v63, %v3328_v5  ;;  %v3339_v31 = vrot.slane %v3338_v53, 2  ;;  %v3591_v2 = vpop.f32.mrb[103].mxu0  ;;  %v11945_v7 = vpop.f32.mrb[103].mxu1  ;;  %v16390_v5 = vld [vmem:[#allocation125_spill] sm:$0xff] }
 0x233   : > { %16386 = vst [vmem:[#allocation154_spill] sm:$0xff] %v11933_v25  ;;  %v3833_v12 = vmul.f32 %v3736_v38, %v16387_v56  ;;  %v3834_v29 = vmul.f32 %v3737_v18, %v16388_v28  ;;  %v3345_v50 = vadd.f32 %v3344_v23, %v3343_v20  ;;  %v3739_v61 = vadd.f32 %v3587_v59, %v16229_v43  ;;  %v16393_v20 = vld [vmem:[#allocation21_spill] sm:$0xff]  ;;  %v11957_v23 = vld [vmem:[%s15657_s4 + $0x20] sm:$0xff]   ;;  %v16395_v59 = vld [vmem:[#allocation8_spill] sm:$0xff] }
 0x234   : > { %v3335_v54 = vadd.f32 %v3334_v62, %v3333_v4  ;;  %v3835_v25 = vmul.f32 %v3738_v52, %v10797_v11  ;;  %v3405_v22 = vrot.slane %v3375_v21, 2  ;;  %v16391_v41 = vmax.f32 %v16389_v47, %v16390_v5  ;;  %16394 = vst [vmem:[#allocation125_spill] sm:$0xff] %v11957_v23  ;;  %v3595_v11 = vpop.f32.mrb[104].mxu0  ;;  %v11977_v43 = vpop.f32.mrb[104].mxu1 }
 0x235   : > { %v3340_v38 = vadd.f32 %v3339_v31, %v3338_v53  ;;  %v3863_v18 = vadd.f32 %v3833_v12, %v3831_v6  ;;  %v3346_v56 = vrot.slane %v3345_v50, 2  ;;  %v3870_v4 = vadd.f32 %v3834_v29, %v3832_v57  ;;  %5489 = vmatmul.mubr.bf16.gmra.mrb[208].mxu1 %v11957_v23  ;;  %v16398_v57 = vld [vmem:[#allocation126_spill] sm:$0xff] }
 0x236   : > { %v11950_v19 = vmax.f32 %v16391_v41, %v3375_v21  ;;  %v3376_v28 = vadd.f32 %v11491_v1, %v3335_v54  ;;  %v3836_v62 = vmul.f32 %v3739_v61, %v16393_v20  ;;  %v3406_v52 = vsel %vm2171_vm5, %v3405_v22, %v3404_v40  ;;  %v11965_v54 = vld [vmem:[%s15657_s4 + $0x60] sm:$0xff]   ;;  %5498 = vmatprep.mubr.bf16.mxu1 %v16096_v8  ;;  %v16397_v61 = vld [vmem:[#allocation80_spill] sm:$0xff] }
 0x237   : > { %v3341_v47 = vrot.slane %v3340_v38, 1  ;;  %v3864_v41 = vrot.slane %v3863_v18, 4  ;;  %v3740_v53 = vadd.f32 %v3589_v60, %v16395_v59  ;;  %16396 = vst [vmem:[#allocation155_spill] sm:$0xff] %v11965_v54  ;;  %4944 = vmatmul.mubr.bf16.gmra.mrb[208].mxu0 %v11965_v54  ;;  %v16399_v21 = vmax.f32 %v16397_v61, %v16398_v57  ;;  %v16401_v60 = vld [vmem:[#allocation22_spill] sm:$0xff]  ;;  %v16402_v61 = vld [vmem:[#allocation12_spill] sm:$0xff]  ;;  %v3597_v57 = vpop.f32.mrb[105].mxu0 }
 0x238   : > { %16392 = vst [vmem:[#allocation78_spill] sm:$0xff] %v11950_v19  ;;  %v3419_v6 = vrot.slane %v3376_v28, 2  ;;  %v3347_v22 = vadd.f32 %v3346_v56, %v3345_v50  ;;  %v3871_v40 = vrot.slane %v3870_v4, 4  ;;  %4953 = vmatprep.mubr.bf16.mxu0 %v16096_v8  ;;  %v3741_v20 = vadd.f32 %v3591_v2, %v16395_v59  ;;  %v11981_v56 = vpop.f32.mrb[105].mxu1  ;;  %v16406_v59 = vld [vmem:[#allocation27_spill] sm:$0xff] }
 0x239   : > { %v11972_v31 = vmax.f32 %v16399_v21, %v3376_v28  ;;  %v3342_v12 = vadd.f32 %v3341_v47, %v3340_v38  ;;  %v3865_v29 = vadd.f32 %v3864_v41, %v3863_v18  ;;  %v3837_v5 = vmul.f32 %v3740_v53, %v16401_v60  ;;  %16403 = vst [vmem:[#allocation126_spill] sm:$0xff] %v11981_v56  ;;  %v16404_v47 = vld [vmem:[#allocation23_spill] sm:$0xff]  ;;  %v3599_v53 = vpop.f32.mrb[106].mxu0  ;;  %v11985_v2 = vpop.f32.mrb[106].mxu1  ;;  %v16408_v56 = vld [vmem:[#allocation84_spill] sm:$0xff] }
 0x23a   : > { %v3420_v23 = vsel %vm2171_vm5, %v3419_v6, %v3418_v48  ;;  %v3348_v54 = vrot.slane %v3347_v22, 1  ;;  %v3872_v19 = vadd.f32 %v3871_v40, %v3870_v4  ;;  %v3742_v28 = vadd.f32 %v3595_v11, %v16402_v61  ;;  %16405 = vst [vmem:[#allocation156_spill] sm:$0xff] %v11985_v2  ;;  %v3601_v6 = vpop.f32.mrb[107].mxu0  ;;  %v11989_v11 = vpop.f32.mrb[107].mxu1 }
 0x23b   : > { %16400 = vst [vmem:[#allocation80_spill] sm:$0xff] %v11972_v31  ;;  %v3377_v50 = vadd.f32 %v11472_v63, %v3342_v12  ;;  %v3866_v38 = vrot.slane %v3865_v29, 2  ;;  %v3877_v18 = vadd.f32 %v3837_v5, %v3835_v25  ;;  %v3838_v41 = vmul.f32 %v3741_v20, %v16404_v47  ;;  %v16407_v31 = vld [vmem:[#allocation85_spill] sm:$0xff] }
 0x23c   : > { %v3349_v21 = vadd.f32 %v3348_v54, %v3347_v22  ;;  %v3873_v60 = vrot.slane %v3872_v19, 2  ;;  %v3839_v48 = vmul.f32 %v3742_v28, %v16406_v59  ;;  %v3743_v4 = vadd.f32 %v3597_v57, %v16402_v61  ;;  %v16411_v22 = vld [vmem:[#allocation29_spill] sm:$0xff]  ;;  %v12001_v28 = vld [vmem:[%s15657_s4 + $0x28] sm:$0xff]  }
 0x23d   : > { %v3407_v40 = vrot.slane %v3377_v50, 1  ;;  %v16409_v63 = vmax.f32 %v16407_v31, %v16408_v56  ;;  %v3867_v25 = vadd.f32 %v3866_v38, %v3865_v29  ;;  %v3878_v20 = vrot.slane %v3877_v18, 4  ;;  %16412 = vst [vmem:[#allocation84_spill] sm:$0xff] %v12001_v28  ;;  %5499 = vmatmul.mubr.bf16.gmra.mrb[212].mxu1 %v12001_v28  ;;  %v16414_v29 = vld [vmem:[#allocation9_spill] sm:$0xff] }
 0x23e   : > { %v3378_v5 = vadd.f32 %v11491_v1, %v3349_v21  ;;  %v3874_v47 = vadd.f32 %v3873_v60, %v3872_v19  ;;  %v3884_v54 = vadd.f32 %v3838_v41, %v3836_v62  ;;  %v3840_v2 = vmul.f32 %v3743_v4, %v16411_v22  ;;  %v12011_v1 = vld [vmem:[%s15657_s4 + $0x68] sm:$0xff]   ;;  %5508 = vmatprep.mubr.bf16.mxu1 %v16096_v8  ;;  %v16417_v60 = vld [vmem:[#allocation130_spill] sm:$0xff] }
 0x23f   : > { %v11994_v12 = vmax.f32 %v16409_v63, %v3377_v50  ;;  %v12005_v57 = vsel %vm2174_vm6, %v3407_v40, %v3406_v52  ;;  %v3868_v31 = vrot.slane %v3867_v25, 1  ;;  %v3879_v56 = vadd.f32 %v3878_v20, %v3877_v18  ;;  %16415 = vst [vmem:[#allocation158_spill] sm:$0xff] %v12011_v1  ;;  %4954 = vmatmul.mubr.bf16.gmra.mrb[212].mxu0 %v12011_v1  ;;  %v16416_v62 = vld [vmem:[#allocation88_spill] sm:$0xff]  ;;  %v16420_v4 = vld [vmem:[#allocation30_spill] sm:$0xff]  ;;  %v3605_v20 = vpop.f32.mrb[108].mxu0 }
 0x240   : > { %16413 = vst [vmem:[#allocation157_spill] sm:$0xff] %v12005_v57  ;;  %v3744_v50 = vadd.f32 %v3599_v53, %v16414_v29  ;;  %v3421_v19 = vrot.slane %v3378_v5, 1  ;;  %v16418_v38 = vmax.f32 %v16416_v62, %v16417_v60  ;;  %v3875_v52 = vrot.slane %v3874_v47, 1  ;;  %4963 = vmatprep.mubr.bf16.mxu0 %v16096_v8  ;;  %v12023_v57 = vpop.f32.mrb[108].mxu1 }
 0x241   : > { %16410 = vst [vmem:[#allocation85_spill] sm:$0xff] %v11994_v12  ;;  %v3885_v21 = vrot.slane %v3884_v54, 4  ;;  %v3869_v18 = vadd.f32 %v3868_v31, %v3867_v25  ;;  %v3880_v53 = vrot.slane %v3879_v56, 2  ;;  %v3745_v63 = vadd.f32 %v3601_v6, %v16414_v29  ;;  %16421 = vst [vmem:[#allocation130_spill] sm:$0xff] %v12023_v57  ;;  %v12029_v61 = vpop.f32.mrb[109].mxu1  ;;  %v16429_v12 = vld [vmem:[#allocation136_spill] sm:$0xff] }
 0x242   : > { %v12018_v41 = vmax.f32 %v16418_v38, %v3378_v5  ;;  %v3841_v40 = vmul.f32 %v3744_v50, %v16420_v4  ;;  %v12026_v22 = vsel %vm2174_vm6, %v3421_v19, %v3420_v23  ;;  %v3876_v59 = vadd.f32 %v3875_v52, %v3874_v47  ;;  %v16423_v5 = vld [vmem:[#allocation11_spill] sm:$0xff]  ;;  %v3607_v38 = vpop.f32.mrb[109].mxu0  ;;  %16424 = vst [vmem:[#allocation160_spill] sm:$0xff] %v12029_v61  ;;  %v12035_v28 = vpop.f32.mrb[110].mxu1 }
 0x243   : > { %16422 = vst [vmem:[#allocation159_spill] sm:$0xff] %v12026_v22  ;;  %v3886_v62 = vadd.f32 %v3885_v21, %v3884_v54  ;;  %v3746_v60 = vadd.f32 %v3605_v20, %v16423_v5  ;;  %v3881_v31 = vadd.f32 %v3880_v53, %v3879_v56  ;;  %v16427_v4 = vld [vmem:[#allocation31_spill] sm:$0xff]  ;;  %v3609_v29 = vpop.f32.mrb[110].mxu0  ;;  %16428 = vst [vmem:[#allocation161_spill] sm:$0xff] %v12035_v28  ;;  %v16431_v54 = vld [vmem:[#allocation33_spill] sm:$0xff]  ;;  %v12042_v20 = vpop.f32.mrb[111].mxu1 }
 0x244   : > { %16419 = vst [vmem:[#allocation88_spill] sm:$0xff] %v12018_v41  ;;  %v16425_v41 = vld [vmem:[#allocation134_spill] sm:$0xff]  ;;  %v3891_v50 = vadd.f32 %v3841_v40, %v3839_v48  ;;  %v3842_v6 = vmul.f32 %v3745_v63, %v16427_v4  ;;  %v12038_v23 = vadd.f32 %v16429_v12, %v3876_v59  ;;  %v3747_v52 = vadd.f32 %v3607_v38, %v16423_v5  ;;  %v3611_v21 = vpop.f32.mrb[111].mxu0  ;;  %v16436_v28 = vld [vmem:[#allocation32_spill] sm:$0xff] }
 0x245   : > { %v12032_v25 = vadd.f32 %v16425_v41, %v3869_v18  ;;  %v3887_v47 = vrot.slane %v3886_v62, 2  ;;  %v3843_v19 = vmul.f32 %v3746_v60, %v16431_v54  ;;  %16432 = vst [vmem:[#allocation162_spill] sm:$0xff] %v12042_v20  ;;  %v3882_v48 = vrot.slane %v3881_v31, 1  ;;  %v16435_v59 = vld [vmem:[#allocation34_spill] sm:$0xff]  ;;  %v12053_v60 = vld [vmem:[%s15657_s4 + $0x30] sm:$0xff]  }
 0x246   : > { %16430 = vst [vmem:[#allocation136_spill] sm:$0xff] %v12038_v23  ;;  %v3892_v53 = vrot.slane %v3891_v50, 4  ;;  %v3898_v40 = vadd.f32 %v3842_v6, %v3840_v2  ;;  %v3844_v1 = vmul.f32 %v3747_v52, %v16435_v59  ;;  %v3748_v61 = vadd.f32 %v3609_v29, %v16436_v28  ;;  %16437 = vst [vmem:[#allocation163_spill] sm:$0xff] %v12053_v60  ;;  %v16439_v29 = vld [vmem:[#allocation133_spill] sm:$0xff] }
 0x247   : > { %16426 = vst [vmem:[#allocation134_spill] sm:$0xff] %v12032_v25  ;;  %v3888_v4 = vadd.f32 %v3887_v47, %v3886_v62  ;;  %5509 = vmatmul.mubr.bf16.gmra.mrb[216].mxu1 %v12053_v60  ;;  %v3883_v38 = vadd.f32 %v3882_v48, %v3881_v31  ;;  %v3749_v2 = vadd.f32 %v3611_v21, %v16436_v28  ;;  %v12060_v62 = vld [vmem:[%s15657_s4 + $0x70] sm:$0xff]   ;;  %v16441_v47 = vld [vmem:[#allocation135_spill] sm:$0xff] }
 0x248   : > { %v3893_v56 = vadd.f32 %v3892_v53, %v3891_v50  ;;  %v3899_v54 = vrot.slane %v3898_v40, 4  ;;  %16438 = vst [vmem:[#allocation164_spill] sm:$0xff] %v12060_v62  ;;  %4964 = vmatmul.mubr.bf16.gmra.mrb[216].mxu0 %v12060_v62  ;;  %5518 = vmatprep.mubr.bf16.mxu1 %v16096_v8  ;;  %v12066_v6 = vadd.f32 %v16439_v29, %v11643_v46  ;;  %v12072_v50 = vpop.permute.xlu0 %1872  ;;  %v16444_v21 = vld [vmem:[#allocation35_spill] sm:$0xff]  ;;  %v16446_v28 = vld [vmem:[#allocation37_spill] sm:$0xff]  ;;  %v3615_v29 = vpop.f32.mrb[112].mxu0 }
 0x249   : > { %v12070_v31 = vadd.f32 %v16441_v47, %v11643_v46  ;;  %16443 = vst [vmem:[#allocation165_spill] sm:$0xff] %v12072_v50  ;;  %v3889_v52 = vrot.slane %v3888_v4, 1  ;;  %v3845_v48 = vmul.f32 %v3748_v61, %v16444_v21  ;;  %4973 = vmatprep.mubr.bf16.mxu0 %v16096_v8  ;;  %v12077_v53 = vadd.f32 %v16425_v41, %v3883_v38  ;;  %v16448_v47 = vld [vmem:[#allocation137_spill] sm:$0xff]  ;;  %v3617_v21 = vpop.f32.mrb[113].mxu0 }
 0x24a   : > { %16440 = vst [vmem:[#allocation133_spill] sm:$0xff] %v12066_v6  ;;  %v3894_v22 = vrot.slane %v3893_v56, 2  ;;  %v3900_v59 = vadd.f32 %v3899_v54, %v3898_v40  ;;  %v3846_v63 = vmul.f32 %v3749_v2, %v16446_v28  ;;  %v12080_v6 = vpop.f32.mrb[112].mxu1  ;;  %v16450_v60 = vld [vmem:[#allocation13_spill] sm:$0xff]  ;;  %v3619_v20 = vpop.f32.mrb[114].mxu0 }
 0x24b   : > { %16442 = vst [vmem:[#allocation135_spill] sm:$0xff] %v12070_v31  ;;  %16445 = vst [vmem:[#allocation166_spill] sm:$0xff] %v12077_v53  ;;  %v12084_v31 = vadd.f32 %v16448_v47, %v11681_v26  ;;  %v3890_v18 = vadd.f32 %v3889_v52, %v3888_v4  ;;  %v3905_v5 = vadd.f32 %v3845_v48, %v3843_v19  ;;  %v12087_v62 = vpop.f32.mrb[113].mxu1  ;;  %v4020_v38 = vrot.slane %v12077_v53, 7  ;;  %v16455_v52 = vld [vmem:[#allocation42_spill] sm:$0xff]  ;;  %v16465_v53 = vld [vmem:[#allocation44_spill] sm:$0xff] }
 0x24c   : > { %16447 = vst [vmem:[#allocation167_spill] sm:$0xff] %v12080_v6  ;;  %v3750_v61 = vadd.f32 %v3615_v29, %v16450_v60  ;;  %16451 = vst [vmem:[#allocation168_spill] sm:$0xff] %v12087_v62  ;;  %v3895_v2 = vadd.f32 %v3894_v22, %v3893_v56  ;;  %v3901_v28 = vrot.slane %v3900_v59, 2  ;;  %v12092_v6 = vpop.f32.mrb[114].mxu1  ;;  %v3912_v19 = vadd.f32 %v3846_v63, %v3844_v1  ;;  %v3621_v29 = vpop.f32.mrb[115].mxu0  ;;  %v12109_v1 = vld [vmem:[%s15657_s4 + $0x38] sm:$0xff]  }
 0x24d   : > { %16449 = vst [vmem:[#allocation137_spill] sm:$0xff] %v12084_v31  ;;  %16453 = vst [vmem:[#allocation169_spill] sm:$0xff] %v12092_v6  ;;  %v12095_v47 = vadd.f32 %v16429_v12, %v3890_v18  ;;  %v3906_v4 = vrot.slane %v3905_v5, 4  ;;  %v12098_v31 = vpop.f32.mrb[115].mxu1  ;;  %v4021_v62 = vsel %vm2156_vm0, %v4020_v38, %v12032_v25  ;;  %v3751_v22 = vadd.f32 %v3617_v21, %v16450_v60  ;;  %v16458_v38 = vld [vmem:[#allocation43_spill] sm:$0xff] }
 0x24e   : > { %v3847_v48 = vmul.f32 %v3750_v61, %v16455_v52  ;;  %v3896_v57 = vrot.slane %v3895_v2, 1  ;;  %v3902_v40 = vadd.f32 %v3901_v28, %v3900_v59  ;;  %v3913_v6 = vrot.slane %v3912_v19, 4  ;;  %16457 = vst [vmem:[#allocation171_spill] sm:$0xff] %v12109_v1  ;;  %v16459_v59 = vld [vmem:[#allocation15_spill] sm:$0xff]  ;;  %v12117_v52 = vld [vmem:[%s15657_s4 + $0x78] sm:$0xff]  }
 0x24f   : > { %16454 = vst [vmem:[#allocation170_spill] sm:$0xff] %v12095_v47  ;;  %v4034_v56 = vrot.slane %v12095_v47, 7  ;;  %v3907_v54 = vadd.f32 %v3906_v4, %v3905_v5  ;;  %5519 = vmatmul.mubr.bf16.gmra.mrb[220].mxu1 %v12109_v1  ;;  %v3848_v28 = vmul.f32 %v3751_v22, %v16458_v38  ;;  %v3752_v21 = vadd.f32 %v3619_v20, %v16459_v59  ;;  %v12121_v5 = vpop.permute.xlu0 %1880  ;;  %v16462_v20 = vld [vmem:[#allocation138_spill] sm:$0xff]  ;;  %v3625_v1 = vpop.f32.mrb[116].mxu0 }
 0x250   : > { %v3897_v63 = vadd.f32 %v3896_v57, %v3895_v2  ;;  %v3903_v61 = vrot.slane %v3902_v40, 1  ;;  %16460 = vst [vmem:[#allocation172_spill] sm:$0xff] %v12117_v52  ;;  %4974 = vmatmul.mubr.bf16.gmra.mrb[220].mxu0 %v12117_v52  ;;  %5528 = vmatprep.mubr.bf16.mxu1 %v16096_v8  ;;  %16461 = vst [vmem:[#allocation173_spill] sm:$0xff] %v12121_v5  ;;  %v3914_v2 = vadd.f32 %v3913_v6, %v3912_v19  ;;  %v12135_v52 = vpop.f32.mrb[116].mxu1  ;;  %v3627_v25 = vpop.f32.mrb[117].mxu0 }
 0x251   : > { %v4035_v4 = vsel %vm2156_vm0, %v4034_v56, %v12038_v23  ;;  %v3908_v57 = vrot.slane %v3907_v54, 2  ;;  %v3753_v22 = vadd.f32 %v3621_v29, %v16459_v59  ;;  %6073 = vmatprep.mubr.bf16.mxu0 %v16096_v8  ;;  %v12129_v18 = vadd.f32 %v16462_v20, %v11681_v26  ;;  %16466 = vst [vmem:[#allocation175_spill] sm:$0xff] %v12135_v52  ;;  %v16467_v56 = vld [vmem:[#allocation89_spill] sm:$0xff]  ;;  %v16469_v59 = vld [vmem:[#allocation46_spill] sm:$0xff]  ;;  %v12142_v20 = vpop.f32.mrb[117].mxu1  ;;  %v12158_v52 = vpop.permute.xlu1 %1876 }
 0x252   : > { %v12132_v38 = vadd.f32 %v16425_v41, %v3897_v63  ;;  %v3904_v47 = vadd.f32 %v3903_v61, %v3902_v40  ;;  %v3849_v60 = vmul.f32 %v3752_v21, %v16465_v53  ;;  %v12139_v6 = vadd.f32 %v16467_v56, %v12072_v50  ;;  %16470 = vst [vmem:[#allocation176_spill] sm:$0xff] %v12142_v20  ;;  %v12150_v53 = vpop.f32.mrb[118].mxu1 }
 0x253   : > { %16463 = vst [vmem:[#allocation138_spill] sm:$0xff] %v12129_v18  ;;  %v3909_v19 = vadd.f32 %v3908_v57, %v3907_v54  ;;  %v3915_v29 = vrot.slane %v3914_v2, 2  ;;  %v3850_v23 = vmul.f32 %v3753_v22, %v16469_v59  ;;  %v3629_v18 = vpop.f32.mrb[118].mxu0  ;;  %v16472_v54 = vld [vmem:[#allocation140_spill] sm:$0xff]  ;;  %v12156_v20 = vpop.f32.mrb[119].mxu1  ;;  %16474 = vst [vmem:[#allocation178_spill] sm:$0xff] %v12158_v52  ;;  %v3754_v55 = vadd.f32 %v3625_v1, %v16318_v17 }
 0x254   : > { %16464 = vst [vmem:[#allocation174_spill] sm:$0xff] %v12132_v38  ;;  %16468 = vst [vmem:[#allocation89_spill] sm:$0xff] %v12139_v6  ;;  %v4022_v63 = vrot.slane %v12132_v38, 6  ;;  %v12148_v61 = vadd.f32 %v16429_v12, %v3904_v47  ;;  %v3919_v21 = vadd.f32 %v3849_v60, %v3847_v48  ;;  %v12154_v57 = vadd.f32 %v16472_v54, %v12072_v50  ;;  %v3631_v59 = vpop.f32.mrb[119].mxu0  ;;  %v16475_v38 = vld [vmem:[#allocation100_spill] sm:$0xff]  ;;  %v16479_v60 = vld [vmem:[#allocation95_spill] sm:$0xff] }
 0x255   : > { %v3910_v22 = vrot.slane %v3909_v19, 1  ;;  %v3916_v56 = vadd.f32 %v3915_v29, %v3914_v2  ;;  %v3926_v6 = vadd.f32 %v3850_v23, %v3848_v28  ;;  %v12166_v54 = vadd.f32 %v16475_v38, %v12158_v52  ;;  %v16477_v28 = vld [vmem:[#allocation101_spill] sm:$0xff] }
 0x256   : > { %16471 = vst [vmem:[#allocation177_spill] sm:$0xff] %v12148_v61  ;;  %16473 = vst [vmem:[#allocation140_spill] sm:$0xff] %v12154_v57  ;;  %v4023_v40 = vsel %vm2159_vm1, %v4022_v63, %v4021_v62  ;;  %v4036_v47 = vrot.slane %v12148_v61, 6  ;;  %v3920_v48 = vrot.slane %v3919_v21, 4  ;;  %v12171_v29 = vadd.f32 %v16477_v28, %v12158_v52  ;;  %v12186_v28 = vpop.permute.xlu1 %1884 }
 0x257   : > { %16476 = vst [vmem:[#allocation100_spill] sm:$0xff] %v12166_v54  ;;  %v3911_v57 = vadd.f32 %v3910_v22, %v3909_v19  ;;  %v3917_v2 = vrot.slane %v3916_v56, 1  ;;  %v3927_v23 = vrot.slane %v3926_v6, 4  ;;  %5529 = vmatmul.mubr.bf16.gmra.mrb[224].mxu1 %v11748_v42  ;;  %v12178_v38 = vadd.f32 %v16479_v60, %v12121_v5  ;;  %v12180_v19 = vpop.permute.xlu0 %1888  ;;  %16483 = vst [vmem:[#allocation181_spill] sm:$0xff] %v12186_v28  ;;  %v12194_v60 = vpop.f32.mrb[120].mxu1 }
 0x258   : > { %16478 = vst [vmem:[#allocation101_spill] sm:$0xff] %v12171_v29  ;;  %v4037_v62 = vsel %vm2159_vm1, %v4036_v47, %v4035_v4  ;;  %v3921_v63 = vadd.f32 %v3920_v48, %v3919_v21  ;;  %6074 = vmatmul.mubr.bf16.vlgmr.msra.gmra.mrb[224].mxu0 %v11737_v36  ;;  %16481 = vst [vmem:[#allocation179_spill] sm:$0xff] %v12180_v19  ;;  %v16484_v4 = vld [vmem:[#allocation142_spill] sm:$0xff]  ;;  %v3851_v21 = vmul.f32 %v3754_v55, %v16329_v14  ;;  %v16488_v55 = vld [vmem:[#allocation143_spill] sm:$0xff] }
 0x259   : > { %16480 = vst [vmem:[#allocation95_spill] sm:$0xff] %v12178_v38  ;;  %v12183_v22 = vadd.f32 %v16425_v41, %v3911_v57  ;;  %v3918_v42 = vadd.f32 %v3917_v2, %v3916_v56  ;;  %v3928_v54 = vadd.f32 %v3927_v23, %v3926_v6  ;;  %6083 = vmatprep.mubr.bf16.mxu0 %v16096_v8  ;;  %v3635_v2 = vpop.f32.mrb[120].mxu0  ;;  %v12203_v23 = vpop.f32.mrb[121].mxu1  ;;  %v16491_v29 = vld [vmem:[#allocation25_spill] sm:$0xff] }
 0x25a   : > { %v12190_v1 = vadd.f32 %v16484_v4, %v12121_v5  ;;  %v3922_v36 = vrot.slane %v3921_v63, 2  ;;  %v3755_v47 = vadd.f32 %v3627_v25, %v16318_v17  ;;  %5538 = vmatprep.mubr.bf16.mxu1 %v16096_v8  ;;  %16487 = vst [vmem:[#allocation183_spill] sm:$0xff] %v12203_v23  ;;  %v12207_v4 = vadd.f32 %v16488_v55, %v12186_v28  ;;  %v3637_v17 = vpop.f32.mrb[121].mxu0  ;;  %v12211_v61 = vpop.f32.mrb[122].mxu1  ;;  %v16496_v55 = vld [vmem:[#allocation52_spill] sm:$0xff] }
 0x25b   : > { %16482 = vst [vmem:[#allocation180_spill] sm:$0xff] %v12183_v22  ;;  %v4024_v57 = vrot.slane %v12183_v22, 5  ;;  %v12201_v56 = vadd.f32 %v16429_v12, %v3918_v42  ;;  %v3929_v48 = vrot.slane %v3928_v54, 2  ;;  %v3756_v14 = vadd.f32 %v3629_v18, %v16491_v29  ;;  %16492 = vst [vmem:[#allocation184_spill] sm:$0xff] %v12211_v61  ;;  %v3639_v37 = vpop.f32.mrb[122].mxu0  ;;  %v12217_v23 = vpop.f32.mrb[123].mxu1 }
 0x25c   : > { %16485 = vst [vmem:[#allocation142_spill] sm:$0xff] %v12190_v1  ;;  %16489 = vst [vmem:[#allocation143_spill] sm:$0xff] %v12207_v4  ;;  %v3923_v25 = vadd.f32 %v3922_v36, %v3921_v63  ;;  %v16490_v1 = vld [vmem:[#allocation51_spill] sm:$0xff]  ;;  %v16493_v63 = vld [vmem:[#allocation108_spill] sm:$0xff] }
 0x25d   : > { %16486 = vst [vmem:[#allocation182_spill] sm:$0xff] %v12201_v56  ;;  %v3852_v38 = vmul.f32 %v3755_v47, %v16490_v1  ;;  %v4025_v6 = vsel %vm2162_vm2, %v4024_v57, %v4023_v40  ;;  %v4038_v42 = vrot.slane %v12201_v56, 5  ;;  %v3930_v30 = vadd.f32 %v3929_v48, %v3928_v54  ;;  %v12223_v47 = vpop.permute.xlu1 %1892  ;;  %v3641_v57 = vpop.f32.mrb[123].mxu0  ;;  %v16497_v1 = vld [vmem:[#allocation146_spill] sm:$0xff]  ;;  %v16499_v54 = vld [vmem:[#allocation147_spill] sm:$0xff] }
 0x25e   : > { %v12221_v36 = vadd.f32 %v16493_v63, %v12186_v28  ;;  %16495 = vst [vmem:[#allocation185_spill] sm:$0xff] %v12223_v47  ;;  %v3924_v18 = vrot.slane %v3923_v25, 1  ;;  %v3853_v4 = vmul.f32 %v3756_v14, %v16496_v55  ;;  %v3757_v40 = vadd.f32 %v3631_v59, %v16491_v29  ;;  %v12241_v14 = vpop.permute.xlu0 %1896  ;;  %v16516_v55 = vld [vmem:[#allocation63_spill] sm:$0xff] }
 0x25f   : > { %v12229_v61 = vadd.f32 %v16497_v1, %v12180_v19  ;;  %v12233_v48 = vadd.f32 %v16499_v54, %v12180_v19  ;;  %v4039_v22 = vsel %vm2162_vm2, %v4038_v42, %v4037_v62  ;;  %v3931_v63 = vrot.slane %v3930_v30, 1  ;;  %5539 = vmatmul.mubr.bf16.gmra.mrb[228].mxu1 %v11807_v39  ;;  %16503 = vst [vmem:[#allocation186_spill] sm:$0xff] %v12241_v14 }
 0x260   : > { %16494 = vst [vmem:[#allocation108_spill] sm:$0xff] %v12221_v36  ;;  %v16501_v36 = vld [vmem:[#allocation114_spill] sm:$0xff]  ;;  %v3925_v59 = vadd.f32 %v3924_v18, %v3923_v25  ;;  %v3933_v3 = vadd.f32 %v3853_v4, %v3851_v21  ;;  %v3854_v1 = vmul.f32 %v3757_v40, %v16344_v51  ;;  %6084 = vmatmul.mubr.bf16.gmra.mrb[228].mxu0 %v11796_v35  ;;  %v16511_v40 = vld [vmem:[#allocation49_spill] sm:$0xff]  ;;  %v16514_v51 = vld [vmem:[#allocation151_spill] sm:$0xff] }
 0x261   : > { %16498 = vst [vmem:[#allocation146_spill] sm:$0xff] %v12229_v61  ;;  %16500 = vst [vmem:[#allocation147_spill] sm:$0xff] %v12233_v48  ;;  %v12239_v56 = vadd.f32 %v16501_v36, %v12223_v47  ;;  %v12247_v54 = vadd.f32 %v11784_v32, %v12223_v47  ;;  %v12251_v62 = vadd.f32 %v11819_v49, %v12241_v14  ;;  %6093 = vmatprep.mubr.bf16.mxu0 %v16096_v8  ;;  %v12255_v36 = vpop.permute.xlu1 %1900  ;;  %v12261_v32 = vpop.f32.mrb[124].mxu1  ;;  %v16513_v48 = vld [vmem:[#allocation60_spill] sm:$0xff] }
 0x262   : > { %v3932_v39 = vadd.f32 %v3931_v63, %v3930_v30  ;;  %v3758_v42 = vadd.f32 %v3635_v2, %v16345_v33  ;;  %16506 = vst [vmem:[#allocation189_spill] sm:$0xff] %v12255_v36  ;;  %v12258_v21 = vadd.f32 %v16425_v41, %v3925_v59  ;;  %v3934_v4 = vrot.slane %v3933_v3, 4  ;;  %5548 = vmatprep.mubr.bf16.mxu1 %v16096_v8  ;;  %v16510_v2 = vld [vmem:[#allocation58_spill] sm:$0xff]  ;;  %v3645_v59 = vpop.f32.mrb[124].mxu0 }
 0x263   : > { %16502 = vst [vmem:[#allocation114_spill] sm:$0xff] %v12239_v56  ;;  %16504 = vst [vmem:[#allocation187_spill] sm:$0xff] %v12247_v54  ;;  %v3940_v35 = vadd.f32 %v3854_v1, %v3852_v38  ;;  %v3759_v25 = vadd.f32 %v3637_v17, %v16345_v33  ;;  %v12266_v30 = vadd.f32 %v11827_v24, %v12241_v14  ;;  %v3647_v56 = vpop.f32.mrb[125].mxu0 }
 0x264   : > { %16505 = vst [vmem:[#allocation188_spill] sm:$0xff] %v12251_v62  ;;  %16507 = vst [vmem:[#allocation190_spill] sm:$0xff] %v12258_v21  ;;  %v12269_v49 = vadd.f32 %v16429_v12, %v3932_v39  ;;  %v3855_v18 = vmul.f32 %v3758_v42, %v16510_v2  ;;  %v3760_v63 = vadd.f32 %v3639_v37, %v16511_v40  ;;  %v12273_v62 = vpop.f32.mrb[125].mxu1  ;;  %v4026_v17 = vrot.slane %v12258_v21, 4  ;;  %v3649_v2 = vpop.f32.mrb[126].mxu0 }
 0x265   : > { %16508 = vst [vmem:[#allocation191_spill] sm:$0xff] %v12266_v30  ;;  %v3935_v1 = vadd.f32 %v3934_v4, %v3933_v3  ;;  %v3941_v54 = vrot.slane %v3940_v35, 4  ;;  %v12278_v24 = vpop.f32.mrb[126].mxu1  ;;  %v16512_v30 = vld [vmem:[#allocation59_spill] sm:$0xff]  ;;  %v12289_v38 = vadd.f32 %v16514_v51, %v12255_v36  ;;  %v3651_v13 = vpop.f32.mrb[127].mxu0  ;;  %v12296_v42 = vadd.f32 %v16516_v55, %v12255_v36  ;;  %v16524_v55 = vld [vmem:[#allocation62_spill] sm:$0xff] }
 0x266   : > { %16509 = vst [vmem:[#allocation192_spill] sm:$0xff] %v12269_v49  ;;  %v4040_v39 = vrot.slane %v12269_v49, 4  ;;  %v3856_v37 = vmul.f32 %v3759_v25, %v16512_v30  ;;  %v3857_v61 = vmul.f32 %v3760_v63, %v16513_v48  ;;  %v12285_v33 = vpop.f32.mrb[127].mxu1  ;;  %v12292_v3 = vsel %vm2165_vm3, %v4026_v17, %v4025_v6  ;;  %v16518_v51 = vld [vmem:[#allocation123_spill] sm:$0xff] }
 0x267   : > { %16515 = vst [vmem:[#allocation151_spill] sm:$0xff] %v12289_v38  ;;  %v3936_v4 = vrot.slane %v3935_v1, 2  ;;  %v3942_v21 = vadd.f32 %v3941_v54, %v3940_v35  ;;  %16517 = vst [vmem:[#allocation63_spill] sm:$0xff] %v12296_v42  ;;  %v3761_v49 = vadd.f32 %v3641_v57, %v16511_v40  ;;  %5549 = vmatmul.mubr.bf16.gmra.mrb[232].mxu1 %v11867_v16  ;;  %v16539_v40 = vld [vmem:[#allocation124_spill] sm:$0xff] }
 0x268   : > { %v12299_v25 = vsel %vm2165_vm3, %v4040_v39, %v4039_v22  ;;  %v3947_v63 = vadd.f32 %v3857_v61, %v3855_v18  ;;  %v12305_v38 = vadd.f32 %v11879_v0, %v16518_v51  ;;  %v12309_v6 = vadd.f32 %v11886_v15, %v16518_v51  ;;  %6094 = vmatmul.mubr.bf16.gmra.mrb[232].mxu0 %v11856_v58  ;;  %v16521_v22 = vld [vmem:[#allocation127_spill] sm:$0xff]  ;;  %v16525_v15 = vld [vmem:[#allocation128_spill] sm:$0xff] }
 0x269   : > { %v3937_v54 = vadd.f32 %v3936_v4, %v3935_v1  ;;  %v3943_v35 = vrot.slane %v3942_v21, 2  ;;  %5558 = vmatprep.mubr.bf16.mxu1 %v16096_v8  ;;  %v12315_v61 = vadd.f32 %v11891_v9, %v16521_v22  ;;  %v12319_v16 = vadd.f32 %v11896_v44, %v16521_v22  ;;  %6103 = vmatprep.mubr.bf16.mxu0 %v16096_v8  ;;  %v16527_v1 = vld [vmem:[#allocation65_spill] sm:$0xff]  ;;  %v4200_v4 = vpop.f32.mrb[128].mxu1 }
 0x26a   : > { %16519 = vst [vmem:[#allocation193_spill] sm:$0xff] %v12305_v38  ;;  %16520 = vst [vmem:[#allocation194_spill] sm:$0xff] %v12309_v6  ;;  %v3948_v0 = vrot.slane %v3947_v63, 4  ;;  %v3858_v57 = vmul.f32 %v3761_v49, %v16524_v55  ;;  %v12325_v18 = vadd.f32 %v11929_v10, %v16525_v15  ;;  %v3762_v39 = vadd.f32 %v3645_v59, %v16527_v1  ;;  %v12333_v49 = vpop.f32.mrb[128].mxu0  ;;  %v16529_v10 = vld [vmem:[#allocation68_spill] sm:$0xff]  ;;  %v16531_v55 = vld [vmem:[#allocation129_spill] sm:$0xff] }
 0x26b   : > { %16522 = vst [vmem:[#allocation195_spill] sm:$0xff] %v12315_v61  ;;  %16523 = vst [vmem:[#allocation196_spill] sm:$0xff] %v12319_v16  ;;  %v3938_v58 = vrot.slane %v3937_v54, 1  ;;  %v3944_v17 = vadd.f32 %v3943_v35, %v3942_v21  ;;  %v12330_v9 = vadd.f32 %v11936_v27, %v16525_v15  ;;  %v3763_v16 = vadd.f32 %v3647_v56, %v16527_v1  ;;  %v4202_v61 = vpop.f32.mrb[129].mxu1  ;;  %v12337_v35 = vpop.f32.mrb[129].mxu0  ;;  %v16533_v56 = vld [vmem:[#allocation69_spill] sm:$0xff] }
 0x26c   : > { %16526 = vst [vmem:[#allocation197_spill] sm:$0xff] %v12325_v18  ;;  %v3949_v44 = vadd.f32 %v3948_v0, %v3947_v63  ;;  %v3954_v42 = vadd.f32 %v3858_v57, %v3856_v37  ;;  %v3859_v18 = vmul.f32 %v3762_v39, %v16529_v10  ;;  %v3764_v21 = vadd.f32 %v3649_v2, %v16530_v45  ;;  %v12339_v59 = vpop.f32.mrb[130].mxu1  ;;  %v12346_v57 = vpop.f32.mrb[130].mxu0  ;;  %v16535_v39 = vld [vmem:[#allocation70_spill] sm:$0xff] }
 0x26d   : > { %16528 = vst [vmem:[#allocation198_spill] sm:$0xff] %v12330_v9  ;;  %v3939_v6 = vadd.f32 %v3938_v58, %v3937_v54  ;;  %v3945_v38 = vrot.slane %v3944_v17, 1  ;;  %v12343_v27 = vadd.f32 %v11941_v34, %v16531_v55  ;;  %v3860_v0 = vmul.f32 %v3763_v16, %v16533_v56  ;;  %v12348_v54 = vpop.f32.mrb[131].mxu1  ;;  %v12355_v1 = vpop.f32.mrb[131].mxu0 }
 0x26e   : > { %v3950_v37 = vrot.slane %v3949_v44, 2  ;;  %v3955_v63 = vrot.slane %v3954_v42, 4  ;;  %v3861_v9 = vmul.f32 %v3764_v21, %v16535_v39  ;;  %v3765_v10 = vadd.f32 %v3651_v13, %v16530_v45  ;;  %v16542_v39 = vld [vmem:[#allocation74_spill] sm:$0xff] }
 0x26f   : > { %16532 = vst [vmem:[#allocation199_spill] sm:$0xff] %v12343_v27  ;;  %v12351_v58 = vadd.f32 %v16425_v41, %v3939_v6  ;;  %v3946_v2 = vadd.f32 %v3945_v38, %v3944_v17  ;;  %v12359_v34 = vadd.f32 %v11945_v7, %v16531_v55  ;;  %v16537_v27 = vld [vmem:[#allocation83_spill] sm:$0xff]  ;;  %5559 = vmatmul.mubr.bf16.gmra.mrb[236].mxu1 %v16539_v40  ;;  %v4210_v17 = vpop.f32.mrb[132].mxu1  ;;  %v16562_v55 = vld [vmem:[#allocation161_spill] sm:$0xff] }
 0x270   : > { %v12363_v16 = vadd.f32 %v11977_v43, %v16537_v27  ;;  %v3951_v56 = vadd.f32 %v3950_v37, %v3949_v44  ;;  %v3956_v48 = vadd.f32 %v3955_v63, %v3954_v42  ;;  %v3961_v21 = vadd.f32 %v3861_v9, %v3859_v18  ;;  %6104 = vmatmul.mubr.bf16.gmra.mrb[236].mxu0 %v16542_v39  ;;  %v16543_v43 = vld [vmem:[#allocation126_spill] sm:$0xff]  ;;  %v16545_v40 = vld [vmem:[#allocation71_spill] sm:$0xff] }
 0x271   : > { %16534 = vst [vmem:[#allocation200_spill] sm:$0xff] %v12351_v58  ;;  %16536 = vst [vmem:[#allocation201_spill] sm:$0xff] %v12359_v34  ;;  %v4028_v38 = vrot.slane %v12351_v58, 3  ;;  %v12370_v13 = vadd.f32 %v16429_v12, %v3946_v2  ;;  %5568 = vmatprep.mubr.bf16.mxu1 %v16096_v8  ;;  %v12376_v7 = vadd.f32 %v16543_v43, %v16537_v27  ;;  %6113 = vmatprep.mubr.bf16.mxu0 %v16096_v8  ;;  %v16548_v34 = vld [vmem:[#allocation156_spill] sm:$0xff] }
 0x272   : > { %16538 = vst [vmem:[#allocation202_spill] sm:$0xff] %v12363_v16  ;;  %v3952_v42 = vrot.slane %v3951_v56, 1  ;;  %v3957_v44 = vrot.slane %v3956_v48, 2  ;;  %v3862_v37 = vmul.f32 %v3765_v10, %v16545_v40  ;;  %v3962_v39 = vrot.slane %v3961_v21, 4  ;;  %v16547_v16 = vld [vmem:[#allocation139_spill] sm:$0xff]  ;;  %v12389_v10 = vpop.f32.mrb[132].mxu0 }
 0x273   : > { %16541 = vst [vmem:[#allocation124_spill] sm:$0xff] %v12370_v13  ;;  %16544 = vst [vmem:[#allocation74_spill] sm:$0xff] %v12376_v7  ;;  %v4029_v63 = vsel %vm2168_vm4, %v4028_v38, %v12292_v3  ;;  %v4042_v2 = vrot.slane %v12370_v13, 3  ;;  %v12387_v43 = vadd.f32 %v16548_v34, %v16547_v16  ;;  %v4212_v40 = vpop.f32.mrb[133].mxu1  ;;  %v12393_v3 = vadd.f32 %v11989_v11, %v16547_v16  ;;  %v16551_v13 = vld [vmem:[#allocation14_spill] sm:$0xff]  ;;  %v12398_v45 = vpop.f32.mrb[133].mxu0 }
 0x274   : > { %v3953_v7 = vadd.f32 %v3952_v42, %v3951_v56  ;;  %v3958_v58 = vadd.f32 %v3957_v44, %v3956_v48  ;;  %v3968_v6 = vadd.f32 %v3862_v37, %v3860_v0  ;;  %v3963_v9 = vadd.f32 %v3962_v39, %v3961_v21  ;;  %v4214_v34 = vpop.f32.mrb[134].mxu1  ;;  %v16552_v56 = vld [vmem:[#allocation130_spill] sm:$0xff]  ;;  %v12407_v11 = vpop.f32.mrb[134].mxu0 }
 0x275   : > { %16549 = vst [vmem:[#allocation126_spill] sm:$0xff] %v12387_v43  ;;  %16550 = vst [vmem:[#allocation156_spill] sm:$0xff] %v12393_v3  ;;  %v4043_v38 = vsel %vm2168_vm4, %v4042_v2, %v12299_v25  ;;  %v4359_v18 = vadd.f32 %v4200_v4, %v16551_v13  ;;  %v12402_v48 = vadd.f32 %v16552_v56, %v11643_v46  ;;  %v12409_v37 = vpop.f32.mrb[135].mxu1  ;;  %v16556_v25 = vld [vmem:[#allocation160_spill] sm:$0xff]  ;;  %v12417_v56 = vpop.f32.mrb[135].mxu0 }
 0x276   : > { %v12405_v0 = vadd.f32 %v16425_v41, %v3953_v7  ;;  %v3959_v42 = vrot.slane %v3958_v58, 1  ;;  %v3969_v44 = vrot.slane %v3968_v6, 4  ;;  %16555 = vst [vmem:[#allocation204_spill] sm:$0xff] %v12407_v11  ;;  %v12413_v21 = vadd.f32 %v16556_v25, %v11643_v46  ;;  %v16558_v2 = vld [vmem:[#allocation16_spill] sm:$0xff]  ;;  %16559 = vst [vmem:[#allocation205_spill] sm:$0xff] %v12417_v56  ;;  %v16561_v11 = vld [vmem:[#allocation155_spill] sm:$0xff] }
 0x277   : > { %16553 = vst [vmem:[#allocation130_spill] sm:$0xff] %v12402_v48  ;;  %v3964_v4 = vrot.slane %v3963_v9, 2  ;;  %v4456_v39 = vmul.f32 %v4359_v18, %v16558_v2  ;;  %v4360_v3 = vadd.f32 %v4202_v61, %v16551_v13  ;;  %5569 = vmatmul.mubr.bf16.gmra.mrb[240].mxu1 %v16561_v11  ;;  %v12425_v25 = vadd.f32 %v16562_v55, %v11681_v26  ;;  %v16564_v46 = vld [vmem:[#allocation17_spill] sm:$0xff]  ;;  %v16565_v2 = vld [vmem:[#allocation10_spill] sm:$0xff]  ;;  %v16570_v55 = vld [vmem:[#allocation167_spill] sm:$0xff]  ;;  %v4220_v11 = vpop.f32.mrb[136].mxu1 }
 0x278   : > { %16554 = vst [vmem:[#allocation203_spill] sm:$0xff] %v12405_v0  ;;  %16557 = vst [vmem:[#allocation160_spill] sm:$0xff] %v12413_v21  ;;  %v4030_v7 = vrot.slane %v12405_v0, 2  ;;  %v3960_v16 = vadd.f32 %v3959_v42, %v3958_v58  ;;  %v3970_v27 = vadd.f32 %v3969_v44, %v3968_v6  ;;  %v4361_v61 = vadd.f32 %v12339_v59, %v16565_v2  ;;  %v16566_v13 = vld [vmem:[#allocation125_spill] sm:$0xff]  ;;  %v16567_v56 = vld [vmem:[#allocation162_spill] sm:$0xff] }
 0x279   : > { %16563 = vst [vmem:[#allocation155_spill] sm:$0xff] %v12425_v25  ;;  %v3965_v21 = vadd.f32 %v3964_v4, %v3963_v9  ;;  %v4457_v18 = vmul.f32 %v4360_v3, %v16564_v46  ;;  %6114 = vmatmul.mubr.bf16.gmra.mrb[240].mxu0 %v16566_v13  ;;  %v12433_v30 = vadd.f32 %v16567_v56, %v11681_v26  ;;  %v16572_v13 = vld [vmem:[#allocation18_spill] sm:$0xff]  ;;  %v16577_v0 = vld [vmem:[#allocation7_spill] sm:$0xff] }
 0x27a   : > { %v4031_v58 = vsel %vm2171_vm5, %v4030_v7, %v4029_v63  ;;  %v12437_v6 = vadd.f32 %v16429_v12, %v3960_v16  ;;  %v3971_v42 = vrot.slane %v3970_v27, 2  ;;  %6123 = vmatprep.mubr.bf16.mxu0 %v16096_v8  ;;  %5578 = vmatprep.mubr.bf16.mxu1 %v16096_v8  ;;  %v12443_v9 = vadd.f32 %v16570_v55, %v12072_v50  ;;  %v16573_v63 = vld [vmem:[#allocation168_spill] sm:$0xff]  ;;  %v4222_v55 = vpop.f32.mrb[137].mxu1 }
 0x27b   : > { %16568 = vst [vmem:[#allocation161_spill] sm:$0xff] %v12433_v30  ;;  %v3966_v59 = vrot.slane %v3965_v21, 1  ;;  %v4458_v3 = vmul.f32 %v4361_v61, %v16572_v13  ;;  %v4362_v44 = vadd.f32 %v12348_v54, %v16565_v2  ;;  %v12450_v16 = vadd.f32 %v16573_v63, %v12072_v50  ;;  %v12455_v30 = vpop.f32.mrb[136].mxu0  ;;  %v16576_v61 = vld [vmem:[#allocation19_spill] sm:$0xff]  ;;  %v4224_v13 = vpop.f32.mrb[138].mxu1  ;;  %v16578_v63 = vld [vmem:[#allocation169_spill] sm:$0xff] }
 0x27c   : > { %16569 = vst [vmem:[#allocation125_spill] sm:$0xff] %v12437_v6  ;;  %16571 = vst [vmem:[#allocation162_spill] sm:$0xff] %v12443_v9  ;;  %v4044_v4 = vrot.slane %v12437_v6, 2  ;;  %v3972_v43 = vadd.f32 %v3971_v42, %v3970_v27  ;;  %v4363_v54 = vadd.f32 %v4210_v17, %v16577_v0  ;;  %v12459_v48 = vpop.f32.mrb[137].mxu0  ;;  %v4364_v27 = vadd.f32 %v4212_v40, %v16577_v0  ;;  %v16585_v40 = vld [vmem:[#allocation8_spill] sm:$0xff]  ;;  %v16586_v0 = vld [vmem:[#allocation158_spill] sm:$0xff] }
 0x27d   : > { %16574 = vst [vmem:[#allocation167_spill] sm:$0xff] %v12450_v16  ;;  %v3967_v9 = vadd.f32 %v3966_v59, %v3965_v21  ;;  %v4488_v25 = vadd.f32 %v4458_v3, %v4456_v39  ;;  %v4459_v26 = vmul.f32 %v4362_v44, %v16576_v61  ;;  %v12463_v16 = vadd.f32 %v16578_v63, %v12158_v52  ;;  %v12467_v42 = vpop.f32.mrb[138].mxu0  ;;  %v4226_v21 = vpop.f32.mrb[139].mxu1  ;;  %v16581_v3 = vld [vmem:[#allocation20_spill] sm:$0xff] }
 0x27e   : > { %v4045_v50 = vsel %vm2171_vm5, %v4044_v4, %v4043_v38  ;;  %v3973_v7 = vrot.slane %v3972_v43, 1  ;;  %v4460_v44 = vmul.f32 %v4363_v54, %v16581_v3  ;;  %v12473_v6 = vpop.f32.mrb[139].mxu0  ;;  %v12477_v63 = vadd.f32 %v12098_v31, %v12158_v52  ;;  %v16584_v4 = vld [vmem:[#allocation21_spill] sm:$0xff]  ;;  %v16589_v31 = vld [vmem:[#allocation175_spill] sm:$0xff] }
 0x27f   : > { %16579 = vst [vmem:[#allocation168_spill] sm:$0xff] %v12463_v16  ;;  %v12470_v39 = vadd.f32 %v16425_v41, %v3967_v9  ;;  %v4489_v59 = vrot.slane %v4488_v25, 4  ;;  %v4495_v17 = vadd.f32 %v4459_v26, %v4457_v18  ;;  %16582 = vst [vmem:[#allocation206_spill] sm:$0xff] %v12473_v6  ;;  %v4461_v16 = vmul.f32 %v4364_v27, %v16584_v4  ;;  %v16588_v6 = vld [vmem:[#allocation84_spill] sm:$0xff]  ;;  %v12510_v9 = vpop.f32.mrb[140].mxu0 }
 0x280   : > { %16583 = vst [vmem:[#allocation207_spill] sm:$0xff] %v12477_v63  ;;  %v3974_v38 = vadd.f32 %v3973_v7, %v3972_v43  ;;  %v4365_v56 = vadd.f32 %v4214_v34, %v16585_v40  ;;  %5579 = vmatmul.mubr.bf16.gmra.mrb[244].mxu1 %v16586_v0  ;;  %v12489_v43 = vadd.f32 %v16589_v31, %v12121_v5  ;;  %v16592_v0 = vld [vmem:[#allocation22_spill] sm:$0xff]  ;;  %v9352_v63 = vld [vmem:[%s10834_s17 + $0x4] ss:$8 sm:$0x3]  ;;  %16598 = vst [vmem:[#allocation208_spill] sm:$0xff] %v12510_v9 }
 0x281   : > { %16580 = vst [vmem:[#allocation169_spill] sm:$0xff] %v12470_v39  ;;  %v4032_v41 = vrot.slane %v12470_v39, 1  ;;  %v4490_v18 = vadd.f32 %v4489_v59, %v4488_v25  ;;  %v4496_v54 = vrot.slane %v4495_v17, 4  ;;  %6124 = vmatmul.mubr.bf16.gmra.mrb[244].mxu0 %v16588_v6  ;;  %5588 = vmatprep.mubr.bf16.mxu1 %v16096_v8  ;;  %v4366_v27 = vadd.f32 %v12409_v37, %v16585_v40  ;;  %v16593_v25 = vld [vmem:[#allocation176_spill] sm:$0xff]  ;;  %v16597_v37 = vld [vmem:[#allocation23_spill] sm:$0xff] }
 0x282   : > { %16590 = vst [vmem:[#allocation158_spill] sm:$0xff] %v12489_v43  ;;  %v12492_v34 = vadd.f32 %v16429_v12, %v3974_v38  ;;  %v4462_v7 = vmul.f32 %v4365_v56, %v16592_v0  ;;  %6133 = vmatprep.mubr.bf16.mxu0 %v16096_v8  ;;  %v12500_v59 = vadd.f32 %v16593_v25, %v12121_v5  ;;  %v4230_v43 = vpop.f32.mrb[140].mxu1 }
 0x283   : > { %v12503_v6 = vsel %vm2174_vm6, %v4032_v41, %v4031_v58  ;;  %v4491_v26 = vrot.slane %v4490_v18, 2  ;;  %v4497_v31 = vadd.f32 %v4496_v54, %v4495_v17  ;;  %v4463_v39 = vmul.f32 %v4366_v27, %v16597_v37  ;;  %v4232_v0 = vpop.f32.mrb[141].mxu1  ;;  %v16600_v17 = vld [vmem:[#allocation12_spill] sm:$0xff] }
 0x284   : > { %16591 = vst [vmem:[#allocation84_spill] sm:$0xff] %v12492_v34  ;;  %16594 = vst [vmem:[#allocation175_spill] sm:$0xff] %v12500_v59  ;;  %v4046_v12 = vrot.slane %v12492_v34, 1  ;;  %v4502_v52 = vadd.f32 %v4462_v7, %v4460_v44  ;;  %v12514_v25 = vadd.f32 %v12150_v53, %v12186_v28  ;;  %v4367_v54 = vadd.f32 %v4220_v11, %v16600_v17  ;;  %v12517_v59 = vpop.f32.mrb[141].mxu0  ;;  %v16604_v53 = vld [vmem:[#allocation26_spill] sm:$0xff] }
 0x285   : > { %16595 = vst [vmem:[#allocation176_spill] sm:$0xff] %v12503_v6  ;;  %v4492_v58 = vadd.f32 %v4491_v26, %v4490_v18  ;;  %v4498_v41 = vrot.slane %v4497_v31, 2  ;;  %16601 = vst [vmem:[#allocation210_spill] sm:$0xff] %v12517_v59  ;;  %v4234_v6 = vpop.f32.mrb[142].mxu1  ;;  %v4509_v7 = vadd.f32 %v4463_v39, %v4461_v16  ;;  %v4368_v27 = vadd.f32 %v4222_v55, %v16600_v17  ;;  %v12523_v5 = vpop.f32.mrb[142].mxu0  ;;  %v16605_v18 = vld [vmem:[#allocation27_spill] sm:$0xff] }
 0x286   : > { %16599 = vst [vmem:[#allocation209_spill] sm:$0xff] %v12514_v25  ;;  %v12520_v56 = vsel %vm2174_vm6, %v4046_v12, %v4045_v50  ;;  %v4503_v44 = vrot.slane %v4502_v52, 4  ;;  %16603 = vst [vmem:[#allocation212_spill] sm:$0xff] %v12523_v5  ;;  %v4236_v9 = vpop.f32.mrb[143].mxu1  ;;  %v12526_v25 = vrot.slane %v9352_v63, %v16604_v53  ;;  %v4464_v11 = vmul.f32 %v4367_v54, %v16605_v18  ;;  %v12529_v38 = vpop.f32.mrb[143].mxu0  ;;  %v16607_v50 = vld [vmem:[#allocation29_spill] sm:$0xff] }
 0x287   : > { %16602 = vst [vmem:[#allocation211_spill] sm:$0xff] %v12520_v56  ;;  %v4493_v34 = vrot.slane %v4492_v58, 1  ;;  %v4499_v26 = vadd.f32 %v4498_v41, %v4497_v31  ;;  %16606 = vst [vmem:[#allocation213_spill] sm:$0xff] %v12529_v38  ;;  %v4510_v37 = vrot.slane %v4509_v7, 4  ;;  %v4465_v12 = vmul.f32 %v4368_v27, %v16607_v50  ;;  %v16608_v56 = vld [vmem:[#allocation9_spill] sm:$0xff]  ;;  %v16609_v39 = vld [vmem:[#allocation164_spill] sm:$0xff] }
 0x288   : > { %v4504_v59 = vadd.f32 %v4503_v44, %v4502_v52  ;;  %v4369_v16 = vadd.f32 %v4224_v13, %v16608_v56  ;;  %5589 = vmatmul.mubr.bf16.gmra.mrb[248].mxu1 %v16609_v39  ;;  %v16610_v17 = vld [vmem:[#allocation28_spill] sm:$0xff]  ;;  %v4370_v4 = vadd.f32 %v4226_v21, %v16608_v56  ;;  %v16611_v31 = vld [vmem:[#allocation163_spill] sm:$0xff]  ;;  %v12542_v52 = vadd.f32 %v12156_v20, %v12186_v28  ;;  %v16613_v13 = vld [vmem:[#allocation30_spill] sm:$0xff] }
 0x289   : > { %v4494_v55 = vadd.f32 %v4493_v34, %v4492_v58  ;;  %v4500_v5 = vrot.slane %v4499_v26, 1  ;;  %v12535_v40 = vrot.slane %v9352_v63, %v16610_v17  ;;  %6134 = vmatmul.mubr.bf16.gmra.mrb[248].mxu0 %v16611_v31  ;;  %5598 = vmatprep.mubr.bf16.mxu1 %v16096_v8  ;;  %v4511_v54 = vadd.f32 %v4510_v37, %v4509_v7  ;;  %v16614_v58 = vld [vmem:[#allocation31_spill] sm:$0xff]  ;;  %v4240_v31 = vpop.f32.mrb[144].mxu1  ;;  %v12553_v37 = vpop.f32.mrb[144].mxu0  ;;  %v16634_v50 = vld [vmem:[#allocation172_spill] sm:$0xff] }
 0x28a   : > { %16612 = vst [vmem:[#allocation164_spill] sm:$0xff] %v12542_v52  ;;  %v4505_v41 = vrot.slane %v4504_v59, 2  ;;  %v4466_v44 = vmul.f32 %v4369_v16, %v16613_v13  ;;  %6143 = vmatprep.mubr.bf16.mxu0 %v16096_v8  ;;  %v4467_v27 = vmul.f32 %v4370_v4, %v16614_v58  ;;  %v16615_v21 = vld [vmem:[#allocation11_spill] sm:$0xff]  ;;  %v12551_v38 = vadd.f32 %v12194_v60, %v12180_v19  ;;  %v12555_v7 = vpop.f32.mrb[145].mxu1  ;;  %v16619_v13 = vld [vmem:[#allocation134_spill] sm:$0xff]  ;;  %v12564_v56 = vpop.f32.mrb[145].mxu0 }
 0x28b   : > { %v4613_v34 = vadd.f32 %v12526_v25, %v4494_v55  ;;  %v4501_v63 = vadd.f32 %v4500_v5, %v4499_v26  ;;  %v4371_v39 = vadd.f32 %v4230_v43, %v16615_v21  ;;  %v4512_v52 = vrot.slane %v4511_v54, 2  ;;  %16617 = vst [vmem:[#allocation214_spill] sm:$0xff] %v12553_v37  ;;  %v16618_v16 = vld [vmem:[#allocation39_spill] sm:$0xff]  ;;  %v16622_v26 = vld [vmem:[#allocation33_spill] sm:$0xff]  ;;  %16623 = vst [vmem:[#allocation134_spill] sm:$0xff] %v12564_v56  ;;  %v12566_v60 = vpop.f32.mrb[146].mxu1 }
 0x28c   : > { %16616 = vst [vmem:[#allocation163_spill] sm:$0xff] %v12551_v38  ;;  %v4506_v20 = vadd.f32 %v4505_v41, %v4504_v59  ;;  %v4516_v28 = vadd.f32 %v4466_v44, %v4464_v11  ;;  %v16620_v55 = vmax.f32 %v16618_v16, %v16619_v13  ;;  %v4523_v43 = vadd.f32 %v4467_v27, %v4465_v12  ;;  %v12569_v38 = vpop.f32.mrb[146].mxu0  ;;  %v12571_v37 = vpop.f32.mrb[147].mxu1  ;;  %v16625_v13 = vld [vmem:[#allocation183_spill] sm:$0xff]  ;;  %v16631_v56 = vld [vmem:[#allocation32_spill] sm:$0xff] }
 0x28d   : > { %v4614_v4 = vadd.f32 %v12535_v40, %v4501_v63  ;;  %v4468_v58 = vmul.f32 %v4371_v39, %v16622_v26  ;;  %v4513_v11 = vadd.f32 %v4512_v52, %v4511_v54  ;;  %v4372_v44 = vadd.f32 %v4232_v0, %v16615_v21  ;;  %16624 = vst [vmem:[#allocation215_spill] sm:$0xff] %v12569_v38  ;;  %v16627_v12 = vld [vmem:[#allocation87_spill] sm:$0xff]  ;;  %v16628_v63 = vld [vmem:[#allocation136_spill] sm:$0xff]  ;;  %v12583_v52 = vpop.f32.mrb[147].mxu0  ;;  %v16633_v38 = vld [vmem:[#allocation34_spill] sm:$0xff] }
 0x28e   : > { %v12560_v5 = vmax.f32 %v16620_v55, %v4613_v34  ;;  %v4507_v59 = vrot.slane %v4506_v20, 1  ;;  %v4517_v41 = vrot.slane %v4516_v28, 4  ;;  %v12575_v16 = vadd.f32 %v16625_v13, %v12180_v19  ;;  %16632 = vst [vmem:[#allocation136_spill] sm:$0xff] %v12583_v52  ;;  %v16635_v13 = vld [vmem:[#allocation184_spill] sm:$0xff] }
 0x28f   : > { %v16629_v27 = vmax.f32 %v16627_v12, %v16628_v63  ;;  %v4524_v55 = vrot.slane %v4523_v43, 4  ;;  %v4514_v0 = vrot.slane %v4513_v11, 1  ;;  %v4469_v21 = vmul.f32 %v4372_v44, %v16633_v38  ;;  %v16637_v12 = vld [vmem:[#allocation35_spill] sm:$0xff]  ;;  %v16641_v44 = vld [vmem:[#allocation13_spill] sm:$0xff] }
 0x290   : > { %16621 = vst [vmem:[#allocation39_spill] sm:$0xff] %v12560_v5  ;;  %16626 = vst [vmem:[#allocation183_spill] sm:$0xff] %v12575_v16  ;;  %v4373_v5 = vadd.f32 %v4234_v6, %v16631_v56  ;;  %v4508_v54 = vadd.f32 %v4507_v59, %v4506_v20  ;;  %v4518_v26 = vadd.f32 %v4517_v41, %v4516_v28  ;;  %5599 = vmatmul.mubr.bf16.gmra.mrb[252].mxu1 %v16634_v50  ;;  %v16640_v41 = vld [vmem:[#allocation37_spill] sm:$0xff] }
 0x291   : > { %v12580_v39 = vmax.f32 %v16629_v27, %v4614_v4  ;;  %v12589_v16 = vadd.f32 %v16635_v13, %v12223_v47  ;;  %v4525_v19 = vadd.f32 %v4524_v55, %v4523_v43  ;;  %v4374_v27 = vadd.f32 %v4236_v9, %v16631_v56  ;;  %8861 = vmatprep.mubr.bf16.mxu1 %v16096_v8  ;;  %v4250_v55 = vpop.f32.mrb[148].mxu1  ;;  %v16642_v13 = vld [vmem:[#allocation36_spill] sm:$0xff] }
 0x292   : > { %v4470_v63 = vmul.f32 %v4373_v5, %v16637_v12  ;;  %v12596_v6 = vadd.f32 %v12217_v23, %v12223_v47  ;;  %v4615_v28 = vadd.f32 %v12526_v25, %v4508_v54  ;;  %v4515_v20 = vadd.f32 %v4514_v0, %v4513_v11  ;;  %v12609_v0 = vpop.f32.mrb[148].mxu0  ;;  %v12611_v47 = vpop.f32.mrb[149].mxu1 }
 0x293   : > { %16630 = vst [vmem:[#allocation87_spill] sm:$0xff] %v12580_v39  ;;  %16636 = vst [vmem:[#allocation172_spill] sm:$0xff] %v12589_v16  ;;  %v16638_v39 = vld [vmem:[#allocation171_spill] sm:$0xff]  ;;  %v4519_v59 = vrot.slane %v4518_v26, 2  ;;  %v4526_v50 = vrot.slane %v4525_v19, 2  ;;  %v4471_v5 = vmul.f32 %v4374_v27, %v16640_v41  ;;  %v4375_v9 = vadd.f32 %v4240_v31, %v16641_v44  ;;  %v16643_v16 = vld [vmem:[#allocation166_spill] sm:$0xff] }
 0x294   : > { %6144 = vmatmul.mubr.bf16.gmra.mrb[252].mxu0 %v16638_v39  ;;  %16639 = vst [vmem:[#allocation184_spill] sm:$0xff] %v12596_v6  ;;  %v4530_v43 = vadd.f32 %v4470_v63, %v4468_v58  ;;  %v4645_v39 = vrot.slane %v4615_v28, 7  ;;  %v16644_v23 = vmax.f32 %v16642_v13, %v16643_v16  ;;  %v4616_v11 = vadd.f32 %v12535_v40, %v4515_v20  ;;  %v16647_v27 = vld [vmem:[#allocation42_spill] sm:$0xff]  ;;  %v12614_v31 = vpop.f32.mrb[149].mxu0  ;;  %v4254_v12 = vpop.f32.mrb[150].mxu1 }
 0x295   : > { %6153 = vmatprep.mubr.bf16.mxu0 %v16096_v8  ;;  %v4520_v54 = vadd.f32 %v4519_v59, %v4518_v26  ;;  %16646 = vst [vmem:[#allocation36_spill] sm:$0xff] %v12609_v0  ;;  %v4527_v52 = vadd.f32 %v4526_v50, %v4525_v19  ;;  %v4537_v63 = vadd.f32 %v4471_v5, %v4469_v21  ;;  %16648 = vst [vmem:[#allocation166_spill] sm:$0xff] %v12614_v31  ;;  %v16650_v13 = vld [vmem:[#allocation170_spill] sm:$0xff]  ;;  %v12622_v59 = vpop.f32.mrb[150].mxu0  ;;  %v12624_v0 = vpop.f32.mrb[151].mxu1 }
 0x296   : > { %v12606_v6 = vmax.f32 %v16644_v23, %v4615_v28  ;;  %v4531_v58 = vrot.slane %v4530_v43, 4  ;;  %v4472_v41 = vmul.f32 %v4375_v9, %v16647_v27  ;;  %v4646_v56 = vsel %vm2156_vm0, %v4645_v39, %v4613_v34  ;;  %v16649_v28 = vld [vmem:[#allocation38_spill] sm:$0xff]  ;;  %16653 = vst [vmem:[#allocation170_spill] sm:$0xff] %v12622_v59  ;;  %v12630_v9 = vpop.f32.mrb[151].mxu0 }
 0x297   : > { %v4659_v16 = vrot.slane %v4616_v11, 7  ;;  %v16651_v23 = vmax.f32 %v16649_v28, %v16650_v13  ;;  %v4521_v26 = vrot.slane %v4520_v54, 1  ;;  %v12628_v19 = vadd.f32 %v12261_v32, %v12241_v14  ;;  %16655 = vst [vmem:[#allocation217_spill] sm:$0xff] %v12630_v9  ;;  %v16657_v32 = vld [vmem:[#allocation15_spill] sm:$0xff]  ;;  %v16669_v9 = vld [vmem:[#allocation177_spill] sm:$0xff] }
 0x298   : > { %16645 = vst [vmem:[#allocation171_spill] sm:$0xff] %v12606_v6  ;;  %v4528_v21 = vrot.slane %v4527_v52, 1  ;;  %v4532_v50 = vadd.f32 %v4531_v58, %v4530_v43  ;;  %v4538_v5 = vrot.slane %v4537_v63, 4  ;;  %v12634_v34 = vadd.f32 %v12273_v62, %v12241_v14  ;;  %v9832_v43 = vld [vmem:[%s15657_s4 + $0x40] sm:$0xff]   ;;  %v12665_v14 = vpop.f32.mrb[152].mxu0 }
 0x299   : > { %v12620_v20 = vmax.f32 %v16651_v23, %v4616_v11  ;;  %16654 = vst [vmem:[#allocation216_spill] sm:$0xff] %v12628_v19  ;;  %v4660_v39 = vsel %vm2156_vm0, %v4659_v16, %v4614_v4  ;;  %v4522_v11 = vadd.f32 %v4521_v26, %v4520_v54  ;;  %v4376_v28 = vadd.f32 %v12555_v7, %v16641_v44  ;;  %v16659_v54 = vld [vmem:[#allocation43_spill] sm:$0xff]  ;;  %v16660_v16 = vld [vmem:[#allocation44_spill] sm:$0xff] }
 0x29a   : > { %16656 = vst [vmem:[#allocation218_spill] sm:$0xff] %v12634_v34  ;;  %v4529_v13 = vadd.f32 %v4528_v21, %v4527_v52  ;;  %v4533_v23 = vrot.slane %v4532_v50, 2  ;;  %v4539_v59 = vadd.f32 %v4538_v5, %v4537_v63  ;;  %v4377_v19 = vadd.f32 %v12566_v60, %v16657_v32  ;;  %v4260_v21 = vpop.f32.mrb[152].mxu1 }
 0x29b   : > { %16652 = vst [vmem:[#allocation38_spill] sm:$0xff] %v12620_v20  ;;  %v12646_v62 = vadd.f32 %v12278_v24, %v12255_v36  ;;  %v4617_v4 = vadd.f32 %v12526_v25, %v4522_v11  ;;  %v4473_v58 = vmul.f32 %v4376_v28, %v16659_v54  ;;  %v4378_v7 = vadd.f32 %v12571_v37, %v16657_v32  ;;  %v16662_v11 = vld [vmem:[#allocation45_spill] sm:$0xff]  ;;  %v16666_v37 = vld [vmem:[#allocation46_spill] sm:$0xff] }
 0x29c   : > { %6154 = vmatmul.mubr.bf16.gmra.mrb[0].mxu0 %v9832_v43  ;;  %v4618_v60 = vadd.f32 %v12535_v40, %v4529_v13  ;;  %v4534_v52 = vadd.f32 %v4533_v23, %v4532_v50  ;;  %v4540_v63 = vrot.slane %v4539_v59, 2  ;;  %v4474_v26 = vmul.f32 %v4377_v19, %v16660_v16  ;;  %v16663_v43 = vld [vmem:[#allocation174_spill] sm:$0xff]  ;;  %v4262_v13 = vpop.f32.mrb[153].mxu1  ;;  %v16668_v23 = vld [vmem:[#allocation47_spill] sm:$0xff] }
 0x29d   : > { %16658 = vst [vmem:[#allocation219_spill] sm:$0xff] %v12646_v62  ;;  %6163 = vmatprep.mubr.bf16.mxu0 %v16096_v8  ;;  %v12657_v24 = vadd.f32 %v12285_v33, %v12255_v36  ;;  %v4647_v5 = vrot.slane %v4617_v4, 6  ;;  %v16664_v28 = vmax.f32 %v16662_v11, %v16663_v43  ;;  %v4475_v34 = vmul.f32 %v4378_v7, %v16666_v37  ;;  %v4264_v36 = vpop.f32.mrb[154].mxu1 }
 0x29e   : > { %16667 = vst [vmem:[#allocation174_spill] sm:$0xff] %v12665_v14  ;;  %v4661_v50 = vrot.slane %v4618_v60, 6  ;;  %v16670_v19 = vmax.f32 %v16668_v23, %v16669_v9  ;;  %v4535_v16 = vrot.slane %v4534_v52, 1  ;;  %v4541_v33 = vadd.f32 %v4540_v63, %v4539_v59  ;;  %v12678_v14 = vpop.f32.mrb[155].mxu1 }
 0x29f   : > { %16661 = vst [vmem:[#allocation220_spill] sm:$0xff] %v12657_v24  ;;  %v12662_v62 = vmax.f32 %v16664_v28, %v4617_v4  ;;  %v12672_v24 = vpop.f32.mrb[153].mxu0  ;;  %v4648_v11 = vsel %vm2159_vm1, %v4647_v5, %v4646_v56  ;;  %v4544_v4 = vadd.f32 %v4474_v26, %v4472_v41  ;;  %v4551_v43 = vadd.f32 %v4475_v34, %v4473_v58  ;;  %v16673_v28 = vld [vmem:[#allocation48_spill] sm:$0xff]  ;;  %v16677_v41 = vld [vmem:[#allocation50_spill] sm:$0xff] }
 0x2a0   : > { %v12670_v31 = vmax.f32 %v16670_v19, %v4618_v60  ;;  %16672 = vst [vmem:[#allocation177_spill] sm:$0xff] %v12672_v24  ;;  %v4379_v7 = vadd.f32 %v4250_v55, %v16673_v28  ;;  %v12682_v9 = vadd.f32 %v12333_v49, %v16518_v51  ;;  %v4662_v60 = vsel %vm2159_vm1, %v4661_v50, %v4660_v39  ;;  %v16680_v50 = vld [vmem:[#allocation51_spill] sm:$0xff] }
 0x2a1   : > { %16665 = vst [vmem:[#allocation45_spill] sm:$0xff] %v12662_v62  ;;  %v12676_v62 = vpop.f32.mrb[154].mxu0  ;;  %v4536_v59 = vadd.f32 %v4535_v16, %v4534_v52  ;;  %v4542_v63 = vrot.slane %v4541_v33, 1  ;;  %v4545_v19 = vrot.slane %v4544_v4, 4  ;;  %v4552_v56 = vrot.slane %v4551_v43, 4  ;;  %v9833_v52 = vld [vmem:[%s15657_s4 + $0x48] sm:$0xff]  }
 0x2a2   : > { %16671 = vst [vmem:[#allocation47_spill] sm:$0xff] %v12670_v31  ;;  %16674 = vst [vmem:[#allocation221_spill] sm:$0xff] %v12676_v62  ;;  %v12685_v23 = vpop.f32.mrb[155].mxu0  ;;  %v4476_v34 = vmul.f32 %v4379_v7, %v16677_v41  ;;  %v4380_v55 = vadd.f32 %v12611_v47, %v16673_v28  ;;  %v12692_v58 = vadd.f32 %v12337_v35, %v16518_v51  ;;  %v4270_v51 = vpop.f32.mrb[156].mxu1  ;;  %v16843_v31 = vld [vmem:[#allocation40_spill] sm:$0xff] }
 0x2a3   : > { %16675 = vst [vmem:[#allocation222_spill] sm:$0xff] %v12682_v9  ;;  %16676 = vst [vmem:[#allocation223_spill] sm:$0xff] %v12685_v23  ;;  %v4619_v49 = vadd.f32 %v12526_v25, %v4536_v59  ;;  %v4543_v26 = vadd.f32 %v4542_v63, %v4541_v33  ;;  %v4381_v39 = vadd.f32 %v4254_v12, %v16491_v29  ;;  %v16681_v59 = vld [vmem:[#allocation54_spill] sm:$0xff]  ;;  %v16682_v33 = vld [vmem:[#allocation180_spill] sm:$0xff] }
 0x2a4   : > { %16678 = vst [vmem:[#allocation224_spill] sm:$0xff] %v12692_v58  ;;  %6164 = vmatmul.mubr.bf16.gmra.mrb[4].mxu0 %v9833_v52  ;;  %v12701_v16 = vadd.f32 %v12346_v57, %v16521_v22  ;;  %v4546_v5 = vadd.f32 %v4545_v19, %v4544_v4  ;;  %v4553_v47 = vadd.f32 %v4552_v56, %v4551_v43  ;;  %v16685_v9 = vld [vmem:[#allocation52_spill] sm:$0xff]  ;;  %v12718_v56 = vpop.f32.mrb[156].mxu0 }
 0x2a5   : > { %v4477_v7 = vmul.f32 %v4380_v55, %v16680_v50  ;;  %6173 = vmatprep.mubr.bf16.mxu0 %v16096_v8  ;;  %v4649_v35 = vrot.slane %v4619_v49, 5  ;;  %v16683_v63 = vmax.f32 %v16681_v59, %v16682_v33  ;;  %v4620_v58 = vadd.f32 %v12535_v40, %v4543_v26  ;;  %16687 = vst [vmem:[#allocation226_spill] sm:$0xff] %v12718_v56  ;;  %v12720_v55 = vpop.f32.mrb[157].mxu1  ;;  %v16688_v26 = vld [vmem:[#allocation57_spill] sm:$0xff]  ;;  %v16689_v33 = vld [vmem:[#allocation182_spill] sm:$0xff]  ;;  %v16694_v56 = vld [vmem:[#allocation40_spill] sm:$0xff] }
 0x2a6   : > { %16679 = vst [vmem:[#allocation225_spill] sm:$0xff] %v12701_v16  ;;  %v4478_v52 = vmul.f32 %v4381_v39, %v16685_v9  ;;  %v12714_v57 = vadd.f32 %v12355_v1, %v16521_v22  ;;  %v4547_v4 = vrot.slane %v4546_v5, 2  ;;  %v4554_v43 = vrot.slane %v4553_v47, 2  ;;  %v12728_v1 = vpop.f32.mrb[157].mxu0 }
 0x2a7   : > { %v12708_v12 = vmax.f32 %v16683_v63, %v4619_v49  ;;  %v4382_v19 = vadd.f32 %v12624_v0, %v16491_v29  ;;  %v4650_v49 = vsel %vm2162_vm2, %v4649_v35, %v4648_v11  ;;  %v4663_v59 = vrot.slane %v4620_v58, 5  ;;  %16692 = vst [vmem:[#allocation182_spill] sm:$0xff] %v12728_v1  ;;  %v16693_v0 = vld [vmem:[#allocation55_spill] sm:$0xff]  ;;  %v12734_v24 = vpop.f32.mrb[158].mxu0 }
 0x2a8   : > { %16686 = vst [vmem:[#allocation180_spill] sm:$0xff] %v12714_v57  ;;  %v16690_v39 = vmax.f32 %v16688_v26, %v16689_v33  ;;  %v4558_v16 = vadd.f32 %v4478_v52, %v4476_v34  ;;  %v12730_v57 = vpop.f32.mrb[158].mxu1  ;;  %v4548_v22 = vadd.f32 %v4547_v4, %v4546_v5  ;;  %v4555_v23 = vadd.f32 %v4554_v43, %v4553_v47  ;;  %v12744_v26 = vpop.f32.mrb[159].mxu0  ;;  %v16698_v43 = vld [vmem:[#allocation58_spill] sm:$0xff] }
 0x2a9   : > { %16684 = vst [vmem:[#allocation54_spill] sm:$0xff] %v12708_v12  ;;  %v4479_v9 = vmul.f32 %v4382_v19, %v16693_v0  ;;  %v4383_v62 = vadd.f32 %v4260_v21, %v16694_v56  ;;  %16695 = vst [vmem:[#allocation227_spill] sm:$0xff] %v12734_v24  ;;  %v12736_v11 = vpop.f32.mrb[159].mxu1  ;;  %v12740_v35 = vadd.f32 %v12389_v10, %v16525_v15 }
 0x2aa   : > { %v12726_v63 = vmax.f32 %v16690_v39, %v4620_v58  ;;  %v4664_v34 = vsel %vm2162_vm2, %v4663_v59, %v4662_v60  ;;  %v4559_v58 = vrot.slane %v4558_v16, 4  ;;  %v4384_v52 = vadd.f32 %v4262_v13, %v16694_v56  ;;  %16697 = vst [vmem:[#allocation229_spill] sm:$0xff] %v12744_v26  ;;  %v16700_v39 = vld [vmem:[#allocation59_spill] sm:$0xff]  ;;  %v9834_v13 = vld [vmem:[%s15657_s4 + $0x50] sm:$0xff]   ;;  %v16703_v59 = vld [vmem:[#allocation204_spill] sm:$0xff] }
 0x2ab   : > { %16696 = vst [vmem:[#allocation228_spill] sm:$0xff] %v12740_v35  ;;  %v4549_v5 = vrot.slane %v4548_v22, 1  ;;  %v4556_v47 = vrot.slane %v4555_v23, 1  ;;  %v4565_v4 = vadd.f32 %v4479_v9, %v4477_v7  ;;  %v4480_v21 = vmul.f32 %v4383_v62, %v16698_v43  ;;  %v16701_v35 = vld [vmem:[#allocation49_spill] sm:$0xff]  ;;  %v16719_v43 = vld [vmem:[#allocation67_spill] sm:$0xff] }
 0x2ac   : > { %16691 = vst [vmem:[#allocation57_spill] sm:$0xff] %v12726_v63  ;;  %v12749_v19 = vadd.f32 %v12398_v45, %v16525_v15  ;;  %v4560_v33 = vadd.f32 %v4559_v58, %v4558_v16  ;;  %v4481_v10 = vmul.f32 %v4384_v52, %v16700_v39  ;;  %v4385_v24 = vadd.f32 %v4264_v36, %v16701_v35  ;;  %v16702_v60 = vld [vmem:[#allocation129_spill] sm:$0xff]  ;;  %v16707_v36 = vld [vmem:[#allocation60_spill] sm:$0xff]  ;;  %v16831_v63 = vld [vmem:[#allocation179_spill] sm:$0xff] }
 0x2ad   : > { %6174 = vmatmul.mubr.bf16.gmra.mrb[8].mxu0 %v9834_v13  ;;  %v12758_v26 = vadd.f32 %v16703_v59, %v16702_v60  ;;  %v4550_v9 = vadd.f32 %v4549_v5, %v4548_v22  ;;  %v4557_v62 = vadd.f32 %v4556_v47, %v4555_v23  ;;  %v4566_v7 = vrot.slane %v4565_v4, 4  ;;  %v16705_v45 = vld [vmem:[#allocation205_spill] sm:$0xff]  ;;  %v12768_v13 = vpop.f32.mrb[160].mxu1  ;;  %v16715_v39 = vld [vmem:[#allocation64_spill] sm:$0xff] }
 0x2ae   : > { %16699 = vst [vmem:[#allocation230_spill] sm:$0xff] %v12749_v19  ;;  %6183 = vmatprep.mubr.bf16.mxu0 %v16096_v8  ;;  %v12763_v16 = vadd.f32 %v16705_v45, %v16702_v60  ;;  %v4561_v58 = vrot.slane %v4560_v33, 2  ;;  %v4482_v52 = vmul.f32 %v4385_v24, %v16707_v36  ;;  %v4386_v19 = vadd.f32 %v12678_v14, %v16701_v35  ;;  %v16709_v5 = vld [vmem:[#allocation65_spill] sm:$0xff]  ;;  %v12773_v15 = vpop.f32.mrb[161].mxu1  ;;  %v16711_v45 = vld [vmem:[#allocation83_spill] sm:$0xff]  ;;  %v16713_v36 = vld [vmem:[#allocation62_spill] sm:$0xff] }
 0x2af   : > { %16704 = vst [vmem:[#allocation204_spill] sm:$0xff] %v12758_v26  ;;  %16708 = vst [vmem:[#allocation231_spill] sm:$0xff] %v12768_v13  ;;  %v4621_v59 = vadd.f32 %v12526_v25, %v4550_v9  ;;  %v4622_v22 = vadd.f32 %v12535_v40, %v4557_v62  ;;  %v4567_v23 = vadd.f32 %v4566_v7, %v4565_v4  ;;  %v4825_v26 = vpop.f32.mrb[160].mxu0  ;;  %v12780_v13 = vpop.f32.mrb[162].mxu1  ;;  %v16716_v62 = vld [vmem:[#allocation190_spill] sm:$0xff] }
 0x2b0   : > { %16706 = vst [vmem:[#allocation205_spill] sm:$0xff] %v12763_v16  ;;  %v4387_v47 = vadd.f32 %v4270_v51, %v16709_v5  ;;  %16710 = vst [vmem:[#allocation232_spill] sm:$0xff] %v12773_v15  ;;  %v12777_v16 = vadd.f32 %v12455_v30, %v16711_v45  ;;  %v4562_v24 = vadd.f32 %v4561_v58, %v4560_v33  ;;  %v4827_v35 = vpop.f32.mrb[161].mxu0  ;;  %v16720_v15 = vld [vmem:[#allocation192_spill] sm:$0xff]  ;;  %v12792_v33 = vpop.f32.mrb[163].mxu1 }
 0x2b1   : > { %v4572_v60 = vadd.f32 %v4482_v52, %v4480_v21  ;;  %v4483_v14 = vmul.f32 %v4386_v19, %v16713_v36  ;;  %16714 = vst [vmem:[#allocation234_spill] sm:$0xff] %v12780_v13  ;;  %v4651_v9 = vrot.slane %v4621_v59, 4  ;;  %v16717_v4 = vmax.f32 %v16715_v39, %v16716_v62  ;;  %v4829_v30 = vpop.f32.mrb[162].mxu0  ;;  %16723 = vst [vmem:[#allocation67_spill] sm:$0xff] %v12792_v33  ;;  %v9835_v33 = vld [vmem:[%s15657_s4 + $0x58] sm:$0xff]  }
 0x2b2   : > { %16712 = vst [vmem:[#allocation233_spill] sm:$0xff] %v12777_v16  ;;  %v4665_v51 = vrot.slane %v4622_v22, 4  ;;  %v16721_v1 = vmax.f32 %v16719_v43, %v16720_v15  ;;  %v4563_v21 = vrot.slane %v4562_v24, 1  ;;  %v4568_v19 = vrot.slane %v4567_v23, 2  ;;  %v4831_v16 = vpop.f32.mrb[163].mxu0 }
 0x2b3   : > { %v12785_v7 = vmax.f32 %v16717_v4, %v4621_v59  ;;  %v4573_v58 = vrot.slane %v4572_v60, 4  ;;  %v4579_v52 = vadd.f32 %v4483_v14, %v4481_v10  ;;  %v4652_v13 = vsel %vm2165_vm3, %v4651_v9, %v4650_v49  ;;  %v16724_v59 = vld [vmem:[#allocation68_spill] sm:$0xff]  ;;  %v16726_v49 = vld [vmem:[#allocation139_spill] sm:$0xff] }
 0x2b4   : > { %v12790_v56 = vmax.f32 %v16721_v1, %v4622_v22  ;;  %v4666_v39 = vsel %vm2165_vm3, %v4665_v51, %v4664_v34  ;;  %v4484_v62 = vmul.f32 %v4387_v47, %v16724_v59  ;;  %v4388_v4 = vadd.f32 %v12720_v55, %v16709_v5  ;;  %v16728_v47 = vld [vmem:[#allocation69_spill] sm:$0xff]  ;;  %v16729_v55 = vld [vmem:[#allocation66_spill] sm:$0xff]  ;;  %v16739_v5 = vld [vmem:[#allocation16_spill] sm:$0xff] }
 0x2b5   : > { %16718 = vst [vmem:[#allocation64_spill] sm:$0xff] %v12785_v7  ;;  %v4564_v15 = vadd.f32 %v4563_v21, %v4562_v24  ;;  %v4569_v1 = vadd.f32 %v4568_v19, %v4567_v23  ;;  %v4574_v43 = vadd.f32 %v4573_v58, %v4572_v60  ;;  %v4580_v22 = vrot.slane %v4579_v52, 4  ;;  %6184 = vmatmul.mubr.bf16.gmra.mrb[12].mxu0 %v9835_v33  ;;  %v12815_v33 = vpop.f32.mrb[164].mxu1  ;;  %v16732_v19 = vld [vmem:[#allocation14_spill] sm:$0xff] }
 0x2b6   : > { %16722 = vst [vmem:[#allocation190_spill] sm:$0xff] %v12790_v56  ;;  %v12804_v10 = vadd.f32 %v12459_v48, %v16711_v45  ;;  %v12808_v34 = vadd.f32 %v12467_v42, %v16726_v49  ;;  %v4485_v14 = vmul.f32 %v4388_v4, %v16728_v47  ;;  %v4389_v23 = vadd.f32 %v12730_v57, %v16729_v55  ;;  %v16731_v48 = vld [vmem:[#allocation70_spill] sm:$0xff]  ;;  %v4835_v57 = vpop.f32.mrb[164].mxu0  ;;  %v16735_v45 = vld [vmem:[#allocation200_spill] sm:$0xff] }
 0x2b7   : > { %6193 = vmatprep.mubr.bf16.mxu0 %v16096_v8  ;;  %v4623_v60 = vadd.f32 %v12526_v25, %v4564_v15  ;;  %v4570_v24 = vrot.slane %v4569_v1, 1  ;;  %v4575_v9 = vrot.slane %v4574_v43, 2  ;;  %v4581_v51 = vadd.f32 %v4580_v22, %v4579_v52  ;;  %16730 = vst [vmem:[#allocation236_spill] sm:$0xff] %v12815_v33  ;;  %v16734_v15 = vld [vmem:[#allocation72_spill] sm:$0xff] }
 0x2b8   : > { %16725 = vst [vmem:[#allocation192_spill] sm:$0xff] %v12804_v10  ;;  %16727 = vst [vmem:[#allocation235_spill] sm:$0xff] %v12808_v34  ;;  %v4486_v21 = vmul.f32 %v4389_v23, %v16731_v48  ;;  %v4390_v42 = vadd.f32 %v12736_v11, %v16729_v55  ;;  %v4984_v58 = vadd.f32 %v4825_v26, %v16732_v19  ;;  %v12822_v34 = vpop.f32.mrb[165].mxu1  ;;  %v4837_v23 = vpop.f32.mrb[165].mxu0  ;;  %v16738_v55 = vld [vmem:[#allocation71_spill] sm:$0xff] }
 0x2b9   : > { %v4985_v4 = vadd.f32 %v4827_v35, %v16732_v19  ;;  %16733 = vst [vmem:[#allocation237_spill] sm:$0xff] %v12822_v34  ;;  %v4653_v10 = vrot.slane %v4623_v60, 3  ;;  %v16736_v47 = vmax.f32 %v16734_v15, %v16735_v45  ;;  %v4571_v22 = vadd.f32 %v4570_v24, %v4569_v1  ;;  %v12829_v48 = vpop.f32.mrb[166].mxu1  ;;  %v9385_v19 = vld [vmem:[%s10834_s17 + $0x5] ss:$8 sm:$0x3] }
 0x2ba   : > { %v4576_v59 = vadd.f32 %v4575_v9, %v4574_v43  ;;  %v4582_v33 = vrot.slane %v4581_v51, 2  ;;  %v4586_v11 = vadd.f32 %v4486_v21, %v4484_v62  ;;  %v4487_v26 = vmul.f32 %v4390_v42, %v16738_v55  ;;  %v4839_v36 = vpop.f32.mrb[166].mxu0  ;;  %v12834_v34 = vpop.f32.mrb[167].mxu1  ;;  %v16740_v42 = vld [vmem:[#allocation122_spill] sm:$0xff]  ;;  %v16757_v55 = vld [vmem:[#allocation8_spill] sm:$0xff] }
 0x2bb   : > { %v12827_v52 = vmax.f32 %v16736_v47, %v4623_v60  ;;  %v5081_v35 = vmul.f32 %v4984_v58, %v16739_v5  ;;  %v4654_v56 = vsel %vm2168_vm4, %v4653_v10, %v4652_v13  ;;  %v4624_v45 = vadd.f32 %v12535_v40, %v4571_v22  ;;  %v4841_v43 = vpop.f32.mrb[167].mxu0  ;;  %v16741_v58 = vld [vmem:[#allocation124_spill] sm:$0xff]  ;;  %v9836_v10 = vld [vmem:[%s15657_s4 + $0x60] sm:$0xff]  }
 0x2bc   : > { %v4577_v47 = vrot.slane %v4576_v59, 1  ;;  %v5082_v1 = vmul.f32 %v4985_v4, %v16564_v46  ;;  %v4583_v60 = vadd.f32 %v4582_v33, %v4581_v51  ;;  %v4587_v24 = vrot.slane %v4586_v11, 4  ;;  %v16744_v4 = vld [vmem:[#allocation18_spill] sm:$0xff] }
 0x2bd   : > { %16737 = vst [vmem:[#allocation72_spill] sm:$0xff] %v12827_v52  ;;  %v4593_v9 = vadd.f32 %v4487_v26, %v4485_v14  ;;  %v4986_v62 = vadd.f32 %v4829_v30, %v16565_v2  ;;  %v4667_v21 = vrot.slane %v4624_v45, 3  ;;  %v16742_v15 = vmax.f32 %v16740_v42, %v16741_v58  ;;  %6194 = vmatmul.mubr.bf16.gmra.mrb[16].mxu0 %v9836_v10 }
 0x2be   : > { %v4578_v52 = vadd.f32 %v4577_v47, %v4576_v59  ;;  %v12846_v13 = vrot.slane %v9385_v19, %v16604_v53  ;;  %v4584_v51 = vrot.slane %v4583_v60, 1  ;;  %v4588_v33 = vadd.f32 %v4587_v24, %v4586_v11  ;;  %6203 = vmatprep.mubr.bf16.mxu0 %v16096_v8  ;;  %v12859_v47 = vpop.f32.mrb[168].mxu1  ;;  %v4845_v24 = vpop.f32.mrb[168].mxu0  ;;  %v16746_v53 = vld [vmem:[#allocation78_spill] sm:$0xff] }
 0x2bf   : > { %v12843_v5 = vmax.f32 %v16742_v15, %v4624_v45  ;;  %v4594_v14 = vrot.slane %v4593_v9, 4  ;;  %v5083_v30 = vmul.f32 %v4986_v62, %v16744_v4  ;;  %v4668_v22 = vsel %vm2168_vm4, %v4667_v21, %v4666_v39  ;;  %v12861_v10 = vpop.f32.mrb[169].mxu1  ;;  %v16747_v4 = vld [vmem:[#allocation203_spill] sm:$0xff] }
 0x2c0   : > { %v4625_v26 = vadd.f32 %v12526_v25, %v4578_v52  ;;  %v4987_v59 = vadd.f32 %v4831_v16, %v16565_v2  ;;  %v12857_v45 = vrot.slane %v9385_v19, %v16610_v17  ;;  %v4585_v42 = vadd.f32 %v4584_v51, %v4583_v60  ;;  %16745 = vst [vmem:[#allocation122_spill] sm:$0xff] %v12861_v10  ;;  %v16750_v52 = vld [vmem:[#allocation7_spill] sm:$0xff]  ;;  %v4847_v17 = vpop.f32.mrb[169].mxu0  ;;  %v12870_v2 = vpop.f32.mrb[170].mxu1 }
 0x2c1   : > { %16743 = vst [vmem:[#allocation200_spill] sm:$0xff] %v12843_v5  ;;  %v4589_v58 = vrot.slane %v4588_v33, 2  ;;  %v4595_v15 = vadd.f32 %v4594_v14, %v4593_v9  ;;  %v5113_v11 = vadd.f32 %v5083_v30, %v5081_v35  ;;  %v16748_v39 = vmax.f32 %v16746_v53, %v16747_v4  ;;  %16751 = vst [vmem:[#allocation78_spill] sm:$0xff] %v12870_v2  ;;  %v4849_v14 = vpop.f32.mrb[170].mxu0  ;;  %v12873_v30 = vpop.f32.mrb[171].mxu1  ;;  %v16756_v5 = vld [vmem:[#allocation21_spill] sm:$0xff] }
 0x2c2   : > { %v4655_v62 = vrot.slane %v4625_v26, 2  ;;  %v5084_v16 = vmul.f32 %v4987_v59, %v16576_v61  ;;  %v4988_v19 = vadd.f32 %v4835_v57, %v16750_v52  ;;  %v4626_v60 = vadd.f32 %v12535_v40, %v4585_v42  ;;  %16752 = vst [vmem:[#allocation203_spill] sm:$0xff] %v12873_v30  ;;  %v4851_v59 = vpop.f32.mrb[171].mxu0  ;;  %v16754_v61 = vld [vmem:[#allocation125_spill] sm:$0xff] }
 0x2c3   : > { %v12866_v21 = vmax.f32 %v16748_v39, %v4625_v26  ;;  %v4590_v9 = vadd.f32 %v4589_v58, %v4588_v33  ;;  %v4596_v35 = vrot.slane %v4595_v15, 2  ;;  %v5114_v51 = vrot.slane %v5113_v11, 4  ;;  %v16753_v39 = vld [vmem:[#allocation80_spill] sm:$0xff] }
 0x2c4   : > { %v4656_v46 = vsel %vm2171_vm5, %v4655_v62, %v4654_v56  ;;  %v5120_v53 = vadd.f32 %v5084_v16, %v5082_v1  ;;  %v5085_v4 = vmul.f32 %v4988_v19, %v16581_v3  ;;  %v4989_v26 = vadd.f32 %v4837_v23, %v16750_v52  ;;  %v9837_v1 = vld [vmem:[%s15657_s4 + $0x68] sm:$0xff]  }
 0x2c5   : > { %16749 = vst [vmem:[#allocation124_spill] sm:$0xff] %v12866_v21  ;;  %v4669_v57 = vrot.slane %v4626_v60, 2  ;;  %v16755_v21 = vmax.f32 %v16753_v39, %v16754_v61  ;;  %v4591_v33 = vrot.slane %v4590_v9, 1  ;;  %v4597_v42 = vadd.f32 %v4596_v35, %v4595_v15  ;;  %6204 = vmatmul.mubr.bf16.gmra.mrb[20].mxu0 %v9837_v1  ;;  %v16760_v39 = vld [vmem:[#allocation23_spill] sm:$0xff]  ;;  %v16767_v3 = vld [vmem:[#allocation88_spill] sm:$0xff] }
 0x2c6   : > { %v5115_v58 = vadd.f32 %v5114_v51, %v5113_v11  ;;  %v5121_v10 = vrot.slane %v5120_v53, 4  ;;  %v5086_v30 = vmul.f32 %v4989_v26, %v16756_v5  ;;  %v4990_v56 = vadd.f32 %v4839_v36, %v16757_v55  ;;  %6213 = vmatprep.mubr.bf16.mxu0 %v16096_v8  ;;  %v12893_v36 = vpop.f32.mrb[172].mxu1 }
 0x2c7   : > { %v12881_v2 = vmax.f32 %v16755_v21, %v4626_v60  ;;  %v4670_v23 = vsel %vm2171_vm5, %v4669_v57, %v4668_v22  ;;  %v4592_v62 = vadd.f32 %v4591_v33, %v4590_v9  ;;  %v4598_v16 = vrot.slane %v4597_v42, 1  ;;  %v16758_v21 = vld [vmem:[#allocation22_spill] sm:$0xff]  ;;  %v16759_v60 = vld [vmem:[#allocation12_spill] sm:$0xff]  ;;  %v4855_v9 = vpop.f32.mrb[172].mxu0  ;;  %v12898_v57 = vpop.f32.mrb[173].mxu1 }
 0x2c8   : > { %v4991_v61 = vadd.f32 %v4841_v43, %v16757_v55  ;;  %v5116_v15 = vrot.slane %v5115_v58, 2  ;;  %v5122_v11 = vadd.f32 %v5121_v10, %v5120_v53  ;;  %v5087_v19 = vmul.f32 %v4990_v56, %v16758_v21  ;;  %v4857_v53 = vpop.f32.mrb[173].mxu0  ;;  %v12901_v56 = vpop.f32.mrb[174].mxu1  ;;  %v16761_v21 = vld [vmem:[#allocation85_spill] sm:$0xff] }
 0x2c9   : > { %v4992_v35 = vadd.f32 %v4845_v24, %v16759_v60  ;;  %v4627_v51 = vadd.f32 %v12526_v25, %v4592_v62  ;;  %v4599_v26 = vadd.f32 %v4598_v16, %v4597_v42  ;;  %v4993_v22 = vadd.f32 %v4847_v17, %v16759_v60  ;;  %v16762_v55 = vld [vmem:[#allocation169_spill] sm:$0xff]  ;;  %v4859_v16 = vpop.f32.mrb[174].mxu0 }
 0x2ca   : > { %v5088_v1 = vmul.f32 %v4991_v61, %v16760_v39  ;;  %v5117_v43 = vadd.f32 %v5116_v15, %v5115_v58  ;;  %v5123_v33 = vrot.slane %v5122_v11, 2  ;;  %v5127_v5 = vadd.f32 %v5087_v19, %v5085_v4  ;;  %v12909_v61 = vpop.f32.mrb[175].mxu1  ;;  %v16765_v19 = vld [vmem:[#allocation29_spill] sm:$0xff] }
 0x2cb   : > { %v5089_v10 = vmul.f32 %v4992_v35, %v16605_v18  ;;  %v4657_v24 = vrot.slane %v4627_v51, 1  ;;  %v16763_v25 = vmax.f32 %v16761_v21, %v16762_v55  ;;  %v4628_v62 = vadd.f32 %v12535_v40, %v4599_v26  ;;  %v4861_v18 = vpop.f32.mrb[175].mxu0  ;;  %v16768_v55 = vld [vmem:[#allocation84_spill] sm:$0xff] }
 0x2cc   : > { %v5134_v17 = vadd.f32 %v5088_v1, %v5086_v30  ;;  %v5118_v58 = vrot.slane %v5117_v43, 1  ;;  %v5124_v15 = vadd.f32 %v5123_v33, %v5122_v11  ;;  %v5128_v4 = vrot.slane %v5127_v5, 4  ;;  %v9838_v11 = vld [vmem:[%s15657_s4 + $0x70] sm:$0xff]  }
 0x2cd   : > { %v12906_v42 = vmax.f32 %v16763_v25, %v4627_v51  ;;  %v5090_v35 = vmul.f32 %v4993_v22, %v16765_v19  ;;  %v12913_v60 = vsel %vm2174_vm6, %v4657_v24, %v4656_v46  ;;  %v4671_v39 = vrot.slane %v4628_v62, 1  ;;  %v16771_v25 = vld [vmem:[#allocation9_spill] sm:$0xff]  ;;  %6214 = vmatmul.mubr.bf16.gmra.mrb[24].mxu0 %v9838_v11 }
 0x2ce   : > { %16766 = vst [vmem:[#allocation80_spill] sm:$0xff] %v12913_v60  ;;  %v16769_v21 = vmax.f32 %v16767_v3, %v16768_v55  ;;  %v5135_v40 = vrot.slane %v5134_v17, 4  ;;  %v5119_v30 = vadd.f32 %v5118_v58, %v5117_v43  ;;  %v5125_v26 = vrot.slane %v5124_v15, 1  ;;  %v16773_v3 = vld [vmem:[#allocation11_spill] sm:$0xff]  ;;  %6223 = vmatprep.mubr.bf16.mxu0 %v16096_v8 }
 0x2cf   : > { %16764 = vst [vmem:[#allocation7_spill] sm:$0xff] %v12906_v42  ;;  %v5129_v1 = vadd.f32 %v5128_v4, %v5127_v5  ;;  %v4994_v42 = vadd.f32 %v4849_v14, %v16771_v25  ;;  %v12925_v46 = vsel %vm2174_vm6, %v4671_v39, %v4670_v23  ;;  %v4995_v33 = vadd.f32 %v4851_v59, %v16771_v25  ;;  %v12934_v4 = vpop.f32.mrb[176].mxu1  ;;  %v16777_v39 = vld [vmem:[#allocation33_spill] sm:$0xff] }
 0x2d0   : > { %v12918_v51 = vmax.f32 %v16769_v21, %v4628_v62  ;;  %16772 = vst [vmem:[#allocation85_spill] sm:$0xff] %v12925_v46  ;;  %v5136_v22 = vadd.f32 %v5135_v40, %v5134_v17  ;;  %v4996_v24 = vadd.f32 %v4855_v9, %v16773_v3  ;;  %v12931_v43 = vadd.f32 %v12846_v13, %v5119_v30  ;;  %v16775_v62 = vld [vmem:[#allocation30_spill] sm:$0xff]  ;;  %v16776_v21 = vld [vmem:[#allocation31_spill] sm:$0xff]  ;;  %v4865_v40 = vpop.f32.mrb[176].mxu0  ;;  %v12939_v9 = vpop.f32.mrb[177].mxu1 }
 0x2d1   : > { %v5126_v5 = vadd.f32 %v5125_v26, %v5124_v15  ;;  %v5130_v14 = vrot.slane %v5129_v1, 2  ;;  %v5091_v58 = vmul.f32 %v4994_v42, %v16775_v62  ;;  %v5092_v23 = vmul.f32 %v4995_v33, %v16776_v21  ;;  %v4867_v8 = vpop.f32.mrb[177].mxu0  ;;  %v12946_v46 = vpop.f32.mrb[178].mxu1  ;;  %v9839_v30 = vld [vmem:[%s15657_s4 + $0x78] sm:$0xff]  }
 0x2d2   : > { %16770 = vst [vmem:[#allocation125_spill] sm:$0xff] %v12918_v51  ;;  %16774 = vst [vmem:[#allocation169_spill] sm:$0xff] %v12931_v43  ;;  %v5137_v55 = vrot.slane %v5136_v22, 2  ;;  %v5093_v17 = vmul.f32 %v4996_v24, %v16777_v39  ;;  %v4997_v59 = vadd.f32 %v4857_v53, %v16773_v3  ;;  %v16780_v39 = vld [vmem:[#allocation32_spill] sm:$0xff]  ;;  %v4869_v3 = vpop.f32.mrb[178].mxu0  ;;  %v12950_v21 = vpop.f32.mrb[179].mxu1  ;;  %v5000_v19 = vadd.f32 %v4865_v40, %v16641_v44 }
 0x2d3   : > { %v12944_v15 = vadd.f32 %v12857_v45, %v5126_v5  ;;  %v5131_v26 = vadd.f32 %v5130_v14, %v5129_v1  ;;  %v5141_v42 = vadd.f32 %v5091_v58, %v5089_v10  ;;  %v5148_v33 = vadd.f32 %v5092_v23, %v5090_v35  ;;  %v4871_v10 = vpop.f32.mrb[179].mxu0  ;;  %v16782_v14 = vld [vmem:[#allocation206_spill] sm:$0xff]  ;;  %v12973_v40 = vpop.f32.mrb[180].mxu1 }
 0x2d4   : > { %v5138_v60 = vadd.f32 %v5137_v55, %v5136_v22  ;;  %v5094_v24 = vmul.f32 %v4997_v59, %v16633_v38  ;;  %v4998_v53 = vadd.f32 %v4859_v16, %v16780_v39  ;;  %v4999_v1 = vadd.f32 %v4861_v18, %v16780_v39  ;;  %v16784_v55 = vld [vmem:[#allocation35_spill] sm:$0xff]  ;;  %v16785_v38 = vld [vmem:[#allocation37_spill] sm:$0xff]  ;;  %v16787_v39 = vld [vmem:[#allocation208_spill] sm:$0xff] }
 0x2d5   : > { %16779 = vst [vmem:[#allocation88_spill] sm:$0xff] %v12944_v15  ;;  %v5132_v11 = vrot.slane %v5131_v26, 1  ;;  %v5142_v5 = vrot.slane %v5141_v42, 4  ;;  %v12957_v58 = vadd.f32 %v16782_v14, %v16726_v49  ;;  %v5149_v22 = vrot.slane %v5148_v33, 4  ;;  %6224 = vmatmul.mubr.bf16.gmra.mrb[28].mxu0 %v9839_v30  ;;  %v16786_v18 = vld [vmem:[#allocation41_spill] sm:$0xff] }
 0x2d6   : > { %v5139_v35 = vrot.slane %v5138_v60, 1  ;;  %v5095_v23 = vmul.f32 %v4998_v53, %v16784_v55  ;;  %v5096_v25 = vmul.f32 %v4999_v1, %v16785_v38  ;;  %v12967_v62 = vadd.f32 %v16787_v39, %v16786_v18  ;;  %v16798_v55 = vld [vmem:[#allocation165_spill] sm:$0xff] }
 0x2d7   : > { %16783 = vst [vmem:[#allocation84_spill] sm:$0xff] %v12957_v58  ;;  %v5133_v16 = vadd.f32 %v5132_v11, %v5131_v26  ;;  %v5143_v59 = vadd.f32 %v5142_v5, %v5141_v42  ;;  %v5150_v58 = vadd.f32 %v5149_v22, %v5148_v33  ;;  %v5097_v42 = vmul.f32 %v5000_v19, %v16647_v27 }
 0x2d8   : > { %16788 = vst [vmem:[#allocation206_spill] sm:$0xff] %v12967_v62  ;;  %v5140_v14 = vadd.f32 %v5139_v35, %v5138_v60  ;;  %v5155_v51 = vadd.f32 %v5095_v23, %v5093_v17  ;;  %v5162_v26 = vadd.f32 %v5096_v25, %v5094_v24  ;;  %v5001_v39 = vadd.f32 %v4867_v8, %v16641_v44  ;;  %v12979_v62 = vpop.f32.mrb[180].mxu0  ;;  %v12981_v60 = vpop.f32.mrb[181].mxu1  ;;  %v16794_v8 = vld [vmem:[#allocation212_spill] sm:$0xff] }
 0x2d9   : > { %v12970_v53 = vadd.f32 %v12846_v13, %v5133_v16  ;;  %v5144_v11 = vrot.slane %v5143_v59, 2  ;;  %v5151_v30 = vrot.slane %v5150_v58, 2  ;;  %v12986_v24 = vpop.f32.mrb[181].mxu0  ;;  %v12988_v35 = vpop.f32.mrb[182].mxu1 }
 0x2da   : > { %v12976_v5 = vadd.f32 %v12857_v45, %v5140_v14  ;;  %v5156_v1 = vrot.slane %v5155_v51, 4  ;;  %v5163_v19 = vrot.slane %v5162_v26, 4  ;;  %v12993_v14 = vpop.f32.mrb[182].mxu0  ;;  %v12995_v27 = vpop.f32.mrb[183].mxu1  ;;  %v5098_v44 = vmul.f32 %v5001_v39, %v16659_v54  ;;  %v16796_v39 = vld [vmem:[#allocation213_spill] sm:$0xff] }
 0x2db   : > { %16789 = vst [vmem:[#allocation208_spill] sm:$0xff] %v12970_v53  ;;  %v5270_v17 = vrot.slane %v12970_v53, 7  ;;  %v5145_v33 = vadd.f32 %v5144_v11, %v5143_v59  ;;  %v5152_v23 = vadd.f32 %v5151_v30, %v5150_v58  ;;  %v13000_v38 = vpop.f32.mrb[183].mxu0  ;;  %v16791_v53 = vld [vmem:[#allocation210_spill] sm:$0xff] }
 0x2dc   : > { %16790 = vst [vmem:[#allocation238_spill] sm:$0xff] %v12976_v5  ;;  %v5284_v22 = vrot.slane %v12976_v5, 7  ;;  %v5157_v16 = vadd.f32 %v5156_v1, %v5155_v51  ;;  %v5164_v11 = vadd.f32 %v5163_v19, %v5162_v26  ;;  %v13004_v6 = vadd.f32 %v16791_v53, %v16786_v18  ;;  %v16793_v1 = vld [vmem:[#allocation141_spill] sm:$0xff] }
 0x2dd   : > { %v5271_v25 = vsel %vm2156_vm0, %v5270_v17, %v12931_v43  ;;  %v5146_v59 = vrot.slane %v5145_v33, 1  ;;  %v5153_v58 = vrot.slane %v5152_v23, 1  ;;  %v13010_v5 = vadd.f32 %v16794_v8, %v16793_v1 }
 0x2de   : > { %16792 = vst [vmem:[#allocation210_spill] sm:$0xff] %v13004_v6  ;;  %v5285_v51 = vsel %vm2156_vm0, %v5284_v22, %v12944_v15  ;;  %v5158_v30 = vrot.slane %v5157_v16, 2  ;;  %v5165_v20 = vrot.slane %v5164_v11, 2  ;;  %v5002_v26 = vadd.f32 %v4869_v3, %v16657_v32  ;;  %v16799_v22 = vld [vmem:[#allocation214_spill] sm:$0xff] }
 0x2df   : > { %16795 = vst [vmem:[#allocation212_spill] sm:$0xff] %v13010_v5  ;;  %v5147_v17 = vadd.f32 %v5146_v59, %v5145_v33  ;;  %v13015_v19 = vadd.f32 %v16796_v39, %v16793_v1  ;;  %v5154_v54 = vadd.f32 %v5153_v58, %v5152_v23  ;;  %v5003_v6 = vadd.f32 %v4871_v10, %v16657_v32  ;;  %v16802_v33 = vld [vmem:[#allocation44_spill] sm:$0xff]  ;;  %v13026_v5 = vpop.f32.mrb[184].mxu1  ;;  %v16804_v3 = vld [vmem:[#allocation134_spill] sm:$0xff]  ;;  %v4885_v58 = vpop.f32.mrb[184].mxu0 }
 0x2e0   : > { %v5159_v53 = vadd.f32 %v5158_v30, %v5157_v16  ;;  %v13020_v15 = vadd.f32 %v16799_v22, %v16798_v55  ;;  %v5166_v8 = vadd.f32 %v5165_v20, %v5164_v11  ;;  %v5099_v59 = vmul.f32 %v5002_v26, %v16802_v33  ;;  %16803 = vst [vmem:[#allocation240_spill] sm:$0xff] %v13026_v5  ;;  %v13036_v30 = vpop.f32.mrb[185].mxu1  ;;  %v16811_v32 = vld [vmem:[#allocation178_spill] sm:$0xff]  ;;  %v16814_v20 = vld [vmem:[#allocation136_spill] sm:$0xff] }
 0x2e1   : > { %16797 = vst [vmem:[#allocation213_spill] sm:$0xff] %v13015_v19  ;;  %v13023_v43 = vadd.f32 %v12846_v13, %v5147_v17  ;;  %v13030_v39 = vadd.f32 %v16804_v3, %v16798_v55  ;;  %v13033_v23 = vadd.f32 %v12857_v45, %v5154_v54  ;;  %v5100_v16 = vmul.f32 %v5003_v6, %v16666_v37  ;;  %v13041_v19 = vpop.f32.mrb[186].mxu1 }
 0x2e2   : > { %16800 = vst [vmem:[#allocation214_spill] sm:$0xff] %v13020_v15  ;;  %v5160_v10 = vrot.slane %v5159_v53, 1  ;;  %16807 = vst [vmem:[#allocation242_spill] sm:$0xff] %v13036_v30  ;;  %v5167_v26 = vrot.slane %v5166_v8, 1  ;;  %v5169_v22 = vadd.f32 %v5099_v59, %v5097_v42  ;;  %v4887_v15 = vpop.f32.mrb[185].mxu0  ;;  %v13046_v33 = vpop.f32.mrb[187].mxu1 }
 0x2e3   : > { %16801 = vst [vmem:[#allocation239_spill] sm:$0xff] %v13023_v43  ;;  %16805 = vst [vmem:[#allocation134_spill] sm:$0xff] %v13030_v39  ;;  %v5272_v17 = vrot.slane %v13023_v43, 6  ;;  %v5286_v3 = vrot.slane %v13033_v23, 6  ;;  %v5176_v6 = vadd.f32 %v5100_v16, %v5098_v44  ;;  %v4889_v37 = vpop.f32.mrb[186].mxu0  ;;  %v16812_v30 = vld [vmem:[#allocation215_spill] sm:$0xff] }
 0x2e4   : > { %16806 = vst [vmem:[#allocation241_spill] sm:$0xff] %v13033_v23  ;;  %16809 = vst [vmem:[#allocation243_spill] sm:$0xff] %v13041_v19  ;;  %v5161_v39 = vadd.f32 %v5160_v10, %v5159_v53  ;;  %v13050_v5 = vadd.f32 %v16812_v30, %v16811_v32  ;;  %v5168_v42 = vadd.f32 %v5167_v26, %v5166_v8  ;;  %v5170_v59 = vrot.slane %v5169_v22, 4  ;;  %v4891_v43 = vpop.f32.mrb[187].mxu0  ;;  %v16817_v10 = vld [vmem:[#allocation173_spill] sm:$0xff]  ;;  %v16818_v16 = vld [vmem:[#allocation36_spill] sm:$0xff] }
 0x2e5   : > { %16810 = vst [vmem:[#allocation244_spill] sm:$0xff] %v13046_v33  ;;  %v5273_v11 = vsel %vm2159_vm1, %v5272_v17, %v5271_v25  ;;  %v13055_v19 = vadd.f32 %v16814_v20, %v16811_v32  ;;  %v5287_v54 = vsel %vm2159_vm1, %v5286_v3, %v5285_v51  ;;  %v5177_v53 = vrot.slane %v5176_v6, 4  ;;  %v16826_v3 = vld [vmem:[#allocation170_spill] sm:$0xff] }
 0x2e6   : > { %16813 = vst [vmem:[#allocation215_spill] sm:$0xff] %v13050_v5  ;;  %v13059_v44 = vadd.f32 %v12846_v13, %v5161_v39  ;;  %v13063_v23 = vadd.f32 %v16818_v16, %v16817_v10  ;;  %v13066_v30 = vadd.f32 %v12857_v45, %v5168_v42  ;;  %v5171_v25 = vadd.f32 %v5170_v59, %v5169_v22  ;;  %v13079_v59 = vpop.f32.mrb[188].mxu1 }
 0x2e7   : > { %16815 = vst [vmem:[#allocation136_spill] sm:$0xff] %v13055_v19  ;;  %v5004_v8 = vadd.f32 %v12979_v62, %v16673_v28  ;;  %v5178_v20 = vadd.f32 %v5177_v53, %v5176_v6  ;;  %v5005_v39 = vadd.f32 %v12986_v24, %v16673_v28  ;;  %16821 = vst [vmem:[#allocation247_spill] sm:$0xff] %v13079_v59  ;;  %v16822_v62 = vld [vmem:[#allocation166_spill] sm:$0xff]  ;;  %v13087_v24 = vpop.f32.mrb[188].mxu0  ;;  %v16825_v19 = vld [vmem:[#allocation181_spill] sm:$0xff] }
 0x2e8   : > { %16816 = vst [vmem:[#allocation245_spill] sm:$0xff] %v13059_v44  ;;  %16819 = vst [vmem:[#allocation36_spill] sm:$0xff] %v13063_v23  ;;  %v5274_v17 = vrot.slane %v13059_v44, 5  ;;  %v5288_v26 = vrot.slane %v13066_v30, 5  ;;  %v5172_v42 = vrot.slane %v5171_v25, 2  ;;  %v13083_v16 = vadd.f32 %v16822_v62, %v16817_v10  ;;  %v13089_v23 = vpop.f32.mrb[189].mxu1 }
 0x2e9   : > { %16820 = vst [vmem:[#allocation246_spill] sm:$0xff] %v13066_v30  ;;  %v5101_v22 = vmul.f32 %v5004_v8, %v16677_v41  ;;  %v5179_v6 = vrot.slane %v5178_v20, 2  ;;  %v5102_v53 = vmul.f32 %v5005_v39, %v16680_v50  ;;  %16824 = vst [vmem:[#allocation248_spill] sm:$0xff] %v13089_v23  ;;  %v13093_v5 = vadd.f32 %v16826_v3, %v16825_v19  ;;  %v16832_v44 = vld [vmem:[#allocation174_spill] sm:$0xff]  ;;  %v16838_v50 = vld [vmem:[#allocation221_spill] sm:$0xff] }
 0x2ea   : > { %16823 = vst [vmem:[#allocation166_spill] sm:$0xff] %v13083_v16  ;;  %v5275_v51 = vsel %vm2162_vm2, %v5274_v17, %v5273_v11  ;;  %v5289_v8 = vsel %vm2162_vm2, %v5288_v26, %v5287_v54  ;;  %v5173_v30 = vadd.f32 %v5172_v42, %v5171_v25  ;;  %v5006_v62 = vadd.f32 %v12993_v14, %v16491_v29  ;;  %v13098_v16 = vpop.f32.mrb[189].mxu0  ;;  %v13100_v11 = vpop.f32.mrb[190].mxu1  ;;  %v16829_v17 = vld [vmem:[#allocation217_spill] sm:$0xff]  ;;  %v16840_v41 = vld [vmem:[#allocation52_spill] sm:$0xff] }
 0x2eb   : > { %16827 = vst [vmem:[#allocation170_spill] sm:$0xff] %v13093_v5  ;;  %16828 = vst [vmem:[#allocation249_spill] sm:$0xff] %v13100_v11  ;;  %v13104_v39 = vadd.f32 %v16829_v17, %v16825_v19  ;;  %v13108_v12 = vadd.f32 %v16832_v44, %v16831_v63  ;;  %v5180_v3 = vadd.f32 %v5179_v6, %v5178_v20  ;;  %v13112_v25 = vpop.f32.mrb[190].mxu0  ;;  %v13114_v26 = vpop.f32.mrb[191].mxu1  ;;  %v16835_v14 = vld [vmem:[#allocation177_spill] sm:$0xff]  ;;  %v16841_v20 = vld [vmem:[#allocation223_spill] sm:$0xff] }
 0x2ec   : > { %v5007_v54 = vadd.f32 %v13000_v38, %v16491_v29  ;;  %16834 = vst [vmem:[#allocation250_spill] sm:$0xff] %v13114_v26  ;;  %v13118_v42 = vadd.f32 %v16835_v14, %v16831_v63  ;;  %v16837_v5 = vld [vmem:[#allocation185_spill] sm:$0xff]  ;;  %v5103_v44 = vmul.f32 %v5006_v62, %v16840_v41  ;;  %v5008_v28 = vadd.f32 %v4885_v58, %v16843_v31  ;;  %v16844_v14 = vld [vmem:[#allocation186_spill] sm:$0xff] }
 0x2ed   : > { %16830 = vst [vmem:[#allocation217_spill] sm:$0xff] %v13104_v39  ;;  %16833 = vst [vmem:[#allocation174_spill] sm:$0xff] %v13108_v12  ;;  %v13122_v17 = vadd.f32 %v16838_v50, %v16837_v5  ;;  %v5174_v39 = vrot.slane %v5173_v30, 1  ;;  %v13125_v12 = vpop.f32.mrb[191].mxu0  ;;  %v13129_v38 = vadd.f32 %v16841_v20, %v16837_v5  ;;  %v5181_v6 = vrot.slane %v5180_v3, 1  ;;  %v16847_v62 = vld [vmem:[#allocation182_spill] sm:$0xff] }
 0x2ee   : > { %16836 = vst [vmem:[#allocation177_spill] sm:$0xff] %v13118_v42  ;;  %v5104_v29 = vmul.f32 %v5007_v54, %v16693_v0  ;;  %v16845_v42 = vld [vmem:[#allocation226_spill] sm:$0xff]  ;;  %v5009_v11 = vadd.f32 %v4887_v15, %v16843_v31  ;;  %v13140_v41 = vadd.f32 %v16847_v62, %v16844_v14  ;;  %v16851_v0 = vld [vmem:[#allocation59_spill] sm:$0xff] }
 0x2ef   : > { %16839 = vst [vmem:[#allocation221_spill] sm:$0xff] %v13122_v17  ;;  %16842 = vst [vmem:[#allocation223_spill] sm:$0xff] %v13129_v38  ;;  %v13135_v26 = vadd.f32 %v16845_v42, %v16844_v14  ;;  %v5175_v50 = vadd.f32 %v5174_v39, %v5173_v30  ;;  %v5183_v17 = vadd.f32 %v5103_v44, %v5101_v22  ;;  %v16849_v38 = vld [vmem:[#allocation58_spill] sm:$0xff]  ;;  %v16852_v42 = vld [vmem:[#allocation49_spill] sm:$0xff]  ;;  %v13148_v30 = vpop.f32.mrb[192].mxu1 }
 0x2f0   : > { %16848 = vst [vmem:[#allocation182_spill] sm:$0xff] %v13140_v41  ;;  %v5182_v23 = vadd.f32 %v5181_v6, %v5180_v3  ;;  %v5190_v20 = vadd.f32 %v5104_v29, %v5102_v53  ;;  %v5105_v59 = vmul.f32 %v5008_v28, %v16849_v38  ;;  %v5106_v33 = vmul.f32 %v5009_v11, %v16851_v0  ;;  %v16853_v22 = vld [vmem:[#allocation189_spill] sm:$0xff]  ;;  %v16854_v15 = vld [vmem:[#allocation227_spill] sm:$0xff]  ;;  %v13158_v53 = vpop.f32.mrb[192].mxu0  ;;  %v13160_v3 = vpop.f32.mrb[193].mxu1  ;;  %v16861_v0 = vld [vmem:[#allocation62_spill] sm:$0xff] }
 0x2f1   : > { %16846 = vst [vmem:[#allocation226_spill] sm:$0xff] %v13135_v26  ;;  %v13144_v54 = vadd.f32 %v12846_v13, %v5175_v50  ;;  %v5184_v58 = vrot.slane %v5183_v17, 4  ;;  %v5010_v26 = vadd.f32 %v4889_v37, %v16852_v42  ;;  %v13152_v39 = vadd.f32 %v16854_v15, %v16853_v22  ;;  %16857 = vst [vmem:[#allocation253_spill] sm:$0xff] %v13158_v53  ;;  %v16858_v50 = vld [vmem:[#allocation60_spill] sm:$0xff]  ;;  %v13166_v15 = vpop.f32.mrb[193].mxu0 }
 0x2f2   : > { %v13155_v44 = vadd.f32 %v12857_v45, %v5182_v23  ;;  %v5191_v29 = vrot.slane %v5190_v20, 4  ;;  %v5011_v28 = vadd.f32 %v4891_v43, %v16852_v42  ;;  %16859 = vst [vmem:[#allocation254_spill] sm:$0xff] %v13166_v15  ;;  %v13174_v31 = vpop.f32.mrb[194].mxu0  ;;  %v16867_v15 = vld [vmem:[#allocation231_spill] sm:$0xff] }
 0x2f3   : > { %16850 = vst [vmem:[#allocation251_spill] sm:$0xff] %v13144_v54  ;;  %16855 = vst [vmem:[#allocation227_spill] sm:$0xff] %v13152_v39  ;;  %v5276_v11 = vrot.slane %v13144_v54, 4  ;;  %v5185_v6 = vadd.f32 %v5184_v58, %v5183_v17  ;;  %v5107_v62 = vmul.f32 %v5010_v26, %v16858_v50  ;;  %v13168_v39 = vpop.f32.mrb[194].mxu1  ;;  %v16863_v17 = vld [vmem:[#allocation229_spill] sm:$0xff]  ;;  %v13183_v7 = vpop.f32.mrb[195].mxu0 }
 0x2f4   : > { %16856 = vst [vmem:[#allocation252_spill] sm:$0xff] %v13155_v44  ;;  %v5290_v23 = vrot.slane %v13155_v44, 4  ;;  %v5192_v42 = vadd.f32 %v5191_v29, %v5190_v20  ;;  %v5108_v38 = vmul.f32 %v5011_v28, %v16861_v0  ;;  %16862 = vst [vmem:[#allocation255_spill] sm:$0xff] %v13174_v31  ;;  %v13176_v53 = vpop.f32.mrb[195].mxu1  ;;  %v13180_v58 = vadd.f32 %v16863_v17, %v16853_v22  ;;  %v16866_v50 = vld [vmem:[#allocation123_spill] sm:$0xff]  ;;  %v16869_v44 = vld [vmem:[#allocation232_spill] sm:$0xff] }
 0x2f5   : > { %v5277_v26 = vsel %vm2165_vm3, %v5276_v11, %v5275_v51  ;;  %v5186_v37 = vrot.slane %v5185_v6, 2  ;;  %v5197_v54 = vadd.f32 %v5107_v62, %v5105_v59  ;;  %16865 = vst [vmem:[#allocation256_spill] sm:$0xff] %v13183_v7  ;;  %v13187_v41 = vadd.f32 %v16867_v15, %v16866_v50  ;;  %v16871_v17 = vld [vmem:[#allocation127_spill] sm:$0xff]  ;;  %v16876_v7 = vld [vmem:[#allocation65_spill] sm:$0xff] }
 0x2f6   : > { %16864 = vst [vmem:[#allocation229_spill] sm:$0xff] %v13180_v58  ;;  %v5291_v20 = vsel %vm2165_vm3, %v5290_v23, %v5289_v8  ;;  %v5193_v29 = vrot.slane %v5192_v42, 2  ;;  %v5204_v28 = vadd.f32 %v5108_v38, %v5106_v33  ;;  %v13192_v43 = vadd.f32 %v16869_v44, %v16866_v50  ;;  %v16872_v58 = vld [vmem:[#allocation234_spill] sm:$0xff]  ;;  %v16874_v11 = vld [vmem:[#allocation67_spill] sm:$0xff]  ;;  %v16877_v33 = vld [vmem:[#allocation128_spill] sm:$0xff] }
 0x2f7   : > { %16868 = vst [vmem:[#allocation231_spill] sm:$0xff] %v13187_v41  ;;  %v13196_v0 = vadd.f32 %v16872_v58, %v16871_v17  ;;  %v5187_v51 = vadd.f32 %v5186_v37, %v5185_v6  ;;  %v5198_v59 = vrot.slane %v5197_v54, 4  ;;  %v13200_v62 = vadd.f32 %v16874_v11, %v16871_v17  ;;  %v16878_v38 = vld [vmem:[#allocation236_spill] sm:$0xff]  ;;  %v13210_v37 = vpop.f32.mrb[196].mxu1  ;;  %v16880_v6 = vld [vmem:[#allocation237_spill] sm:$0xff]  ;;  %v16884_v17 = vld [vmem:[#allocation66_spill] sm:$0xff] }
 0x2f8   : > { %16870 = vst [vmem:[#allocation232_spill] sm:$0xff] %v13192_v43  ;;  %v5194_v15 = vadd.f32 %v5193_v29, %v5192_v42  ;;  %v5205_v41 = vrot.slane %v5204_v28, 4  ;;  %v5012_v8 = vadd.f32 %v13087_v24, %v16876_v7  ;;  %v13206_v23 = vadd.f32 %v16878_v38, %v16877_v33  ;;  %v13217_v24 = vpop.f32.mrb[196].mxu0  ;;  %v13219_v31 = vpop.f32.mrb[197].mxu1 }
 0x2f9   : > { %16873 = vst [vmem:[#allocation234_spill] sm:$0xff] %v13196_v0  ;;  %16875 = vst [vmem:[#allocation67_spill] sm:$0xff] %v13200_v62  ;;  %v5188_v44 = vrot.slane %v5187_v51, 1  ;;  %v5199_v43 = vadd.f32 %v5198_v59, %v5197_v54  ;;  %v5013_v58 = vadd.f32 %v13098_v16, %v16876_v7  ;;  %v13214_v11 = vadd.f32 %v16880_v6, %v16877_v33  ;;  %v16882_v62 = vld [vmem:[#allocation68_spill] sm:$0xff]  ;;  %v16883_v54 = vld [vmem:[#allocation69_spill] sm:$0xff]  ;;  %v13224_v7 = vpop.f32.mrb[197].mxu0 }
 0x2fa   : > { %16879 = vst [vmem:[#allocation236_spill] sm:$0xff] %v13206_v23  ;;  %v5195_v42 = vrot.slane %v5194_v15, 1  ;;  %v5206_v29 = vadd.f32 %v5205_v41, %v5204_v28  ;;  %v5109_v0 = vmul.f32 %v5012_v8, %v16882_v62  ;;  %v5014_v16 = vadd.f32 %v13112_v25, %v16884_v17  ;;  %16885 = vst [vmem:[#allocation257_spill] sm:$0xff] %v13224_v7  ;;  %v13226_v50 = vpop.f32.mrb[198].mxu1  ;;  %v16886_v6 = vld [vmem:[#allocation129_spill] sm:$0xff]  ;;  %v16891_v62 = vld [vmem:[#allocation70_spill] sm:$0xff] }
 0x2fb   : > { %16881 = vst [vmem:[#allocation237_spill] sm:$0xff] %v13214_v11  ;;  %v5189_v38 = vadd.f32 %v5188_v44, %v5187_v51  ;;  %v5200_v23 = vrot.slane %v5199_v43, 2  ;;  %v5110_v59 = vmul.f32 %v5013_v58, %v16883_v54  ;;  %v13230_v41 = vadd.f32 %v12829_v48, %v16886_v6  ;;  %v13234_v51 = vpop.f32.mrb[198].mxu0  ;;  %v13236_v44 = vpop.f32.mrb[199].mxu1 }
 0x2fc   : > { %v5196_v28 = vadd.f32 %v5195_v42, %v5194_v15  ;;  %v5207_v8 = vrot.slane %v5206_v29, 2  ;;  %v5015_v11 = vadd.f32 %v13125_v12, %v16884_v17  ;;  %16888 = vst [vmem:[#allocation259_spill] sm:$0xff] %v13234_v51  ;;  %v13240_v25 = vadd.f32 %v12834_v34, %v16886_v6  ;;  %v16893_v15 = vld [vmem:[#allocation83_spill] sm:$0xff] }
 0x2fd   : > { %16887 = vst [vmem:[#allocation258_spill] sm:$0xff] %v13230_v41  ;;  %v13243_v58 = vadd.f32 %v12846_v13, %v5189_v38  ;;  %v5201_v54 = vadd.f32 %v5200_v23, %v5199_v43  ;;  %v5111_v48 = vmul.f32 %v5014_v16, %v16891_v62  ;;  %v13246_v41 = vpop.f32.mrb[199].mxu0  ;;  %v13250_v42 = vadd.f32 %v12859_v47, %v16893_v15  ;;  %v16896_v51 = vld [vmem:[#allocation71_spill] sm:$0xff] }
 0x2fe   : > { %16889 = vst [vmem:[#allocation260_spill] sm:$0xff] %v13240_v25  ;;  %16892 = vst [vmem:[#allocation262_spill] sm:$0xff] %v13246_v41  ;;  %v13253_v12 = vadd.f32 %v12857_v45, %v5196_v28  ;;  %v5208_v17 = vadd.f32 %v5207_v8, %v5206_v29  ;;  %v5112_v7 = vmul.f32 %v5015_v11, %v16896_v51  ;;  %v16899_v28 = vld [vmem:[#allocation122_spill] sm:$0xff]  ;;  %v13267_v51 = vpop.f32.mrb[200].mxu1 }
 0x2ff   : > { %16890 = vst [vmem:[#allocation261_spill] sm:$0xff] %v13243_v58  ;;  %16894 = vst [vmem:[#allocation263_spill] sm:$0xff] %v13250_v42  ;;  %v5278_v34 = vrot.slane %v13243_v58, 3  ;;  %v5202_v43 = vrot.slane %v5201_v54, 1  ;;  %v5211_v23 = vadd.f32 %v5111_v48, %v5109_v0  ;;  %v13264_v6 = vadd.f32 %v16899_v28, %v16893_v15  ;;  %v16901_v25 = vld [vmem:[#allocation78_spill] sm:$0xff] }
 0x300   : > { %16895 = vst [vmem:[#allocation264_spill] sm:$0xff] %v13253_v12  ;;  %v5292_v16 = vrot.slane %v13253_v12, 3  ;;  %v5209_v47 = vrot.slane %v5208_v17, 1  ;;  %v5218_v42 = vadd.f32 %v5112_v7, %v5110_v59  ;;  %v13271_v0 = vadd.f32 %v16901_v25, %v16726_v49  ;;  %v13274_v12 = vpop.f32.mrb[200].mxu0  ;;  %v13276_v7 = vpop.f32.mrb[201].mxu1  ;;  %v16903_v59 = vld [vmem:[#allocation203_spill] sm:$0xff] }
 0x301   : > { %16900 = vst [vmem:[#allocation122_spill] sm:$0xff] %v13264_v6  ;;  %v5279_v11 = vsel %vm2168_vm4, %v5278_v34, %v5277_v26  ;;  %v5203_v29 = vadd.f32 %v5202_v43, %v5201_v54  ;;  %v5212_v8 = vrot.slane %v5211_v23, 4  ;;  %v13280_v28 = vadd.f32 %v16903_v59, %v16726_v49  ;;  %v16906_v34 = vld [vmem:[#allocation14_spill] sm:$0xff]  ;;  %v13287_v43 = vpop.f32.mrb[201].mxu0  ;;  %v16910_v6 = vld [vmem:[#allocation16_spill] sm:$0xff] }
 0x302   : > { %16902 = vst [vmem:[#allocation78_spill] sm:$0xff] %v13271_v0  ;;  %v5293_v48 = vsel %vm2168_vm4, %v5292_v16, %v5291_v20  ;;  %v5210_v58 = vadd.f32 %v5209_v47, %v5208_v17  ;;  %v5219_v41 = vrot.slane %v5218_v42, 4  ;;  %v5609_v25 = vadd.f32 %v13148_v30, %v16906_v34  ;;  %v13289_v20 = vpop.f32.mrb[202].mxu1  ;;  %v13300_v59 = vpop.f32.mrb[202].mxu0 }
 0x303   : > { %16904 = vst [vmem:[#allocation203_spill] sm:$0xff] %v13280_v28  ;;  %v13283_v26 = vadd.f32 %v12846_v13, %v5203_v29  ;;  %v5213_v54 = vadd.f32 %v5212_v8, %v5211_v23  ;;  %v13293_v17 = vadd.f32 %v12893_v36, %v16786_v18  ;;  %v5610_v29 = vadd.f32 %v13160_v3, %v16906_v34  ;;  %v13302_v23 = vpop.f32.mrb[203].mxu1  ;;  %v16909_v8 = vld [vmem:[#allocation124_spill] sm:$0xff] }
 0x304   : > { %v13296_v16 = vadd.f32 %v12857_v45, %v5210_v58  ;;  %v5220_v47 = vadd.f32 %v5219_v41, %v5218_v42  ;;  %v5706_v36 = vmul.f32 %v5609_v25, %v16910_v6  ;;  %v16912_v42 = vld [vmem:[#allocation17_spill] sm:$0xff]  ;;  %v13316_v34 = vadd.f32 %v12898_v57, %v16786_v18 }
 0x305   : > { %16905 = vst [vmem:[#allocation265_spill] sm:$0xff] %v13283_v26  ;;  %16907 = vst [vmem:[#allocation266_spill] sm:$0xff] %v13293_v17  ;;  %v5280_v30 = vrot.slane %v13283_v26, 2  ;;  %v5214_v0 = vrot.slane %v5213_v54, 2  ;;  %v13308_v17 = vpop.f32.mrb[203].mxu0  ;;  %v5707_v62 = vmul.f32 %v5610_v29, %v16912_v42  ;;  %v16914_v26 = vld [vmem:[#allocation10_spill] sm:$0xff]  ;;  %v13327_v41 = vadd.f32 %v12909_v61, %v16793_v1 }
 0x306   : > { %16908 = vst [vmem:[#allocation267_spill] sm:$0xff] %v13296_v16  ;;  %16911 = vst [vmem:[#allocation124_spill] sm:$0xff] %v13308_v17  ;;  %v5294_v58 = vrot.slane %v13296_v16, 2  ;;  %v5221_v3 = vrot.slane %v5220_v47, 2  ;;  %v5611_v25 = vadd.f32 %v13168_v39, %v16914_v26  ;;  %v13323_v17 = vadd.f32 %v12901_v56, %v16793_v1 }
 0x307   : > { %16913 = vst [vmem:[#allocation16_spill] sm:$0xff] %v13316_v34  ;;  %v5281_v38 = vsel %vm2171_vm5, %v5280_v30, %v5279_v11  ;;  %v5215_v28 = vadd.f32 %v5214_v0, %v5213_v54  ;;  %16916 = vst [vmem:[#allocation10_spill] sm:$0xff] %v13327_v41  ;;  %v13332_v57 = vadd.f32 %v12934_v4, %v16798_v55  ;;  %v16918_v0 = vld [vmem:[#allocation18_spill] sm:$0xff]  ;;  %v13337_v30 = vpop.f32.mrb[204].mxu1  ;;  %v16926_v34 = vld [vmem:[#allocation8_spill] sm:$0xff] }
 0x308   : > { %16915 = vst [vmem:[#allocation17_spill] sm:$0xff] %v13323_v17  ;;  %v5295_v29 = vsel %vm2171_vm5, %v5294_v58, %v5293_v48  ;;  %v5222_v16 = vadd.f32 %v5221_v3, %v5220_v47  ;;  %v5708_v54 = vmul.f32 %v5611_v25, %v16918_v0  ;;  %v5612_v39 = vadd.f32 %v13176_v53, %v16914_v26  ;;  %v13349_v47 = vpop.f32.mrb[204].mxu0  ;;  %v13351_v58 = vpop.f32.mrb[205].mxu1  ;;  %v16922_v25 = vld [vmem:[#allocation19_spill] sm:$0xff] }
 0x309   : > { %16917 = vst [vmem:[#allocation268_spill] sm:$0xff] %v13332_v57  ;;  %v5216_v11 = vrot.slane %v5215_v28, 1  ;;  %v13341_v56 = vadd.f32 %v12939_v9, %v16798_v55  ;;  %v13345_v61 = vadd.f32 %v12946_v46, %v16811_v32  ;;  %v5613_v4 = vadd.f32 %v13210_v37, %v16750_v52  ;;  %16921 = vst [vmem:[#allocation270_spill] sm:$0xff] %v13349_v47  ;;  %v13358_v41 = vpop.f32.mrb[206].mxu1  ;;  %v16929_v55 = vld [vmem:[#allocation21_spill] sm:$0xff] }
 0x30a   : > { %v5223_v48 = vrot.slane %v5222_v16, 1  ;;  %v5738_v53 = vadd.f32 %v5708_v54, %v5706_v36  ;;  %v5709_v57 = vmul.f32 %v5612_v39, %v16922_v25  ;;  %v5614_v9 = vadd.f32 %v13219_v31, %v16750_v52 }
 0x30b   : > { %16919 = vst [vmem:[#allocation18_spill] sm:$0xff] %v13341_v56  ;;  %16920 = vst [vmem:[#allocation269_spill] sm:$0xff] %v13345_v61  ;;  %v5217_v3 = vadd.f32 %v5216_v11, %v5215_v28  ;;  %v13356_v56 = vpop.f32.mrb[205].mxu0  ;;  %v13362_v46 = vadd.f32 %v12950_v21, %v16811_v32  ;;  %v16925_v61 = vld [vmem:[#allocation20_spill] sm:$0xff]  ;;  %v5615_v28 = vadd.f32 %v13226_v50, %v16926_v34  ;;  %v13369_v11 = vpop.f32.mrb[207].mxu1 }
 0x30c   : > { %16923 = vst [vmem:[#allocation19_spill] sm:$0xff] %v13356_v56  ;;  %v5224_v37 = vadd.f32 %v5223_v48, %v5222_v16  ;;  %v5710_v17 = vmul.f32 %v5613_v4, %v16925_v61  ;;  %v13367_v36 = vpop.f32.mrb[206].mxu0  ;;  %v5739_v54 = vrot.slane %v5738_v53, 4  ;;  %v5745_v39 = vadd.f32 %v5709_v57, %v5707_v62  ;;  %v16933_v16 = vld [vmem:[#allocation22_spill] sm:$0xff] }
 0x30d   : > { %16924 = vst [vmem:[#allocation271_spill] sm:$0xff] %v13362_v46  ;;  %16927 = vst [vmem:[#allocation20_spill] sm:$0xff] %v13367_v36  ;;  %v13372_v31 = vadd.f32 %v12846_v13, %v5217_v3  ;;  %v5711_v1 = vmul.f32 %v5614_v9, %v16929_v55  ;;  %v13375_v56 = vpop.f32.mrb[207].mxu0  ;;  %v13379_v21 = vadd.f32 %v12973_v40, %v16817_v10  ;;  %v9418_v36 = vld [vmem:[%s10834_s17 + $0x6] ss:$8 sm:$0x3] }
 0x30e   : > { %16930 = vst [vmem:[#allocation21_spill] sm:$0xff] %v13375_v56  ;;  %v13382_v50 = vadd.f32 %v12857_v45, %v5224_v37  ;;  %v5712_v48 = vmul.f32 %v5615_v28, %v16933_v16  ;;  %v5616_v13 = vadd.f32 %v13236_v44, %v16926_v34  ;;  %v5740_v3 = vadd.f32 %v5739_v54, %v5738_v53  ;;  %v16936_v45 = vld [vmem:[#allocation23_spill] sm:$0xff]  ;;  %v13402_v53 = vpop.f32.mrb[208].mxu1 }
 0x30f   : > { %16928 = vst [vmem:[#allocation8_spill] sm:$0xff] %v13372_v31  ;;  %16931 = vst [vmem:[#allocation272_spill] sm:$0xff] %v13379_v21  ;;  %v5282_v4 = vrot.slane %v13372_v31, 1  ;;  %v5746_v9 = vrot.slane %v5745_v39, 4  ;;  %v13396_v28 = vadd.f32 %v12981_v60, %v16817_v10  ;;  %v13411_v60 = vpop.f32.mrb[209].mxu1  ;;  %v16951_v31 = vld [vmem:[#allocation28_spill] sm:$0xff] }
 0x310   : > { %16932 = vst [vmem:[#allocation273_spill] sm:$0xff] %v13382_v50  ;;  %v5296_v46 = vrot.slane %v13382_v50, 1  ;;  %v5752_v32 = vadd.f32 %v5712_v48, %v5710_v17  ;;  %v5713_v37 = vmul.f32 %v5616_v13, %v16936_v45  ;;  %v5741_v56 = vrot.slane %v5740_v3, 2  ;;  %v16940_v17 = vld [vmem:[#allocation12_spill] sm:$0xff]  ;;  %v13409_v13 = vpop.f32.mrb[208].mxu0 }
 0x311   : > { %16937 = vst [vmem:[#allocation22_spill] sm:$0xff] %v13396_v28  ;;  %v13399_v44 = vsel %vm2174_vm6, %v5282_v4, %v5281_v38  ;;  %v5747_v57 = vadd.f32 %v5746_v9, %v5745_v39  ;;  %v5617_v48 = vadd.f32 %v13267_v51, %v16940_v17  ;;  %16941 = vst [vmem:[#allocation12_spill] sm:$0xff] %v13409_v13 }
 0x312   : > { %16938 = vst [vmem:[#allocation23_spill] sm:$0xff] %v13399_v44  ;;  %v13405_v54 = vsel %vm2174_vm6, %v5296_v46, %v5295_v29  ;;  %v5753_v47 = vrot.slane %v5752_v32, 4  ;;  %v5759_v21 = vadd.f32 %v5713_v37, %v5711_v1  ;;  %v13415_v38 = vadd.f32 %v12988_v35, %v16825_v19  ;;  %v13419_v29 = vpop.f32.mrb[209].mxu0  ;;  %v13421_v46 = vpop.f32.mrb[210].mxu1  ;;  %v16944_v1 = vld [vmem:[#allocation26_spill] sm:$0xff] }
 0x313   : > { %16939 = vst [vmem:[#allocation274_spill] sm:$0xff] %v13405_v54  ;;  %v5742_v4 = vadd.f32 %v5741_v56, %v5740_v3  ;;  %v5748_v39 = vrot.slane %v5747_v57, 2  ;;  %v5618_v9 = vadd.f32 %v13276_v7, %v16940_v17  ;;  %16943 = vst [vmem:[#allocation276_spill] sm:$0xff] %v13419_v29  ;;  %v13424_v37 = vrot.slane %v9418_v36, %v16944_v1  ;;  %v16945_v54 = vld [vmem:[#allocation27_spill] sm:$0xff]  ;;  %v13427_v10 = vpop.f32.mrb[210].mxu0  ;;  %v13429_v35 = vpop.f32.mrb[211].mxu1 }
 0x314   : > { %16942 = vst [vmem:[#allocation275_spill] sm:$0xff] %v13415_v38  ;;  %v5754_v51 = vadd.f32 %v5753_v47, %v5752_v32  ;;  %v5760_v28 = vrot.slane %v5759_v21, 4  ;;  %v5714_v44 = vmul.f32 %v5617_v48, %v16945_v54  ;;  %16946 = vst [vmem:[#allocation26_spill] sm:$0xff] %v13427_v10  ;;  %v16947_v38 = vld [vmem:[#allocation29_spill] sm:$0xff]  ;;  %v13434_v18 = vpop.f32.mrb[211].mxu0  ;;  %v13438_v50 = vadd.f32 %v12995_v27, %v16825_v19  ;;  %v16954_v54 = vld [vmem:[#allocation11_spill] sm:$0xff] }
 0x315   : > { %v5743_v56 = vrot.slane %v5742_v4, 1  ;;  %v5749_v3 = vadd.f32 %v5748_v39, %v5747_v57  ;;  %v5715_v13 = vmul.f32 %v5618_v9, %v16947_v38  ;;  %v16948_v7 = vld [vmem:[#allocation9_spill] sm:$0xff]  ;;  %16949 = vst [vmem:[#allocation277_spill] sm:$0xff] %v13434_v18  ;;  %v13443_v57 = vrot.slane %v9418_v36, %v16951_v31  ;;  %v16952_v39 = vld [vmem:[#allocation30_spill] sm:$0xff]  ;;  %v16953_v38 = vld [vmem:[#allocation31_spill] sm:$0xff] }
 0x316   : > { %v5619_v29 = vadd.f32 %v13289_v20, %v16948_v7  ;;  %16950 = vst [vmem:[#allocation278_spill] sm:$0xff] %v13438_v50  ;;  %v5755_v32 = vrot.slane %v5754_v51, 2  ;;  %v5761_v47 = vadd.f32 %v5760_v28, %v5759_v21  ;;  %v5620_v48 = vadd.f32 %v13302_v23, %v16948_v7  ;;  %v16955_v50 = vld [vmem:[#allocation240_spill] sm:$0xff] }
 0x317   : > { %v5744_v10 = vadd.f32 %v5743_v56, %v5742_v4  ;;  %v5750_v40 = vrot.slane %v5749_v3, 1  ;;  %v5621_v27 = vadd.f32 %v13337_v30, %v16954_v54  ;;  %v13451_v21 = vadd.f32 %v16955_v50, %v16831_v63  ;;  %v13454_v56 = vpop.f32.mrb[212].mxu1  ;;  %v16959_v30 = vld [vmem:[#allocation39_spill] sm:$0xff] }
 0x318   : > { %v5716_v9 = vmul.f32 %v5619_v29, %v16952_v39  ;;  %v5756_v62 = vadd.f32 %v5755_v32, %v5754_v51  ;;  %v5762_v20 = vrot.slane %v5761_v47, 2  ;;  %v5717_v18 = vmul.f32 %v5620_v48, %v16953_v38  ;;  %v16957_v51 = vld [vmem:[#allocation33_spill] sm:$0xff]  ;;  %v13457_v39 = vpop.f32.mrb[212].mxu0  ;;  %v13459_v48 = vpop.f32.mrb[213].mxu1 }
 0x319   : > { %16956 = vst [vmem:[#allocation240_spill] sm:$0xff] %v13451_v21  ;;  %v5863_v23 = vadd.f32 %v13424_v37, %v5744_v10  ;;  %v5751_v28 = vadd.f32 %v5750_v40, %v5749_v3  ;;  %v5718_v32 = vmul.f32 %v5621_v27, %v16957_v51  ;;  %16958 = vst [vmem:[#allocation279_spill] sm:$0xff] %v13457_v39  ;;  %v16960_v38 = vld [vmem:[#allocation169_spill] sm:$0xff]  ;;  %v13469_v3 = vpop.f32.mrb[213].mxu0  ;;  %v16972_v51 = vld [vmem:[#allocation32_spill] sm:$0xff] }
 0x31a   : > { %v5766_v4 = vadd.f32 %v5716_v9, %v5714_v44  ;;  %v5757_v36 = vrot.slane %v5756_v62, 1  ;;  %v5763_v19 = vadd.f32 %v5762_v20, %v5761_v47  ;;  %v5773_v29 = vadd.f32 %v5717_v18, %v5715_v13  ;;  %16963 = vst [vmem:[#allocation169_spill] sm:$0xff] %v13469_v3  ;;  %v13471_v18 = vpop.f32.mrb[214].mxu1  ;;  %v16964_v13 = vld [vmem:[#allocation242_spill] sm:$0xff] }
 0x31b   : > { %v16961_v7 = vmax.f32 %v16959_v30, %v16960_v38  ;;  %v5864_v10 = vadd.f32 %v13443_v57, %v5751_v28  ;;  %v5622_v44 = vadd.f32 %v13351_v58, %v16954_v54  ;;  %v13475_v47 = vadd.f32 %v16964_v13, %v16831_v63  ;;  %v13477_v38 = vpop.f32.mrb[214].mxu0  ;;  %v16967_v28 = vld [vmem:[#allocation87_spill] sm:$0xff]  ;;  %v16968_v30 = vld [vmem:[#allocation88_spill] sm:$0xff]  ;;  %v16971_v3 = vld [vmem:[#allocation34_spill] sm:$0xff] }
 0x31c   : > { %v5767_v40 = vrot.slane %v5766_v4, 4  ;;  %v5758_v9 = vadd.f32 %v5757_v36, %v5756_v62  ;;  %v5764_v20 = vrot.slane %v5763_v19, 1  ;;  %v5774_v27 = vrot.slane %v5773_v29, 4  ;;  %16966 = vst [vmem:[#allocation280_spill] sm:$0xff] %v13477_v38  ;;  %v13489_v13 = vpop.f32.mrb[215].mxu0  ;;  %v16974_v62 = vld [vmem:[#allocation243_spill] sm:$0xff] }
 0x31d   : > { %v13464_v50 = vmax.f32 %v16961_v7, %v5863_v23  ;;  %16965 = vst [vmem:[#allocation242_spill] sm:$0xff] %v13475_v47  ;;  %v13479_v7 = vpop.f32.mrb[215].mxu1  ;;  %v16969_v21 = vmax.f32 %v16967_v28, %v16968_v30  ;;  %v5623_v54 = vadd.f32 %v13358_v41, %v16972_v51  ;;  %16973 = vst [vmem:[#allocation88_spill] sm:$0xff] %v13489_v13  ;;  %v16976_v28 = vld [vmem:[#allocation244_spill] sm:$0xff]  ;;  %v16979_v13 = vld [vmem:[#allocation171_spill] sm:$0xff] }
 0x31e   : > { %v5768_v58 = vadd.f32 %v5767_v40, %v5766_v4  ;;  %v13493_v36 = vadd.f32 %v16974_v62, %v16837_v5  ;;  %v5865_v47 = vadd.f32 %v13424_v37, %v5758_v9  ;;  %v5765_v63 = vadd.f32 %v5764_v20, %v5763_v19  ;;  %v16978_v40 = vld [vmem:[#allocation35_spill] sm:$0xff] }
 0x31f   : > { %16962 = vst [vmem:[#allocation39_spill] sm:$0xff] %v13464_v50  ;;  %v13484_v39 = vmax.f32 %v16969_v21, %v5864_v10  ;;  %v5719_v50 = vmul.f32 %v5622_v44, %v16971_v3  ;;  %v5775_v38 = vadd.f32 %v5774_v27, %v5773_v29  ;;  %v13498_v21 = vadd.f32 %v16976_v28, %v16837_v5  ;;  %v16983_v27 = vld [vmem:[#allocation37_spill] sm:$0xff] }
 0x320   : > { %16975 = vst [vmem:[#allocation243_spill] sm:$0xff] %v13493_v36  ;;  %v5769_v4 = vrot.slane %v5768_v58, 2  ;;  %v5720_v44 = vmul.f32 %v5623_v54, %v16978_v40  ;;  %v5624_v41 = vadd.f32 %v13369_v11, %v16972_v51  ;;  %v5895_v30 = vrot.slane %v5865_v47, 7  ;;  %v13512_v54 = vpop.f32.mrb[216].mxu1  ;;  %v16985_v40 = vld [vmem:[#allocation38_spill] sm:$0xff] }
 0x321   : > { %16970 = vst [vmem:[#allocation87_spill] sm:$0xff] %v13484_v39  ;;  %16977 = vst [vmem:[#allocation244_spill] sm:$0xff] %v13498_v21  ;;  %v16980_v39 = vld [vmem:[#allocation208_spill] sm:$0xff]  ;;  %v5866_v9 = vadd.f32 %v13443_v57, %v5765_v63  ;;  %v5776_v19 = vrot.slane %v5775_v38, 2  ;;  %v16984_v21 = vld [vmem:[#allocation13_spill] sm:$0xff]  ;;  %v13520_v63 = vpop.f32.mrb[216].mxu0 }
 0x322   : > { %v16981_v3 = vmax.f32 %v16979_v13, %v16980_v39  ;;  %v5770_v29 = vadd.f32 %v5769_v4, %v5768_v58  ;;  %v5780_v20 = vadd.f32 %v5720_v44, %v5718_v32  ;;  %v5721_v28 = vmul.f32 %v5624_v41, %v16983_v27  ;;  %v16986_v51 = vld [vmem:[#allocation238_spill] sm:$0xff]  ;;  %16989 = vst [vmem:[#allocation13_spill] sm:$0xff] %v13520_v63  ;;  %v13522_v58 = vpop.f32.mrb[217].mxu1  ;;  %v13525_v41 = vpop.f32.mrb[217].mxu0 }
 0x323   : > { %v5625_v36 = vadd.f32 %v13402_v53, %v16984_v21  ;;  %v5896_v11 = vsel %vm2156_vm0, %v5895_v30, %v5863_v23  ;;  %v5909_v5 = vrot.slane %v5866_v9, 7  ;;  %v16987_v39 = vmax.f32 %v16985_v40, %v16986_v51  ;;  %v16990_v44 = vld [vmem:[#allocation42_spill] sm:$0xff]  ;;  %16991 = vst [vmem:[#allocation38_spill] sm:$0xff] %v13525_v41  ;;  %v16992_v23 = vld [vmem:[#allocation247_spill] sm:$0xff] }
 0x324   : > { %v13506_v62 = vmax.f32 %v16981_v3, %v5865_v47  ;;  %v5777_v47 = vadd.f32 %v5776_v19, %v5775_v38  ;;  %v5771_v32 = vrot.slane %v5770_v29, 1  ;;  %v5781_v13 = vrot.slane %v5780_v20, 4 }
 0x325   : > { %v13518_v3 = vmax.f32 %v16987_v39, %v5866_v9  ;;  %v5787_v4 = vadd.f32 %v5721_v28, %v5719_v50  ;;  %v5722_v53 = vmul.f32 %v5625_v36, %v16990_v44  ;;  %v13531_v30 = vadd.f32 %v16992_v23, %v16844_v14  ;;  %v13536_v9 = vpop.f32.mrb[218].mxu0  ;;  %v16995_v50 = vld [vmem:[#allocation248_spill] sm:$0xff]  ;;  %v16998_v23 = vld [vmem:[#allocation249_spill] sm:$0xff] }
 0x326   : > { %16982 = vst [vmem:[#allocation171_spill] sm:$0xff] %v13506_v62  ;;  %v13527_v62 = vpop.f32.mrb[218].mxu1  ;;  %v5910_v51 = vsel %vm2156_vm0, %v5909_v5, %v5864_v10  ;;  %v5778_v38 = vrot.slane %v5777_v47, 1  ;;  %v5626_v40 = vadd.f32 %v13411_v60, %v16984_v21  ;;  %16994 = vst [vmem:[#allocation247_spill] sm:$0xff] %v13536_v9  ;;  %v13542_v36 = vadd.f32 %v16995_v50, %v16844_v14  ;;  %v13544_v63 = vpop.f32.mrb[219].mxu0 }
 0x327   : > { %16988 = vst [vmem:[#allocation208_spill] sm:$0xff] %v13518_v3  ;;  %16993 = vst [vmem:[#allocation238_spill] sm:$0xff] %v13531_v30  ;;  %v13538_v19 = vpop.f32.mrb[219].mxu1  ;;  %v5772_v28 = vadd.f32 %v5771_v32, %v5770_v29  ;;  %v5782_v39 = vadd.f32 %v5781_v13, %v5780_v20  ;;  %v5788_v41 = vrot.slane %v5787_v4, 4  ;;  %v13548_v5 = vadd.f32 %v16998_v23, %v16853_v22  ;;  %v17000_v30 = vld [vmem:[#allocation43_spill] sm:$0xff]  ;;  %v17002_v20 = vld [vmem:[#allocation250_spill] sm:$0xff] }
 0x328   : > { %16996 = vst [vmem:[#allocation248_spill] sm:$0xff] %v13542_v36  ;;  %16997 = vst [vmem:[#allocation281_spill] sm:$0xff] %v13544_v63  ;;  %v5779_v10 = vadd.f32 %v5778_v38, %v5777_v47  ;;  %v5723_v60 = vmul.f32 %v5626_v40, %v17000_v30  ;;  %v17001_v3 = vld [vmem:[#allocation15_spill] sm:$0xff]  ;;  %v13558_v32 = vadd.f32 %v17002_v20, %v16853_v22  ;;  %v17004_v23 = vld [vmem:[#allocation44_spill] sm:$0xff] }
 0x329   : > { %16999 = vst [vmem:[#allocation249_spill] sm:$0xff] %v13548_v5  ;;  %v5627_v9 = vadd.f32 %v13421_v46, %v17001_v3  ;;  %v5867_v44 = vadd.f32 %v13424_v37, %v5772_v28  ;;  %v5783_v27 = vrot.slane %v5782_v39, 2  ;;  %v5789_v50 = vadd.f32 %v5788_v41, %v5787_v4  ;;  %v17005_v38 = vld [vmem:[#allocation48_spill] sm:$0xff]  ;;  %v17006_v46 = vld [vmem:[#allocation45_spill] sm:$0xff]  ;;  %v17007_v36 = vld [vmem:[#allocation239_spill] sm:$0xff] }
 0x32a   : > { %v5628_v29 = vadd.f32 %v13429_v35, %v17001_v3  ;;  %17003 = vst [vmem:[#allocation250_spill] sm:$0xff] %v13558_v32  ;;  %v5868_v13 = vadd.f32 %v13443_v57, %v5779_v10  ;;  %v5629_v40 = vadd.f32 %v13454_v56, %v17005_v38  ;;  %v17008_v28 = vmax.f32 %v17006_v46, %v17007_v36  ;;  %v13569_v35 = vpop.f32.mrb[220].mxu1  ;;  %v17010_v20 = vld [vmem:[#allocation47_spill] sm:$0xff]  ;;  %v17011_v32 = vld [vmem:[#allocation241_spill] sm:$0xff]  ;;  %v13577_v56 = vpop.f32.mrb[220].mxu0 }
 0x32b   : > { %v5724_v47 = vmul.f32 %v5627_v9, %v17004_v23  ;;  %v5897_v5 = vrot.slane %v5867_v44, 6  ;;  %v5784_v4 = vadd.f32 %v5783_v27, %v5782_v39  ;;  %v5790_v41 = vrot.slane %v5789_v50, 2  ;;  %v17014_v23 = vld [vmem:[#allocation46_spill] sm:$0xff]  ;;  %17015 = vst [vmem:[#allocation47_spill] sm:$0xff] %v13577_v56  ;;  %v13579_v30 = vpop.f32.mrb[221].mxu1 }
 0x32c   : > { %v13567_v14 = vmax.f32 %v17008_v28, %v5867_v44  ;;  %v5911_v63 = vrot.slane %v5868_v13, 6  ;;  %v17012_v22 = vmax.f32 %v17010_v20, %v17011_v32  ;;  %v5725_v3 = vmul.f32 %v5628_v29, %v17014_v23  ;;  %v17016_v39 = vld [vmem:[#allocation50_spill] sm:$0xff]  ;;  %v13583_v28 = vpop.f32.mrb[221].mxu0  ;;  %v17018_v32 = vld [vmem:[#allocation123_spill] sm:$0xff] }
 0x32d   : > { %v5794_v9 = vadd.f32 %v5724_v47, %v5722_v53  ;;  %v5898_v44 = vsel %vm2159_vm1, %v5897_v5, %v5896_v11  ;;  %v5785_v36 = vrot.slane %v5784_v4, 1  ;;  %v5791_v27 = vadd.f32 %v5790_v41, %v5789_v50  ;;  %17017 = vst [vmem:[#allocation241_spill] sm:$0xff] %v13583_v28  ;;  %v13592_v20 = vpop.f32.mrb[222].mxu0  ;;  %v17022_v11 = vld [vmem:[#allocation254_spill] sm:$0xff] }
 0x32e   : > { %17009 = vst [vmem:[#allocation45_spill] sm:$0xff] %v13567_v14  ;;  %v13574_v10 = vmax.f32 %v17012_v22, %v5868_v13  ;;  %v5726_v46 = vmul.f32 %v5629_v40, %v17016_v39  ;;  %v13585_v14 = vpop.f32.mrb[222].mxu1  ;;  %v17019_v22 = vld [vmem:[#allocation253_spill] sm:$0xff]  ;;  %v5912_v53 = vsel %vm2159_vm1, %v5911_v63, %v5910_v51  ;;  %v5801_v47 = vadd.f32 %v5725_v3, %v5723_v60  ;;  %v13602_v28 = vpop.f32.mrb[223].mxu0 }
 0x32f   : > { %v13589_v13 = vadd.f32 %v17019_v22, %v17018_v32  ;;  %v5795_v29 = vrot.slane %v5794_v9, 4  ;;  %17021 = vst [vmem:[#allocation282_spill] sm:$0xff] %v13592_v20  ;;  %v13594_v56 = vpop.f32.mrb[223].mxu1  ;;  %v13598_v5 = vadd.f32 %v17022_v11, %v17018_v32  ;;  %v5786_v50 = vadd.f32 %v5785_v36, %v5784_v4  ;;  %17024 = vst [vmem:[#allocation283_spill] sm:$0xff] %v13602_v28  ;;  %v17025_v22 = vld [vmem:[#allocation127_spill] sm:$0xff]  ;;  %v17028_v60 = vld [vmem:[#allocation25_spill] sm:$0xff] }
 0x330   : > { %17013 = vst [vmem:[#allocation239_spill] sm:$0xff] %v13574_v10  ;;  %v5792_v40 = vrot.slane %v5791_v27, 1  ;;  %v5630_v41 = vadd.f32 %v13459_v48, %v17005_v38  ;;  %v5802_v51 = vrot.slane %v5801_v47, 4  ;;  %v5631_v20 = vadd.f32 %v13471_v18, %v17028_v60  ;;  %v17030_v48 = vld [vmem:[#allocation256_spill] sm:$0xff]  ;;  %v17033_v10 = vld [vmem:[#allocation54_spill] sm:$0xff]  ;;  %v17034_v38 = vld [vmem:[#allocation245_spill] sm:$0xff] }
 0x331   : > { %17020 = vst [vmem:[#allocation253_spill] sm:$0xff] %v13589_v13  ;;  %17023 = vst [vmem:[#allocation254_spill] sm:$0xff] %v13598_v5  ;;  %v17026_v13 = vld [vmem:[#allocation255_spill] sm:$0xff]  ;;  %v5796_v3 = vadd.f32 %v5795_v29, %v5794_v9  ;;  %v5869_v39 = vadd.f32 %v13424_v37, %v5786_v50  ;;  %v5632_v36 = vadd.f32 %v13479_v7, %v17028_v60 }
 0x332   : > { %v13606_v63 = vadd.f32 %v17026_v13, %v17025_v22  ;;  %v5793_v11 = vadd.f32 %v5792_v40, %v5791_v27  ;;  %v17029_v5 = vld [vmem:[#allocation51_spill] sm:$0xff]  ;;  %v13616_v32 = vadd.f32 %v17030_v48, %v17025_v22  ;;  %v5803_v13 = vadd.f32 %v5802_v51, %v5801_v47  ;;  %v13630_v51 = vpop.f32.mrb[224].mxu0 }
 0x333   : > { %v5727_v4 = vmul.f32 %v5630_v41, %v17029_v5  ;;  %v5797_v28 = vrot.slane %v5796_v3, 2  ;;  %v5899_v29 = vrot.slane %v5869_v39, 5  ;;  %v17035_v18 = vmax.f32 %v17033_v10, %v17034_v38  ;;  %v17037_v50 = vld [vmem:[#allocation55_spill] sm:$0xff]  ;;  %v13626_v41 = vpop.f32.mrb[224].mxu1 }
 0x334   : > { %17027 = vst [vmem:[#allocation255_spill] sm:$0xff] %v13606_v63  ;;  %17031 = vst [vmem:[#allocation51_spill] sm:$0xff] %v13616_v32  ;;  %v17032_v63 = vld [vmem:[#allocation52_spill] sm:$0xff]  ;;  %v5870_v27 = vadd.f32 %v13443_v57, %v5793_v11  ;;  %v5729_v40 = vmul.f32 %v5632_v36, %v17037_v50  ;;  %v5804_v60 = vrot.slane %v5803_v13, 2 }
 0x335   : > { %v5728_v9 = vmul.f32 %v5631_v20, %v17032_v63  ;;  %v13622_v23 = vmax.f32 %v17035_v18, %v5869_v39  ;;  %17038 = vst [vmem:[#allocation54_spill] sm:$0xff] %v13626_v41  ;;  %v5798_v7 = vadd.f32 %v5797_v28, %v5796_v3  ;;  %v17039_v32 = vld [vmem:[#allocation40_spill] sm:$0xff]  ;;  %v13632_v20 = vpop.f32.mrb[225].mxu1  ;;  %v5900_v38 = vsel %vm2162_vm2, %v5899_v29, %v5898_v44  ;;  %v17041_v39 = vld [vmem:[#allocation57_spill] sm:$0xff]  ;;  %v17042_v18 = vld [vmem:[#allocation246_spill] sm:$0xff]  ;;  %v13640_v41 = vpop.f32.mrb[225].mxu0 }
 0x336   : > { %v5633_v47 = vadd.f32 %v13512_v54, %v17039_v32  ;;  %17040 = vst [vmem:[#allocation245_spill] sm:$0xff] %v13632_v20  ;;  %v5913_v10 = vrot.slane %v5870_v27, 5  ;;  %v17043_v11 = vmax.f32 %v17041_v39, %v17042_v18  ;;  %v5815_v36 = vadd.f32 %v5729_v40, %v5727_v4  ;;  %v13642_v28 = vpop.f32.mrb[226].mxu1  ;;  %v13645_v63 = vpop.f32.mrb[226].mxu0 }
 0x337   : > { %17036 = vst [vmem:[#allocation256_spill] sm:$0xff] %v13622_v23  ;;  %v5808_v48 = vadd.f32 %v5728_v9, %v5726_v46  ;;  %17045 = vst [vmem:[#allocation57_spill] sm:$0xff] %v13642_v28  ;;  %v5799_v46 = vrot.slane %v5798_v7, 1  ;;  %v5805_v3 = vadd.f32 %v5804_v60, %v5803_v13  ;;  %v17046_v9 = vld [vmem:[#allocation58_spill] sm:$0xff]  ;;  %v13647_v20 = vpop.f32.mrb[227].mxu1  ;;  %v13651_v44 = vadd.f32 %v13217_v24, %v16877_v33  ;;  %v13656_v40 = vpop.f32.mrb[227].mxu0 }
 0x338   : > { %v13638_v22 = vmax.f32 %v17043_v11, %v5870_v27  ;;  %v5730_v50 = vmul.f32 %v5633_v47, %v17046_v9  ;;  %17047 = vst [vmem:[#allocation246_spill] sm:$0xff] %v13647_v20  ;;  %v5914_v29 = vsel %vm2162_vm2, %v5913_v10, %v5912_v53  ;;  %v5816_v4 = vrot.slane %v5815_v36, 4  ;;  %v17049_v60 = vld [vmem:[#allocation257_spill] sm:$0xff]  ;;  %v17052_v20 = vld [vmem:[#allocation259_spill] sm:$0xff] }
 0x339   : > { %v5809_v54 = vrot.slane %v5808_v48, 4  ;;  %17048 = vst [vmem:[#allocation284_spill] sm:$0xff] %v13651_v44  ;;  %v5634_v27 = vadd.f32 %v13522_v58, %v17039_v32  ;;  %v13660_v13 = vadd.f32 %v17049_v60, %v16877_v33  ;;  %v5800_v47 = vadd.f32 %v5799_v46, %v5798_v7  ;;  %v17051_v11 = vld [vmem:[#allocation129_spill] sm:$0xff]  ;;  %v17054_v44 = vld [vmem:[#allocation59_spill] sm:$0xff]  ;;  %v17056_v7 = vld [vmem:[#allocation262_spill] sm:$0xff]  ;;  %v13687_v33 = vpop.f32.mrb[228].mxu0 }
 0x33a   : > { %17044 = vst [vmem:[#allocation40_spill] sm:$0xff] %v13638_v22  ;;  %v5806_v39 = vrot.slane %v5805_v3, 1  ;;  %v13664_v28 = vadd.f32 %v17052_v20, %v17051_v11  ;;  %v5817_v24 = vadd.f32 %v5816_v4, %v5815_v36  ;;  %v17055_v10 = vld [vmem:[#allocation49_spill] sm:$0xff]  ;;  %v17058_v20 = vld [vmem:[#allocation60_spill] sm:$0xff] }
 0x33b   : > { %17050 = vst [vmem:[#allocation257_spill] sm:$0xff] %v13660_v13  ;;  %v5810_v18 = vadd.f32 %v5809_v54, %v5808_v48  ;;  %v5731_v53 = vmul.f32 %v5634_v27, %v17054_v44  ;;  %v5635_v9 = vadd.f32 %v13527_v62, %v17055_v10  ;;  %v5871_v58 = vadd.f32 %v13424_v37, %v5800_v47  ;;  %v17059_v36 = vld [vmem:[#allocation65_spill] sm:$0xff]  ;;  %v13679_v27 = vpop.f32.mrb[228].mxu1  ;;  %v17062_v47 = vld [vmem:[#allocation251_spill] sm:$0xff] }
 0x33c   : > { %17053 = vst [vmem:[#allocation259_spill] sm:$0xff] %v13664_v28  ;;  %v5807_v22 = vadd.f32 %v5806_v39, %v5805_v3  ;;  %v5636_v60 = vadd.f32 %v13538_v19, %v17055_v10  ;;  %v13674_v48 = vadd.f32 %v17056_v7, %v17051_v11  ;;  %v5818_v46 = vrot.slane %v5817_v24, 2  ;;  %17060 = vst [vmem:[#allocation65_spill] sm:$0xff] %v13679_v27  ;;  %v17061_v28 = vld [vmem:[#allocation64_spill] sm:$0xff]  ;;  %v13689_v7 = vpop.f32.mrb[229].mxu1  ;;  %v17065_v11 = vld [vmem:[#allocation62_spill] sm:$0xff] }
 0x33d   : > { %v5811_v23 = vrot.slane %v5810_v18, 2  ;;  %v5732_v54 = vmul.f32 %v5635_v9, %v17058_v20  ;;  %v5637_v4 = vadd.f32 %v13569_v35, %v17059_v36  ;;  %v5901_v62 = vrot.slane %v5871_v58, 4  ;;  %17064 = vst [vmem:[#allocation64_spill] sm:$0xff] %v13689_v7  ;;  %v17066_v35 = vld [vmem:[#allocation68_spill] sm:$0xff]  ;;  %v13693_v27 = vpop.f32.mrb[229].mxu0  ;;  %v13695_v44 = vpop.f32.mrb[230].mxu1 }
 0x33e   : > { %17057 = vst [vmem:[#allocation262_spill] sm:$0xff] %v13674_v48  ;;  %v17063_v3 = vmax.f32 %v17061_v28, %v17062_v47  ;;  %v5872_v19 = vadd.f32 %v13443_v57, %v5807_v22  ;;  %v5819_v48 = vadd.f32 %v5818_v46, %v5817_v24  ;;  %v5733_v20 = vmul.f32 %v5636_v60, %v17065_v11  ;;  %v17068_v47 = vld [vmem:[#allocation190_spill] sm:$0xff]  ;;  %v17069_v22 = vld [vmem:[#allocation252_spill] sm:$0xff]  ;;  %v13703_v7 = vpop.f32.mrb[230].mxu0 }
 0x33f   : > { %v5812_v13 = vadd.f32 %v5811_v23, %v5810_v18  ;;  %v5822_v9 = vadd.f32 %v5732_v54, %v5730_v50  ;;  %v5734_v10 = vmul.f32 %v5637_v4, %v17066_v35  ;;  %17067 = vst [vmem:[#allocation251_spill] sm:$0xff] %v13695_v44  ;;  %v5902_v28 = vsel %vm2165_vm3, %v5901_v62, %v5900_v38  ;;  %v13709_v54 = vpop.f32.mrb[231].mxu0 }
 0x340   : > { %v13684_v39 = vmax.f32 %v17063_v3, %v5871_v58  ;;  %v5915_v58 = vrot.slane %v5872_v19, 4  ;;  %v17070_v23 = vmax.f32 %v17068_v47, %v17069_v22  ;;  %v13707_v50 = vadd.f32 %v13274_v12, %v16893_v15  ;;  %v17074_v12 = vld [vmem:[#allocation66_spill] sm:$0xff]  ;;  %v13738_v44 = vpop.f32.mrb[232].mxu0 }
 0x341   : > { %v5813_v3 = vrot.slane %v5812_v13, 1  ;;  %v5820_v24 = vrot.slane %v5819_v48, 1  ;;  %v5823_v60 = vrot.slane %v5822_v9, 4  ;;  %v5829_v46 = vadd.f32 %v5733_v20, %v5731_v53 }
 0x342   : > { %v13701_v18 = vmax.f32 %v17070_v23, %v5872_v19  ;;  %17072 = vst [vmem:[#allocation68_spill] sm:$0xff] %v13707_v50  ;;  %v13713_v38 = vadd.f32 %v13287_v43, %v16893_v15  ;;  %v5916_v4 = vsel %vm2165_vm3, %v5915_v58, %v5914_v29  ;;  %v5638_v19 = vadd.f32 %v13579_v30, %v17059_v36  ;;  %v17076_v43 = vld [vmem:[#allocation69_spill] sm:$0xff]  ;;  %v17083_v15 = vld [vmem:[#allocation14_spill] sm:$0xff] }
 0x343   : > { %v5814_v62 = vadd.f32 %v5813_v3, %v5812_v13  ;;  %v5821_v47 = vadd.f32 %v5820_v24, %v5819_v48  ;;  %v5824_v22 = vadd.f32 %v5823_v60, %v5822_v9  ;;  %v5830_v23 = vrot.slane %v5829_v46, 4  ;;  %v17077_v9 = vld [vmem:[#allocation70_spill] sm:$0xff]  ;;  %v17079_v24 = vld [vmem:[#allocation261_spill] sm:$0xff] }
 0x344   : > { %17071 = vst [vmem:[#allocation62_spill] sm:$0xff] %v13701_v18  ;;  %17073 = vst [vmem:[#allocation190_spill] sm:$0xff] %v13713_v38  ;;  %v5639_v50 = vadd.f32 %v13585_v14, %v17074_v12  ;;  %v13722_v53 = vadd.f32 %v13300_v59, %v16726_v49  ;;  %v5735_v38 = vmul.f32 %v5638_v19, %v17076_v43  ;;  %v17078_v14 = vld [vmem:[#allocation72_spill] sm:$0xff]  ;;  %v13746_v18 = vpop.f32.mrb[233].mxu0 }
 0x345   : > { %v5873_v20 = vadd.f32 %v13424_v37, %v5814_v62  ;;  %v5640_v29 = vadd.f32 %v13594_v56, %v17074_v12  ;;  %v5874_v30 = vadd.f32 %v13443_v57, %v5821_v47  ;;  %v5825_v13 = vrot.slane %v5824_v22, 2  ;;  %v17084_v49 = vld [vmem:[#allocation200_spill] sm:$0xff] }
 0x346   : > { %17075 = vst [vmem:[#allocation252_spill] sm:$0xff] %v13722_v53  ;;  %v5831_v48 = vadd.f32 %v5830_v23, %v5829_v46  ;;  %v5736_v58 = vmul.f32 %v5639_v50, %v17077_v9  ;;  %v17080_v60 = vmax.f32 %v17078_v14, %v17079_v24  ;;  %v17082_v53 = vld [vmem:[#allocation71_spill] sm:$0xff]  ;;  %v6234_v19 = vadd.f32 %v13630_v51, %v17083_v15  ;;  %v17085_v47 = vld [vmem:[#allocation264_spill] sm:$0xff]  ;;  %v13750_v51 = vpop.f32.mrb[234].mxu0 }
 0x347   : > { %v5903_v3 = vrot.slane %v5873_v20, 3  ;;  %v5737_v62 = vmul.f32 %v5640_v29, %v17082_v53  ;;  %v5917_v56 = vrot.slane %v5874_v30, 3  ;;  %v17086_v12 = vmax.f32 %v17084_v49, %v17085_v47  ;;  %v9451_v9 = vld [vmem:[%s10834_s17 + $0x7] ss:$8 sm:$0x3] }
 0x348   : > { %v13733_v59 = vmax.f32 %v17080_v60, %v5873_v20  ;;  %v5826_v50 = vadd.f32 %v5825_v13, %v5824_v22  ;;  %v5832_v23 = vrot.slane %v5831_v48, 2  ;;  %v5836_v14 = vadd.f32 %v5736_v58, %v5734_v10  ;;  %v13755_v22 = vpop.f32.mrb[235].mxu0 }
 0x349   : > { %v13743_v46 = vmax.f32 %v17086_v12, %v5874_v30  ;;  %v5904_v20 = vsel %vm2168_vm4, %v5903_v3, %v5902_v28  ;;  %v5843_v29 = vadd.f32 %v5737_v62, %v5735_v38  ;;  %v6331_v24 = vmul.f32 %v6234_v19, %v16910_v6 }
 0x34a   : > { %17081 = vst [vmem:[#allocation69_spill] sm:$0xff] %v13733_v59  ;;  %v5918_v60 = vsel %vm2168_vm4, %v5917_v56, %v5916_v4  ;;  %v5827_v59 = vrot.slane %v5826_v50, 1  ;;  %v5833_v53 = vadd.f32 %v5832_v23, %v5831_v48  ;;  %v6235_v49 = vadd.f32 %v13640_v41, %v17083_v15  ;;  %v13765_v48 = vpop.f32.mrb[231].mxu1 }
 0x34b   : > { %v5837_v12 = vrot.slane %v5836_v14, 4  ;;  %v5844_v30 = vrot.slane %v5843_v29, 4  ;;  %v6236_v28 = vadd.f32 %v13645_v63, %v16914_v26  ;;  %v13760_v10 = vrot.slane %v9451_v9, %v16944_v1  ;;  %v13771_v63 = vpop.f32.mrb[232].mxu1 }
 0x34c   : > { %v5828_v6 = vadd.f32 %v5827_v59, %v5826_v50  ;;  %v5834_v38 = vrot.slane %v5833_v53, 1  ;;  %v6332_v13 = vmul.f32 %v6235_v49, %v16912_v42  ;;  %v6237_v4 = vadd.f32 %v13656_v40, %v16914_v26  ;;  %v17087_v50 = vld [vmem:[#allocation265_spill] sm:$0xff] }
 0x34d   : > { %v5838_v15 = vadd.f32 %v5837_v12, %v5836_v14  ;;  %v5845_v41 = vadd.f32 %v5844_v30, %v5843_v29  ;;  %v6333_v58 = vmul.f32 %v6236_v28, %v16918_v0  ;;  %v13769_v3 = vrot.slane %v9451_v9, %v16951_v31  ;;  %v13779_v0 = vpop.f32.mrb[236].mxu0  ;;  %v17089_v28 = vld [vmem:[#allocation267_spill] sm:$0xff] }
 0x34e   : > { %v5875_v62 = vadd.f32 %v13424_v37, %v5828_v6  ;;  %v5835_v59 = vadd.f32 %v5834_v38, %v5833_v53  ;;  %v6334_v19 = vmul.f32 %v6237_v4, %v16922_v25  ;;  %v6238_v42 = vadd.f32 %v13687_v33, %v16750_v52  ;;  %v6107_v29 = vpop.f32.mrb[237].mxu0 }
 0x34f   : > { %v5839_v26 = vrot.slane %v5838_v15, 2  ;;  %v5846_v40 = vrot.slane %v5845_v41, 2  ;;  %v6363_v56 = vadd.f32 %v6333_v58, %v6331_v24  ;;  %v6239_v47 = vadd.f32 %v13693_v27, %v16750_v52  ;;  %v13788_v30 = vpop.f32.mrb[238].mxu0 }
 0x350   : > { %v5905_v9 = vrot.slane %v5875_v62, 2  ;;  %v17088_v23 = vmax.f32 %v16909_v8, %v17087_v50  ;;  %v5876_v53 = vadd.f32 %v13443_v57, %v5835_v59  ;;  %v6370_v25 = vadd.f32 %v6334_v19, %v6332_v13  ;;  %v13796_v4 = vpop.f32.mrb[239].mxu0 }
 0x351   : > { %v5840_v49 = vadd.f32 %v5839_v26, %v5838_v15  ;;  %v5847_v33 = vadd.f32 %v5846_v40, %v5845_v41  ;;  %v6364_v12 = vrot.slane %v6363_v56, 4  ;;  %v6335_v24 = vmul.f32 %v6238_v42, %v16925_v61 }
 0x352   : > { %v13784_v14 = vmax.f32 %v17088_v23, %v5875_v62  ;;  %v5906_v52 = vsel %vm2171_vm5, %v5905_v9, %v5904_v20  ;;  %v5919_v27 = vrot.slane %v5876_v53, 2  ;;  %v17090_v6 = vmax.f32 %v12881_v2, %v17089_v28  ;;  %v13804_v2 = vpop.f32.mrb[233].mxu1  ;;  %v17091_v9 = vld [vmem:[#allocation27_spill] sm:$0xff]  ;;  %v6115_v23 = vpop.f32.mrb[240].mxu0 }
 0x353   : > { %v6371_v38 = vrot.slane %v6370_v25, 4  ;;  %v5841_v13 = vrot.slane %v5840_v49, 1  ;;  %v5848_v58 = vrot.slane %v5847_v33, 1  ;;  %v6365_v15 = vadd.f32 %v6364_v12, %v6363_v56  ;;  %v6117_v12 = vpop.f32.mrb[241].mxu0 }
 0x354   : > { %v13794_v8 = vmax.f32 %v17090_v6, %v5876_v53  ;;  %v6336_v41 = vmul.f32 %v6239_v47, %v16929_v55  ;;  %v5920_v61 = vsel %vm2171_vm5, %v5919_v27, %v5918_v60  ;;  %v6240_v20 = vadd.f32 %v13703_v7, %v16926_v34  ;;  %v17093_v27 = vld [vmem:[#allocation7_spill] sm:$0xff] }
 0x355   : > { %v6372_v62 = vadd.f32 %v6371_v38, %v6370_v25  ;;  %v6241_v59 = vadd.f32 %v13709_v54, %v16926_v34  ;;  %v5842_v19 = vadd.f32 %v5841_v13, %v5840_v49  ;;  %v5849_v42 = vadd.f32 %v5848_v58, %v5847_v33  ;;  %v6119_v13 = vpop.f32.mrb[242].mxu0  ;;  %v13826_v58 = vpop.f32.mrb[234].mxu1 }
 0x356   : > { %v6366_v26 = vrot.slane %v6365_v15, 2  ;;  %v6242_v40 = vadd.f32 %v13738_v44, %v16940_v17  ;;  %v6337_v55 = vmul.f32 %v6240_v20, %v16933_v16  ;;  %v6243_v47 = vadd.f32 %v13746_v18, %v16940_v17  ;;  %v17092_v44 = vld [vmem:[#allocation29_spill] sm:$0xff]  ;;  %v6121_v20 = vpop.f32.mrb[243].mxu0 }
 0x357   : > { %v6373_v56 = vrot.slane %v6372_v62, 2  ;;  %v6338_v60 = vmul.f32 %v6241_v59, %v16936_v45  ;;  %v5877_v7 = vadd.f32 %v13424_v37, %v5842_v19  ;;  %v5878_v34 = vadd.f32 %v13443_v57, %v5849_v42  ;;  %v17094_v45 = vld [vmem:[#allocation8_spill] sm:$0xff]  ;;  %v17096_v37 = vld [vmem:[#allocation125_spill] sm:$0xff] }
 0x358   : > { %v6367_v54 = vadd.f32 %v6366_v26, %v6365_v15  ;;  %v6339_v50 = vmul.f32 %v6242_v40, %v17091_v9  ;;  %v6377_v25 = vadd.f32 %v6337_v55, %v6335_v24  ;;  %v6340_v33 = vmul.f32 %v6243_v47, %v17092_v44  ;;  %v17097_v18 = vld [vmem:[#allocation273_spill] sm:$0xff]  ;;  %v17101_v9 = vld [vmem:[#allocation31_spill] sm:$0xff] }
 0x359   : > { %v6374_v53 = vadd.f32 %v6373_v56, %v6372_v62  ;;  %v6384_v49 = vadd.f32 %v6338_v60, %v6336_v41  ;;  %v5907_v16 = vrot.slane %v5877_v7, 1  ;;  %v17095_v28 = vmax.f32 %v17093_v27, %v17094_v45  ;;  %v17099_v42 = vld [vmem:[#allocation9_spill] sm:$0xff]  ;;  %v17102_v27 = vld [vmem:[#allocation11_spill] sm:$0xff] }
 0x35a   : > { %v5921_v17 = vrot.slane %v5878_v34, 1  ;;  %v17098_v57 = vmax.f32 %v17096_v37, %v17097_v18  ;;  %v6368_v24 = vrot.slane %v6367_v54, 1  ;;  %v6378_v41 = vrot.slane %v6377_v25, 4  ;;  %v13851_v37 = vpop.f32.mrb[244].mxu0 }
 0x35b   : > { %v13819_v6 = vmax.f32 %v17095_v28, %v5877_v7  ;;  %v6375_v15 = vrot.slane %v6374_v53, 1  ;;  %v6385_v62 = vrot.slane %v6384_v49, 4  ;;  %v13829_v59 = vsel %vm2174_vm6, %v5907_v16, %v5906_v52  ;;  %v17100_v7 = vld [vmem:[#allocation30_spill] sm:$0xff] }
 0x35c   : > { %v13824_v38 = vmax.f32 %v17098_v57, %v5878_v34  ;;  %v13832_v19 = vsel %vm2174_vm6, %v5921_v17, %v5920_v61  ;;  %v6244_v26 = vadd.f32 %v13750_v51, %v17099_v42  ;;  %v6245_v40 = vadd.f32 %v13755_v22, %v17099_v42  ;;  %v17104_v28 = vld [vmem:[#allocation34_spill] sm:$0xff] }
 0x35d   : > { %v6369_v56 = vadd.f32 %v6368_v24, %v6367_v54  ;;  %v6376_v55 = vadd.f32 %v6375_v15, %v6374_v53  ;;  %v6379_v60 = vadd.f32 %v6378_v41, %v6377_v25  ;;  %v6386_v47 = vadd.f32 %v6385_v62, %v6384_v49  ;;  %v17103_v49 = vld [vmem:[#allocation33_spill] sm:$0xff]  ;;  %v13857_v41 = vpop.f32.mrb[245].mxu0 }
 0x35e   : > { %v6341_v34 = vmul.f32 %v6244_v26, %v17100_v7  ;;  %v6342_v44 = vmul.f32 %v6245_v40, %v17101_v9  ;;  %v6246_v52 = vadd.f32 %v13779_v0, %v17102_v27  ;;  %v6247_v61 = vadd.f32 %v6107_v29, %v17102_v27  ;;  %v17105_v0 = vld [vmem:[#allocation39_spill] sm:$0xff]  ;;  %v13863_v40 = vpop.f32.mrb[246].mxu0 }
 0x35f   : > { %v13844_v16 = vadd.f32 %v13760_v10, %v6369_v56  ;;  %v13847_v51 = vadd.f32 %v13769_v3, %v6376_v55  ;;  %v6380_v22 = vrot.slane %v6379_v60, 2  ;;  %v6387_v54 = vrot.slane %v6386_v47, 2  ;;  %v17106_v29 = vld [vmem:[#allocation87_spill] sm:$0xff] }
 0x360   : > { %v6391_v53 = vadd.f32 %v6341_v34, %v6339_v50  ;;  %v6398_v25 = vadd.f32 %v6342_v44, %v6340_v33  ;;  %v6343_v45 = vmul.f32 %v6246_v52, %v17103_v49  ;;  %v6344_v17 = vmul.f32 %v6247_v61, %v17104_v28  ;;  %v17107_v50 = vld [vmem:[#allocation32_spill] sm:$0xff]  ;;  %v17108_v44 = vld [vmem:[#allocation35_spill] sm:$0xff]  ;;  %v17109_v52 = vld [vmem:[#allocation37_spill] sm:$0xff] }
 0x361   : > { %v6553_v18 = vmax.f32 %v17105_v0, %v13844_v16  ;;  %v6554_v57 = vmax.f32 %v17106_v29, %v13847_v51  ;;  %v6381_v24 = vadd.f32 %v6380_v22, %v6379_v60  ;;  %v6388_v15 = vadd.f32 %v6387_v54, %v6386_v47  ;;  %v13867_v60 = vpop.f32.mrb[247].mxu0  ;;  %v17110_v54 = vld [vmem:[#allocation42_spill] sm:$0xff]  ;;  %v17111_v49 = vld [vmem:[#allocation43_spill] sm:$0xff]  ;;  %v13873_v0 = vpop.f32.mrb[235].mxu1 }
 0x362   : > { %v6392_v62 = vrot.slane %v6391_v53, 4  ;;  %v6399_v42 = vrot.slane %v6398_v25, 4  ;;  %v6248_v33 = vadd.f32 %v13788_v30, %v17107_v50  ;;  %v6249_v26 = vadd.f32 %v13796_v4, %v17107_v50 }
 0x363   : > { %v6382_v56 = vrot.slane %v6381_v24, 1  ;;  %v6389_v55 = vrot.slane %v6388_v15, 1  ;;  %v6250_v7 = vadd.f32 %v6115_v23, %v16984_v21  ;;  %v6251_v34 = vadd.f32 %v6117_v12, %v16984_v21 }
 0x364   : > { %v6393_v47 = vadd.f32 %v6392_v62, %v6391_v53  ;;  %v6400_v9 = vadd.f32 %v6399_v42, %v6398_v25  ;;  %v6345_v27 = vmul.f32 %v6248_v33, %v17108_v44  ;;  %v6346_v61 = vmul.f32 %v6249_v26, %v17109_v52  ;;  %v17112_v25 = vld [vmem:[#allocation15_spill] sm:$0xff]  ;;  %v17114_v44 = vld [vmem:[#allocation208_spill] sm:$0xff] }
 0x365   : > { %v6383_v30 = vadd.f32 %v6382_v56, %v6381_v24  ;;  %v6390_v22 = vadd.f32 %v6389_v55, %v6388_v15  ;;  %v6347_v4 = vmul.f32 %v6250_v7, %v17110_v54  ;;  %v6348_v28 = vmul.f32 %v6251_v34, %v17111_v49  ;;  %v13879_v56 = vpop.f32.mrb[248].mxu0  ;;  %v13881_v55 = vpop.f32.mrb[236].mxu1  ;;  %v17113_v34 = vld [vmem:[#allocation171_spill] sm:$0xff] }
 0x366   : > { %v6394_v29 = vrot.slane %v6393_v47, 2  ;;  %v6401_v23 = vrot.slane %v6400_v9, 2  ;;  %v6405_v50 = vadd.f32 %v6345_v27, %v6343_v45  ;;  %v6412_v21 = vadd.f32 %v6346_v61, %v6344_v17  ;;  %v6137_v52 = vpop.f32.mrb[249].mxu0 }
 0x367   : > { %v6490_v12 = vadd.f32 %v13760_v10, %v6383_v30  ;;  %v6491_v53 = vadd.f32 %v13769_v3, %v6390_v22  ;;  %v6252_v62 = vadd.f32 %v6119_v13, %v17112_v25  ;;  %v6253_v42 = vadd.f32 %v6121_v20, %v17112_v25  ;;  %v13885_v20 = vpop.f32.mrb[250].mxu0 }
 0x368   : > { %v6395_v24 = vadd.f32 %v6394_v29, %v6393_v47  ;;  %v6402_v15 = vadd.f32 %v6401_v23, %v6400_v9  ;;  %v6406_v33 = vrot.slane %v6405_v50, 4  ;;  %v6413_v26 = vrot.slane %v6412_v21, 4  ;;  %v13891_v29 = vpop.f32.mrb[251].mxu0 }
 0x369   : > { %v6520_v7 = vrot.slane %v6490_v12, 7  ;;  %v6555_v45 = vmax.f32 %v17113_v34, %v6490_v12  ;;  %v6534_v17 = vrot.slane %v6491_v53, 7  ;;  %v6556_v27 = vmax.f32 %v17114_v44, %v6491_v53 }
 0x36a   : > { %v6396_v61 = vrot.slane %v6395_v24, 1  ;;  %v6403_v30 = vrot.slane %v6402_v15, 1  ;;  %v6407_v13 = vadd.f32 %v6406_v33, %v6405_v50  ;;  %v6414_v22 = vadd.f32 %v6413_v26, %v6412_v21  ;;  %v17115_v21 = vld [vmem:[#allocation44_spill] sm:$0xff]  ;;  %v17116_v26 = vld [vmem:[#allocation46_spill] sm:$0xff] }
 0x36b   : > { %v6521_v47 = vsel %vm2156_vm0, %v6520_v7, %v13844_v16  ;;  %v6587_v9 = vrot.slane %v6555_v45, 7  ;;  %v6535_v54 = vsel %vm2156_vm0, %v6534_v17, %v13847_v51  ;;  %v6601_v49 = vrot.slane %v6556_v27, 7 }
 0x36c   : > { %v6397_v23 = vadd.f32 %v6396_v61, %v6395_v24  ;;  %v6404_v12 = vadd.f32 %v6403_v30, %v6402_v15  ;;  %v6408_v53 = vrot.slane %v6407_v13, 2  ;;  %v6415_v25 = vrot.slane %v6414_v22, 2  ;;  %v17117_v24 = vld [vmem:[#allocation48_spill] sm:$0xff]  ;;  %v13903_v61 = vpop.f32.mrb[237].mxu1 }
 0x36d   : > { %v6588_v34 = vsel %vm2156_vm0, %v6587_v9, %v6553_v18  ;;  %v6602_v50 = vsel %vm2156_vm0, %v6601_v49, %v6554_v57  ;;  %v6349_v33 = vmul.f32 %v6252_v62, %v17115_v21  ;;  %v6350_v44 = vmul.f32 %v6253_v42, %v17116_v26  ;;  %v17118_v62 = vld [vmem:[#allocation45_spill] sm:$0xff]  ;;  %v17119_v9 = vld [vmem:[#allocation239_spill] sm:$0xff] }
 0x36e   : > { %v6492_v16 = vadd.f32 %v13760_v10, %v6397_v23  ;;  %v6493_v7 = vadd.f32 %v13769_v3, %v6404_v12  ;;  %v6409_v51 = vadd.f32 %v6408_v53, %v6407_v13  ;;  %v6416_v45 = vadd.f32 %v6415_v25, %v6414_v22  ;;  %v6145_v23 = vpop.f32.mrb[252].mxu0 }
 0x36f   : > { %v6419_v17 = vadd.f32 %v6349_v33, %v6347_v4  ;;  %v6426_v27 = vadd.f32 %v6350_v44, %v6348_v28  ;;  %v6254_v15 = vadd.f32 %v13851_v37, %v17117_v24  ;;  %v6255_v18 = vadd.f32 %v13857_v41, %v17117_v24  ;;  %v6147_v28 = vpop.f32.mrb[253].mxu0 }
 0x370   : > { %v6522_v57 = vrot.slane %v6492_v16, 6  ;;  %v6557_v30 = vmax.f32 %v17118_v62, %v6492_v16  ;;  %v6536_v42 = vrot.slane %v6493_v7, 6  ;;  %v6558_v49 = vmax.f32 %v17119_v9, %v6493_v7  ;;  %v13909_v21 = vpop.f32.mrb[254].mxu0  ;;  %v17120_v9 = vld [vmem:[#allocation50_spill] sm:$0xff] }
 0x371   : > { %v6410_v12 = vrot.slane %v6409_v51, 1  ;;  %v6417_v13 = vrot.slane %v6416_v45, 1  ;;  %v6420_v22 = vrot.slane %v6419_v17, 4  ;;  %v6427_v4 = vrot.slane %v6426_v27, 4  ;;  %v13911_v24 = vpop.f32.mrb[255].mxu0 }
 0x372   : > { %v6523_v53 = vsel %vm2159_vm1, %v6522_v57, %v6521_v47  ;;  %v6589_v37 = vrot.slane %v6557_v30, 6  ;;  %v6537_v25 = vsel %vm2159_vm1, %v6536_v42, %v6535_v54  ;;  %v6603_v41 = vrot.slane %v6558_v49, 6  ;;  %v13917_v57 = vpop.f32.mrb[238].mxu1 }
 0x373   : > { %v6411_v33 = vadd.f32 %v6410_v12, %v6409_v51  ;;  %v6418_v26 = vadd.f32 %v6417_v13, %v6416_v45  ;;  %v6421_v44 = vadd.f32 %v6420_v22, %v6419_v17  ;;  %v6428_v16 = vadd.f32 %v6427_v4, %v6426_v27  ;;  %v17121_v17 = vld [vmem:[#allocation25_spill] sm:$0xff]  ;;  %v17123_v12 = vld [vmem:[#allocation40_spill] sm:$0xff] }
 0x374   : > { %v6590_v7 = vsel %vm2159_vm1, %v6589_v37, %v6588_v34  ;;  %v6604_v62 = vsel %vm2159_vm1, %v6603_v41, %v6602_v50  ;;  %v6351_v31 = vmul.f32 %v6254_v15, %v17120_v9  ;;  %v6352_v47 = vmul.f32 %v6255_v18, %v17029_v5  ;;  %v17122_v18 = vld [vmem:[#allocation256_spill] sm:$0xff] }
 0x375   : > { %v6494_v54 = vadd.f32 %v13760_v10, %v6411_v33  ;;  %v6495_v30 = vadd.f32 %v13769_v3, %v6418_v26  ;;  %v6422_v51 = vrot.slane %v6421_v44, 2  ;;  %v6429_v45 = vrot.slane %v6428_v16, 2  ;;  %v17124_v37 = vld [vmem:[#allocation52_spill] sm:$0xff]  ;;  %v17125_v33 = vld [vmem:[#allocation55_spill] sm:$0xff]  ;;  %v13932_v26 = vpop.f32.mrb[0].mxu0 }
 0x376   : > { %v6256_v27 = vadd.f32 %v13863_v40, %v17121_v17  ;;  %v6257_v34 = vadd.f32 %v13867_v60, %v17121_v17  ;;  %v6258_v50 = vadd.f32 %v13879_v56, %v17039_v32  ;;  %v6259_v15 = vadd.f32 %v6137_v52, %v17039_v32  ;;  %v13936_v52 = vpop.f32.mrb[1].mxu0 }
 0x377   : > { %v6524_v5 = vrot.slane %v6494_v54, 5  ;;  %v6559_v42 = vmax.f32 %v17122_v18, %v6494_v54  ;;  %v6538_v49 = vrot.slane %v6495_v30, 5  ;;  %v6560_v13 = vmax.f32 %v17123_v12, %v6495_v30 }
 0x378   : > { %v6423_v22 = vadd.f32 %v6422_v51, %v6421_v44  ;;  %v6430_v4 = vadd.f32 %v6429_v45, %v6428_v16  ;;  %v6353_v41 = vmul.f32 %v6256_v27, %v17124_v37  ;;  %v6354_v40 = vmul.f32 %v6257_v34, %v17125_v33  ;;  %v13938_v44 = vpop.f32.mrb[2].mxu0  ;;  %v17126_v45 = vld [vmem:[#allocation58_spill] sm:$0xff]  ;;  %v17127_v34 = vld [vmem:[#allocation59_spill] sm:$0xff] }
 0x379   : > { %v6525_v60 = vsel %vm2162_vm2, %v6524_v5, %v6523_v53  ;;  %v6591_v9 = vrot.slane %v6559_v42, 5  ;;  %v6539_v56 = vsel %vm2162_vm2, %v6538_v49, %v6537_v25  ;;  %v6605_v32 = vrot.slane %v6560_v13, 5  ;;  %v13944_v5 = vpop.f32.mrb[3].mxu0  ;;  %v17128_v13 = vld [vmem:[#allocation49_spill] sm:$0xff] }
 0x37a   : > { %v6424_v54 = vrot.slane %v6423_v22, 1  ;;  %v6431_v17 = vrot.slane %v6430_v4, 1  ;;  %v6433_v18 = vadd.f32 %v6353_v41, %v6351_v31  ;;  %v6440_v30 = vadd.f32 %v6354_v40, %v6352_v47 }
 0x37b   : > { %v6592_v16 = vsel %vm2162_vm2, %v6591_v9, %v6590_v7  ;;  %v6606_v51 = vsel %vm2162_vm2, %v6605_v32, %v6604_v62  ;;  %v6355_v27 = vmul.f32 %v6258_v50, %v17126_v45  ;;  %v6356_v53 = vmul.f32 %v6259_v15, %v17127_v34 }
 0x37c   : > { %v6425_v25 = vadd.f32 %v6424_v54, %v6423_v22  ;;  %v6432_v42 = vadd.f32 %v6431_v17, %v6430_v4  ;;  %v6434_v49 = vrot.slane %v6433_v18, 4  ;;  %v6441_v12 = vrot.slane %v6440_v30, 4  ;;  %v13954_v22 = vpop.f32.mrb[239].mxu1  ;;  %v17129_v4 = vld [vmem:[#allocation60_spill] sm:$0xff]  ;;  %v13962_v54 = vpop.f32.mrb[4].mxu0 }
 0x37d   : > { %v6260_v31 = vadd.f32 %v13885_v20, %v17128_v13  ;;  %v6261_v47 = vadd.f32 %v13891_v29, %v17128_v13  ;;  %v6262_v7 = vadd.f32 %v6145_v23, %v17059_v36  ;;  %v6263_v62 = vadd.f32 %v6147_v28, %v17059_v36  ;;  %v17130_v28 = vld [vmem:[#allocation62_spill] sm:$0xff]  ;;  %v13964_v34 = vpop.f32.mrb[5].mxu0 }
 0x37e   : > { %v6496_v50 = vadd.f32 %v13760_v10, %v6425_v25  ;;  %v6497_v15 = vadd.f32 %v13769_v3, %v6432_v42  ;;  %v6435_v37 = vadd.f32 %v6434_v49, %v6433_v18  ;;  %v6442_v41 = vadd.f32 %v6441_v12, %v6440_v30  ;;  %v13968_v42 = vpop.f32.mrb[6].mxu0 }
 0x37f   : > { %v6357_v33 = vmul.f32 %v6260_v31, %v17129_v4  ;;  %v6358_v40 = vmul.f32 %v6261_v47, %v17065_v11  ;;  %v6359_v20 = vmul.f32 %v6262_v7, %v17066_v35  ;;  %v6360_v29 = vmul.f32 %v6263_v62, %v17076_v43  ;;  %v13970_v31 = vpop.f32.mrb[7].mxu0 }
 0x380   : > { %v6526_v9 = vrot.slane %v6496_v50, 4  ;;  %v6561_v23 = vmax.f32 %v13684_v39, %v6496_v50  ;;  %v6540_v36 = vrot.slane %v6497_v15, 4  ;;  %v6562_v32 = vmax.f32 %v17130_v28, %v6497_v15 }
 0x381   : > { %v6436_v17 = vrot.slane %v6435_v37, 2  ;;  %v6443_v18 = vrot.slane %v6442_v41, 2  ;;  %v6447_v30 = vadd.f32 %v6357_v33, %v6355_v27  ;;  %v6454_v45 = vadd.f32 %v6358_v40, %v6356_v53  ;;  %v17131_v53 = vld [vmem:[#allocation66_spill] sm:$0xff]  ;;  %v17135_v33 = vld [vmem:[#allocation41_spill] sm:$0xff] }
 0x382   : > { %v6527_v11 = vsel %vm2165_vm3, %v6526_v9, %v6525_v60  ;;  %v6593_v25 = vrot.slane %v6561_v23, 4  ;;  %v6541_v35 = vsel %vm2165_vm3, %v6540_v36, %v6539_v56  ;;  %v6607_v43 = vrot.slane %v6562_v32, 4  ;;  %v17136_v40 = vld [vmem:[#allocation270_spill] sm:$0xff]  ;;  %v17139_v23 = vld [vmem:[#allocation71_spill] sm:$0xff] }
 0x383   : > { %v6437_v39 = vadd.f32 %v6436_v17, %v6435_v37  ;;  %v6444_v49 = vadd.f32 %v6443_v18, %v6442_v41  ;;  %v6448_v12 = vrot.slane %v6447_v30, 4  ;;  %v6455_v13 = vrot.slane %v6454_v45, 4  ;;  %v17132_v37 = vld [vmem:[#allocation139_spill] sm:$0xff]  ;;  %v17133_v41 = vld [vmem:[#allocation124_spill] sm:$0xff] }
 0x384   : > { %v6594_v47 = vsel %vm2165_vm3, %v6593_v25, %v6592_v16  ;;  %v6608_v27 = vsel %vm2165_vm3, %v6607_v43, %v6606_v51  ;;  %v6264_v7 = vadd.f32 %v13909_v21, %v17131_v53  ;;  %v6265_v60 = vadd.f32 %v13911_v24, %v17131_v53  ;;  %v17138_v16 = vld [vmem:[#allocation70_spill] sm:$0xff]  ;;  %v17140_v17 = vld [vmem:[#allocation19_spill] sm:$0xff] }
 0x385   : > { %v6438_v56 = vrot.slane %v6437_v39, 1  ;;  %v6445_v62 = vrot.slane %v6444_v49, 1  ;;  %v6449_v50 = vadd.f32 %v6448_v12, %v6447_v30  ;;  %v6456_v15 = vadd.f32 %v6455_v13, %v6454_v45  ;;  %v17142_v30 = vld [vmem:[#allocation141_spill] sm:$0xff]  ;;  %v17143_v45 = vld [vmem:[#allocation20_spill] sm:$0xff]  ;;  %v13996_v13 = vpop.f32.mrb[8].mxu0 }
 0x386   : > { %v13980_v4 = vadd.f32 %v17133_v41, %v17132_v37  ;;  %v13984_v9 = vadd.f32 %v17136_v40, %v17135_v33  ;;  %v6361_v51 = vmul.f32 %v6264_v7, %v17138_v16  ;;  %v6362_v36 = vmul.f32 %v6265_v60, %v17139_v23  ;;  %v14000_v60 = vpop.f32.mrb[9].mxu0  ;;  %v17147_v23 = vld [vmem:[#allocation69_spill] sm:$0xff] }
 0x387   : > { %v6439_v21 = vadd.f32 %v6438_v56, %v6437_v39  ;;  %v6446_v28 = vadd.f32 %v6445_v62, %v6444_v49  ;;  %v6450_v32 = vrot.slane %v6449_v50, 2  ;;  %v6457_v24 = vrot.slane %v6456_v15, 2  ;;  %v17145_v56 = vld [vmem:[#allocation21_spill] sm:$0xff] }
 0x388   : > { %17134 = vst [vmem:[#allocation72_spill] sm:$0xff] %v13980_v4  ;;  %17137 = vst [vmem:[#allocation261_spill] sm:$0xff] %v13984_v9  ;;  %v13990_v18 = vadd.f32 %v17140_v17, %v17135_v33  ;;  %v13994_v25 = vadd.f32 %v17143_v45, %v17142_v30  ;;  %v6461_v43 = vadd.f32 %v6361_v51, %v6359_v20  ;;  %v17149_v9 = vld [vmem:[#allocation12_spill] sm:$0xff] }
 0x389   : > { %v6468_v12 = vadd.f32 %v6362_v36, %v6360_v29  ;;  %v6498_v53 = vadd.f32 %v13760_v10, %v6439_v21  ;;  %v6499_v7 = vadd.f32 %v13769_v3, %v6446_v28  ;;  %v6451_v39 = vadd.f32 %v6450_v32, %v6449_v50 }
 0x38a   : > { %17141 = vst [vmem:[#allocation14_spill] sm:$0xff] %v13990_v18  ;;  %17144 = vst [vmem:[#allocation200_spill] sm:$0xff] %v13994_v25  ;;  %v6458_v49 = vadd.f32 %v6457_v24, %v6456_v15  ;;  %v14004_v62 = vadd.f32 %v17145_v56, %v17142_v30  ;;  %v6462_v41 = vrot.slane %v6461_v43, 4  ;;  %v17148_v18 = vld [vmem:[#allocation165_spill] sm:$0xff] }
 0x38b   : > { %v6469_v40 = vrot.slane %v6468_v12, 4  ;;  %v6528_v16 = vrot.slane %v6498_v53, 3  ;;  %v6563_v20 = vmax.f32 %v17147_v23, %v6498_v53  ;;  %v6542_v29 = vrot.slane %v6499_v7, 3 }
 0x38c   : > { %17146 = vst [vmem:[#allocation264_spill] sm:$0xff] %v14004_v62  ;;  %v6564_v51 = vmax.f32 %v13743_v46, %v6499_v7  ;;  %v6452_v36 = vrot.slane %v6451_v39, 1  ;;  %v6459_v21 = vrot.slane %v6458_v49, 1  ;;  %v6463_v17 = vadd.f32 %v6462_v41, %v6461_v43  ;;  %v17151_v46 = vld [vmem:[#allocation276_spill] sm:$0xff]  ;;  %v17153_v41 = vld [vmem:[#allocation178_spill] sm:$0xff] }
 0x38d   : > { %v6470_v28 = vadd.f32 %v6469_v40, %v6468_v12  ;;  %v6529_v50 = vsel %vm2168_vm4, %v6528_v16, %v6527_v11  ;;  %v6595_v15 = vrot.slane %v6563_v20, 3  ;;  %v6543_v32 = vsel %vm2168_vm4, %v6542_v29, %v6541_v35  ;;  %v17154_v40 = vld [vmem:[#allocation26_spill] sm:$0xff]  ;;  %v17158_v20 = vld [vmem:[#allocation173_spill] sm:$0xff]  ;;  %v17159_v29 = vld [vmem:[#allocation279_spill] sm:$0xff] }
 0x38e   : > { %v6609_v24 = vrot.slane %v6564_v51, 3  ;;  %v6453_v45 = vadd.f32 %v6452_v36, %v6451_v39  ;;  %v6460_v56 = vadd.f32 %v6459_v21, %v6458_v49  ;;  %v6464_v62 = vrot.slane %v6463_v17, 2 }
 0x38f   : > { %v6471_v25 = vrot.slane %v6470_v28, 2  ;;  %v14012_v53 = vadd.f32 %v17149_v9, %v17148_v18  ;;  %v14016_v7 = vadd.f32 %v17151_v46, %v17148_v18  ;;  %v6596_v43 = vsel %vm2168_vm4, %v6595_v15, %v6594_v47  ;;  %v17156_v9 = vld [vmem:[#allocation277_spill] sm:$0xff] }
 0x390   : > { %v6610_v11 = vsel %vm2168_vm4, %v6609_v24, %v6608_v27  ;;  %v6500_v12 = vadd.f32 %v13760_v10, %v6453_v45  ;;  %v6501_v35 = vadd.f32 %v13769_v3, %v6460_v56  ;;  %v6465_v39 = vadd.f32 %v6464_v62, %v6463_v17  ;;  %v17161_v62 = vld [vmem:[#allocation169_spill] sm:$0xff]  ;;  %v17164_v24 = vld [vmem:[#allocation280_spill] sm:$0xff] }
 0x391   : > { %17150 = vst [vmem:[#allocation265_spill] sm:$0xff] %v14012_v53  ;;  %17152 = vst [vmem:[#allocation267_spill] sm:$0xff] %v14016_v7  ;;  %v6472_v49 = vadd.f32 %v6471_v25, %v6470_v28  ;;  %v14024_v16 = vadd.f32 %v17154_v40, %v17153_v41  ;;  %v14028_v23 = vadd.f32 %v17156_v9, %v17153_v41  ;;  %v9883_v47 = vmov 1966171168   ;;  %v17163_v28 = vld [vmem:[#allocation181_spill] sm:$0xff]  ;;  %v17209_v53 = vld [vmem:[#allocation176_spill] sm:$0xff] }
 0x392   : > { %v14032_v51 = vadd.f32 %v17159_v29, %v17158_v20  ;;  %v6628_v27 = vunpack.c.l.s4 %v9883_v47  ;;  %v6530_v36 = vrot.slane %v6500_v12, 2  ;;  %v6565_v21 = vmax.f32 %v13784_v14, %v6500_v12  ;;  %v17166_v14 = vld [vmem:[#allocation88_spill] sm:$0xff]  ;;  %v17208_v7 = vld [vmem:[#allocation157_spill] sm:$0xff] }
 0x393   : > { %17155 = vst [vmem:[#allocation27_spill] sm:$0xff] %v14024_v16  ;;  %17157 = vst [vmem:[#allocation29_spill] sm:$0xff] %v14028_v23  ;;  %v6544_v15 = vrot.slane %v6501_v35, 2  ;;  %v6566_v25 = vmax.f32 %v13794_v8, %v6501_v35  ;;  %v14038_v17 = vadd.f32 %v17161_v62, %v17158_v20  ;;  %v14042_v45 = vadd.f32 %v17164_v24, %v17163_v28  ;;  %v17168_v8 = vld [vmem:[#allocation179_spill] sm:$0xff]  ;;  %v17169_v35 = vld [vmem:[#allocation13_spill] sm:$0xff] }
 0x394   : > { %17160 = vst [vmem:[#allocation7_spill] sm:$0xff] %v14032_v51  ;;  %v6466_v56 = vrot.slane %v6465_v39, 1  ;;  %v6473_v46 = vrot.slane %v6472_v49, 1  ;;  %v6531_v40 = vsel %vm2171_vm5, %v6530_v36, %v6529_v50  ;;  %v6597_v9 = vrot.slane %v6565_v21, 2  ;;  %v17171_v24 = vld [vmem:[#allocation38_spill] sm:$0xff]  ;;  %v17173_v21 = vld [vmem:[#allocation185_spill] sm:$0xff] }
 0x395   : > { %17162 = vst [vmem:[#allocation8_spill] sm:$0xff] %v14038_v17  ;;  %17165 = vst [vmem:[#allocation125_spill] sm:$0xff] %v14042_v45  ;;  %v6545_v29 = vsel %vm2171_vm5, %v6544_v15, %v6543_v32  ;;  %v6611_v47 = vrot.slane %v6566_v25, 2  ;;  %v14048_v12 = vadd.f32 %v17166_v14, %v17163_v28  ;;  %v14052_v62 = vadd.f32 %v17169_v35, %v17168_v8  ;;  %v17174_v15 = vld [vmem:[#allocation247_spill] sm:$0xff]  ;;  %v17176_v14 = vld [vmem:[#allocation281_spill] sm:$0xff] }
 0x396   : > { %v6467_v17 = vadd.f32 %v6466_v56, %v6465_v39  ;;  %v6474_v51 = vadd.f32 %v6473_v46, %v6472_v49  ;;  %v14056_v45 = vadd.f32 %v17171_v24, %v17168_v8  ;;  %v6598_v50 = vsel %vm2171_vm5, %v6597_v9, %v6596_v43  ;;  %v17178_v56 = vld [vmem:[#allocation186_spill] sm:$0xff]  ;;  %v17179_v46 = vld [vmem:[#allocation47_spill] sm:$0xff]  ;;  %v17181_v43 = vld [vmem:[#allocation241_spill] sm:$0xff] }
 0x397   : > { %17167 = vst [vmem:[#allocation273_spill] sm:$0xff] %v14048_v12  ;;  %17170 = vst [vmem:[#allocation9_spill] sm:$0xff] %v14052_v62  ;;  %v6612_v36 = vsel %vm2171_vm5, %v6611_v47, %v6610_v11  ;;  %v6629_v32 = vunpack.c.0.s8 %v6628_v27  ;;  %v14062_v25 = vadd.f32 %v17174_v15, %v17173_v21  ;;  %v14066_v12 = vadd.f32 %v17176_v14, %v17173_v21  ;;  %v17183_v27 = vld [vmem:[#allocation189_spill] sm:$0xff]  ;;  %v17184_v9 = vld [vmem:[#allocation282_spill] sm:$0xff]  ;;  %v14086_v14 = vpop.f32.mrb[240].mxu1 }
 0x398   : > { %17172 = vst [vmem:[#allocation30_spill] sm:$0xff] %v14056_v45  ;;  %v6502_v39 = vadd.f32 %v13760_v10, %v6467_v17  ;;  %v6503_v49 = vadd.f32 %v13769_v3, %v6474_v51  ;;  %v14072_v35 = vadd.f32 %v17179_v46, %v17178_v56  ;;  %v14076_v11 = vadd.f32 %v17181_v43, %v17178_v56  ;;  %v17186_v24 = vld [vmem:[#allocation283_spill] sm:$0xff] }
 0x399   : > { %17175 = vst [vmem:[#allocation31_spill] sm:$0xff] %v14062_v25  ;;  %17177 = vst [vmem:[#allocation11_spill] sm:$0xff] %v14066_v12  ;;  %v14080_v47 = vadd.f32 %v17184_v9, %v17183_v27  ;;  %v14084_v15 = vadd.f32 %v17186_v24, %v17183_v27  ;;  %v17188_v46 = vld [vmem:[#allocation123_spill] sm:$0xff]  ;;  %v17191_v9 = vld [vmem:[#allocation245_spill] sm:$0xff] }
 0x39a   : > { %17180 = vst [vmem:[#allocation33_spill] sm:$0xff] %v14072_v35  ;;  %17182 = vst [vmem:[#allocation34_spill] sm:$0xff] %v14076_v11  ;;  %v6532_v10 = vrot.slane %v6502_v39, 1  ;;  %v6567_v3 = vmax.f32 %v13819_v6, %v6502_v39  ;;  %v6546_v51 = vrot.slane %v6503_v49, 1  ;;  %v6568_v17 = vmax.f32 %v13824_v38, %v6503_v49  ;;  %v17189_v35 = vld [vmem:[#allocation54_spill] sm:$0xff]  ;;  %v17190_v11 = vld [vmem:[#allocation24_spill] sm:$0xff] }
 0x39b   : > { %17185 = vst [vmem:[#allocation39_spill] sm:$0xff] %v14080_v47  ;;  %17187 = vst [vmem:[#allocation87_spill] sm:$0xff] %v14084_v15  ;;  %v14092_v43 = vadd.f32 %v17189_v35, %v17188_v46  ;;  %v14095_v12 = vsub.s32 %v6629_v32, %v17190_v11  ;;  %v14099_v47 = vadd.f32 %v17191_v9, %v17188_v46  ;;  %v17192_v24 = vld [vmem:[#allocation127_spill] sm:$0xff]  ;;  %v17193_v15 = vld [vmem:[#allocation57_spill] sm:$0xff] }
 0x39c   : > { %v14103_v25 = vadd.f32 %v17193_v15, %v17192_v24  ;;  %v6533_v6 = vsel %vm2174_vm6, %v6532_v10, %v6531_v40  ;;  %v6599_v39 = vrot.slane %v6567_v3, 1  ;;  %v14107_v38 = vsel %vm2174_vm6, %v6546_v51, %v6545_v29  ;;  %v17194_v35 = vld [vmem:[#allocation246_spill] sm:$0xff]  ;;  %v17196_v32 = vld [vmem:[#allocation128_spill] sm:$0xff]  ;;  %v17197_v11 = vld [vmem:[#allocation65_spill] sm:$0xff] }
 0x39d   : > { %v6613_v49 = vrot.slane %v6568_v17, 1  ;;  %v14111_v45 = vadd.f32 %v17194_v35, %v17192_v24  ;;  %v14115_v62 = vadd.f32 %v17197_v11, %v17196_v32  ;;  %v17199_v9 = vld [vmem:[#allocation64_spill] sm:$0xff]  ;;  %v17201_v15 = vld [vmem:[#allocation129_spill] sm:$0xff]  ;;  %v17202_v16 = vld [vmem:[#allocation251_spill] sm:$0xff]  ;;  %v14131_v3 = vadd.f32 %v13932_v26, %v17188_v46 }
 0x39e   : > { %v14119_v23 = vadd.f32 %v17199_v9, %v17196_v32  ;;  %v14123_v40 = vadd.f32 %v17202_v16, %v17201_v15  ;;  %v6600_v29 = vsel %vm2174_vm6, %v6599_v39, %v6598_v50  ;;  %v14135_v51 = vadd.f32 %v13765_v48, %v17201_v15  ;;  %v17206_v17 = vld [vmem:[#allocation91_spill] sm:$0xff]  ;;  %v17210_v50 = vld [vmem:[#allocation80_spill] sm:$0xff]  ;;  %v17212_v48 = vld [vmem:[#allocation93_spill] sm:$0xff] }
 0x39f   : > { %17195 = vst [vmem:[#allocation32_spill] sm:$0xff] %v14111_v45  ;;  %17198 = vst [vmem:[#allocation35_spill] sm:$0xff] %v14115_v62  ;;  %v14127_v10 = vsel %vm2174_vm6, %v6613_v49, %v6612_v36  ;;  %v6617_v35 = vsub.f32 %v17206_v17, %v6600_v29  ;;  %v17207_v11 = vld [vmem:[#allocation131_spill] sm:$0xff]  ;;  %v7093_v16 = vsub.f32 %v17208_v7, %v6600_v29 }
 0x3a0   : > { %17200 = vst [vmem:[#allocation37_spill] sm:$0xff] %v14119_v23  ;;  %17203 = vst [vmem:[#allocation42_spill] sm:$0xff] %v14123_v40  ;;  %v6855_v9 = vsub.f32 %v17207_v11, %v6600_v29  ;;  %v7331_v4 = vsub.f32 %v17209_v53, %v6600_v29  ;;  %v7569_v39 = vsub.f32 %v17210_v50, %v6600_v29  ;;  %v17211_v36 = vld [vmem:[#allocation23_spill] sm:$0xff]  ;;  %v17213_v11 = vld [vmem:[#allocation132_spill] sm:$0xff] }
 0x3a1   : > { %17204 = vst [vmem:[#allocation43_spill] sm:$0xff] %v14131_v3  ;;  %17205 = vst [vmem:[#allocation15_spill] sm:$0xff] %v14135_v51  ;;  %v7807_v49 = vsub.f32 %v17211_v36, %v6600_v29  ;;  %v8045_v40 = vsub.f32 %v13829_v59, %v6600_v29  ;;  %v8283_v26 = vsub.f32 %v6533_v6, %v6600_v29  ;;  %v6619_v3 = vmul.f32 1.442695, %v6617_v35  ;;  %v17215_v7 = vld [vmem:[#allocation83_spill] sm:$0xff]  ;;  %v5572_v36 = vpop.f32.mrb[241].mxu1 }
 0x3a2   : > { %v6857_v23 = vmul.f32 1.442695, %v6855_v9  ;;  %v7095_v62 = vmul.f32 1.442695, %v7093_v16  ;;  %v6618_v51 = vsub.f32 %v17212_v48, %v14127_v10  ;;  %v7333_v17 = vmul.f32 1.442695, %v7331_v4 }
 0x3a3   : > { %v6856_v45 = vsub.f32 %v17213_v11, %v14127_v10  ;;  %v14150_v53 = vadd.f32 %v13936_v52, %v17188_v46  ;;  %v14154_v50 = vadd.f32 %v13771_v63, %v17215_v7  ;;  %9764 = vpow2.f32 %v6619_v3  ;;  %v17218_v35 = vld [vmem:[#allocation159_spill] sm:$0xff]  ;;  %v6179_v46 = vpop.f32.mrb[10].mxu0  ;;  %v17220_v63 = vld [vmem:[#allocation85_spill] sm:$0xff] }
 0x3a4   : > { %v7571_v59 = vmul.f32 1.442695, %v7569_v39  ;;  %v7809_v6 = vmul.f32 1.442695, %v7807_v49  ;;  %v14158_v29 = vadd.f32 %v13938_v44, %v17192_v24  ;;  %9766 = vpow2.f32 %v6857_v23  ;;  %v17219_v16 = vld [vmem:[#allocation211_spill] sm:$0xff]  ;;  %v17221_v39 = vld [vmem:[#allocation274_spill] sm:$0xff] }
 0x3a5   : > { %17214 = vst [vmem:[#allocation171_spill] sm:$0xff] %v14150_v53  ;;  %17216 = vst [vmem:[#allocation208_spill] sm:$0xff] %v14154_v50  ;;  %v8047_v4 = vmul.f32 1.442695, %v8045_v40  ;;  %v7094_v9 = vsub.f32 %v17218_v35, %v14127_v10  ;;  %v7332_v52 = vsub.f32 %v17219_v16, %v14127_v10  ;;  %9768 = vpow2.f32 %v7095_v62  ;;  %v17309_v50 = vld [vmem:[#allocation144_spill] sm:$0xff]  ;;  %v17314_v53 = vld [vmem:[#allocation255_spill] sm:$0xff] }
 0x3a6   : > { %17217 = vst [vmem:[#allocation44_spill] sm:$0xff] %v14158_v29  ;;  %v7570_v3 = vsub.f32 %v17220_v63, %v14127_v10  ;;  %v7808_v49 = vsub.f32 %v17221_v39, %v14127_v10  ;;  %v8046_v44 = vsub.f32 %v13832_v19, %v14127_v10  ;;  %9770 = vpow2.f32 %v7333_v17 }
 0x3a7   : > { %v8285_v23 = vmul.f32 1.442695, %v8283_v26  ;;  %v8284_v40 = vsub.f32 %v14107_v38, %v14127_v10  ;;  %v14174_v48 = vadd.f32 %v13804_v2, %v17215_v7  ;;  %9772 = vpow2.f32 %v7571_v59 }
 0x3a8   : > { %v6621_v62 = vmul.f32 1.442695, %v6618_v51  ;;  %v14178_v11 = vadd.f32 %v13944_v5, %v17192_v24  ;;  %v14182_v35 = vadd.f32 %v13826_v58, %v17132_v37  ;;  %9774 = vpow2.f32 %v7809_v6  ;;  %v6181_v24 = vpop.f32.mrb[11].mxu0 }
 0x3a9   : > { %17222 = vst [vmem:[#allocation46_spill] sm:$0xff] %v14174_v48  ;;  %v6859_v19 = vmul.f32 1.442695, %v6856_v45  ;;  %v14186_v26 = vadd.f32 %v13962_v54, %v17196_v32  ;;  %v14190_v2 = vadd.f32 %v13873_v0, %v17132_v37  ;;  %9776 = vpow2.f32 %v8047_v4  ;;  %v5574_v45 = vpop.f32.mrb[242].mxu1 }
 0x3aa   : > { %17223 = vst [vmem:[#allocation48_spill] sm:$0xff] %v14178_v11  ;;  %17224 = vst [vmem:[#allocation45_spill] sm:$0xff] %v14182_v35  ;;  %v7097_v38 = vmul.f32 1.442695, %v7094_v9  ;;  %v14194_v5 = vadd.f32 %v13964_v34, %v17196_v32  ;;  %v14198_v58 = vadd.f32 %v13881_v55, %v17135_v33  ;;  %9778 = vpow2.f32 %v8285_v23  ;;  %v17242_v9 = vld [vmem:[#allocation104_spill] sm:$0xff] }
 0x3ab   : > { %17225 = vst [vmem:[#allocation239_spill] sm:$0xff] %v14186_v26  ;;  %17226 = vst [vmem:[#allocation50_spill] sm:$0xff] %v14190_v2  ;;  %v7335_v10 = vmul.f32 1.442695, %v7332_v52  ;;  %v14202_v54 = vadd.f32 %v13968_v42, %v17201_v15  ;;  %v14206_v0 = vadd.f32 %v13903_v61, %v17135_v33  ;;  %9780 = vpow2.f32 %v6621_v62  ;;  %v17250_v62 = vld [vmem:[#allocation110_spill] sm:$0xff]  ;;  %v17305_v2 = vld [vmem:[#allocation224_spill] sm:$0xff] }
 0x3ac   : > { %17227 = vst [vmem:[#allocation25_spill] sm:$0xff] %v14194_v5  ;;  %17228 = vst [vmem:[#allocation256_spill] sm:$0xff] %v14198_v58  ;;  %v7573_v51 = vmul.f32 1.442695, %v7570_v3  ;;  %v14210_v34 = vadd.f32 %v13970_v31, %v17201_v15  ;;  %v14214_v55 = vadd.f32 %v13917_v57, %v17142_v30  ;;  %9782 = vpow2.f32 %v6859_v19  ;;  %v17236_v57 = vld [vmem:[#allocation102_spill] sm:$0xff] }
 0x3ad   : > { %17229 = vst [vmem:[#allocation40_spill] sm:$0xff] %v14202_v54  ;;  %17230 = vst [vmem:[#allocation52_spill] sm:$0xff] %v14206_v0  ;;  %v7811_v32 = vmul.f32 1.442695, %v7808_v49  ;;  %v14218_v42 = vadd.f32 %v13996_v13, %v17215_v7  ;;  %v14222_v61 = vadd.f32 %v13954_v22, %v17142_v30  ;;  %v14224_v17 = vpop.eup %9764  ;;  %9784 = vpow2.f32 %v7097_v38  ;;  %v17240_v22 = vld [vmem:[#allocation103_spill] sm:$0xff] }
 0x3ae   : > { %17231 = vst [vmem:[#allocation55_spill] sm:$0xff] %v14210_v34  ;;  %17232 = vst [vmem:[#allocation58_spill] sm:$0xff] %v14214_v55  ;;  %v8049_v59 = vmul.f32 1.442695, %v8046_v44  ;;  %v14228_v31 = vadd.f32 %v14000_v60, %v17215_v7  ;;  %v14232_v15 = vadd.f32 %v17148_v18, %v17236_v57  ;;  %v14234_v6 = vpop.eup %9766  ;;  %9786 = vpow2.f32 %v7335_v10  ;;  %v6185_v60 = vpop.f32.mrb[12].mxu0  ;;  %v17248_v44 = vld [vmem:[#allocation105_spill] sm:$0xff] }
 0x3af   : > { %17233 = vst [vmem:[#allocation59_spill] sm:$0xff] %v14218_v42  ;;  %17234 = vst [vmem:[#allocation49_spill] sm:$0xff] %v14222_v61  ;;  %v14238_v13 = vadd.f32 %v14086_v14, %v17148_v18  ;;  %v14242_v4 = vadd.f32 %v17148_v18, %v17240_v22  ;;  %v14246_v16 = vadd.f32 %v17153_v41, %v17242_v9  ;;  %v5576_v7 = vpop.f32.mrb[243].mxu1  ;;  %v14248_v52 = vpop.eup %9768  ;;  %9788 = vpow2.f32 %v7573_v51  ;;  %v17254_v10 = vld [vmem:[#allocation111_spill] sm:$0xff]  ;;  %v17258_v9 = vld [vmem:[#allocation112_spill] sm:$0xff] }
 0x3b0   : > { %17235 = vst [vmem:[#allocation60_spill] sm:$0xff] %v14228_v31  ;;  %17237 = vst [vmem:[#allocation62_spill] sm:$0xff] %v14232_v15  ;;  %v8287_v63 = vmul.f32 1.442695, %v8284_v40  ;;  %v6993_v3 = vadd.f32 %v14234_v6, %v14224_v17  ;;  %v14253_v14 = vadd.f32 %v6179_v46, %v17132_v37  ;;  %v14255_v39 = vpop.eup %9770  ;;  %9790 = vpow2.f32 %v7811_v32  ;;  %v6187_v57 = vpop.f32.mrb[13].mxu0  ;;  %v17304_v34 = vld [vmem:[#allocation194_spill] sm:$0xff] }
 0x3b1   : > { %17238 = vst [vmem:[#allocation66_spill] sm:$0xff] %v14234_v6  ;;  %17239 = vst [vmem:[#allocation139_spill] sm:$0xff] %v14238_v13  ;;  %v14258_v49 = vadd.f32 %v5572_v36, %v17148_v18  ;;  %v14262_v23 = vadd.f32 %v17153_v41, %v17248_v44  ;;  %v14266_v19 = vadd.f32 %v17158_v20, %v17250_v62  ;;  %v14268_v40 = vpop.eup %9772  ;;  %9792 = vpow2.f32 %v8049_v59  ;;  %v5580_v22 = vpop.f32.mrb[244].mxu1  ;;  %v17260_v59 = vld [vmem:[#allocation113_spill] sm:$0xff]  ;;  %v17293_v13 = vld [vmem:[#allocation96_spill] sm:$0xff] }
 0x3b2   : > { %17241 = vst [vmem:[#allocation124_spill] sm:$0xff] %v14242_v4  ;;  %17243 = vst [vmem:[#allocation41_spill] sm:$0xff] %v14246_v16  ;;  %v7231_v46 = vadd.f32 %v14248_v52, %v6993_v3  ;;  %v14272_v38 = vadd.f32 %v6181_v24, %v17132_v37  ;;  %v14276_v36 = vadd.f32 %v17158_v20, %v17254_v10  ;;  %v14278_v51 = vpop.eup %9774  ;;  %v17262_v37 = vld [vmem:[#allocation53_spill] sm:$0xff]  ;;  %9794 = vpow2.f32 %v8287_v63 }
 0x3b3   : > { %17244 = vst [vmem:[#allocation270_spill] sm:$0xff] %v14248_v52  ;;  %17245 = vst [vmem:[#allocation70_spill] sm:$0xff] %v14253_v14  ;;  %v14281_v32 = vadd.f32 %v5574_v45, %v17153_v41  ;;  %v14285_v44 = vadd.f32 %v17163_v28, %v17258_v9  ;;  %v14289_v3 = vadd.f32 %v17163_v28, %v17260_v59  ;;  %v14295_v62 = vpop.eup %9776  ;;  %v17265_v45 = vld [vmem:[#allocation115_spill] sm:$0xff] }
 0x3b4   : > { %17246 = vst [vmem:[#allocation71_spill] sm:$0xff] %v14255_v39  ;;  %17247 = vst [vmem:[#allocation19_spill] sm:$0xff] %v14258_v49  ;;  %v14293_v24 = vadd.f32 %v17168_v8, %v17262_v37  ;;  %v7469_v10 = vadd.f32 %v14255_v39, %v7231_v46  ;;  %v14300_v18 = vadd.f32 %v17168_v8, %v17265_v45  ;;  %v17272_v37 = vld [vmem:[#allocation118_spill] sm:$0xff]  ;;  %v17274_v28 = vld [vmem:[#allocation119_spill] sm:$0xff] }
 0x3b5   : > { %17249 = vst [vmem:[#allocation20_spill] sm:$0xff] %v14262_v23  ;;  %17251 = vst [vmem:[#allocation21_spill] sm:$0xff] %v14266_v19  ;;  %v14318_v46 = vadd.f32 %v17178_v56, %v17274_v28  ;;  %v17276_v45 = vld [vmem:[#allocation120_spill] sm:$0xff]  ;;  %v14415_v19 = vpop.f32.mrb[14].mxu0  ;;  %v17295_v14 = vld [vmem:[#allocation75_spill] sm:$0xff] }
 0x3b6   : > { %17252 = vst [vmem:[#allocation69_spill] sm:$0xff] %v14268_v40  ;;  %17253 = vst [vmem:[#allocation12_spill] sm:$0xff] %v14272_v38  ;;  %v17290_v23 = vld [vmem:[#allocation28_spill] sm:$0xff]  ;;  %v14470_v55 = vpop.f32.mrb[15].mxu0 }
 0x3b7   : > { %17255 = vst [vmem:[#allocation276_spill] sm:$0xff] %v14276_v36  ;;  %17256 = vst [vmem:[#allocation26_spill] sm:$0xff] %v14278_v51  ;;  %v17267_v36 = vld [vmem:[#allocation116_spill] sm:$0xff] }
 0x3b8   : > { %17257 = vst [vmem:[#allocation277_spill] sm:$0xff] %v14281_v32  ;;  %17259 = vst [vmem:[#allocation279_spill] sm:$0xff] %v14285_v44  ;;  %v14304_v9 = vadd.f32 %v17173_v21, %v17267_v36  ;;  %v17269_v44 = vld [vmem:[#allocation117_spill] sm:$0xff] }
 0x3b9   : > { %17261 = vst [vmem:[#allocation169_spill] sm:$0xff] %v14289_v3  ;;  %17263 = vst [vmem:[#allocation280_spill] sm:$0xff] %v14293_v24  ;;  %v14308_v59 = vadd.f32 %v17173_v21, %v17269_v44  ;;  %v14310_v3 = vpop.eup %9778  ;;  %v14314_v24 = vadd.f32 %v17178_v56, %v17272_v37  ;;  %v17278_v36 = vld [vmem:[#allocation121_spill] sm:$0xff]  ;;  %v14330_v21 = vadd.f32 %v6185_v60, %v17135_v33 }
 0x3ba   : > { %17264 = vst [vmem:[#allocation88_spill] sm:$0xff] %v14295_v62  ;;  %17266 = vst [vmem:[#allocation13_spill] sm:$0xff] %v14300_v18  ;;  %v14322_v18 = vadd.f32 %v17183_v27, %v17276_v45  ;;  %v9781_v44 = vpop.eup %9780  ;;  %v14333_v37 = vadd.f32 %v5576_v7, %v17153_v41  ;;  %v17291_v32 = vld [vmem:[#allocation73_spill] sm:$0xff] }
 0x3bb   : > { %17268 = vst [vmem:[#allocation38_spill] sm:$0xff] %v14304_v9  ;;  %17270 = vst [vmem:[#allocation247_spill] sm:$0xff] %v14308_v59  ;;  %v14326_v9 = vadd.f32 %v17183_v27, %v17278_v36  ;;  %v7707_v59 = vadd.f32 %v14268_v40, %v7469_v10  ;;  %v14335_v28 = vpop.eup %9782  ;;  %v6626_v45 = vcombine.high %v14224_v17, %v9781_v44 }
 0x3bc   : > { %17271 = vst [vmem:[#allocation281_spill] sm:$0xff] %v14310_v3  ;;  %17273 = vst [vmem:[#allocation47_spill] sm:$0xff] %v14314_v24  ;;  %v14343_v36 = vadd.f32 %v5580_v22, %v17158_v20  ;;  %v14345_v63 = vpop.eup %9784  ;;  %v6863_v60 = vcombine.low %v14234_v6, %v14335_v28  ;;  %v6994_v7 = vadd.f32 %v14335_v28, %v9781_v44 }
 0x3bd   : > { %17275 = vst [vmem:[#allocation241_spill] sm:$0xff] %v14318_v46  ;;  %17277 = vst [vmem:[#allocation282_spill] sm:$0xff] %v14322_v18  ;;  %v6625_v46 = vcombine.low %v14224_v17, %v9781_v44  ;;  %v14340_v18 = vadd.f32 %v6187_v57, %v17135_v33  ;;  %v7945_v10 = vadd.f32 %v14278_v51, %v7707_v59  ;;  %v14353_v27 = vpop.eup %9786 }
 0x3be   : > { %17279 = vst [vmem:[#allocation283_spill] sm:$0xff] %v14326_v9  ;;  %17280 = vst [vmem:[#allocation123_spill] sm:$0xff] %v14330_v21  ;;  %v7101_v17 = vcombine.low %v14248_v52, %v14345_v63  ;;  %v14361_v57 = vrot.slane %v6626_v45, %v14095_v12  ;;  %v14365_v44 = vpop.eup %9788  ;;  %v14368_v59 = vrot.slane %v6863_v60, %v14095_v12 }
 0x3bf   : > { %17281 = vst [vmem:[#allocation54_spill] sm:$0xff] %v14333_v37  ;;  %17282 = vst [vmem:[#allocation24_spill] sm:$0xff] %v14335_v28  ;;  %v14356_v33 = vrot.slane %v6625_v46, %v14095_v12  ;;  %v7339_v9 = vcombine.low %v14255_v39, %v14353_v27  ;;  %v14373_v46 = vadd.f32 %v14345_v63, %v6994_v7  ;;  %v14378_v56 = vpop.eup %9790 }
 0x3c0   : > { %17283 = vst [vmem:[#allocation245_spill] sm:$0xff] %v14340_v18  ;;  %17284 = vst [vmem:[#allocation127_spill] sm:$0xff] %v14343_v36  ;;  %v14376_v24 = vadd.f32 %v14295_v62, %v7945_v10  ;;  %v14385_v22 = vrot.slane %v7101_v17, %v14095_v12  ;;  %v7577_v60 = vcombine.low %v14268_v40, %v14365_v44  ;;  %v14391_v7 = vpop.eup %9792  ;;  %v14417_v18 = vpop.f32.mrb[245].mxu1 }
 0x3c1   : > { %17285 = vst [vmem:[#allocation57_spill] sm:$0xff] %v14345_v63  ;;  %17286 = vst [vmem:[#allocation246_spill] sm:$0xff] %v14361_v57  ;;  %v14382_v45 = vrot.slane %v14356_v33, %v14095_v12  ;;  %v14395_v10 = vrot.slane %v14368_v59, %v14095_v12  ;;  %v14398_v8 = vrot.slane %v7339_v9, %v14095_v12  ;;  %v14440_v38 = vpop.eup %9794  ;;  %v17298_v63 = vld [vmem:[#allocation222_spill] sm:$0xff]  ;;  %v17300_v57 = vld [vmem:[#allocation109_spill] sm:$0xff] }
 0x3c2   : > { %v7815_v36 = vcombine.low %v14278_v51, %v14378_v56  ;;  %v14408_v41 = vrot.slane %v14385_v22, %v14095_v12  ;;  %v14411_v30 = vrot.slane %v7577_v60, %v14095_v12  ;;  %v8053_v9 = vcombine.low %v14295_v62, %v14391_v7  ;;  %17287 = vst [vmem:[#allocation128_spill] sm:$0xff] %v14415_v19  ;;  %v17296_v51 = vld [vmem:[#allocation193_spill] sm:$0xff] }
 0x3c3   : > { %v6678_v20 = vrot.slane %v14382_v45, %v16944_v1  ;;  %17288 = vst [vmem:[#allocation65_spill] sm:$0xff] %v14417_v18  ;;  %v6916_v17 = vrot.slane %v14395_v10, %v16944_v1  ;;  %v14423_v21 = vrot.slane %v14398_v8, %v14095_v12  ;;  %v6682_v60 = vrot.slane %v14382_v45, %v17290_v23 }
 0x3c4   : > { %v14426_v37 = vrot.slane %v7815_v36, %v14095_v12  ;;  %v7154_v19 = vrot.slane %v14408_v41, %v16944_v1  ;;  %v14435_v18 = vrot.slane %v14411_v30, %v14095_v12  ;;  %v14438_v16 = vrot.slane %v8053_v9, %v14095_v12  ;;  %17301 = vst [vmem:[#allocation131_spill] sm:$0xff] %v14470_v55  ;;  %v17306_v55 = vld [vmem:[#allocation232_spill] sm:$0xff] }
 0x3c5   : > { %17289 = vst [vmem:[#allocation64_spill] sm:$0xff] %v14423_v21  ;;  %v6789_v49 = vmul.f32 %v6678_v20, %v17291_v32  ;;  %v7027_v36 = vmul.f32 %v6916_v17, %v17293_v13  ;;  %v7392_v4 = vrot.slane %v14423_v21, %v16944_v1  ;;  %v6790_v62 = vmul.f32 %v6682_v60, %v17295_v14 }
 0x3c6   : > { %17292 = vst [vmem:[#allocation129_spill] sm:$0xff] %v14435_v18  ;;  %v14447_v32 = vrot.slane %v14426_v37, %v14095_v12  ;;  %v7265_v40 = vmul.f32 %v7154_v19, %v17296_v51  ;;  %v7630_v15 = vrot.slane %v14435_v18, %v16944_v1  ;;  %v14455_v9 = vrot.slane %v14438_v16, %v14095_v12  ;;  %v17299_v51 = vld [vmem:[#allocation231_spill] sm:$0xff] }
 0x3c7   : > { %v6920_v13 = vrot.slane %v14395_v10, %v17290_v23  ;;  %v7059_v39 = vadd.f32 %v7027_v36, %v6789_v49  ;;  %v7503_v52 = vmul.f32 %v7392_v4, %v17298_v63  ;;  %v7158_v14 = vrot.slane %v14408_v41, %v17290_v23  ;;  %v14472_v49 = vpop.f32.mrb[246].mxu1  ;;  %v17303_v36 = vld [vmem:[#allocation253_spill] sm:$0xff] }
 0x3c8   : > { %17294 = vst [vmem:[#allocation251_spill] sm:$0xff] %v14447_v32  ;;  %17297 = vst [vmem:[#allocation91_spill] sm:$0xff] %v14455_v9  ;;  %v7868_v31 = vrot.slane %v14447_v32, %v16944_v1  ;;  %v7741_v28 = vmul.f32 %v7630_v15, %v17299_v51  ;;  %v8106_v6 = vrot.slane %v14455_v9, %v16944_v1 }
 0x3c9   : > { %v7028_v61 = vmul.f32 %v6920_v13, %v17300_v57  ;;  %v7396_v42 = vrot.slane %v14423_v21, %v17290_v23  ;;  %17302 = vst [vmem:[#allocation157_spill] sm:$0xff] %v14472_v49  ;;  %v7297_v63 = vadd.f32 %v7265_v40, %v7059_v39  ;;  %v7266_v58 = vmul.f32 %v7158_v14, %v17304_v34  ;;  %v17307_v40 = vld [vmem:[#allocation76_spill] sm:$0xff]  ;;  %v17308_v49 = vld [vmem:[#allocation254_spill] sm:$0xff] }
 0x3ca   : > { %v7979_v0 = vmul.f32 %v7868_v31, %v17303_v36  ;;  %v7634_v51 = vrot.slane %v14435_v18, %v17290_v23  ;;  %v8217_v54 = vmul.f32 %v8106_v6, %v14092_v43  ;;  %v7872_v26 = vrot.slane %v14447_v32, %v17290_v23  ;;  %v17310_v43 = vld [vmem:[#allocation195_spill] sm:$0xff]  ;;  %v17311_v18 = vld [vmem:[#allocation225_spill] sm:$0xff] }
 0x3cb   : > { %v7060_v5 = vadd.f32 %v7028_v61, %v6790_v62  ;;  %v7504_v57 = vmul.f32 %v7396_v42, %v17305_v2  ;;  %v7535_v35 = vadd.f32 %v7503_v52, %v7297_v63  ;;  %v8110_v39 = vrot.slane %v14455_v9, %v17290_v23  ;;  %v17312_v52 = vld [vmem:[#allocation234_spill] sm:$0xff] }
 0x3cc   : > { %v7742_v48 = vmul.f32 %v7634_v51, %v17306_v55  ;;  %v6791_v36 = vmul.f32 %v6678_v20, %v17307_v40  ;;  %v7980_v11 = vmul.f32 %v7872_v26, %v17308_v49  ;;  %v7029_v29 = vmul.f32 %v6916_v17, %v17309_v50  ;;  %v14492_v55 = vpop.f32.mrb[16].mxu0  ;;  %v17315_v49 = vld [vmem:[#allocation77_spill] sm:$0xff] }
 0x3cd   : > { %v7298_v34 = vadd.f32 %v7266_v58, %v7060_v5  ;;  %v7267_v61 = vmul.f32 %v7154_v19, %v17310_v43  ;;  %v7773_v62 = vadd.f32 %v7741_v28, %v7535_v35  ;;  %v8218_v2 = vmul.f32 %v8110_v39, %v14099_v47  ;;  %17313 = vst [vmem:[#allocation176_spill] sm:$0xff] %v14492_v55  ;;  %v17316_v17 = vld [vmem:[#allocation145_spill] sm:$0xff]  ;;  %v17317_v35 = vld [vmem:[#allocation196_spill] sm:$0xff] }
 0x3ce   : > { %v7505_v32 = vmul.f32 %v7392_v4, %v17311_v18  ;;  %v7743_v63 = vmul.f32 %v7630_v15, %v17312_v52  ;;  %v7061_v9 = vadd.f32 %v7029_v29, %v6791_v36  ;;  %v7981_v20 = vmul.f32 %v7868_v31, %v17314_v53  ;;  %v17318_v18 = vld [vmem:[#allocation180_spill] sm:$0xff]  ;;  %v17319_v15 = vld [vmem:[#allocation67_spill] sm:$0xff]  ;;  %v14501_v52 = vpop.f32.mrb[247].mxu1 }
 0x3cf   : > { %v7536_v21 = vadd.f32 %v7504_v57, %v7298_v34  ;;  %v8219_v5 = vmul.f32 %v8106_v6, %v14103_v25  ;;  %v8011_v58 = vadd.f32 %v7979_v0, %v7773_v62  ;;  %v6792_v50 = vmul.f32 %v6682_v60, %v17315_v49  ;;  %17320 = vst [vmem:[#allocation80_spill] sm:$0xff] %v14501_v52  ;;  %v17321_v31 = vld [vmem:[#allocation51_spill] sm:$0xff]  ;;  %v17322_v0 = vld [vmem:[#allocation32_spill] sm:$0xff]  ;;  %v14507_v60 = vpop.f32.mrb[17].mxu0 }
 0x3d0   : > { %v7030_v19 = vmul.f32 %v6920_v13, %v17316_v17  ;;  %v7268_v28 = vmul.f32 %v7158_v14, %v17317_v35  ;;  %v7299_v40 = vadd.f32 %v7267_v61, %v7061_v9  ;;  %v7506_v4 = vmul.f32 %v7396_v42, %v17318_v18  ;;  %17323 = vst [vmem:[#allocation23_spill] sm:$0xff] %v14507_v60  ;;  %v14509_v13 = vpop.f32.mrb[248].mxu1  ;;  %v17327_v61 = vld [vmem:[#allocation79_spill] sm:$0xff]  ;;  %v17348_v52 = vld [vmem:[#allocation204_spill] sm:$0xff] }
 0x3d1   : > { %v7774_v47 = vadd.f32 %v7742_v48, %v7536_v21  ;;  %v7744_v43 = vmul.f32 %v7634_v51, %v17319_v15  ;;  %v14503_v29 = vadd.f32 %v8217_v54, %v8011_v58  ;;  %v7982_v25 = vmul.f32 %v7872_v26, %v17321_v31  ;;  %17324 = vst [vmem:[#allocation93_spill] sm:$0xff] %v14509_v13 }
 0x3d2   : > { %v7062_v53 = vadd.f32 %v7030_v19, %v6792_v50  ;;  %v8220_v6 = vmul.f32 %v8110_v39, %v17322_v0  ;;  %v7537_v21 = vadd.f32 %v7505_v32, %v7299_v40  ;;  %v17325_v48 = vcombine.high %v14356_v33, %v14356_v33  ;;  %v17330_v40 = vld [vmem:[#allocation197_spill] sm:$0xff] }
 0x3d3   : > { %v8012_v14 = vadd.f32 %v7980_v11, %v7774_v47  ;;  %v17326_v54 = vcombine.high %v14368_v59, %v14368_v59  ;;  %v7117_v51 = vcombine.high %v14385_v22, %v14385_v22  ;;  %v7355_v11 = vcombine.high %v14398_v8, %v14398_v8 }
 0x3d4   : > { %v14515_v42 = vrot.slane %v17325_v48, %v14095_v12  ;;  %v7300_v26 = vadd.f32 %v7268_v28, %v7062_v53  ;;  %v7593_v32 = vcombine.high %v14411_v30, %v14411_v30  ;;  %v7775_v33 = vadd.f32 %v7743_v63, %v7537_v21 }
 0x3d5   : > { %v14521_v9 = vrot.slane %v17326_v54, %v14095_v12  ;;  %v14529_v57 = vadd.f32 %v8218_v2, %v8012_v14  ;;  %v14536_v34 = vrot.slane %v7117_v51, %v14095_v12  ;;  %v14539_v22 = vrot.slane %v7355_v11, %v14095_v12  ;;  %v17328_v2 = vld [vmem:[#allocation148_spill] sm:$0xff]  ;;  %v14579_v54 = vpop.f32.mrb[18].mxu0 }
 0x3d6   : > { %v6686_v39 = vrot.slane %v14515_v42, %v16944_v1  ;;  %v7538_v36 = vadd.f32 %v7506_v4, %v7300_v26  ;;  %v14542_v8 = vrot.slane %v7593_v32, %v14095_v12  ;;  %v8013_v30 = vadd.f32 %v7981_v20, %v7775_v33  ;;  %v17331_v4 = vld [vmem:[#allocation228_spill] sm:$0xff]  ;;  %17334 = vst [vmem:[#allocation159_spill] sm:$0xff] %v14579_v54  ;;  %v14581_v26 = vpop.f32.mrb[249].mxu1  ;;  %v17337_v33 = vld [vmem:[#allocation81_spill] sm:$0xff] }
 0x3d7   : > { %v6924_v59 = vrot.slane %v14521_v9, %v16944_v1  ;;  %v7831_v58 = vcombine.high %v14426_v37, %v14426_v37  ;;  %v7162_v50 = vrot.slane %v14536_v34, %v16944_v1  ;;  %v7400_v17 = vrot.slane %v14539_v22, %v16944_v1  ;;  %17335 = vst [vmem:[#allocation211_spill] sm:$0xff] %v14581_v26  ;;  %v17336_v51 = vld [vmem:[#allocation284_spill] sm:$0xff]  ;;  %v17346_v54 = vld [vmem:[#allocation37_spill] sm:$0xff] }
 0x3d8   : > { %v6793_v62 = vmul.f32 %v6686_v39, %v17327_v61  ;;  %v7776_v49 = vadd.f32 %v7744_v43, %v7538_v36  ;;  %v7638_v19 = vrot.slane %v14542_v8, %v16944_v1  ;;  %v14554_v35 = vadd.f32 %v8219_v5, %v8013_v30  ;;  %v17332_v43 = vld [vmem:[#allocation236_spill] sm:$0xff] }
 0x3d9   : > { %v7031_v63 = vmul.f32 %v6924_v59, %v17328_v2  ;;  %v14557_v28 = vrot.slane %v7831_v58, %v14095_v12  ;;  %v8069_v47 = vcombine.high %v14438_v16, %v14438_v16  ;;  %v7269_v18 = vmul.f32 %v7162_v50, %v17330_v40 }
 0x3da   : > { %v8014_v37 = vadd.f32 %v7982_v25, %v7776_v49  ;;  %v7507_v15 = vmul.f32 %v7400_v17, %v17331_v4  ;;  %v7745_v53 = vmul.f32 %v7638_v19, %v17332_v43  ;;  %v6690_v0 = vrot.slane %v14515_v42, %v17290_v23  ;;  %v17342_v43 = vld [vmem:[#allocation237_spill] sm:$0xff] }
 0x3db   : > { %v7063_v20 = vadd.f32 %v7031_v63, %v6793_v62  ;;  %17329 = vst [vmem:[#allocation132_spill] sm:$0xff] %v14557_v28  ;;  %v7876_v31 = vrot.slane %v14557_v28, %v16944_v1  ;;  %v14567_v5 = vrot.slane %v8069_v47, %v14095_v12  ;;  %v6928_v14 = vrot.slane %v14521_v9, %v17290_v23  ;;  %v17339_v62 = vld [vmem:[#allocation198_spill] sm:$0xff] }
 0x3dc   : > { %v14573_v16 = vadd.f32 %v8220_v6, %v8014_v37  ;;  %v7166_v21 = vrot.slane %v14536_v34, %v17290_v23  ;;  %v7404_v48 = vrot.slane %v14539_v22, %v17290_v23  ;;  %v6794_v36 = vmul.f32 %v6690_v0, %v17337_v33  ;;  %v17338_v6 = vld [vmem:[#allocation56_spill] sm:$0xff]  ;;  %v17340_v63 = vld [vmem:[#allocation230_spill] sm:$0xff]  ;;  %v17344_v33 = vld [vmem:[#allocation149_spill] sm:$0xff] }
 0x3dd   : > { %17333 = vst [vmem:[#allocation83_spill] sm:$0xff] %v14567_v5  ;;  %v7301_v25 = vadd.f32 %v7269_v18, %v7063_v20  ;;  %v7983_v11 = vmul.f32 %v7876_v31, %v17336_v51  ;;  %v8114_v32 = vrot.slane %v14567_v5, %v16944_v1  ;;  %v7032_v30 = vmul.f32 %v6928_v14, %v17338_v6  ;;  %v17341_v20 = vld [vmem:[#allocation35_spill] sm:$0xff] }
 0x3de   : > { %v7270_v2 = vmul.f32 %v7166_v21, %v17339_v62  ;;  %v7508_v58 = vmul.f32 %v7404_v48, %v17340_v63  ;;  %v7642_v49 = vrot.slane %v14542_v8, %v17290_v23  ;;  %v7880_v40 = vrot.slane %v14557_v28, %v17290_v23  ;;  %v17345_v63 = vld [vmem:[#allocation257_spill] sm:$0xff]  ;;  %v17349_v28 = vld [vmem:[#allocation258_spill] sm:$0xff] }
 0x3df   : > { %v7539_v61 = vadd.f32 %v7507_v15, %v7301_v25  ;;  %v8221_v47 = vmul.f32 %v8114_v32, %v17341_v20  ;;  %v7064_v37 = vadd.f32 %v7032_v30, %v6794_v36  ;;  %v8118_v18 = vrot.slane %v14567_v5, %v17290_v23  ;;  %v17343_v15 = vld [vmem:[#allocation82_spill] sm:$0xff]  ;;  %v17347_v20 = vld [vmem:[#allocation199_spill] sm:$0xff] }
 0x3e0   : > { %v7746_v51 = vmul.f32 %v7642_v49, %v17342_v43  ;;  %v6795_v25 = vmul.f32 %v6686_v39, %v17343_v15  ;;  %v7033_v6 = vmul.f32 %v6924_v59, %v17344_v33  ;;  %v7984_v26 = vmul.f32 %v7880_v40, %v17345_v63  ;;  %v17352_v43 = vld [vmem:[#allocation259_spill] sm:$0xff] }
 0x3e1   : > { %v7777_v4 = vadd.f32 %v7745_v53, %v7539_v61  ;;  %v7302_v62 = vadd.f32 %v7270_v2, %v7064_v37  ;;  %v8222_v13 = vmul.f32 %v8118_v18, %v17346_v54  ;;  %v7271_v36 = vmul.f32 %v7162_v50, %v17347_v20  ;;  %v14605_v53 = vpop.f32.mrb[19].mxu0  ;;  %v14607_v61 = vpop.f32.mrb[250].mxu1  ;;  %v17353_v2 = vld [vmem:[#allocation42_spill] sm:$0xff] }
 0x3e2   : > { %v7065_v60 = vadd.f32 %v7033_v6, %v6795_v25  ;;  %v7509_v55 = vmul.f32 %v7400_v17, %v17348_v52  ;;  %v7747_v5 = vmul.f32 %v7638_v19, %v17349_v28  ;;  %17350 = vst [vmem:[#allocation85_spill] sm:$0xff] %v14605_v53  ;;  %17351 = vst [vmem:[#allocation274_spill] sm:$0xff] %v14607_v61  ;;  %v17360_v20 = vld [vmem:[#allocation262_spill] sm:$0xff] }
 0x3e3   : > { %v8015_v30 = vadd.f32 %v7983_v11, %v7777_v4  ;;  %v7540_v39 = vadd.f32 %v7508_v58, %v7302_v62  ;;  %v7985_v59 = vmul.f32 %v7876_v31, %v17352_v43  ;;  %v8223_v37 = vmul.f32 %v8114_v32, %v17353_v2  ;;  %v17354_v11 = vld [vmem:[#allocation92_spill] sm:$0xff]  ;;  %v17355_v31 = vld [vmem:[#allocation150_spill] sm:$0xff]  ;;  %v17357_v62 = vld [vmem:[#allocation205_spill] sm:$0xff] }
 0x3e4   : > { %v7470_v54 = vadd.f32 %v14353_v27, %v14373_v46  ;;  %v7303_v50 = vadd.f32 %v7271_v36, %v7065_v60  ;;  %v8291_v52 = vcombine.low %v14310_v3, %v14440_v38  ;;  %v8421_v17 = vadd.f32 %v14310_v3, %v14376_v24  ;;  %v17356_v46 = vld [vmem:[#allocation201_spill] sm:$0xff]  ;;  %v17362_v43 = vld [vmem:[#allocation15_spill] sm:$0xff] }
 0x3e5   : > { %v14613_v15 = vadd.f32 %v8221_v47, %v8015_v30  ;;  %v7778_v19 = vadd.f32 %v7746_v51, %v7540_v39  ;;  %v6796_v58 = vmul.f32 %v6690_v0, %v17354_v11  ;;  %v7034_v4 = vmul.f32 %v6928_v14, %v17355_v31  ;;  %v14628_v51 = vpop.f32.mrb[20].mxu0  ;;  %v14636_v30 = vpop.f32.mrb[251].mxu1  ;;  %v17366_v11 = vld [vmem:[#allocation171_spill] sm:$0xff] }
 0x3e6   : > { %v7708_v28 = vadd.f32 %v14365_v44, %v7470_v54  ;;  %v7541_v32 = vadd.f32 %v7509_v55, %v7303_v50  ;;  %v14623_v25 = vrot.slane %v8291_v52, %v14095_v12  ;;  %9796 = vrcp.f32 %v8421_v17  ;;  %17358 = vst [vmem:[#allocation102_spill] sm:$0xff] %v14628_v51  ;;  %v17359_v55 = vld [vmem:[#allocation260_spill] sm:$0xff]  ;;  %17361 = vst [vmem:[#allocation103_spill] sm:$0xff] %v14636_v30 }
 0x3e7   : > { %v7272_v60 = vmul.f32 %v7166_v21, %v17356_v46  ;;  %v8016_v47 = vadd.f32 %v7984_v26, %v7778_v19  ;;  %v7066_v6 = vadd.f32 %v7034_v4, %v6796_v58  ;;  %v7510_v24 = vmul.f32 %v7404_v48, %v17357_v62  ;;  %v17365_v19 = vld [vmem:[#allocation43_spill] sm:$0xff] }
 0x3e8   : > { %v7946_v33 = vadd.f32 %v14378_v56, %v7708_v28  ;;  %v7779_v63 = vadd.f32 %v7747_v5, %v7541_v32  ;;  %v14632_v0 = vrot.slane %v14623_v25, %v14095_v12  ;;  %v7748_v14 = vmul.f32 %v7642_v49, %v17359_v55  ;;  %v17372_v55 = vld [vmem:[#allocation129_spill] sm:$0xff] }
 0x3e9   : > { %v7986_v36 = vmul.f32 %v7880_v40, %v17360_v20  ;;  %v14638_v21 = vadd.f32 %v8222_v13, %v8016_v47  ;;  %v7304_v39 = vadd.f32 %v7272_v60, %v7066_v6  ;;  %v8224_v48 = vmul.f32 %v8118_v18, %v17362_v43  ;;  %v14653_v18 = vpop.f32.mrb[21].mxu0  ;;  %v17369_v60 = vld [vmem:[#allocation64_spill] sm:$0xff]  ;;  %v17370_v6 = vld [vmem:[#allocation61_spill] sm:$0xff] }
 0x3ea   : > { %v8184_v26 = vadd.f32 %v14391_v7, %v7946_v33  ;;  %v8017_v2 = vadd.f32 %v7985_v59, %v7779_v63  ;;  %v8344_v5 = vrot.slane %v14632_v0, %v16944_v1  ;;  %v8348_v54 = vrot.slane %v14632_v0, %v17290_v23  ;;  %17363 = vst [vmem:[#allocation104_spill] sm:$0xff] %v14653_v18  ;;  %v14655_v59 = vpop.f32.mrb[252].mxu1 }
 0x3eb   : > { %v6671_v49 = vcombine.high %v14382_v45, %v14382_v45  ;;  %v7542_v50 = vadd.f32 %v7510_v24, %v7304_v39  ;;  %v6909_v13 = vcombine.high %v14395_v10, %v14395_v10  ;;  %v7147_v52 = vcombine.high %v14408_v41, %v14408_v41  ;;  %17364 = vst [vmem:[#allocation105_spill] sm:$0xff] %v14655_v59  ;;  %v17371_v24 = vld [vmem:[#allocation202_spill] sm:$0xff]  ;;  %v17375_v39 = vld [vmem:[#allocation91_spill] sm:$0xff] }
 0x3ec   : > { %v8422_v40 = vadd.f32 %v14440_v38, %v8184_v26  ;;  %v14657_v17 = vadd.f32 %v8223_v37, %v8017_v2  ;;  %v8455_v28 = vmul.f32 %v8344_v5, %v17365_v19  ;;  %v8456_v58 = vmul.f32 %v8348_v54, %v17366_v11  ;;  %v17368_v37 = vld [vmem:[#allocation86_spill] sm:$0xff]  ;;  %v17374_v26 = vld [vmem:[#allocation251_spill] sm:$0xff]  ;;  %v17376_v2 = vld [vmem:[#allocation44_spill] sm:$0xff] }
 0x3ed   : > { %v6694_v45 = vrot.slane %v6671_v49, %v16944_v1  ;;  %v7780_v31 = vadd.f32 %v7748_v14, %v7542_v50  ;;  %v6932_v4 = vrot.slane %v6909_v13, %v16944_v1  ;;  %v7170_v10 = vrot.slane %v7147_v52, %v16944_v1  ;;  %v17377_v11 = vld [vmem:[#allocation233_spill] sm:$0xff] }
 0x3ee   : > { %9798 = vrcp.f32 %v8422_v40  ;;  %v14665_v41 = vadd.f32 %v8455_v28, %v14503_v29  ;;  %v14668_v32 = vadd.f32 %v8456_v58, %v14529_v57  ;;  %v7385_v47 = vcombine.high %v17369_v60, %v17369_v60 }
 0x3ef   : > { %v6797_v46 = vmul.f32 %v6694_v45, %v17368_v37  ;;  %v8018_v33 = vadd.f32 %v7986_v36, %v7780_v31  ;;  %v7035_v62 = vmul.f32 %v6932_v4, %v17370_v6  ;;  %v7273_v63 = vmul.f32 %v7170_v10, %v17371_v24  ;;  %v17378_v24 = vld [vmem:[#allocation263_spill] sm:$0xff] }
 0x3f0   : > { %17367 = vst [vmem:[#allocation110_spill] sm:$0xff] %v14668_v32  ;;  %v7623_v14 = vcombine.high %v17372_v55, %v17372_v55  ;;  %v14677_v20 = vpop.eup %9796  ;;  %v7408_v29 = vrot.slane %v7385_v47, %v16944_v1  ;;  %v7861_v57 = vcombine.high %v17374_v26, %v17374_v26  ;;  %v8099_v43 = vcombine.high %v17375_v39, %v17375_v39  ;;  %v17379_v26 = vld [vmem:[#allocation99_spill] sm:$0xff]  ;;  %v14702_v32 = vpop.f32.mrb[253].mxu1 }
 0x3f1   : > { %17373 = vst [vmem:[#allocation111_spill] sm:$0xff] %v14677_v20  ;;  %v8457_v40 = vmul.f32 %v8344_v5, %v17376_v2  ;;  %v14685_v36 = vadd.f32 %v8224_v48, %v8018_v33  ;;  %v7067_v50 = vadd.f32 %v7035_v62, %v6797_v46  ;;  %v6698_v28 = vrot.slane %v6671_v49, %v17290_v23  ;;  %v17380_v46 = vld [vmem:[#allocation68_spill] sm:$0xff] }
 0x3f2   : > { %v7646_v19 = vrot.slane %v7623_v14, %v16944_v1  ;;  %v7511_v58 = vmul.f32 %v7408_v29, %v17377_v11  ;;  %v7884_v31 = vrot.slane %v7861_v57, %v16944_v1  ;;  %v8122_v37 = vrot.slane %v8099_v43, %v16944_v1  ;;  %v17381_v62 = vld [vmem:[#allocation208_spill] sm:$0xff]  ;;  %v14700_v11 = vpop.f32.mrb[22].mxu0  ;;  %17383 = vst [vmem:[#allocation113_spill] sm:$0xff] %v14702_v32  ;;  %v17389_v32 = vld [vmem:[#allocation122_spill] sm:$0xff] }
 0x3f3   : > { %v8489_v60 = vadd.f32 %v8457_v40, %v14554_v35  ;;  %v7305_v6 = vadd.f32 %v7273_v63, %v7067_v50  ;;  %v6798_v5 = vmul.f32 %v6698_v28, %v17379_v26  ;;  %v6936_v48 = vrot.slane %v6909_v13, %v17290_v23  ;;  %17382 = vst [vmem:[#allocation112_spill] sm:$0xff] %v14700_v11  ;;  %v17384_v63 = vld [vmem:[#allocation152_spill] sm:$0xff]  ;;  %v17385_v13 = vld [vmem:[#allocation74_spill] sm:$0xff] }
 0x3f4   : > { %v7749_v55 = vmul.f32 %v7646_v19, %v17378_v24  ;;  %v7987_v33 = vmul.f32 %v7884_v31, %v17380_v46  ;;  %v8225_v39 = vmul.f32 %v8122_v37, %v17381_v62  ;;  %v7174_v49 = vrot.slane %v7147_v52, %v17290_v23  ;;  %v17386_v46 = vld [vmem:[#allocation192_spill] sm:$0xff] }
 0x3f5   : > { %v7412_v2 = vrot.slane %v7385_v47, %v17290_v23  ;;  %v7543_v35 = vadd.f32 %v7511_v58, %v7305_v6  ;;  %v7036_v40 = vmul.f32 %v6936_v48, %v17384_v63  ;;  %v7650_v50 = vrot.slane %v7623_v14, %v17290_v23  ;;  %v17387_v52 = vld [vmem:[#allocation48_spill] sm:$0xff]  ;;  %v17390_v6 = vld [vmem:[#allocation190_spill] sm:$0xff] }
 0x3f6   : > { %v7888_v24 = vrot.slane %v7861_v57, %v17290_v23  ;;  %v7274_v26 = vmul.f32 %v7174_v49, %v17385_v13  ;;  %v8126_v62 = vrot.slane %v8099_v43, %v17290_v23  ;;  %v8458_v18 = vmul.f32 %v8348_v54, %v17387_v52  ;;  %v17391_v57 = vld [vmem:[#allocation46_spill] sm:$0xff]  ;;  %v17394_v52 = vld [vmem:[#allocation153_spill] sm:$0xff] }
 0x3f7   : > { %v7512_v59 = vmul.f32 %v7412_v2, %v17386_v46  ;;  %v7781_v11 = vadd.f32 %v7749_v55, %v7543_v35  ;;  %v7068_v30 = vadd.f32 %v7036_v40, %v6798_v5  ;;  %v7750_v58 = vmul.f32 %v7650_v50, %v17389_v32  ;;  %v17393_v46 = vld [vmem:[#allocation98_spill] sm:$0xff]  ;;  %v17396_v35 = vld [vmem:[#allocation235_spill] sm:$0xff] }
 0x3f8   : > { %v14711_v47 = vpop.eup %9798  ;;  %v7988_v63 = vmul.f32 %v7888_v24, %v17390_v6  ;;  %v8226_v51 = vmul.f32 %v8126_v62, %v17391_v57  ;;  %v14719_v13 = vadd.f32 %v8458_v18, %v14573_v16  ;;  %v6799_v43 = vmul.f32 %v6694_v45, %v17393_v46  ;;  %v17395_v55 = vld [vmem:[#allocation126_spill] sm:$0xff] }
 0x3f9   : > { %17388 = vst [vmem:[#allocation53_spill] sm:$0xff] %v14711_v47  ;;  %v8523_v14 = vcombine.low %v14677_v20, %v14711_v47  ;;  %v8019_v61 = vadd.f32 %v7987_v33, %v7781_v11  ;;  %v7306_v54 = vadd.f32 %v7274_v26, %v7068_v30  ;;  %v7037_v53 = vmul.f32 %v6932_v4, %v17394_v52  ;;  %v17397_v6 = vld [vmem:[#allocation78_spill] sm:$0xff]  ;;  %v17398_v20 = vld [vmem:[#allocation252_spill] sm:$0xff]  ;;  %v14731_v33 = vpop.f32.mrb[23].mxu0  ;;  %v14733_v30 = vpop.f32.mrb[254].mxu1 }
 0x3fa   : > { %17392 = vst [vmem:[#allocation115_spill] sm:$0xff] %v14719_v13  ;;  %v7275_v5 = vmul.f32 %v7170_v10, %v17395_v55  ;;  %v7513_v40 = vmul.f32 %v7408_v29, %v17396_v35  ;;  %v7751_v3 = vmul.f32 %v7646_v19, %v17397_v6  ;;  %v7989_v47 = vmul.f32 %v7884_v31, %v17398_v20  ;;  %v17399_v13 = vld [vmem:[#allocation45_spill] sm:$0xff]  ;;  %v17403_v19 = vld [vmem:[#allocation90_spill] sm:$0xff]  ;;  %v14753_v52 = vpop.f32.mrb[255].mxu1  ;;  %v17412_v35 = vld [vmem:[#allocation72_spill] sm:$0xff] }
 0x3fb   : > { %v8531_v32 = vrot.slane %v8523_v14, %v14095_v12  ;;  %v14728_v57 = vadd.f32 %v8225_v39, %v8019_v61  ;;  %v7544_v16 = vadd.f32 %v7512_v59, %v7306_v54  ;;  %v7069_v18 = vadd.f32 %v7037_v53, %v6799_v43  ;;  %17400 = vst [vmem:[#allocation116_spill] sm:$0xff] %v14731_v33  ;;  %v17404_v31 = vld [vmem:[#allocation154_spill] sm:$0xff]  ;;  %v17405_v53 = vld [vmem:[#allocation156_spill] sm:$0xff]  ;;  %v17498_v33 = vld [vmem:[#allocation215_spill] sm:$0xff] }
 0x3fc   : > { %v8227_v45 = vmul.f32 %v8122_v37, %v17399_v13  ;;  %17401 = vst [vmem:[#allocation117_spill] sm:$0xff] %v14733_v30  ;;  %v8307_v10 = vcombine.high %v14623_v25, %v14623_v25  ;;  %v6800_v11 = vmul.f32 %v6698_v28, %v17403_v19  ;;  %v7038_v59 = vmul.f32 %v6936_v48, %v17404_v31  ;;  %v17407_v13 = vld [vmem:[#allocation84_spill] sm:$0xff] }
 0x3fd   : > { %v14736_v4 = vrot.slane %v8531_v32, %v14095_v12  ;;  %v8539_v29 = vcombine.high %v8531_v32, %v8531_v32  ;;  %v7782_v20 = vadd.f32 %v7750_v58, %v7544_v16  ;;  %v7307_v61 = vadd.f32 %v7275_v5, %v7069_v18  ;;  %v17408_v58 = vld [vmem:[#allocation203_spill] sm:$0xff]  ;;  %17409 = vst [vmem:[#allocation120_spill] sm:$0xff] %v14753_v52  ;;  %v17414_v16 = vld [vmem:[#allocation50_spill] sm:$0xff]  ;;  %v17495_v52 = vld [vmem:[#allocation100_spill] sm:$0xff] }
 0x3fe   : > { %v7276_v39 = vmul.f32 %v7174_v49, %v17405_v53  ;;  %v14746_v26 = vrot.slane %v8307_v10, %v14095_v12  ;;  %v7514_v25 = vmul.f32 %v7412_v2, %v17407_v13  ;;  %v7070_v28 = vadd.f32 %v7038_v59, %v6800_v11  ;;  %v14773_v10 = vpop.f32.mrb[24].mxu0  ;;  %v17417_v11 = vld [vmem:[#allocation25_spill] sm:$0xff] }
 0x3ff   : > { %17402 = vst [vmem:[#allocation118_spill] sm:$0xff] %v14736_v4  ;;  %v8576_v37 = vrot.slane %v14736_v4, %v16944_v1  ;;  %v14749_v14 = vrot.slane %v8539_v29, %v14095_v12  ;;  %v8020_v46 = vadd.f32 %v7988_v63, %v7782_v20  ;;  %v7545_v43 = vadd.f32 %v7513_v40, %v7307_v61 }
 0x400   : > { %v7752_v54 = vmul.f32 %v7650_v50, %v17408_v58  ;;  %v8352_v55 = vrot.slane %v14746_v26, %v16944_v1  ;;  %v7308_v63 = vadd.f32 %v7276_v39, %v7070_v28  ;;  %v7990_v40 = vmul.f32 %v7888_v24, %v17412_v35  ;;  %v17413_v50 = vld [vmem:[#allocation239_spill] sm:$0xff]  ;;  %17415 = vst [vmem:[#allocation73_spill] sm:$0xff] %v14773_v10  ;;  %v14779_v24 = vpop.f32.mrb[25].mxu0  ;;  %v17425_v28 = vld [vmem:[#allocation130_spill] sm:$0xff] }
 0x401   : > { %17406 = vst [vmem:[#allocation119_spill] sm:$0xff] %v14749_v14  ;;  %v14756_v48 = vmul.f32 %v8576_v37, %v14665_v41  ;;  %v14758_v49 = vmul.f32 %v8576_v37, %v8489_v60  ;;  %v8584_v5 = vrot.slane %v14749_v14, %v16944_v1  ;;  %v14764_v32 = vadd.f32 %v8226_v51, %v8020_v46  ;;  %v14786_v31 = vpop.f32.mrb[26].mxu0  ;;  %v17422_v37 = vld [vmem:[#allocation107_spill] sm:$0xff]  ;;  %v17424_v46 = vld [vmem:[#allocation133_spill] sm:$0xff] }
 0x402   : > { %v7783_v2 = vadd.f32 %v7751_v3, %v7545_v43  ;;  %v8459_v6 = vmul.f32 %v8352_v55, %v17413_v50  ;;  %v8228_v18 = vmul.f32 %v8126_v62, %v17414_v16  ;;  %v8356_v41 = vrot.slane %v14746_v26, %v17290_v23  ;;  %17416 = vst [vmem:[#allocation96_spill] sm:$0xff] %v14779_v24  ;;  %v14792_v53 = vpop.f32.mrb[27].mxu0  ;;  %v17494_v24 = vld [vmem:[#allocation19_spill] sm:$0xff] }
 0x403   : > { %17410 = vst [vmem:[#allocation121_spill] sm:$0xff] %v14756_v48  ;;  %17411 = vst [vmem:[#allocation28_spill] sm:$0xff] %v14758_v49  ;;  %v6673_v60 = vcombine.high %v14515_v42, %v14515_v42  ;;  %v7546_v19 = vadd.f32 %v7514_v25, %v7308_v63  ;;  %v6911_v3 = vcombine.high %v14521_v9, %v14521_v9  ;;  %v14801_v25 = vpop.f32.mrb[28].mxu0  ;;  %v17427_v63 = vld [vmem:[#allocation206_spill] sm:$0xff]  ;;  %v17438_v49 = vld [vmem:[#allocation135_spill] sm:$0xff] }
 0x404   : > { %v8021_v29 = vadd.f32 %v7989_v47, %v7783_v2  ;;  %v7149_v51 = vcombine.high %v14536_v34, %v14536_v34  ;;  %v8491_v62 = vadd.f32 %v8459_v6, %v14613_v15  ;;  %v8460_v20 = vmul.f32 %v8356_v41, %v17417_v11  ;;  %17418 = vst [vmem:[#allocation75_spill] sm:$0xff] %v14786_v31  ;;  %v14807_v2 = vpop.f32.mrb[29].mxu0  ;;  %v17429_v6 = vld [vmem:[#allocation83_spill] sm:$0xff]  ;;  %v17492_v31 = vld [vmem:[#allocation12_spill] sm:$0xff] }
 0x405   : > { %v6702_v61 = vrot.slane %v6673_v60, %v16944_v1  ;;  %v7387_v42 = vcombine.high %v14539_v22, %v14539_v22  ;;  %v7784_v59 = vadd.f32 %v7752_v54, %v7546_v19  ;;  %v6940_v9 = vrot.slane %v6911_v3, %v16944_v1  ;;  %17419 = vst [vmem:[#allocation193_spill] sm:$0xff] %v14792_v53  ;;  %v17451_v53 = vld [vmem:[#allocation200_spill] sm:$0xff] }
 0x406   : > { %v14788_v47 = vadd.f32 %v8227_v45, %v8021_v29  ;;  %v7178_v34 = vrot.slane %v7149_v51, %v16944_v1  ;;  %v14794_v39 = vmul.f32 %v8584_v5, %v8491_v62  ;;  %v14797_v15 = vadd.f32 %v8460_v20, %v14638_v21  ;;  %17423 = vst [vmem:[#allocation109_spill] sm:$0xff] %v14801_v25  ;;  %v17428_v21 = vld [vmem:[#allocation132_spill] sm:$0xff] }
 0x407   : > { %v6801_v13 = vmul.f32 %v6702_v61, %v17422_v37  ;;  %v7416_v22 = vrot.slane %v7387_v42, %v16944_v1  ;;  %v8022_v45 = vadd.f32 %v7990_v40, %v7784_v59  ;;  %v7039_v43 = vmul.f32 %v6940_v9, %v17424_v46  ;;  %17426 = vst [vmem:[#allocation253_spill] sm:$0xff] %v14807_v2  ;;  %v17430_v29 = vld [vmem:[#allocation40_spill] sm:$0xff]  ;;  %v14815_v40 = vpop.f32.mrb[30].mxu0 }
 0x408   : > { %17420 = vst [vmem:[#allocation222_spill] sm:$0xff] %v14794_v39  ;;  %17421 = vst [vmem:[#allocation231_spill] sm:$0xff] %v14797_v15  ;;  %v7277_v58 = vmul.f32 %v7178_v34, %v17425_v28  ;;  %v7625_v54 = vcombine.high %v14542_v8, %v14542_v8  ;;  %v7863_v50 = vcombine.high %v17428_v21, %v17428_v21  ;;  %v14821_v59 = vpop.f32.mrb[31].mxu0  ;;  %v17433_v21 = vld [vmem:[#allocation266_spill] sm:$0xff] }
 0x409   : > { %v7515_v35 = vmul.f32 %v7416_v22, %v17427_v63  ;;  %v8101_v16 = vcombine.high %v17429_v6, %v17429_v6  ;;  %v8461_v19 = vmul.f32 %v8352_v55, %v17430_v29  ;;  %17431 = vst [vmem:[#allocation194_spill] sm:$0xff] %v14815_v40  ;;  %v14817_v62 = vadd.f32 %v8228_v18, %v8022_v45  ;;  %v17434_v18 = vld [vmem:[#allocation94_spill] sm:$0xff]  ;;  %v17439_v40 = vld [vmem:[#allocation160_spill] sm:$0xff] }
 0x40a   : > { %v7071_v11 = vadd.f32 %v7039_v43, %v6801_v13  ;;  %v7654_v20 = vrot.slane %v7625_v54, %v16944_v1  ;;  %v6706_v8 = vrot.slane %v6673_v60, %v17290_v23  ;;  %17432 = vst [vmem:[#allocation224_spill] sm:$0xff] %v14821_v59  ;;  %v7892_v37 = vrot.slane %v7863_v50, %v16944_v1  ;;  %v17435_v43 = vld [vmem:[#allocation261_spill] sm:$0xff]  ;;  %v17436_v60 = vld [vmem:[#allocation256_spill] sm:$0xff] }
 0x40b   : > { %v8130_v46 = vrot.slane %v8101_v16, %v16944_v1  ;;  %v8493_v28 = vadd.f32 %v8461_v19, %v14657_v17  ;;  %v6944_v63 = vrot.slane %v6911_v3, %v17290_v23  ;;  %v7182_v13 = vrot.slane %v7149_v51, %v17290_v23 }
 0x40c   : > { %v7309_v55 = vadd.f32 %v7277_v58, %v7071_v11  ;;  %v7753_v6 = vmul.f32 %v7654_v20, %v17433_v21  ;;  %v6802_v45 = vmul.f32 %v6706_v8, %v17434_v18  ;;  %v7991_v29 = vmul.f32 %v7892_v37, %v17435_v43  ;;  %v17440_v21 = vld [vmem:[#allocation55_spill] sm:$0xff] }
 0x40d   : > { %v8229_v15 = vmul.f32 %v8130_v46, %v17436_v60  ;;  %v14832_v39 = vmul.f32 %v8584_v5, %v8493_v28  ;;  %v7040_v48 = vmul.f32 %v6944_v63, %v17438_v49  ;;  %v7278_v17 = vmul.f32 %v7182_v13, %v17439_v40  ;;  %v17441_v60 = vld [vmem:[#allocation210_spill] sm:$0xff]  ;;  %v17442_v28 = vld [vmem:[#allocation16_spill] sm:$0xff] }
 0x40e   : > { %v7547_v59 = vadd.f32 %v7515_v35, %v7309_v55  ;;  %v7420_v3 = vrot.slane %v7387_v42, %v17290_v23  ;;  %v7658_v58 = vrot.slane %v7625_v54, %v17290_v23  ;;  %v7896_v11 = vrot.slane %v7863_v50, %v17290_v23  ;;  %v17443_v49 = vld [vmem:[#allocation106_spill] sm:$0xff]  ;;  %v17445_v42 = vld [vmem:[#allocation52_spill] sm:$0xff]  ;;  %v17447_v50 = vld [vmem:[#allocation137_spill] sm:$0xff] }
 0x40f   : > { %17437 = vst [vmem:[#allocation232_spill] sm:$0xff] %v14832_v39  ;;  %v7072_v19 = vadd.f32 %v7040_v48, %v6802_v45  ;;  %v8134_v51 = vrot.slane %v8101_v16, %v17290_v23  ;;  %v8462_v18 = vmul.f32 %v8356_v41, %v17440_v21  ;;  %v6803_v35 = vmul.f32 %v6702_v61, %v17443_v49  ;;  %v17444_v40 = vld [vmem:[#allocation14_spill] sm:$0xff]  ;;  %v17448_v45 = vld [vmem:[#allocation155_spill] sm:$0xff] }
 0x410   : > { %v7785_v43 = vadd.f32 %v7753_v6, %v7547_v59  ;;  %v7516_v5 = vmul.f32 %v7420_v3, %v17441_v60  ;;  %v7754_v39 = vmul.f32 %v7658_v58, %v17442_v28  ;;  %v7992_v2 = vmul.f32 %v7896_v11, %v17444_v40  ;;  %v17449_v59 = vld [vmem:[#allocation212_spill] sm:$0xff]  ;;  %v17450_v60 = vld [vmem:[#allocation17_spill] sm:$0xff] }
 0x411   : > { %v7310_v55 = vadd.f32 %v7278_v17, %v7072_v19  ;;  %v8230_v25 = vmul.f32 %v8134_v51, %v17445_v42  ;;  %v14847_v48 = vadd.f32 %v8462_v18, %v14685_v36  ;;  %v7041_v16 = vmul.f32 %v6940_v9, %v17447_v50  ;;  %v17452_v17 = vld [vmem:[#allocation58_spill] sm:$0xff]  ;;  %v17459_v50 = vld [vmem:[#allocation264_spill] sm:$0xff] }
 0x412   : > { %v8023_v54 = vadd.f32 %v7991_v29, %v7785_v43  ;;  %v7279_v41 = vmul.f32 %v7178_v34, %v17448_v45  ;;  %v7517_v6 = vmul.f32 %v7416_v22, %v17449_v59  ;;  %v7755_v28 = vmul.f32 %v7654_v20, %v17450_v60  ;;  %v17454_v29 = vld [vmem:[#allocation97_spill] sm:$0xff]  ;;  %v17455_v18 = vld [vmem:[#allocation138_spill] sm:$0xff] }
 0x413   : > { %17446 = vst [vmem:[#allocation76_spill] sm:$0xff] %v14847_v48  ;;  %v7548_v21 = vadd.f32 %v7516_v5, %v7310_v55  ;;  %v7993_v61 = vmul.f32 %v7892_v37, %v17451_v53  ;;  %v8231_v19 = vmul.f32 %v8130_v46, %v17452_v17  ;;  %v7073_v40 = vadd.f32 %v7041_v16, %v6803_v35  ;;  %v17456_v20 = vld [vmem:[#allocation161_spill] sm:$0xff]  ;;  %v17458_v42 = vld [vmem:[#allocation10_spill] sm:$0xff]  ;;  %v17491_v48 = vld [vmem:[#allocation267_spill] sm:$0xff] }
 0x414   : > { %v14855_v49 = vadd.f32 %v8229_v15, %v8023_v54  ;;  %v8337_v36 = vcombine.high %v14632_v0, %v14632_v0  ;;  %v14861_v9 = vcombine.high %v14736_v4, %v14736_v4  ;;  %v6804_v22 = vmul.f32 %v6706_v8, %v17454_v29  ;;  %v17457_v46 = vld [vmem:[#allocation213_spill] sm:$0xff]  ;;  %v17460_v8 = vld [vmem:[#allocation59_spill] sm:$0xff]  ;;  %v17462_v60 = vld [vmem:[#allocation246_spill] sm:$0xff] }
 0x415   : > { %v7786_v34 = vadd.f32 %v7754_v39, %v7548_v21  ;;  %v7042_v43 = vmul.f32 %v6944_v63, %v17455_v18  ;;  %v7280_v5 = vmul.f32 %v7182_v13, %v17456_v20  ;;  %v7311_v53 = vadd.f32 %v7279_v41, %v7073_v40  ;;  %v17461_v63 = vld [vmem:[#allocation49_spill] sm:$0xff] }
 0x416   : > { %17453 = vst [vmem:[#allocation254_spill] sm:$0xff] %v14861_v9  ;;  %v8360_v37 = vrot.slane %v8337_v36, %v16944_v1  ;;  %v8592_v15 = vrot.slane %v14861_v9, %v16944_v1  ;;  %v7518_v35 = vmul.f32 %v7420_v3, %v17457_v46  ;;  %v7756_v54 = vmul.f32 %v7658_v58, %v17458_v42  ;;  %v17464_v58 = vld [vmem:[#allocation24_spill] sm:$0xff] }
 0x417   : > { %v8024_v0 = vadd.f32 %v7992_v2, %v7786_v34  ;;  %v7074_v55 = vadd.f32 %v7042_v43, %v6804_v22  ;;  %v7994_v39 = vmul.f32 %v7896_v11, %v17459_v50  ;;  %v7549_v16 = vadd.f32 %v7517_v6, %v7311_v53  ;;  %v17463_v2 = vld [vmem:[#allocation66_spill] sm:$0xff]  ;;  %v17468_v34 = vld [vmem:[#allocation57_spill] sm:$0xff] }
 0x418   : > { %v8463_v45 = vmul.f32 %v8360_v37, %v17460_v8  ;;  %v8232_v59 = vmul.f32 %v8134_v51, %v17461_v63  ;;  %v14875_v13 = vrot.slane %v8337_v36, %v17290_v23  ;;  %v14881_v3 = vrot.slane %v17462_v60, %v14095_v12  ;;  %v17466_v51 = vld [vmem:[#allocation60_spill] sm:$0xff] }
 0x419   : > { %v14877_v41 = vadd.f32 %v8230_v25, %v8024_v0  ;;  %v7312_v21 = vadd.f32 %v7280_v5, %v7074_v55  ;;  %v17465_v17 = vcombine.high %v17463_v2, %v17464_v58  ;;  %v7787_v6 = vadd.f32 %v7755_v28, %v7549_v16  ;;  %v17467_v25 = vld [vmem:[#allocation270_spill] sm:$0xff]  ;;  %v17470_v28 = vld [vmem:[#allocation71_spill] sm:$0xff] }
 0x41a   : > { %v8495_v40 = vadd.f32 %v8463_v45, %v14728_v57  ;;  %v8464_v36 = vmul.f32 %v14875_v13, %v17466_v51  ;;  %v17469_v29 = vcombine.high %v17467_v25, %v17468_v34  ;;  %v6710_v43 = vrot.slane %v14881_v3, %v16944_v1  ;;  %v17473_v55 = vld [vmem:[#allocation62_spill] sm:$0xff] }
 0x41b   : > { %v14887_v11 = vrot.slane %v17465_v17, %v14095_v12  ;;  %v7550_v18 = vadd.f32 %v7518_v35, %v7312_v21  ;;  %v7340_v57 = vcombine.high %v17470_v28, %v14353_v27  ;;  %v8025_v5 = vadd.f32 %v7993_v61, %v7787_v6  ;;  %v17475_v45 = vld [vmem:[#allocation26_spill] sm:$0xff]  ;;  %v17476_v21 = vld [vmem:[#allocation89_spill] sm:$0xff]  ;;  %v17477_v17 = vld [vmem:[#allocation88_spill] sm:$0xff] }
 0x41c   : > { %v14896_v22 = vrot.slane %v17469_v29, %v14095_v12  ;;  %v14906_v53 = vmul.f32 %v8592_v15, %v8495_v40  ;;  %v14909_v46 = vadd.f32 %v8464_v36, %v14764_v32  ;;  %v6805_v42 = vmul.f32 %v6710_v43, %v17473_v55  ;;  %v17474_v32 = vld [vmem:[#allocation69_spill] sm:$0xff]  ;;  %v17478_v6 = vld [vmem:[#allocation162_spill] sm:$0xff] }
 0x41d   : > { %v14902_v20 = vrot.slane %v14887_v11, %v14095_v12  ;;  %v7788_v35 = vadd.f32 %v7756_v54, %v7550_v18  ;;  %v14919_v16 = vrot.slane %v7340_v57, %v14095_v12  ;;  %v14921_v27 = vadd.f32 %v8231_v19, %v8025_v5  ;;  %v17479_v36 = vld [vmem:[#allocation70_spill] sm:$0xff] }
 0x41e   : > { %17471 = vst [vmem:[#allocation144_spill] sm:$0xff] %v14906_v53  ;;  %17472 = vst [vmem:[#allocation195_spill] sm:$0xff] %v14909_v46  ;;  %v14913_v0 = vrot.slane %v14896_v22, %v14095_v12  ;;  %v7578_v8 = vcombine.high %v17474_v32, %v14365_v44  ;;  %v7816_v63 = vcombine.high %v17475_v45, %v14378_v56  ;;  %v17480_v57 = vld [vmem:[#allocation214_spill] sm:$0xff] }
 0x41f   : > { %v6948_v50 = vrot.slane %v14902_v20, %v16944_v1  ;;  %v8026_v54 = vadd.f32 %v7994_v39, %v7788_v35  ;;  %v14932_v58 = vrot.slane %v14919_v16, %v14095_v12  ;;  %v8054_v19 = vcombine.high %v17477_v17, %v14391_v7  ;;  %v17489_v46 = vld [vmem:[#allocation134_spill] sm:$0xff] }
 0x420   : > { %v7186_v61 = vrot.slane %v14913_v0, %v16944_v1  ;;  %v14938_v51 = vrot.slane %v7578_v8, %v14095_v12  ;;  %v14941_v44 = vrot.slane %v7816_v63, %v14095_v12  ;;  %v8465_v56 = vmul.f32 %v8360_v37, %v17479_v36  ;;  %v17483_v8 = vld [vmem:[#allocation124_spill] sm:$0xff] }
 0x421   : > { %v7043_v2 = vmul.f32 %v6948_v50, %v17476_v21  ;;  %v14944_v39 = vadd.f32 %v8232_v59, %v8026_v54  ;;  %v7424_v34 = vrot.slane %v14932_v58, %v16944_v1  ;;  %v14949_v29 = vrot.slane %v8054_v19, %v14095_v12  ;;  %v17484_v21 = vld [vmem:[#allocation140_spill] sm:$0xff] }
 0x422   : > { %v7281_v40 = vmul.f32 %v7186_v61, %v17478_v6  ;;  %v14953_v7 = vrot.slane %v14938_v51, %v14095_v12  ;;  %v14957_v18 = vrot.slane %v14941_v44, %v14095_v12  ;;  %v8497_v28 = vadd.f32 %v8465_v56, %v14788_v47  ;;  %v17485_v19 = vld [vmem:[#allocation268_spill] sm:$0xff] }
 0x423   : > { %v7075_v25 = vadd.f32 %v7043_v2, %v6805_v42  ;;  %v6714_v37 = vrot.slane %v14881_v3, %v17290_v23  ;;  %v7519_v5 = vmul.f32 %v7424_v34, %v17480_v57  ;;  %v14965_v35 = vrot.slane %v14949_v29, %v14095_v12  ;;  %v17488_v57 = vld [vmem:[#allocation167_spill] sm:$0xff] }
 0x424   : > { %v6952_v55 = vrot.slane %v14902_v20, %v17290_v23  ;;  %v7662_v42 = vrot.slane %v14953_v7, %v16944_v1  ;;  %v7900_v32 = vrot.slane %v14957_v18, %v16944_v1  ;;  %v14973_v47 = vmul.f32 %v8592_v15, %v8497_v28 }
 0x425   : > { %v7313_v59 = vadd.f32 %v7281_v40, %v7075_v25  ;;  %17481 = vst [vmem:[#allocation225_spill] sm:$0xff] %v14965_v35  ;;  %v6806_v45 = vmul.f32 %v6714_v37, %v17483_v8  ;;  %v8138_v54 = vrot.slane %v14965_v35, %v16944_v1  ;;  %v7190_v17 = vrot.slane %v14913_v0, %v17290_v23  ;;  %v17486_v40 = vld [vmem:[#allocation265_spill] sm:$0xff]  ;;  %v17487_v25 = vld [vmem:[#allocation139_spill] sm:$0xff] }
 0x426   : > { %17482 = vst [vmem:[#allocation234_spill] sm:$0xff] %v14973_v47  ;;  %v7044_v2 = vmul.f32 %v6952_v55, %v17484_v21  ;;  %v7757_v6 = vmul.f32 %v7662_v42, %v17485_v19  ;;  %v7995_v36 = vmul.f32 %v7900_v32, %v17486_v40  ;;  %v7428_v56 = vrot.slane %v14932_v58, %v17290_v23  ;;  %v17490_v19 = vld [vmem:[#allocation18_spill] sm:$0xff] }
 0x427   : > { %v7551_v63 = vadd.f32 %v7519_v5, %v7313_v59  ;;  %v7666_v15 = vrot.slane %v14953_v7, %v17290_v23  ;;  %v8233_v28 = vmul.f32 %v8138_v54, %v17487_v25  ;;  %v7282_v5 = vmul.f32 %v7190_v17, %v17488_v57 }
 0x428   : > { %v7076_v59 = vadd.f32 %v7044_v2, %v6806_v45  ;;  %v7904_v8 = vrot.slane %v14957_v18, %v17290_v23  ;;  %v7520_v47 = vmul.f32 %v7428_v56, %v17489_v46  ;;  %v8142_v40 = vrot.slane %v14965_v35, %v17290_v23  ;;  %v17493_v45 = vld [vmem:[#allocation41_spill] sm:$0xff] }
 0x429   : > { %v7789_v21 = vadd.f32 %v7757_v6, %v7551_v63  ;;  %v7758_v53 = vmul.f32 %v7666_v15, %v17490_v19  ;;  %v8466_v25 = vmul.f32 %v14875_v13, %v17492_v31  ;;  %v6807_v2 = vmul.f32 %v6710_v43, %v17493_v45  ;;  %v17496_v6 = vld [vmem:[#allocation168_spill] sm:$0xff]  ;;  %v17500_v13 = vld [vmem:[#allocation27_spill] sm:$0xff] }
 0x42a   : > { %v7314_v9 = vadd.f32 %v7282_v5, %v7076_v59  ;;  %v7996_v4 = vmul.f32 %v7904_v8, %v17491_v48  ;;  %v8234_v10 = vmul.f32 %v8142_v40, %v17494_v24  ;;  %v7045_v63 = vmul.f32 %v6948_v50, %v17495_v52  ;;  %v17499_v5 = vld [vmem:[#allocation269_spill] sm:$0xff] }
 0x42b   : > { %v8027_v57 = vadd.f32 %v7995_v36, %v7789_v21  ;;  %v7283_v46 = vmul.f32 %v7186_v61, %v17496_v6  ;;  %v15003_v19 = vadd.f32 %v8466_v25, %v14817_v62  ;;  %v7521_v59 = vmul.f32 %v7424_v34, %v17498_v33  ;;  %v17501_v36 = vld [vmem:[#allocation277_spill] sm:$0xff]  ;;  %v17503_v62 = vld [vmem:[#allocation20_spill] sm:$0xff] }
 0x42c   : > { %v7552_v30 = vadd.f32 %v7520_v47, %v7314_v9  ;;  %v7759_v48 = vmul.f32 %v7662_v42, %v17499_v5  ;;  %v7077_v31 = vadd.f32 %v7045_v63, %v6807_v2  ;;  %v7997_v43 = vmul.f32 %v7900_v32, %v17500_v13  ;;  %v17504_v61 = vld [vmem:[#allocation101_spill] sm:$0xff]  ;;  %v17505_v42 = vld [vmem:[#allocation207_spill] sm:$0xff] }
 0x42d   : > { %17497 = vst [vmem:[#allocation255_spill] sm:$0xff] %v15003_v19  ;;  %v15007_v35 = vadd.f32 %v8233_v28, %v8027_v57  ;;  %v8235_v21 = vmul.f32 %v8138_v54, %v17501_v36  ;;  %v8339_v52 = vcombine.high %v14746_v26, %v14746_v26  ;;  %v15015_v9 = vcombine.high %v14749_v14, %v14749_v14  ;;  %v17506_v28 = vld [vmem:[#allocation136_spill] sm:$0xff]  ;;  %v17507_v26 = vld [vmem:[#allocation271_spill] sm:$0xff]  ;;  %v17508_v57 = vld [vmem:[#allocation29_spill] sm:$0xff] }
 0x42e   : > { %v7790_v24 = vadd.f32 %v7758_v53, %v7552_v30  ;;  %v6808_v50 = vmul.f32 %v6714_v37, %v17503_v62  ;;  %v7315_v33 = vadd.f32 %v7283_v46, %v7077_v31  ;;  %v7046_v34 = vmul.f32 %v6952_v55, %v17504_v61  ;;  %v17509_v37 = vld [vmem:[#allocation54_spill] sm:$0xff]  ;;  %v17510_v55 = vld [vmem:[#allocation123_spill] sm:$0xff]  ;;  %v17514_v61 = vld [vmem:[#allocation21_spill] sm:$0xff] }
 0x42f   : > { %17502 = vst [vmem:[#allocation77_spill] sm:$0xff] %v15015_v9  ;;  %v7284_v47 = vmul.f32 %v7190_v17, %v17505_v42  ;;  %v7522_v25 = vmul.f32 %v7428_v56, %v17506_v28  ;;  %v8368_v54 = vrot.slane %v8339_v52, %v16944_v1  ;;  %v8600_v30 = vrot.slane %v15015_v9, %v16944_v1  ;;  %v17515_v28 = vld [vmem:[#allocation95_spill] sm:$0xff] }
 0x430   : > { %v8028_v32 = vadd.f32 %v7996_v4, %v7790_v24  ;;  %v7760_v53 = vmul.f32 %v7666_v15, %v17507_v26  ;;  %v7553_v45 = vadd.f32 %v7521_v59, %v7315_v33  ;;  %v7078_v2 = vadd.f32 %v7046_v34, %v6808_v50 }
 0x431   : > { %v7998_v63 = vmul.f32 %v7904_v8, %v17508_v57  ;;  %v8236_v6 = vmul.f32 %v8142_v40, %v17509_v37  ;;  %v8467_v17 = vmul.f32 %v8368_v54, %v17510_v55  ;;  %v15031_v56 = vrot.slane %v8339_v52, %v17290_v23  ;;  %v17520_v55 = vld [vmem:[#allocation128_spill] sm:$0xff] }
 0x432   : > { %v15027_v46 = vadd.f32 %v8234_v10, %v8028_v32  ;;  %v6642_v4 = vcombine.high %v17462_v60, %v17462_v60  ;;  %v7791_v5 = vadd.f32 %v7759_v48, %v7553_v45  ;;  %v7316_v31 = vadd.f32 %v7284_v47, %v7078_v2  ;;  %v17511_v10 = vld [vmem:[#allocation245_spill] sm:$0xff]  ;;  %v17516_v32 = vld [vmem:[#allocation158_spill] sm:$0xff]  ;;  %v17517_v45 = vld [vmem:[#allocation36_spill] sm:$0xff] }
 0x433   : > { %v6880_v15 = vcombine.high %v14887_v11, %v14887_v11  ;;  %v7118_v8 = vcombine.high %v14896_v22, %v14896_v22  ;;  %v8499_v40 = vadd.f32 %v8467_v17, %v14855_v49  ;;  %v8468_v59 = vmul.f32 %v15031_v56, %v17511_v10 }
 0x434   : > { %v15043_v13 = vrot.slane %v6642_v4, %v14095_v12  ;;  %v7356_v36 = vcombine.high %v14919_v16, %v14919_v16  ;;  %v8029_v60 = vadd.f32 %v7997_v43, %v7791_v5  ;;  %v7554_v48 = vadd.f32 %v7522_v25, %v7316_v31  ;;  %v17522_v5 = vld [vmem:[#allocation173_spill] sm:$0xff] }
 0x435   : > { %v15048_v24 = vrot.slane %v6880_v15, %v14095_v12  ;;  %v15051_v11 = vrot.slane %v7118_v8, %v14095_v12  ;;  %v15053_v22 = vmul.f32 %v8600_v30, %v8499_v40  ;;  %v15056_v49 = vadd.f32 %v8468_v59, %v14877_v41  ;;  %v17523_v31 = vld [vmem:[#allocation65_spill] sm:$0xff] }
 0x436   : > { %v6718_v52 = vrot.slane %v15043_v13, %v16944_v1  ;;  %v15061_v62 = vrot.slane %v7356_v36, %v14095_v12  ;;  %v15063_v16 = vadd.f32 %v8235_v21, %v8029_v60  ;;  %v7792_v43 = vadd.f32 %v7760_v53, %v7554_v48  ;;  %v17524_v48 = vld [vmem:[#allocation272_spill] sm:$0xff] }
 0x437   : > { %17512 = vst [vmem:[#allocation145_spill] sm:$0xff] %v15053_v22  ;;  %17513 = vst [vmem:[#allocation196_spill] sm:$0xff] %v15056_v49  ;;  %v6956_v50 = vrot.slane %v15048_v24, %v16944_v1  ;;  %v7194_v33 = vrot.slane %v15051_v11, %v16944_v1  ;;  %v7594_v42 = vcombine.high %v14938_v51, %v14938_v51  ;;  %v17519_v51 = vld [vmem:[#allocation141_spill] sm:$0xff] }
 0x438   : > { %v6809_v34 = vmul.f32 %v6718_v52, %v17514_v61  ;;  %v7432_v41 = vrot.slane %v15061_v62, %v16944_v1  ;;  %v7832_v47 = vcombine.high %v14941_v44, %v14941_v44  ;;  %v8030_v21 = vadd.f32 %v7998_v63, %v7792_v43  ;;  %v17525_v61 = vld [vmem:[#allocation7_spill] sm:$0xff]  ;;  %v17536_v49 = vld [vmem:[#allocation157_spill] sm:$0xff] }
 0x439   : > { %v7047_v25 = vmul.f32 %v6956_v50, %v17515_v28  ;;  %v7285_v26 = vmul.f32 %v7194_v33, %v17516_v32  ;;  %v8070_v53 = vcombine.high %v14949_v29, %v14949_v29  ;;  %v15082_v57 = vrot.slane %v7594_v42, %v14095_v12  ;;  %v17527_v28 = vld [vmem:[#allocation127_spill] sm:$0xff]  ;;  %v17528_v32 = vld [vmem:[#allocation142_spill] sm:$0xff] }
 0x43a   : > { %v7523_v2 = vmul.f32 %v7432_v41, %v17517_v45  ;;  %v15085_v37 = vrot.slane %v7832_v47, %v14095_v12  ;;  %v6280_v17 = vadd.f32 %v17520_v55, %v17519_v51  ;;  %v15089_v44 = vadd.f32 %v8236_v6, %v8030_v21 }
 0x43b   : > { %v7079_v63 = vadd.f32 %v7047_v25, %v6809_v34  ;;  %v15092_v4 = vrot.slane %v8070_v53, %v14095_v12  ;;  %v5662_v29 = vadd.f32 %v17523_v31, %v17522_v5  ;;  %v7670_v15 = vrot.slane %v15082_v57, %v16944_v1  ;;  %v17529_v53 = vld [vmem:[#allocation175_spill] sm:$0xff] }
 0x43c   : > { %17518 = vst [vmem:[#allocation180_spill] sm:$0xff] %v15085_v37  ;;  %v7908_v8 = vrot.slane %v15085_v37, %v16944_v1  ;;  %v8469_v40 = vmul.f32 %v8368_v54, %v6280_v17  ;;  %v6722_v10 = vrot.slane %v15043_v13, %v17290_v23  ;;  %v6960_v36 = vrot.slane %v15048_v24, %v17290_v23  ;;  %v17526_v54 = vld [vmem:[#allocation276_spill] sm:$0xff] }
 0x43d   : > { %17521 = vst [vmem:[#allocation67_spill] sm:$0xff] %v15092_v4  ;;  %v7317_v59 = vadd.f32 %v7285_v26, %v7079_v63  ;;  %v8146_v6 = vrot.slane %v15092_v4, %v16944_v1  ;;  %v7198_v60 = vrot.slane %v15051_v11, %v17290_v23  ;;  %v7761_v43 = vmul.f32 %v7670_v15, %v17524_v48 }
 0x43e   : > { %v7999_v34 = vmul.f32 %v7908_v8, %v17525_v61  ;;  %v8501_v42 = vadd.f32 %v8469_v40, %v14921_v27  ;;  %v6810_v47 = vmul.f32 %v6722_v10, %v17526_v54  ;;  %v7048_v26 = vmul.f32 %v6960_v36, %v17528_v32  ;;  %v17532_v61 = vld [vmem:[#allocation166_spill] sm:$0xff] }
 0x43f   : > { %v7555_v21 = vadd.f32 %v7523_v2, %v7317_v59  ;;  %v8237_v25 = vmul.f32 %v8146_v6, %v17527_v28  ;;  %v7286_v45 = vmul.f32 %v7198_v60, %v17529_v53  ;;  %v7436_v17 = vrot.slane %v15061_v62, %v17290_v23  ;;  %v17531_v59 = vld [vmem:[#allocation131_spill] sm:$0xff]  ;;  %v17534_v28 = vld [vmem:[#allocation8_spill] sm:$0xff]  ;;  %v17535_v53 = vld [vmem:[#allocation181_spill] sm:$0xff] }
 0x440   : > { %v15115_v55 = vmul.f32 %v8600_v30, %v8501_v42  ;;  %v7674_v63 = vrot.slane %v15082_v57, %v17290_v23  ;;  %v7912_v27 = vrot.slane %v15085_v37, %v17290_v23  ;;  %v7080_v40 = vadd.f32 %v7048_v26, %v6810_v47  ;;  %v17533_v42 = vld [vmem:[#allocation22_spill] sm:$0xff]  ;;  %v17537_v47 = vld [vmem:[#allocation279_spill] sm:$0xff] }
 0x441   : > { %v7793_v31 = vadd.f32 %v7761_v43, %v7555_v21  ;;  %v8150_v2 = vrot.slane %v15092_v4, %v17290_v23  ;;  %v6281_v48 = vadd.f32 %v17531_v59, %v17519_v51  ;;  %v7524_v30 = vmul.f32 %v7436_v17, %v17532_v61  ;;  %v17538_v26 = vld [vmem:[#allocation143_spill] sm:$0xff]  ;;  %v17539_v4 = vld [vmem:[#allocation209_spill] sm:$0xff]  ;;  %v17540_v59 = vld [vmem:[#allocation170_spill] sm:$0xff] }
 0x442   : > { %17530 = vst [vmem:[#allocation51_spill] sm:$0xff] %v15115_v55  ;;  %v7762_v54 = vmul.f32 %v7674_v63, %v17533_v42  ;;  %v8000_v32 = vmul.f32 %v7912_v27, %v17534_v28  ;;  %v5663_v19 = vadd.f32 %v17536_v49, %v17535_v53  ;;  %v7318_v22 = vadd.f32 %v7286_v45, %v7080_v40  ;;  %v17542_v49 = vld [vmem:[#allocation275_spill] sm:$0xff]  ;;  %v17544_v40 = vld [vmem:[#allocation165_spill] sm:$0xff] }
 0x443   : > { %v8031_v55 = vadd.f32 %v7999_v34, %v7793_v31  ;;  %v8238_v9 = vmul.f32 %v8150_v2, %v5662_v29  ;;  %v8470_v43 = vmul.f32 %v15031_v56, %v6281_v48  ;;  %v6811_v21 = vmul.f32 %v6718_v52, %v17537_v47  ;;  %v17543_v29 = vld [vmem:[#allocation125_spill] sm:$0xff]  ;;  %v17545_v52 = vld [vmem:[#allocation176_spill] sm:$0xff] }
 0x444   : > { %v7049_v14 = vmul.f32 %v6956_v50, %v17538_v26  ;;  %v7287_v51 = vmul.f32 %v7194_v33, %v17539_v4  ;;  %v7525_v61 = vmul.f32 %v7432_v41, %v17540_v59  ;;  %v7556_v42 = vadd.f32 %v7524_v30, %v7318_v22  ;;  %v17546_v33 = vld [vmem:[#allocation281_spill] sm:$0xff]  ;;  %v17549_v22 = vld [vmem:[#allocation80_spill] sm:$0xff] }
 0x445   : > { %v15137_v37 = vadd.f32 %v8237_v25, %v8031_v55  ;;  %v15140_v28 = vadd.f32 %v8470_v43, %v14944_v39  ;;  %v7763_v34 = vmul.f32 %v7670_v15, %v17542_v49  ;;  %v8001_v31 = vmul.f32 %v7908_v8, %v17543_v29  ;;  %v17547_v41 = vld [vmem:[#allocation53_spill] sm:$0xff]  ;;  %v17548_v25 = vld [vmem:[#allocation111_spill] sm:$0xff]  ;;  %v17552_v8 = vld [vmem:[#allocation164_spill] sm:$0xff] }
 0x446   : > { %v7081_v45 = vadd.f32 %v7049_v14, %v6811_v21  ;;  %v8239_v56 = vmul.f32 %v8146_v6, %v5663_v19  ;;  %v6282_v48 = vadd.f32 %v17545_v52, %v17544_v40  ;;  %v7794_v50 = vadd.f32 %v7762_v54, %v7556_v42  ;;  %v17550_v43 = vld [vmem:[#allocation169_spill] sm:$0xff]  ;;  %v17551_v14 = vld [vmem:[#allocation108_spill] sm:$0xff]  ;;  %v17554_v49 = vld [vmem:[#allocation278_spill] sm:$0xff] }
 0x447   : > { %17541 = vst [vmem:[#allocation32_spill] sm:$0xff] %v15140_v28  ;;  %v8292_v4 = vcombine.high %v17546_v33, %v14440_v38  ;;  %v8524_v55 = vcombine.high %v17548_v25, %v17547_v41  ;;  %v5664_v39 = vadd.f32 %v17549_v22, %v17535_v53  ;;  %v6812_v15 = vmul.f32 %v6722_v10, %v17550_v43  ;;  %v17553_v38 = vld [vmem:[#allocation217_spill] sm:$0xff]  ;;  %v17558_v33 = vld [vmem:[#allocation179_spill] sm:$0xff] }
 0x448   : > { %v7319_v30 = vadd.f32 %v7287_v51, %v7081_v45  ;;  %v7050_v47 = vmul.f32 %v6960_v36, %v17551_v14  ;;  %v7288_v19 = vmul.f32 %v7198_v60, %v17552_v8  ;;  %v8032_v6 = vadd.f32 %v8000_v32, %v7794_v50  ;;  %v17555_v51 = vld [vmem:[#allocation273_spill] sm:$0xff] }
 0x449   : > { %v15156_v21 = vrot.slane %v8292_v4, %v14095_v12  ;;  %v15159_v54 = vrot.slane %v8524_v55, %v14095_v12  ;;  %v7526_v26 = vmul.f32 %v7436_v17, %v17553_v38  ;;  %v7764_v29 = vmul.f32 %v7674_v63, %v17554_v49  ;;  %v17557_v17 = vld [vmem:[#allocation23_spill] sm:$0xff]  ;;  %v17559_v63 = vld [vmem:[#allocation93_spill] sm:$0xff] }
 0x44a   : > { %v7557_v59 = vadd.f32 %v7525_v61, %v7319_v30  ;;  %v7082_v42 = vadd.f32 %v7050_v47, %v6812_v15  ;;  %v8002_v45 = vmul.f32 %v7912_v27, %v17555_v51  ;;  %v15164_v10 = vadd.f32 %v8238_v9, %v8032_v6  ;;  %v17562_v6 = vld [vmem:[#allocation146_spill] sm:$0xff] }
 0x44b   : > { %v15168_v36 = vrot.slane %v15156_v21, %v14095_v12  ;;  %v15172_v60 = vrot.slane %v15159_v54, %v14095_v12  ;;  %v8240_v32 = vmul.f32 %v8150_v2, %v5664_v39  ;;  %v6283_v61 = vadd.f32 %v17557_v17, %v17544_v40  ;;  %v17568_v17 = vld [vmem:[#allocation159_spill] sm:$0xff] }
 0x44c   : > { %v7795_v52 = vadd.f32 %v7763_v34, %v7557_v59  ;;  %v7320_v50 = vadd.f32 %v7288_v19, %v7082_v42  ;;  %v5665_v4 = vadd.f32 %v17559_v63, %v17558_v33  ;;  %v6672_v2 = vcombine.high %v14881_v3, %v14881_v3  ;;  %v17565_v42 = vld [vmem:[#allocation174_spill] sm:$0xff] }
 0x44d   : > { %17556 = vst [vmem:[#allocation79_spill] sm:$0xff] %v15172_v60  ;;  %v8376_v9 = vrot.slane %v15168_v36, %v16944_v1  ;;  %v8608_v27 = vrot.slane %v15172_v60, %v16944_v1  ;;  %v8380_v41 = vrot.slane %v15168_v36, %v17290_v23  ;;  %v6910_v40 = vcombine.high %v14902_v20, %v14902_v20 }
 0x44e   : > { %v8033_v34 = vadd.f32 %v8001_v31, %v7795_v52  ;;  %v7558_v25 = vadd.f32 %v7526_v26, %v7320_v50  ;;  %v7148_v55 = vcombine.high %v14913_v0, %v14913_v0  ;;  %v6726_v30 = vrot.slane %v6672_v2, %v16944_v1  ;;  %v17561_v0 = vld [vmem:[#allocation280_spill] sm:$0xff]  ;;  %v17567_v50 = vld [vmem:[#allocation178_spill] sm:$0xff] }
 0x44f   : > { %v8471_v22 = vmul.f32 %v8376_v9, %v6282_v48  ;;  %v8472_v39 = vmul.f32 %v8380_v41, %v6283_v61  ;;  %v7386_v43 = vcombine.high %v14932_v58, %v14932_v58  ;;  %v6964_v3 = vrot.slane %v6910_v40, %v16944_v1  ;;  %v17563_v58 = vld [vmem:[#allocation163_spill] sm:$0xff] }
 0x450   : > { %v15193_v15 = vadd.f32 %v8239_v56, %v8033_v34  ;;  %v7796_v14 = vadd.f32 %v7764_v29, %v7558_v25  ;;  %v7202_v31 = vrot.slane %v7148_v55, %v16944_v1  ;;  %v6813_v48 = vmul.f32 %v6726_v30, %v17561_v0  ;;  %v17569_v34 = vld [vmem:[#allocation211_spill] sm:$0xff]  ;;  %v17571_v0 = vld [vmem:[#allocation9_spill] sm:$0xff] }
 0x451   : > { %v8503_v47 = vadd.f32 %v8471_v22, %v15007_v35  ;;  %v15199_v20 = vadd.f32 %v8472_v39, %v15027_v46  ;;  %v7440_v8 = vrot.slane %v7386_v43, %v16944_v1  ;;  %v7051_v38 = vmul.f32 %v6964_v3, %v17562_v6  ;;  %v17566_v46 = vld [vmem:[#allocation225_spill] sm:$0xff]  ;;  %v17570_v39 = vld [vmem:[#allocation240_spill] sm:$0xff] }
 0x452   : > { %v8034_v19 = vadd.f32 %v8002_v45, %v7796_v14  ;;  %v7289_v56 = vmul.f32 %v7202_v31, %v17563_v58  ;;  %v7624_v26 = vcombine.high %v14953_v7, %v14953_v7  ;;  %v7862_v35 = vcombine.high %v14957_v18, %v14957_v18  ;;  %v17572_v6 = vld [vmem:[#allocation13_spill] sm:$0xff] }
 0x453   : > { %17560 = vst [vmem:[#allocation148_spill] sm:$0xff] %v15199_v20  ;;  %v15207_v59 = vmul.f32 %v8608_v27, %v8503_v47  ;;  %v7527_v49 = vmul.f32 %v7440_v8, %v17565_v42  ;;  %v8100_v29 = vcombine.high %v17566_v46, %v17566_v46  ;;  %v7083_v45 = vadd.f32 %v7051_v38, %v6813_v48  ;;  %v17580_v20 = vld [vmem:[#allocation185_spill] sm:$0xff] }
 0x454   : > { %v15214_v51 = vadd.f32 %v8240_v32, %v8034_v19  ;;  %v7678_v52 = vrot.slane %v7624_v26, %v16944_v1  ;;  %v6284_v61 = vadd.f32 %v17568_v17, %v17567_v50  ;;  %v7916_v7 = vrot.slane %v7862_v35, %v16944_v1  ;;  %v17573_v17 = vld [vmem:[#allocation147_spill] sm:$0xff] }
 0x455   : > { %17564 = vst [vmem:[#allocation197_spill] sm:$0xff] %v15207_v59  ;;  %v8154_v63 = vrot.slane %v8100_v29, %v16944_v1  ;;  %v5666_v25 = vadd.f32 %v17569_v34, %v17558_v33  ;;  %v6730_v18 = vrot.slane %v6672_v2, %v17290_v23  ;;  %v7321_v22 = vadd.f32 %v7289_v56, %v7083_v45  ;;  %v17574_v56 = vld [vmem:[#allocation183_spill] sm:$0xff] }
 0x456   : > { %v7765_v14 = vmul.f32 %v7678_v52, %v17570_v39  ;;  %v8473_v32 = vmul.f32 %v8376_v9, %v6284_v61  ;;  %v6968_v47 = vrot.slane %v6910_v40, %v17290_v23  ;;  %v8003_v48 = vmul.f32 %v7916_v7, %v17571_v0 }
 0x457   : > { %v8241_v19 = vmul.f32 %v8154_v63, %v5665_v4  ;;  %v6814_v38 = vmul.f32 %v6730_v18, %v17572_v6  ;;  %v7206_v58 = vrot.slane %v7148_v55, %v17290_v23  ;;  %v7559_v42 = vadd.f32 %v7527_v49, %v7321_v22  ;;  %v17576_v55 = vld [vmem:[#allocation177_spill] sm:$0xff]  ;;  %v17577_v22 = vld [vmem:[#allocation242_spill] sm:$0xff] }
 0x458   : > { %v8505_v46 = vadd.f32 %v8473_v32, %v15063_v16  ;;  %v7052_v34 = vmul.f32 %v6968_v47, %v17573_v17  ;;  %v7444_v2 = vrot.slane %v7386_v43, %v17290_v23  ;;  %v7682_v9 = vrot.slane %v7624_v26, %v17290_v23  ;;  %v17578_v32 = vld [vmem:[#allocation30_spill] sm:$0xff]  ;;  %v17579_v43 = vld [vmem:[#allocation85_spill] sm:$0xff] }
 0x459   : > { %v7290_v45 = vmul.f32 %v7206_v58, %v17574_v56  ;;  %v7920_v40 = vrot.slane %v7862_v35, %v17290_v23  ;;  %v8158_v61 = vrot.slane %v8100_v29, %v17290_v23  ;;  %v7797_v4 = vadd.f32 %v7765_v14, %v7559_v42  ;;  %v17581_v35 = vld [vmem:[#allocation274_spill] sm:$0xff] }
 0x45a   : > { %v15236_v39 = vmul.f32 %v8608_v27, %v8505_v46  ;;  %v7084_v0 = vadd.f32 %v7052_v34, %v6814_v38  ;;  %v7528_v49 = vmul.f32 %v7444_v2, %v17576_v55  ;;  %v7766_v16 = vmul.f32 %v7682_v9, %v17577_v22  ;;  %v17582_v29 = vld [vmem:[#allocation38_spill] sm:$0xff]  ;;  %v17584_v46 = vld [vmem:[#allocation172_spill] sm:$0xff]  ;;  %v17585_v55 = vld [vmem:[#allocation221_spill] sm:$0xff] }
 0x45b   : > { %v8004_v6 = vmul.f32 %v7920_v40, %v17578_v32  ;;  %v8242_v17 = vmul.f32 %v8158_v61, %v5666_v25  ;;  %v6285_v56 = vadd.f32 %v17579_v43, %v17567_v50  ;;  %v8035_v59 = vadd.f32 %v8003_v48, %v7797_v4  ;;  %v17583_v42 = vld [vmem:[#allocation114_spill] sm:$0xff]  ;;  %v17586_v32 = vld [vmem:[#allocation243_spill] sm:$0xff] }
 0x45c   : > { %17575 = vst [vmem:[#allocation228_spill] sm:$0xff] %v15236_v39  ;;  %v7322_v26 = vadd.f32 %v7290_v45, %v7084_v0  ;;  %v5667_v28 = vadd.f32 %v17581_v35, %v17580_v20  ;;  %v6815_v14 = vmul.f32 %v6726_v30, %v17582_v29  ;;  %v7053_v38 = vmul.f32 %v6964_v3, %v17583_v42  ;;  %v17587_v50 = vld [vmem:[#allocation31_spill] sm:$0xff] }
 0x45d   : > { %v8474_v27 = vmul.f32 %v8380_v41, %v6285_v56  ;;  %v7291_v34 = vmul.f32 %v7202_v31, %v17584_v46  ;;  %v7529_v22 = vmul.f32 %v7440_v8, %v17585_v55  ;;  %v15249_v39 = vadd.f32 %v8241_v19, %v8035_v59  ;;  %v17588_v41 = vld [vmem:[#allocation102_spill] sm:$0xff]  ;;  %v17589_v59 = vld [vmem:[#allocation103_spill] sm:$0xff]  ;;  %v17592_v56 = vld [vmem:[#allocation184_spill] sm:$0xff] }
 0x45e   : > { %v7560_v25 = vadd.f32 %v7528_v49, %v7322_v26  ;;  %v7767_v60 = vmul.f32 %v7678_v52, %v17586_v32  ;;  %v8005_v48 = vmul.f32 %v7916_v7, %v17587_v50  ;;  %v7085_v4 = vadd.f32 %v7053_v38, %v6815_v14  ;;  %v17590_v7 = vld [vmem:[#allocation247_spill] sm:$0xff]  ;;  %v17594_v14 = vld [vmem:[#allocation244_spill] sm:$0xff] }
 0x45f   : > { %v15254_v45 = vadd.f32 %v8474_v27, %v15089_v44  ;;  %v8243_v0 = vmul.f32 %v8154_v63, %v5667_v28  ;;  %v6286_v30 = vadd.f32 %v17588_v41, %v17522_v5  ;;  %v8308_v31 = vcombine.high %v15156_v21, %v15156_v21  ;;  %v17591_v44 = vld [vmem:[#allocation187_spill] sm:$0xff] }
 0x460   : > { %v7798_v3 = vadd.f32 %v7766_v16, %v7560_v25  ;;  %v8540_v8 = vcombine.high %v15159_v54, %v15159_v54  ;;  %v5668_v52 = vadd.f32 %v17589_v59, %v17580_v20  ;;  %v7323_v19 = vadd.f32 %v7291_v34, %v7085_v4  ;;  %v17593_v21 = vld [vmem:[#allocation223_spill] sm:$0xff]  ;;  %v17596_v34 = vld [vmem:[#allocation104_spill] sm:$0xff] }
 0x461   : > { %v6816_v49 = vmul.f32 %v6730_v18, %v17590_v7  ;;  %v7054_v43 = vmul.f32 %v6968_v47, %v17591_v44  ;;  %v7292_v28 = vmul.f32 %v7206_v58, %v17592_v56  ;;  %v15268_v26 = vrot.slane %v8308_v31, %v14095_v12  ;;  %v17595_v42 = vld [vmem:[#allocation11_spill] sm:$0xff]  ;;  %v17603_v56 = vld [vmem:[#allocation226_spill] sm:$0xff] }
 0x462   : > { %v8036_v63 = vadd.f32 %v8004_v6, %v7798_v3  ;;  %v15271_v16 = vrot.slane %v8540_v8, %v14095_v12  ;;  %v7530_v35 = vmul.f32 %v7444_v2, %v17593_v21  ;;  %v7561_v54 = vadd.f32 %v7529_v22, %v7323_v19  ;;  %v17597_v22 = vld [vmem:[#allocation186_spill] sm:$0xff] }
 0x463   : > { %v7086_v29 = vadd.f32 %v7054_v43, %v6816_v49  ;;  %v7768_v27 = vmul.f32 %v7682_v9, %v17594_v14  ;;  %v8006_v38 = vmul.f32 %v7920_v40, %v17595_v42  ;;  %v8384_v47 = vrot.slane %v15268_v26, %v16944_v1  ;;  %v17598_v40 = vld [vmem:[#allocation105_spill] sm:$0xff]  ;;  %v17601_v49 = vld [vmem:[#allocation216_spill] sm:$0xff] }
 0x464   : > { %v15276_v18 = vadd.f32 %v8242_v17, %v8036_v63  ;;  %v8616_v58 = vrot.slane %v15271_v16, %v16944_v1  ;;  %v8244_v6 = vmul.f32 %v8158_v61, %v5668_v52  ;;  %v7799_v46 = vadd.f32 %v7767_v60, %v7561_v54  ;;  %v17604_v63 = vld [vmem:[#allocation67_spill] sm:$0xff] }
 0x465   : > { %v7324_v12 = vadd.f32 %v7292_v28, %v7086_v29  ;;  %v6287_v2 = vadd.f32 %v17596_v34, %v17522_v5  ;;  %v8388_v55 = vrot.slane %v15268_v26, %v17290_v23  ;;  %v8475_v9 = vmul.f32 %v8384_v47, %v6286_v30 }
 0x466   : > { %v5669_v17 = vadd.f32 %v17598_v40, %v17597_v22  ;;  %v6674_v25 = vcombine.high %v15043_v13, %v15043_v13  ;;  %v6912_v32 = vcombine.high %v15048_v24, %v15048_v24  ;;  %v8037_v50 = vadd.f32 %v8005_v48, %v7799_v46  ;;  %v17608_v40 = vld [vmem:[#allocation33_spill] sm:$0xff] }
 0x467   : > { %v7562_v61 = vadd.f32 %v7530_v35, %v7324_v12  ;;  %v8476_v60 = vmul.f32 %v8388_v55, %v6287_v2  ;;  %v7150_v4 = vcombine.high %v15051_v11, %v15051_v11  ;;  %v8507_v5 = vadd.f32 %v8475_v9, %v15137_v37  ;;  %v17599_v11 = vld [vmem:[#allocation47_spill] sm:$0xff]  ;;  %v17600_v37 = vld [vmem:[#allocation188_spill] sm:$0xff]  ;;  %v17607_v2 = vld [vmem:[#allocation238_spill] sm:$0xff] }
 0x468   : > { %v6734_v41 = vrot.slane %v6674_v25, %v16944_v1  ;;  %v6972_v30 = vrot.slane %v6912_v32, %v16944_v1  ;;  %v7388_v3 = vcombine.high %v15061_v62, %v15061_v62  ;;  %v15299_v31 = vadd.f32 %v8243_v0, %v8037_v50  ;;  %v17602_v0 = vld [vmem:[#allocation180_spill] sm:$0xff] }
 0x469   : > { %v7800_v13 = vadd.f32 %v7768_v27, %v7562_v61  ;;  %v15302_v24 = vadd.f32 %v8476_v60, %v15164_v10  ;;  %v7210_v48 = vrot.slane %v7150_v4, %v16944_v1  ;;  %v15305_v8 = vmul.f32 %v8616_v58, %v8507_v5  ;;  %v17605_v35 = vld [vmem:[#allocation112_spill] sm:$0xff] }
 0x46a   : > { %v6817_v59 = vmul.f32 %v6734_v41, %v17599_v11  ;;  %v7055_v52 = vmul.f32 %v6972_v30, %v17600_v37  ;;  %v7448_v19 = vrot.slane %v7388_v3, %v16944_v1  ;;  %v7626_v62 = vcombine.high %v15082_v57, %v15082_v57  ;;  %v17606_v57 = vld [vmem:[#allocation113_spill] sm:$0xff]  ;;  %v17610_v37 = vld [vmem:[#allocation191_spill] sm:$0xff] }
 0x46b   : > { %v8038_v7 = vadd.f32 %v8006_v38, %v7800_v13  ;;  %v7293_v44 = vmul.f32 %v7210_v48, %v17601_v49  ;;  %v7864_v10 = vcombine.high %v17602_v0, %v17602_v0  ;;  %v8102_v21 = vcombine.high %v17604_v63, %v17604_v63  ;;  %v17609_v11 = vld [vmem:[#allocation241_spill] sm:$0xff]  ;;  %v17614_v63 = vld [vmem:[#allocation116_spill] sm:$0xff] }
 0x46c   : > { %v7087_v43 = vadd.f32 %v7055_v52, %v6817_v59  ;;  %v7531_v28 = vmul.f32 %v7448_v19, %v17603_v56  ;;  %v6288_v54 = vadd.f32 %v17605_v35, %v17535_v53  ;;  %v7686_v14 = vrot.slane %v7626_v62, %v16944_v1  ;;  %v17613_v56 = vld [vmem:[#allocation248_spill] sm:$0xff] }
 0x46d   : > { %v15320_v29 = vadd.f32 %v8244_v6, %v8038_v7  ;;  %v7924_v27 = vrot.slane %v7864_v10, %v16944_v1  ;;  %v5670_v42 = vadd.f32 %v17606_v57, %v17597_v22  ;;  %v8162_v46 = vrot.slane %v8102_v21, %v16944_v1  ;;  %v17611_v7 = vld [vmem:[#allocation218_spill] sm:$0xff] }
 0x46e   : > { %v7325_v38 = vadd.f32 %v7293_v44, %v7087_v43  ;;  %v8477_v12 = vmul.f32 %v8384_v47, %v6288_v54  ;;  %v6738_v34 = vrot.slane %v6674_v25, %v17290_v23  ;;  %v7769_v9 = vmul.f32 %v7686_v14, %v17607_v2  ;;  %v17612_v43 = vld [vmem:[#allocation182_spill] sm:$0xff] }
 0x46f   : > { %v8007_v50 = vmul.f32 %v7924_v27, %v17608_v40  ;;  %v6976_v6 = vrot.slane %v6912_v32, %v17290_v23  ;;  %v7214_v61 = vrot.slane %v7150_v4, %v17290_v23  ;;  %v8245_v5 = vmul.f32 %v8162_v46, %v5669_v17  ;;  %v17615_v57 = vld [vmem:[#allocation34_spill] sm:$0xff] }
 0x470   : > { %v7563_v60 = vadd.f32 %v7531_v28, %v7325_v38  ;;  %v8509_v13 = vadd.f32 %v8477_v12, %v15193_v15  ;;  %v6818_v59 = vmul.f32 %v6738_v34, %v17609_v11  ;;  %v7452_v25 = vrot.slane %v7388_v3, %v17290_v23  ;;  %v17617_v12 = vld [vmem:[#allocation117_spill] sm:$0xff]  ;;  %v17620_v11 = vld [vmem:[#allocation219_spill] sm:$0xff] }
 0x471   : > { %v7056_v52 = vmul.f32 %v6976_v6, %v17610_v37  ;;  %v7294_v47 = vmul.f32 %v7214_v61, %v17611_v7  ;;  %v7690_v49 = vrot.slane %v7626_v62, %v17290_v23  ;;  %v7928_v32 = vrot.slane %v7864_v10, %v17290_v23  ;;  %v17616_v62 = vld [vmem:[#allocation189_spill] sm:$0xff]  ;;  %v17618_v10 = vld [vmem:[#allocation282_spill] sm:$0xff]  ;;  %v17621_v37 = vld [vmem:[#allocation227_spill] sm:$0xff] }
 0x472   : > { %v7801_v44 = vadd.f32 %v7769_v9, %v7563_v60  ;;  %v15338_v0 = vmul.f32 %v8616_v58, %v8509_v13  ;;  %v8166_v4 = vrot.slane %v8102_v21, %v17290_v23  ;;  %v7532_v15 = vmul.f32 %v7452_v25, %v17612_v43  ;;  %v17619_v21 = vld [vmem:[#allocation151_spill] sm:$0xff] }
 0x473   : > { %v7088_v17 = vadd.f32 %v7056_v52, %v6818_v59  ;;  %v7770_v28 = vmul.f32 %v7690_v49, %v17613_v56  ;;  %v6289_v35 = vadd.f32 %v17614_v63, %v17535_v53  ;;  %v8008_v3 = vmul.f32 %v7928_v32, %v17615_v57  ;;  %v17622_v53 = vld [vmem:[#allocation249_spill] sm:$0xff]  ;;  %v17623_v43 = vld [vmem:[#allocation39_spill] sm:$0xff] }
 0x474   : > { %v8039_v54 = vadd.f32 %v8007_v50, %v7801_v44  ;;  %v8246_v38 = vmul.f32 %v8166_v4, %v5670_v42  ;;  %v5671_v58 = vadd.f32 %v17617_v12, %v17616_v62  ;;  %v6819_v40 = vmul.f32 %v6734_v41, %v17618_v10  ;;  %v17624_v41 = vld [vmem:[#allocation120_spill] sm:$0xff]  ;;  %v17626_v56 = vld [vmem:[#allocation63_spill] sm:$0xff]  ;;  %v17631_v10 = vld [vmem:[#allocation73_spill] sm:$0xff] }
 0x475   : > { %v7326_v2 = vadd.f32 %v7294_v47, %v7088_v17  ;;  %v8478_v9 = vmul.f32 %v8388_v55, %v6289_v35  ;;  %v7057_v60 = vmul.f32 %v6972_v30, %v17619_v21  ;;  %v7295_v59 = vmul.f32 %v7210_v48, %v17620_v11  ;;  %v17625_v30 = vld [vmem:[#allocation283_spill] sm:$0xff] }
 0x476   : > { %v15351_v13 = vadd.f32 %v8245_v5, %v8039_v54  ;;  %v7533_v52 = vmul.f32 %v7448_v19, %v17621_v37  ;;  %v7771_v50 = vmul.f32 %v7686_v14, %v17622_v53  ;;  %v8009_v47 = vmul.f32 %v7924_v27, %v17623_v43  ;;  %v17627_v19 = vld [vmem:[#allocation220_spill] sm:$0xff]  ;;  %v17628_v14 = vld [vmem:[#allocation229_spill] sm:$0xff] }
 0x477   : > { %v7564_v7 = vadd.f32 %v7532_v15, %v7326_v2  ;;  %v15357_v42 = vadd.f32 %v8478_v9, %v15214_v51  ;;  %v7089_v44 = vadd.f32 %v7057_v60, %v6819_v40  ;;  %v8247_v55 = vmul.f32 %v8162_v46, %v5671_v58  ;;  %v17629_v51 = vld [vmem:[#allocation250_spill] sm:$0xff]  ;;  %v17630_v2 = vld [vmem:[#allocation87_spill] sm:$0xff]  ;;  %v17635_v37 = vld [vmem:[#allocation193_spill] sm:$0xff] }
 0x478   : > { %v5672_v17 = vadd.f32 %v17624_v41, %v17616_v62  ;;  %v6820_v5 = vmul.f32 %v6738_v34, %v17625_v30  ;;  %v7058_v63 = vmul.f32 %v6976_v6, %v17626_v56  ;;  %v7296_v54 = vmul.f32 %v7214_v61, %v17627_v19  ;;  %v17636_v53 = vld [vmem:[#allocation109_spill] sm:$0xff] }
 0x479   : > { %v7802_v48 = vadd.f32 %v7770_v28, %v7564_v7  ;;  %v7327_v35 = vadd.f32 %v7295_v59, %v7089_v44  ;;  %v7534_v15 = vmul.f32 %v7452_v25, %v17628_v14  ;;  %v7772_v12 = vmul.f32 %v7690_v49, %v17629_v51  ;;  %v17632_v28 = vld [vmem:[#allocation79_spill] sm:$0xff]  ;;  %v17633_v25 = vld [vmem:[#allocation96_spill] sm:$0xff]  ;;  %v17637_v14 = vld [vmem:[#allocation253_spill] sm:$0xff] }
 0x47a   : > { %v7090_v57 = vadd.f32 %v7058_v63, %v6820_v5  ;;  %v8010_v9 = vmul.f32 %v7928_v32, %v17630_v2  ;;  %v8248_v27 = vmul.f32 %v8166_v4, %v5672_v17  ;;  %v6290_v40 = vadd.f32 %v17631_v10, %v17558_v33  ;;  %v17634_v49 = vld [vmem:[#allocation75_spill] sm:$0xff] }
 0x47b   : > { %v8040_v46 = vadd.f32 %v8008_v3, %v7802_v48  ;;  %v7565_v58 = vadd.f32 %v7533_v52, %v7327_v35  ;;  %v8338_v34 = vcombine.high %v15168_v36, %v15168_v36  ;;  %v15374_v61 = vcombine.high %v17632_v28, %v17632_v28  ;;  %v17643_v10 = vld [vmem:[#allocation119_spill] sm:$0xff] }
 0x47c   : > { %v7328_v6 = vadd.f32 %v7296_v54, %v7090_v57  ;;  %v6291_v21 = vadd.f32 %v17633_v25, %v17558_v33  ;;  %v6292_v32 = vadd.f32 %v17634_v49, %v17580_v20  ;;  %v6293_v52 = vadd.f32 %v17635_v37, %v17580_v20  ;;  %v17645_v25 = vld [vmem:[#allocation232_spill] sm:$0xff] }
 0x47d   : > { %v8278_v4 = vadd.f32 %v8246_v38, %v8040_v46  ;;  %v7803_v3 = vadd.f32 %v7771_v50, %v7565_v58  ;;  %v8392_v60 = vrot.slane %v8338_v34, %v16944_v1  ;;  %v8396_v11 = vrot.slane %v8338_v34, %v17290_v23  ;;  %v17642_v46 = vld [vmem:[#allocation28_spill] sm:$0xff] }
 0x47e   : > { %v7566_v59 = vadd.f32 %v7534_v15, %v7328_v6  ;;  %v8624_v36 = vrot.slane %v15374_v61, %v16944_v1  ;;  %v6294_v7 = vadd.f32 %v17636_v53, %v17597_v22  ;;  %v8340_v17 = vcombine.high %v15268_v26, %v15268_v26  ;;  %v17644_v6 = vld [vmem:[#allocation222_spill] sm:$0xff]  ;;  %v17649_v53 = vld [vmem:[#allocation76_spill] sm:$0xff] }
 0x47f   : > { %v8041_v33 = vadd.f32 %v8009_v47, %v7803_v3  ;;  %v8479_v44 = vmul.f32 %v8392_v60, %v6290_v40  ;;  %v8480_v43 = vmul.f32 %v8396_v11, %v6291_v21  ;;  %v8481_v41 = vmul.f32 %v8392_v60, %v6292_v32  ;;  %v17646_v32 = vld [vmem:[#allocation110_spill] sm:$0xff]  ;;  %v17647_v3 = vld [vmem:[#allocation115_spill] sm:$0xff] }
 0x480   : > { %v7804_v38 = vadd.f32 %v7772_v12, %v7566_v59  ;;  %v8482_v50 = vmul.f32 %v8396_v11, %v6293_v52  ;;  %v8572_v30 = vcombine.high %v15271_v16, %v15271_v16  ;;  %v8400_v35 = vrot.slane %v8340_v17, %v16944_v1  ;;  %v17648_v11 = vld [vmem:[#allocation231_spill] sm:$0xff] }
 0x481   : > { %v8279_v5 = vadd.f32 %v8247_v55, %v8041_v33  ;;  %v8511_v56 = vadd.f32 %v8479_v44, %v15249_v39  ;;  %v8512_v20 = vadd.f32 %v8480_v43, %v15276_v18  ;;  %v8513_v63 = vadd.f32 %v8481_v41, %v15299_v31  ;;  %v17638_v31 = vld [vmem:[#allocation194_spill] sm:$0xff]  ;;  %v17651_v43 = vld [vmem:[#allocation144_spill] sm:$0xff] }
 0x482   : > { %v8042_v48 = vadd.f32 %v8010_v9, %v7804_v38  ;;  %v8514_v47 = vadd.f32 %v8482_v50, %v15320_v29  ;;  %v8632_v19 = vrot.slane %v8572_v30, %v16944_v1  ;;  %v6295_v55 = vadd.f32 %v17637_v14, %v17597_v22  ;;  %v17639_v29 = vld [vmem:[#allocation224_spill] sm:$0xff]  ;;  %v17640_v1 = vld [vmem:[#allocation118_spill] sm:$0xff]  ;;  %v17641_v9 = vld [vmem:[#allocation121_spill] sm:$0xff] }
 0x483   : > { %v15398_v54 = vmul.f32 %v8624_v36, %v8511_v56  ;;  %v15400_v26 = vmul.f32 %v8624_v36, %v8513_v63  ;;  %v8404_v39 = vrot.slane %v8340_v17, %v17290_v23  ;;  %v8483_v18 = vmul.f32 %v8400_v35, %v6294_v7  ;;  %v17652_v41 = vld [vmem:[#allocation234_spill] sm:$0xff]  ;;  %v17654_v63 = vld [vmem:[#allocation145_spill] sm:$0xff]  ;;  %v17656_v14 = vld [vmem:[#allocation195_spill] sm:$0xff] }
 0x484   : > { %v8280_v15 = vadd.f32 %v8248_v27, %v8042_v48  ;;  %v6296_v57 = vadd.f32 %v17638_v31, %v17616_v62  ;;  %v6297_v51 = vadd.f32 %v17639_v29, %v17616_v62  ;;  %v8580_v2 = vrot.slane %v17640_v1, %v17290_v23  ;;  %v17655_v48 = vld [vmem:[#allocation51_spill] sm:$0xff]  ;;  %v17661_v1 = vld [vmem:[#allocation197_spill] sm:$0xff] }
 0x485   : > { %v8484_v12 = vmul.f32 %v8404_v39, %v6295_v55  ;;  %v8685_v58 = vpack.c.bf16 %v17642_v46, %v17641_v9  ;;  %v8588_v22 = vrot.slane %v17643_v10, %v17290_v23  ;;  %v8515_v40 = vadd.f32 %v8483_v18, %v15351_v13  ;;  %v17650_v13 = vld [vmem:[#allocation254_spill] sm:$0xff]  ;;  %v17658_v18 = vld [vmem:[#allocation196_spill] sm:$0xff] }
 0x486   : > { %v8485_v27 = vmul.f32 %v8400_v35, %v6296_v57  ;;  %v8486_v34 = vmul.f32 %v8404_v39, %v6297_v51  ;;  %v8687_v21 = vpack.c.bf16 %v17645_v25, %v17644_v6  ;;  %v8654_v62 = vmul.f32 %v8580_v2, %v17646_v32  ;;  %v17657_v39 = vld [vmem:[#allocation255_spill] sm:$0xff]  ;;  %v17659_v57 = vld [vmem:[#allocation32_spill] sm:$0xff] }
 0x487   : > { %v8516_v49 = vadd.f32 %v8484_v12, %v8278_v4  ;;  %v8656_v60 = vmul.f32 %v8580_v2, %v17647_v3  ;;  %v8658_v59 = vmul.f32 %v8588_v22, %v17648_v11  ;;  %v15421_v36 = vmul.f32 %v8632_v19, %v8515_v40  ;;  %v17653_v4 = vld [vmem:[#allocation77_spill] sm:$0xff]  ;;  %v17660_v51 = vld [vmem:[#allocation148_spill] sm:$0xff]  ;;  %v9850_v11 = vld [vmem:[%s15659_s6 + $0x58] sm:$0xff] }
 0x488   : > { %v8517_v37 = vadd.f32 %v8485_v27, %v8279_v5  ;;  %v8518_v52 = vadd.f32 %v8486_v34, %v8280_v15  ;;  %v8660_v7 = vmul.f32 %v8588_v22, %v17649_v53  ;;  %v8596_v44 = vrot.slane %v17650_v13, %v17290_v23  ;;  %v17662_v2 = vld [vmem:[#allocation228_spill] sm:$0xff]  ;;  %v9855_v13 = vld [vmem:[%s15659_s6 + $0x70] sm:$0xff] }
 0x489   : > { %v8686_v33 = vpack.c.bf16 %v8656_v60, %v8654_v62  ;;  %v8689_v38 = vpack.c.bf16 %v17652_v41, %v17651_v43  ;;  %v8604_v50 = vrot.slane %v17653_v4, %v17290_v23  ;;  %v8691_v35 = vpack.c.bf16 %v17655_v48, %v17654_v63  ;;  %v9849_v60 = vld [vmem:[%s15659_s6 + $0x40] sm:$0xff]  ;;  %v9759_v43 = vld [vmem:[%s15658_s5 + $0x18] sm:$0xff]   ;;  %v9762_v4 = vld [vmem:[%s15658_s5 + $0x30] sm:$0xff]  }
 0x48a   : > { %v15430_v17 = vmul.f32 %v8632_v19, %v8517_v37  ;;  %v8688_v56 = vpack.c.bf16 %v8660_v7, %v8658_v59  ;;  %v8612_v5 = vrot.slane %v17632_v28, %v17290_v23  ;;  %v8662_v55 = vmul.f32 %v8596_v44, %v17656_v14  ;;  %v9756_v59 = vld [vmem:[%s15658_s5] sm:$0xff]   ;;  %v9852_v37 = vld [vmem:[%s15659_s6 + $0x68] sm:$0xff]  ;;  %v9854_v7 = vld [vmem:[%s15659_s6 + $0x78] sm:$0xff] }
 0x48b   : > { %8829 = vmatprep.subr.bf16.mxu1 %v8686_v33  ;;  %v8664_v15 = vmul.f32 %v8596_v44, %v17657_v39  ;;  %v8666_v31 = vmul.f32 %v8604_v50, %v17658_v18  ;;  %v8668_v29 = vmul.f32 %v8604_v50, %v17659_v57  ;;  %v8693_v9 = vpack.c.bf16 %v17662_v2, %v17661_v1  ;;  %v9757_v33 = vld [vmem:[%s15658_s5 + $0x8] sm:$0xff]   ;;  %v9758_v44 = vld [vmem:[%s15658_s5 + $0x10] sm:$0xff]   ;;  %v9760_v41 = vld [vmem:[%s15658_s5 + $0x20] sm:$0xff]  }
 0x48c   : > { %8830 = vmatpush1.bf16.msra.mxu1 %v8685_v58  ;;  %v8670_v19 = vmul.f32 %v8612_v5, %v17660_v51  ;;  %v8672_v12 = vmul.f32 %v8612_v5, %v15254_v45  ;;  %v8620_v28 = vrot.slane %v15271_v16, %v17290_v23  ;;  %v8695_v22 = vpack.c.bf16 %v15338_v0, %v15305_v8  ;;  %v9763_v50 = vld [vmem:[%s15658_s5 + $0x38] sm:$0xff]  }
 0x48d   : > { %8831 = vmatprep.subr.bf16.mxu1 %v8688_v56  ;;  %v8690_v46 = vpack.c.bf16 %v8664_v15, %v8662_v55  ;;  %v8692_v10 = vpack.c.bf16 %v8668_v29, %v8666_v31  ;;  %v8628_v40 = vrot.slane %v15374_v61, %v17290_v23  ;;  %v8697_v34 = vpack.c.bf16 %v15400_v26, %v15398_v54  ;;  %v9845_v54 = vld [vmem:[%s15659_s6 + $0x20] sm:$0xff]  ;;  %v9846_v26 = vld [vmem:[%s15659_s6 + $0x38] sm:$0xff] }
 0x48e   : > { %v8694_v58 = vpack.c.bf16 %v8672_v12, %v8670_v19  ;;  %v8674_v27 = vmul.f32 %v8620_v28, %v15302_v24  ;;  %v8676_v45 = vmul.f32 %v8620_v28, %v15357_v42  ;;  %v8636_v16 = vrot.slane %v8572_v30, %v17290_v23  ;;  %v9840_v24 = vld [vmem:[%s15659_s6] sm:$0xff]  ;;  %v9841_v23 = vld [vmem:[%s15659_s6 + $0x8] sm:$0xff]  ;;  %v9842_v30 = vld [vmem:[%s15659_s6 + $0x18] sm:$0xff] }
 0x48f   : > { %v8678_v6 = vmul.f32 %v8628_v40, %v8512_v20  ;;  %v8680_v25 = vmul.f32 %v8628_v40, %v8514_v47  ;;  %v8699_v32 = vpack.c.bf16 %v15430_v17, %v15421_v36  ;;  %v9884_v3 = vmov 3   ;;  %v9843_v20 = vld [vmem:[%s15659_s6 + $0x10] sm:$0xff]  ;;  %v9844_v47 = vld [vmem:[%s15659_s6 + $0x28] sm:$0xff] }
 0x490   : > { %8832 = vmatpush1.bf16.msra.mxu1 %v8687_v21  ;;  %v8696_v8 = vpack.c.bf16 %v8676_v45, %v8674_v27  ;;  %v8682_v61 = vmul.f32 %v8636_v16, %v8516_v49  ;;  %v8684_v62 = vmul.f32 %v8636_v16, %v8518_v52  ;;  %9514 = vset.pattern.permute.xlu0 %v9884_v3  ;;  %v9847_v21 = vld [vmem:[%s15659_s6 + $0x30] sm:$0xff]  ;;  %v9848_v49 = vld [vmem:[%s15659_s6 + $0x48] sm:$0xff]  ;;  %v9853_v52 = vld [vmem:[%s15659_s6 + $0x60] sm:$0xff]  ;;  %v17663_v53 = vmov 0  }
 0x491   : > { %8833 = vmatprep.subr.bf16.mxu1 %v8690_v46  ;;  %v8698_v0 = vpack.c.bf16 %v8680_v25, %v8678_v6  ;;  %9515 = vset.pattern.permute.xlu1 %v9884_v3  ;;  %v9851_v36 = vld [vmem:[%s15659_s6 + $0x50] sm:$0xff] }
 0x492   : > { %8718 = vperm.xlu0 %9514, %v9840_v24   ;;  %v8700_v42 = vpack.c.bf16 %v8684_v62, %v8682_v61  ;;  %8722 = vperm.xlu1 %9515, %v9841_v23  }
 0x494   : > { %8834 = vmatpush1.bf16.msra.mxu1 %v8689_v38  ;;  %v9761_v38 = vld [vmem:[%s15658_s5 + $0x28] sm:$0xff]  }
 0x495   : > { %8835 = vmatprep.subr.bf16.mxu1 %v8692_v10 }
 0x496   : > { %8730 = vperm.xlu0 %9514, %v9842_v30   ;;  %8726 = vperm.xlu1 %9515, %v9843_v20  }
 0x498   : > { %8836 = vmatpush1.bf16.msra.mxu1 %v8691_v35 }
 0x499   : > { %8837 = vmatprep.subr.bf16.mxu1 %v8694_v58 }
 0x49a   : > { %8738 = vperm.xlu0 %9514, %v9844_v47   ;;  %8734 = vperm.xlu1 %9515, %v9845_v54  }
 0x49c   : > { %8838 = vmatpush1.bf16.msra.mxu1 %v8693_v9 }
 0x49d   : > { %8839 = vmatprep.subr.bf16.mxu1 %v8696_v8 }
 0x49e   : > { %8746 = vperm.xlu0 %9514, %v9846_v26   ;;  %8742 = vperm.xlu1 %9515, %v9847_v21  }
 0x4a0   : > { %8840 = vmatpush1.bf16.msra.mxu1 %v8695_v22 }
 0x4a1   : > { %8841 = vmatprep.subr.bf16.mxu1 %v8698_v0 }
 0x4a2   : > { %8754 = vperm.xlu0 %9514, %v9848_v49   ;;  %8750 = vperm.xlu1 %9515, %v9849_v60  }
 0x4a4   : > { %8842 = vmatpush1.bf16.msra.mxu1 %v8697_v34 }
 0x4a5   : > { %8843 = vmatprep.subr.bf16.mxu1 %v8700_v42 }
 0x4a6   : > { %8762 = vperm.xlu0 %9514, %v9850_v11   ;;  %8758 = vperm.xlu1 %9515, %v9851_v36  }
 0x4a8   : > { %8844 = vmatpush1.bf16.msra.mxu1 %v8699_v32 }
 0x4aa   : > { %8770 = vperm.xlu0 %9514, %v9852_v37   ;;  %8766 = vperm.xlu1 %9515, %v9853_v52  }
 0x4ab   : > { %8862 = vmatmul.mubr.bf16.vlgmr.msra.gmra.mrb[0].mxu1 %v9756_v59 }
 0x4ac   : > { %8871 = vmatprep.mubr.bf16.mxu1 %v17663_v53 }
 0x4ae   : > { %8778 = vperm.xlu0 %9514, %v9854_v7   ;;  %8774 = vperm.xlu1 %9515, %v9855_v13  }
 0x4b3   : > { %8872 = vmatmul.mubr.bf16.gmra.mrb[4].mxu1 %v9757_v33 }
 0x4b4   : > { %8881 = vmatprep.mubr.bf16.mxu1 %v17663_v53 }
 0x4bb   : > { %8882 = vmatmul.mubr.bf16.gmra.mrb[8].mxu1 %v9758_v44 }
 0x4bc   : > { %8891 = vmatprep.mubr.bf16.mxu1 %v17663_v53 }
 0x4c3   : > { %8892 = vmatmul.mubr.bf16.gmra.mrb[12].mxu1 %v9759_v43 }
 0x4c4   : > { %8901 = vmatprep.mubr.bf16.mxu1 %v17663_v53 }
 0x4cb   : > { %8902 = vmatmul.mubr.bf16.gmra.mrb[16].mxu1 %v9760_v41 }
 0x4cc   : > { %8911 = vmatprep.mubr.bf16.mxu1 %v17663_v53 }
 0x4d3   : > { %8912 = vmatmul.mubr.bf16.gmra.mrb[20].mxu1 %v9761_v38 }
 0x4d4   : > { %8921 = vmatprep.mubr.bf16.mxu1 %v17663_v53 }
 0x4db   : > { %8922 = vmatmul.mubr.bf16.gmra.mrb[24].mxu1 %v9762_v4 }
 0x4dc   : > { %8931 = vmatprep.mubr.bf16.mxu1 %v17663_v53 }
 0x4e3   : > { %8932 = vmatmul.mubr.bf16.gmra.mrb[28].mxu1 %v9763_v50 }
 0x511   : > { %v8719_v17 = vpop.permute.xlu0 %8718  ;;  %v8723_v63 = vpop.permute.xlu1 %8722 }
 0x515   : > { %v8727_v18 = vpop.permute.xlu1 %8726  ;;  %v8731_v19 = vpop.permute.xlu0 %8730 }
 0x519   : > { %v8735_v46 = vpop.permute.xlu1 %8734  ;;  %v8739_v58 = vpop.permute.xlu0 %8738 }
 0x51d   : > { %v8743_v16 = vpop.permute.xlu1 %8742  ;;  %v8747_v61 = vpop.permute.xlu0 %8746 }
 0x521   : > { %v8751_v30 = vpop.permute.xlu1 %8750  ;;  %v8755_v26 = vpop.permute.xlu0 %8754 }
 0x525   : > { %v8759_v36 = vpop.permute.xlu1 %8758  ;;  %v8763_v7 = vpop.permute.xlu0 %8762 }
 0x529   : > { %v8767_v38 = vpop.permute.xlu1 %8766 }
 0x57e   : > { %v8863_v56 = vpop.f32.mrb[0].mxu1 }
 0x57f   : > { %v8865_v48 = vpop.f32.mrb[1].mxu1  ;;  %v8864_v35 = vadd.f32 %v8863_v56, %v8719_v17  ;;  %v8771_v56 = vpop.permute.xlu0 %8770 }
 0x580   : > { %v8867_v5 = vpop.f32.mrb[2].mxu1  ;;  %v8866_v14 = vadd.f32 %v8865_v48, %v8719_v17 }
 0x581   : > { %8942 = vst [vmem:[%s15537_s18] sm:$0xff] %v8864_v35  ;;  %v8868_v55 = vadd.f32 %v8867_v5, %v8723_v63  ;;  %v8869_v39 = vpop.f32.mrb[3].mxu1 }
 0x582   : > { %8943 = vst [vmem:[%s15537_s18 + $0x8] sm:$0xff] %v8866_v14  ;;  %v8870_v15 = vadd.f32 %v8869_v39, %v8723_v63 }
 0x583   : > { %8944 = vst [vmem:[%s15537_s18 + $0x10] sm:$0xff] %v8868_v55  ;;  %v8775_v55 = vpop.permute.xlu1 %8774 }
 0x584   : > { %8945 = vst [vmem:[%s15537_s18 + $0x18] sm:$0xff] %v8870_v15 }
 0x586   : > { %v8873_v31 = vpop.f32.mrb[4].mxu1 }
 0x587   : > { %v8875_v57 = vpop.f32.mrb[5].mxu1  ;;  %v8874_v29 = vadd.f32 %v8873_v31, %v8727_v18  ;;  %v8779_v31 = vpop.permute.xlu0 %8778 }
 0x588   : > { %v8877_v51 = vpop.f32.mrb[6].mxu1  ;;  %v8876_v12 = vadd.f32 %v8875_v57, %v8727_v18 }
 0x589   : > { %v8878_v1 = vadd.f32 %v8877_v51, %v8731_v19  ;;  %8946 = vst [vmem:[%s15537_s18 + $0x20] sm:$0xff] %v8874_v29  ;;  %v8879_v2 = vpop.f32.mrb[7].mxu1 }
 0x58a   : > { %8947 = vst [vmem:[%s15537_s18 + $0x28] sm:$0xff] %v8876_v12  ;;  %v8880_v9 = vadd.f32 %v8879_v2, %v8731_v19  ;;  %v8996_v12 = vld [vmem:[%s15537_s18] sm:$0xff] (%p9960_p5)  ;;  %v9000_v2 = vld [vmem:[%s15537_s18 + $0x10] sm:$0xff] (%p9960_p5) }
 0x58b   : > { %8948 = vst [vmem:[%s15537_s18 + $0x30] sm:$0xff] %v8878_v1  ;;  %v8998_v1 = vld [vmem:[%s15537_s18 + $0x8] sm:$0xff] (%p9960_p5)  ;;  %8997 = vst [vmem:[%s15580_s24] sm:$0xff] (%p9960_p5), %v8996_v12 }
 0x58c   : > { %8949 = vst [vmem:[%s15537_s18 + $0x38] sm:$0xff] %v8880_v9  ;;  %v9002_v9 = vld [vmem:[%s15537_s18 + $0x18] sm:$0xff] (%p9960_p5)  ;;  %8999 = vst [vmem:[%s15580_s24 + $0x8] sm:$0xff] (%p9960_p5), %v8998_v1 }
 0x58d   : > { %9001 = vst [vmem:[%s15580_s24 + $0x20] sm:$0xff] (%p9960_p5), %v9000_v2  ;;  %9003 = vst [vmem:[%s15580_s24 + $0x28] sm:$0xff] (%p9960_p5), %v9002_v9 }
 0x58e   : > { %v8883_v28 = vpop.f32.mrb[8].mxu1 }
 0x58f   : > { %v8885_v10 = vpop.f32.mrb[9].mxu1  ;;  %v8884_v22 = vadd.f32 %v8883_v28, %v8735_v46 }
 0x590   : > { %v8887_v40 = vpop.f32.mrb[10].mxu1  ;;  %v8886_v27 = vadd.f32 %v8885_v10, %v8735_v46  ;;  %v9004_v28 = vld [vmem:[%s15537_s18 + $0x20] sm:$0xff] (%p9960_p5) }
 0x591   : > { %v8888_v45 = vadd.f32 %v8887_v40, %v8739_v58  ;;  %8950 = vst [vmem:[%s15537_s18 + $0x40] sm:$0xff] %v8884_v22  ;;  %v8889_v34 = vpop.f32.mrb[11].mxu1  ;;  %v9006_v46 = vld [vmem:[%s15537_s18 + $0x28] sm:$0xff] (%p9960_p5)  ;;  %9005 = vst [vmem:[%s15580_s24 + $0x40] sm:$0xff] (%p9960_p5), %v9004_v28 }
 0x592   : > { %8951 = vst [vmem:[%s15537_s18 + $0x48] sm:$0xff] %v8886_v27  ;;  %v8890_v6 = vadd.f32 %v8889_v34, %v8739_v58  ;;  %9007 = vst [vmem:[%s15580_s24 + $0x48] sm:$0xff] (%p9960_p5), %v9006_v46  ;;  %v9008_v10 = vld [vmem:[%s15537_s18 + $0x30] sm:$0xff] (%p9960_p5) }
 0x593   : > { %8952 = vst [vmem:[%s15537_s18 + $0x50] sm:$0xff] %v8888_v45  ;;  %v9010_v22 = vld [vmem:[%s15537_s18 + $0x38] sm:$0xff] (%p9960_p5)  ;;  %9009 = vst [vmem:[%s15580_s24 + $0x60] sm:$0xff] (%p9960_p5), %v9008_v10 }
 0x594   : > { %8953 = vst [vmem:[%s15537_s18 + $0x58] sm:$0xff] %v8890_v6  ;;  %9011 = vst [vmem:[%s15580_s24 + $0x68] sm:$0xff] (%p9960_p5), %v9010_v22 }
 0x596   : > { %v8893_v25 = vpop.f32.mrb[12].mxu1 }
 0x597   : > { %v8895_v32 = vpop.f32.mrb[13].mxu1  ;;  %v8894_v8 = vadd.f32 %v8893_v25, %v8743_v16 }
 0x598   : > { %v8897_v0 = vpop.f32.mrb[14].mxu1  ;;  %v8896_v62 = vadd.f32 %v8895_v32, %v8743_v16  ;;  %v9012_v40 = vld [vmem:[%s15537_s18 + $0x40] sm:$0xff] (%p9960_p5) }
 0x599   : > { %v8898_v3 = vadd.f32 %v8897_v0, %v8747_v61  ;;  %8954 = vst [vmem:[%s15537_s18 + $0x60] sm:$0xff] %v8894_v8  ;;  %v8899_v24 = vpop.f32.mrb[15].mxu1  ;;  %9013 = vst [vmem:[%s15580_s24 + $0x80] sm:$0xff] (%p9960_p5), %v9012_v40  ;;  %v9014_v58 = vld [vmem:[%s15537_s18 + $0x48] sm:$0xff] (%p9960_p5) }
 0x59a   : > { %8955 = vst [vmem:[%s15537_s18 + $0x68] sm:$0xff] %v8896_v62  ;;  %v8900_v42 = vadd.f32 %v8899_v24, %v8747_v61  ;;  %v9016_v27 = vld [vmem:[%s15537_s18 + $0x50] sm:$0xff] (%p9960_p5)  ;;  %9015 = vst [vmem:[%s15580_s24 + $0x88] sm:$0xff] (%p9960_p5), %v9014_v58 }
 0x59b   : > { %8956 = vst [vmem:[%s15537_s18 + $0x70] sm:$0xff] %v8898_v3  ;;  %v9018_v45 = vld [vmem:[%s15537_s18 + $0x58] sm:$0xff] (%p9960_p5)  ;;  %9017 = vst [vmem:[%s15580_s24 + $0xa0] sm:$0xff] (%p9960_p5), %v9016_v27 }
 0x59c   : > { %8957 = vst [vmem:[%s15537_s18 + $0x78] sm:$0xff] %v8900_v42  ;;  %9019 = vst [vmem:[%s15580_s24 + $0xa8] sm:$0xff] (%p9960_p5), %v9018_v45 }
 0x59e   : > { %v8903_v23 = vpop.f32.mrb[16].mxu1 }
 0x59f   : > { %v8905_v20 = vpop.f32.mrb[17].mxu1  ;;  %v8904_v47 = vadd.f32 %v8903_v23, %v8751_v30 }
 0x5a0   : > { %v8907_v54 = vpop.f32.mrb[18].mxu1  ;;  %v8906_v21 = vadd.f32 %v8905_v20, %v8751_v30  ;;  %v9020_v34 = vld [vmem:[%s15537_s18 + $0x60] sm:$0xff] (%p9960_p5) }
 0x5a1   : > { %v8908_v49 = vadd.f32 %v8907_v54, %v8755_v26  ;;  %8958 = vst [vmem:[%s15537_s18 + $0x80] sm:$0xff] %v8904_v47  ;;  %v8909_v60 = vpop.f32.mrb[19].mxu1  ;;  %v9022_v6 = vld [vmem:[%s15537_s18 + $0x68] sm:$0xff] (%p9960_p5)  ;;  %9021 = vst [vmem:[%s15580_s24 + $0xc0] sm:$0xff] (%p9960_p5), %v9020_v34 }
 0x5a2   : > { %8959 = vst [vmem:[%s15537_s18 + $0x88] sm:$0xff] %v8906_v21  ;;  %v8910_v11 = vadd.f32 %v8909_v60, %v8755_v26  ;;  %v9024_v25 = vld [vmem:[%s15537_s18 + $0x70] sm:$0xff] (%p9960_p5)  ;;  %9023 = vst [vmem:[%s15580_s24 + $0xc8] sm:$0xff] (%p9960_p5), %v9022_v6 }
 0x5a3   : > { %8960 = vst [vmem:[%s15537_s18 + $0x90] sm:$0xff] %v8908_v49  ;;  %9025 = vst [vmem:[%s15580_s24 + $0xe0] sm:$0xff] (%p9960_p5), %v9024_v25  ;;  %v9026_v16 = vld [vmem:[%s15537_s18 + $0x78] sm:$0xff] (%p9960_p5) }
 0x5a4   : > { %8961 = vst [vmem:[%s15537_s18 + $0x98] sm:$0xff] %v8910_v11  ;;  %9027 = vst [vmem:[%s15580_s24 + $0xe8] sm:$0xff] (%p9960_p5), %v9026_v16 }
 0x5a6   : > { %v8913_v59 = vpop.f32.mrb[20].mxu1 }
 0x5a7   : > { %v8915_v37 = vpop.f32.mrb[21].mxu1  ;;  %v8914_v52 = vadd.f32 %v8913_v59, %v8759_v36 }
 0x5a8   : > { %v8917_v53 = vpop.f32.mrb[22].mxu1  ;;  %v8916_v33 = vadd.f32 %v8915_v37, %v8759_v36  ;;  %v9028_v32 = vld [vmem:[%s15537_s18 + $0x80] sm:$0xff] (%p9960_p5) }
 0x5a9   : > { %v8918_v13 = vadd.f32 %v8917_v53, %v8763_v7  ;;  %8962 = vst [vmem:[%s15537_s18 + $0xa0] sm:$0xff] %v8914_v52  ;;  %v8919_v44 = vpop.f32.mrb[23].mxu1  ;;  %v9030_v8 = vld [vmem:[%s15537_s18 + $0x88] sm:$0xff] (%p9960_p5)  ;;  %9029 = vst [vmem:[%s15580_s24 + $0x100] sm:$0xff] (%p9960_p5), %v9028_v32 }
 0x5aa   : > { %8963 = vst [vmem:[%s15537_s18 + $0xa8] sm:$0xff] %v8916_v33  ;;  %v8920_v43 = vadd.f32 %v8919_v44, %v8763_v7  ;;  %9031 = vst [vmem:[%s15580_s24 + $0x108] sm:$0xff] (%p9960_p5), %v9030_v8  ;;  %v9032_v0 = vld [vmem:[%s15537_s18 + $0x90] sm:$0xff] (%p9960_p5) }
 0x5ab   : > { %8964 = vst [vmem:[%s15537_s18 + $0xb0] sm:$0xff] %v8918_v13  ;;  %v9034_v61 = vld [vmem:[%s15537_s18 + $0x98] sm:$0xff] (%p9960_p5)  ;;  %9033 = vst [vmem:[%s15580_s24 + $0x120] sm:$0xff] (%p9960_p5), %v9032_v0 }
 0x5ac   : > { %8965 = vst [vmem:[%s15537_s18 + $0xb8] sm:$0xff] %v8920_v43  ;;  %9035 = vst [vmem:[%s15580_s24 + $0x128] sm:$0xff] (%p9960_p5), %v9034_v61 }
 0x5ae   : > { %v8923_v41 = vpop.f32.mrb[24].mxu1 }
 0x5af   : > { %v8925_v4 = vpop.f32.mrb[25].mxu1  ;;  %v8924_v50 = vadd.f32 %v8923_v41, %v8767_v38 }
 0x5b0   : > { %v8927_v17 = vpop.f32.mrb[26].mxu1  ;;  %v8926_v63 = vadd.f32 %v8925_v4, %v8767_v38  ;;  %v9036_v62 = vld [vmem:[%s15537_s18 + $0xa0] sm:$0xff] (%p9960_p5) }
 0x5b1   : > { %v8928_v48 = vadd.f32 %v8927_v17, %v8771_v56  ;;  %8966 = vst [vmem:[%s15537_s18 + $0xc0] sm:$0xff] %v8924_v50  ;;  %v8929_v35 = vpop.f32.mrb[27].mxu1  ;;  %9037 = vst [vmem:[%s15580_s24 + $0x140] sm:$0xff] (%p9960_p5), %v9036_v62  ;;  %v9038_v3 = vld [vmem:[%s15537_s18 + $0xa8] sm:$0xff] (%p9960_p5) }
 0x5b2   : > { %8967 = vst [vmem:[%s15537_s18 + $0xc8] sm:$0xff] %v8926_v63  ;;  %v8930_v5 = vadd.f32 %v8929_v35, %v8771_v56  ;;  %v9040_v24 = vld [vmem:[%s15537_s18 + $0xb0] sm:$0xff] (%p9960_p5)  ;;  %9039 = vst [vmem:[%s15580_s24 + $0x148] sm:$0xff] (%p9960_p5), %v9038_v3 }
 0x5b3   : > { %8968 = vst [vmem:[%s15537_s18 + $0xd0] sm:$0xff] %v8928_v48  ;;  %v9042_v42 = vld [vmem:[%s15537_s18 + $0xb8] sm:$0xff] (%p9960_p5)  ;;  %9041 = vst [vmem:[%s15580_s24 + $0x160] sm:$0xff] (%p9960_p5), %v9040_v24 }
 0x5b4   : > { %8969 = vst [vmem:[%s15537_s18 + $0xd8] sm:$0xff] %v8930_v5  ;;  %9043 = vst [vmem:[%s15580_s24 + $0x168] sm:$0xff] (%p9960_p5), %v9042_v42 }
 0x5b6   : > { %v8933_v14 = vpop.f32.mrb[28].mxu1  ;;  %8980 = sbr.rel (!%p9960_p5) target bundleno = 1477 (0x5c5), region = 128 }
 0x5b7   : > { %v8935_v39 = vpop.f32.mrb[29].mxu1  ;;  %v8934_v15 = vadd.f32 %v8933_v14, %v8775_v55 }
 0x5b8   : > { %v8937_v18 = vpop.f32.mrb[30].mxu1  ;;  %v8936_v57 = vadd.f32 %v8935_v39, %v8775_v55  ;;  %v9044_v23 = vld [vmem:[%s15537_s18 + $0xc0] sm:$0xff] (%p9960_p5) }
 0x5b9   : > { %v8938_v29 = vadd.f32 %v8937_v18, %v8779_v31  ;;  %8970 = vst [vmem:[%s15537_s18 + $0xe0] sm:$0xff] %v8934_v15  ;;  %v8939_v51 = vpop.f32.mrb[31].mxu1  ;;  %v9046_v30 = vld [vmem:[%s15537_s18 + $0xc8] sm:$0xff] (%p9960_p5)  ;;  %9045 = vst [vmem:[%s15580_s24 + $0x180] sm:$0xff] (%p9960_p5), %v9044_v23 }
 0x5ba   : > { %8971 = vst [vmem:[%s15537_s18 + $0xe8] sm:$0xff] %v8936_v57  ;;  %v8940_v19 = vadd.f32 %v8939_v51, %v8779_v31  ;;  %v9048_v20 = vld [vmem:[%s15537_s18 + $0xd0] sm:$0xff] (%p9960_p5)  ;;  %9047 = vst [vmem:[%s15580_s24 + $0x188] sm:$0xff] (%p9960_p5), %v9046_v30 }
 0x5bb   : > { %8972 = vst [vmem:[%s15537_s18 + $0xf0] sm:$0xff] %v8938_v29  ;;  %9049 = vst [vmem:[%s15580_s24 + $0x1a0] sm:$0xff] (%p9960_p5), %v9048_v20  ;;  %v9050_v47 = vld [vmem:[%s15537_s18 + $0xd8] sm:$0xff] (%p9960_p5) }
 0x5bc   : > { %8973 = vst [vmem:[%s15537_s18 + $0xf8] sm:$0xff] %v8940_v19  ;;  %9051 = vst [vmem:[%s15580_s24 + $0x1a8] sm:$0xff] (%p9960_p5), %v9050_v47 }
 0x5c0   : > { %v9052_v54 = vld [vmem:[%s15537_s18 + $0xe0] sm:$0xff] }
 0x5c1   : > { %v9054_v26 = vld [vmem:[%s15537_s18 + $0xe8] sm:$0xff]  ;;  %9053 = vst [vmem:[%s15580_s24 + $0x1c0] sm:$0xff] %v9052_v54 }
 0x5c2   : > { %9055 = vst [vmem:[%s15580_s24 + $0x1c8] sm:$0xff] %v9054_v26  ;;  %v9056_v21 = vld [vmem:[%s15537_s18 + $0xf0] sm:$0xff] }
 0x5c3   : > { %v9058_v49 = vld [vmem:[%s15537_s18 + $0xf8] sm:$0xff]  ;;  %9057 = vst [vmem:[%s15580_s24 + $0x1e0] sm:$0xff] %v9056_v21 }
 0x5c4   : > { %9059 = vst [vmem:[%s15580_s24 + $0x1e8] sm:$0xff] %v9058_v49 }
 0x5c5 PF: > { %p14_p11 = scmp.ge.s32.totalorder %s9944_s28, 4   ;;  %s17664_s24 = smov %s9874_s25 }
 0x5c6   : > { %s17665_s25 = smov %s9954_s8  ;;  %s17666_s26 = smov %s9944_s28 }
 0x5c7   :  { %16 = sbr.rel (!%p14_p11) target bundleno = 2 (0x2), region = 221 }

</bundles_post_ra>
